<compile_context>
chip_gen: v5e
topology: v5e:2x2
jax: 0.10.0
libtpu: 0.0.40
codegen_flags: <defaults>
</compile_context>

<pallas_src>
import functools

import jax
import jax.numpy as jnp
from jax import lax
from jax.experimental import pallas as pl
from jax.experimental.pallas import tpu as pltpu

PAD = 0  # seq2seq PAD token id; used as ignore_index


def _loss_kernel(ignore_index, x_ref, w_ref, tgt_ref,
                 loss_ref, acc_ref,
                 m_sc, l_sc, tlogit_sc):
    j = pl.program_id(1)          # vocab-tile (reduction) axis
    nj = pl.num_programs(1)

    @pl.when(j == 0)
    def _():
        m_sc[...] = jnp.full_like(m_sc, -jnp.inf)
        l_sc[...] = jnp.zeros_like(l_sc)
        tlogit_sc[...] = jnp.zeros_like(tlogit_sc)

    # inner module: bf16 linear projection to this vocab tile (MXU, f32 acc).
    # Bias is folded into W via a ones column of x, so no per-tile VPU add.
    logits = jnp.dot(x_ref[...], w_ref[...],
                     preferred_element_type=jnp.float32)

    tv = logits.shape[-1]
    tgt = tgt_ref[...]                                       # (tm, 1) i32
    tgt_local = tgt - j * tv                                 # (tm, 1) cheap shift
    col_local = lax.broadcasted_iota(jnp.int32, logits.shape, 1)  # constant iota

    # gather logit[target]: exactly one vocab tile contains the target column
    tlogit_sc[...] = tlogit_sc[...] + jnp.sum(
        jnp.where(col_local == tgt_local, logits, 0.0), axis=-1, keepdims=True)

    # online log-sum-exp (running max also serves the accuracy check at finalize)
    blk_max = jnp.max(logits, axis=-1, keepdims=True)        # (tm, 1)
    m_prev = m_sc[...]
    m_new = jnp.maximum(m_prev, blk_max)
    l_sc[...] = (l_sc[...] * jnp.exp(m_prev - m_new)
                 + jnp.sum(jnp.exp(logits - m_new), axis=-1, keepdims=True))
    m_sc[...] = m_new

    @pl.when(j == nj - 1)
    def _():
        lse = m_sc[...] + jnp.log(l_sc[...])                  # (tm, 1)
        tgt_lp = tlogit_sc[...] - lse                         # log p[target]
        valid = tgt != ignore_index
        nll = -jnp.sum(jnp.where(valid, tgt_lp, 0.0), keepdims=True)   # (1, 1)
        # accuracy: target attains the global max.  Matches argmax==target
        # except on exact f32 ties (reference counts first occurrence only).
        correct = jnp.logical_and(tlogit_sc[...] == m_sc[...], valid)
        acc = jnp.sum(correct.astype(jnp.int32), keepdims=True)        # (1, 1)
        # criterion == NLLLoss(ignore_index, reduction='sum') -> loss == nll
        loss_ref[...] = nll.reshape(1, 1, 1)
        acc_ref[...] = acc.reshape(1, 1, 1)


def _vmem_limit_bytes():
    """Per-generation VMEM request (conservative v7x fallback)."""
    cap = 64 * 1024 * 1024                      # v7x per-TC physical (tightest)
    try:
        info_cap = int(pltpu.get_tpu_info().vmem_capacity_bytes)
        if info_cap > 0:
            cap = info_cap
    except Exception:
        pass
    return max(48 * 1024 * 1024, min(cap - 16 * 1024 * 1024, 100 * 1024 * 1024))


def _pick_v_tile(V, H_pad, row_tile, tile_budget_bytes):
    """Largest vocab tile (dividing V) whose working set fits the VMEM budget."""
    # per-v_tile bytes: double-buffered bf16 W tile + ~2x f32 (row_tile, v_tile)
    # intermediates (logits + exp).  Fixed: double-buffered bf16 x tile + scratch.
    per_v = 2 * H_pad * 2 + 2 * row_tile * 4
    fixed = 2 * row_tile * H_pad * 2 + 4 * row_tile * 4
    candidates = sorted({c for c in (V, 8192, 4096, 2048, 1024, 512, 256, 128)
                         if c <= V and V % c == 0}, reverse=True)
    for cand in candidates:
        if fixed + cand * per_v <= tile_budget_bytes:
            return cand
    return candidates[-1]


def add_loss_module_forward(x, w, b, target, *, ignore_index=PAD,
                            row_tile=512, v_tile=None):
    """x: (B, T, H) float32, w: (H, V), b: (V,), target: (B, T) int.
    Returns (loss (1,1) f32, nll (1,1) f32, accuracy (1,1) i32)."""
    B, T, H = x.shape
    V = w.shape[1]
    N = B * T

    vmem_limit = _vmem_limit_bytes()

    # Pad rows to the row tile (padded targets = ignore_index -> excluded from
    # nll and accuracy).  H gains a bias column/row and is padded to a multiple
    # of 256 (full MXU passes); padding is zeros so it contributes nothing.
    n_row = pl.cdiv(N, row_tile)
    N_pad = n_row * row_tile
    H_aug = H + 1
    H_pad = pl.cdiv(H_aug, 256) * 256

    if v_tile is None:
        v_tile = _pick_v_tile(V, H_pad, row_tile, vmem_limit - 8 * 1024 * 1024)
    assert V % v_tile == 0, "vocab size must be divisible by v_tile"
    n_v = V // v_tile

    # Single fused cast + concat + pad (no zeros + .at[].set HBM round-trips).
    # NOTE: in real training w/b are reused across steps; hoist w2 out of the
    # per-step path there.
    x2 = jnp.concatenate(
        [x.reshape(N, H).astype(jnp.bfloat16),
         jnp.ones((N, 1), jnp.bfloat16)], axis=1)             # (N, H+1)
    if N_pad > N or H_pad > H_aug:
        x2 = jnp.pad(x2, ((0, N_pad - N), (0, H_pad - H_aug)))
    w2 = jnp.concatenate(
        [w.astype(jnp.bfloat16),
         b.reshape(1, V).astype(jnp.bfloat16)], axis=0)       # (H+1, V)
    if H_pad > H_aug:
        w2 = jnp.pad(w2, ((0, H_pad - H_aug), (0, 0)))
    tgt2 = target.reshape(N, 1).astype(jnp.int32)
    if N_pad > N:
        tgt2 = jnp.pad(tgt2, ((0, N_pad - N), (0, 0)),
                       constant_values=ignore_index)

    kernel = functools.partial(_loss_kernel, ignore_index)

    loss_p, acc_p = pl.pallas_call(
        kernel,
        out_shape=(
            jax.ShapeDtypeStruct((n_row, 1, 1), jnp.float32),
            jax.ShapeDtypeStruct((n_row, 1, 1), jnp.int32),
        ),
        grid_spec=pltpu.PrefetchScalarGridSpec(
            num_scalar_prefetch=0,
            grid=(n_row, n_v),                                 # reduction axis last
            in_specs=[
                pl.BlockSpec((row_tile, H_pad), lambda i, j: (i, 0)),  # x (bf16)
                # W tile streamed per vocab step.  If profiling on v5e shows
                # exposed W DMA, add pipeline_mode=pl.Buffered(3) here.
                pl.BlockSpec((H_pad, v_tile), lambda i, j: (0, j)),    # W (bf16)
                pl.BlockSpec((row_tile, 1), lambda i, j: (i, 0)),      # targets
            ],
            out_specs=[
                pl.BlockSpec((1, 1, 1), lambda i, j: (i, 0, 0)),
                pl.BlockSpec((1, 1, 1), lambda i, j: (i, 0, 0)),
            ],
            scratch_shapes=[
                pltpu.VMEM((row_tile, 1), jnp.float32),   # running max (LSE)
                pltpu.VMEM((row_tile, 1), jnp.float32),   # running sum-exp
                pltpu.VMEM((row_tile, 1), jnp.float32),   # gathered target logit
            ],
        ),
        compiler_params=pltpu.CompilerParams(
            # rows are independent (megacore-shardable when n_row >= 2);
            # vocab is a reduction
            dimension_semantics=("parallel", "arbitrary"),
            vmem_limit_bytes=int(vmem_limit),
        ),
    )(x2, w2, tgt2)

    loss = jnp.sum(loss_p).reshape(1, 1)
    nll = loss                      # criterion is NLL-sum -> identical
    acc = jnp.sum(acc_p).reshape(1, 1)
    return loss, nll, acc


def _reference(x, w, b, target, ignore_index=PAD):
    # Same bf16 projection numerics as the kernel (bias folded, f32 accumulate).
    B, T, H = x.shape
    N = B * T
    x_aug = jnp.concatenate([x.reshape(N, H).astype(jnp.bfloat16),
                             jnp.ones((N, 1), jnp.bfloat16)], axis=1)
    w_aug = jnp.concatenate([w.astype(jnp.bfloat16),
                             b.reshape(1, -1).astype(jnp.bfloat16)], axis=0)
    logits = jnp.dot(x_aug, w_aug, preferred_element_type=jnp.float32)
    logp = jax.nn.log_softmax(logits, axis=-1)
    tgt = target.reshape(-1)
    valid = tgt != ignore_index
    tgt_lp = jnp.take_along_axis(logp, tgt[:, None], axis=-1)[:, 0]
    nll = -jnp.sum(jnp.where(valid, tgt_lp, 0.0))
    argmax = jnp.argmax(logp, axis=-1)
    acc = jnp.sum(((argmax == tgt) & valid).astype(jnp.int32))
    return nll, nll, acc


if __name__ == "__main__":
    B, T, H, V = 2, 8, 32, 128   # N = B*T = 16 rows (padded to one row tile)
    key = jax.random.PRNGKey(0)
    kx, kw, kb, kt = jax.random.split(key, 4)

    x = jax.random.normal(kx, (B, T, H), dtype=jnp.float32)
    w = jax.random.normal(kw, (H, V), dtype=jnp.float32) * 0.1
    b = jax.random.normal(kb, (V,), dtype=jnp.float32) * 0.1
    target = jax.random.randint(kt, (B, T), 0, V, dtype=jnp.int32)
    # force a few PAD (ignored) targets
    target = target.at[:, -2:].set(PAD)

    loss, nll, acc = add_loss_module_forward(x, w, b, target)
    jax.block_until_ready((loss, nll, acc))

    ref_loss, ref_nll, ref_acc = _reference(x, w, b, target)
    assert jnp.allclose(loss[0, 0], ref_loss, rtol=2e-3, atol=2e-3), (loss, ref_loss)
    assert jnp.allclose(nll[0, 0], ref_nll, rtol=2e-3, atol=2e-3), (nll, ref_nll)
    assert int(acc[0, 0]) == int(ref_acc), (acc, ref_acc)

    print("KERNEL_OK")
</pallas_src>

<mosaic_0001>
module attributes {stable_mosaic.version = 11 : i64} {
  func.func @_loss_kernel(%arg0: i32, %arg1: i32, %arg2: memref<512x256xbf16, #tpu.memory_space<vmem>>, %arg3: memref<256x128xbf16, #tpu.memory_space<vmem>>, %arg4: memref<512x1xi32, #tpu.memory_space<vmem>>, %arg5: memref<1x1x1xf32, #tpu.memory_space<vmem>>, %arg6: memref<1x1x1xi32, #tpu.memory_space<vmem>>, %arg7: memref<512x1xf32, #tpu.memory_space<vmem>>, %arg8: memref<512x1xf32, #tpu.memory_space<vmem>>, %arg9: memref<512x1xf32, #tpu.memory_space<vmem>>) attributes {dimension_semantics = [#tpu.dimension_semantics<parallel>, #tpu.dimension_semantics<arbitrary>], iteration_bounds = array<i64: 1, 1>, scalar_prefetch = 0 : i64, scratch_operands = 3 : i64, tpu.core_type = #tpu.core_type<tc>, window_params = [{transform_indices = @transform_0, window_bounds = array<i64: 512, 256>}, {transform_indices = @transform_1, window_bounds = array<i64: 256, 128>}, {transform_indices = @transform_2, window_bounds = array<i64: 512, 1>}, {transform_indices = @transform_3, window_bounds = array<i64: 1, 1, 1>}, {transform_indices = @transform_4, window_bounds = array<i64: 1, 1, 1>}]} {
    %c0_i32 = arith.constant 0 : i32
    %0 = arith.cmpi eq, %arg1, %c0_i32 : i32
    %1 = arith.extui %0 : i1 to i32
    %c0_i32_0 = arith.constant 0 : i32
    %2 = arith.cmpi ne, %1, %c0_i32_0 : i32
    scf.if %2 {
      %cst_24 = arith.constant 0xFF800000 : f32
      %39 = vector.broadcast %cst_24 : f32 to vector<512x1xf32>
      %c0_25 = arith.constant 0 : index
      %c0_26 = arith.constant 0 : index
      %40 = vector.load %arg7[%c0_25, %c0_26] : memref<512x1xf32, #tpu.memory_space<vmem>>, vector<512x1xf32>
      tpu.vector_store %arg7[%c0_25, %c0_26], %39 {strides = array<i32>} : memref<512x1xf32, #tpu.memory_space<vmem>>, vector<512x1xf32>,
      %cst_27 = arith.constant 0.000000e+00 : f32
      %41 = vector.broadcast %cst_27 : f32 to vector<512x1xf32>
      %c0_28 = arith.constant 0 : index
      %c0_29 = arith.constant 0 : index
      %42 = vector.load %arg8[%c0_28, %c0_29] : memref<512x1xf32, #tpu.memory_space<vmem>>, vector<512x1xf32>
      tpu.vector_store %arg8[%c0_28, %c0_29], %41 {strides = array<i32>} : memref<512x1xf32, #tpu.memory_space<vmem>>, vector<512x1xf32>,
      %cst_30 = arith.constant 0.000000e+00 : f32
      %43 = vector.broadcast %cst_30 : f32 to vector<512x1xf32>
      %c0_31 = arith.constant 0 : index
      %c0_32 = arith.constant 0 : index
      %44 = vector.load %arg9[%c0_31, %c0_32] : memref<512x1xf32, #tpu.memory_space<vmem>>, vector<512x1xf32>
      tpu.vector_store %arg9[%c0_31, %c0_32], %43 {strides = array<i32>} : memref<512x1xf32, #tpu.memory_space<vmem>>, vector<512x1xf32>,
    } else {
    }
    %c0 = arith.constant 0 : index
    %c0_1 = arith.constant 0 : index
    %3 = vector.load %arg2[%c0, %c0_1] : memref<512x256xbf16, #tpu.memory_space<vmem>>, vector<512x256xbf16>
    %c0_2 = arith.constant 0 : index
    %c0_3 = arith.constant 0 : index
    %4 = vector.load %arg3[%c0_2, %c0_3] : memref<256x128xbf16, #tpu.memory_space<vmem>>, vector<256x128xbf16>
    %cst = arith.constant dense<0.000000e+00> : vector<512x128xf32>
    %5 = tpu.matmul %3, %4, %cst {dimension_numbers = #tpu.dot_dimension_numbers<[1], [0], [0], [1], [0, 0, 1, 1], [], []>} : vector<512x256xbf16>, vector<256x128xbf16>, vector<512x128xf32> -> vector<512x128xf32>
    %c0_4 = arith.constant 0 : index
    %c0_5 = arith.constant 0 : index
    %6 = vector.load %arg4[%c0_4, %c0_5] : memref<512x1xi32, #tpu.memory_space<vmem>>, vector<512x1xi32>
    %c128_i32 = arith.constant 128 : i32
    %7 = arith.muli %arg1, %c128_i32 : i32
    %8 = vector.broadcast %7 : i32 to vector<512x1xi32>
    %9 = arith.subi %6, %8 : vector<512x1xi32>
    %10 = tpu.iota {dimensions = array<i32: 1>} : vector<512x128xi32>
    %c0_6 = arith.constant 0 : index
    %c0_7 = arith.constant 0 : index
    %11 = vector.load %arg9[%c0_6, %c0_7] : memref<512x1xf32, #tpu.memory_space<vmem>>, vector<512x1xf32>
    %12 = vector.broadcast %9 : vector<512x1xi32> to vector<512x128xi32>
    %13 = arith.cmpi eq, %10, %12 : vector<512x128xi32>
    %cst_8 = arith.constant 0.000000e+00 : f32
    %14 = vector.broadcast %cst_8 : f32 to vector<512x128xf32>
    %15 = arith.select %13, %5, %14 : vector<512x128xi1>, vector<512x128xf32>
    %cst_9 = arith.constant dense<0.000000e+00> : vector<512xf32>
    %16 = vector.multi_reduction <add>, %15, %cst_9 [1] : vector<512x128xf32> to vector<512xf32>
    %17 = vector.shape_cast %16 : vector<512xf32> to vector<512x1xf32>
    %18 = arith.addf %11, %17 : vector<512x1xf32>
    %c0_10 = arith.constant 0 : index
    %c0_11 = arith.constant 0 : index
    %19 = vector.load %arg9[%c0_10, %c0_11] : memref<512x1xf32, #tpu.memory_space<vmem>>, vector<512x1xf32>
    tpu.vector_store %arg9[%c0_10, %c0_11], %18 {strides = array<i32>} : memref<512x1xf32, #tpu.memory_space<vmem>>, vector<512x1xf32>,
    %cst_12 = arith.constant dense<0xFF800000> : vector<512xf32>
    %20 = vector.multi_reduction <maximumf>, %5, %cst_12 [1] : vector<512x128xf32> to vector<512xf32>
    %21 = vector.shape_cast %20 : vector<512xf32> to vector<512x1xf32>
    %c0_13 = arith.constant 0 : index
    %c0_14 = arith.constant 0 : index
    %22 = vector.load %arg7[%c0_13, %c0_14] : memref<512x1xf32, #tpu.memory_space<vmem>>, vector<512x1xf32>
    %23 = arith.maximumf %22, %21 : vector<512x1xf32>
    %c0_15 = arith.constant 0 : index
    %c0_16 = arith.constant 0 : index
    %24 = vector.load %arg8[%c0_15, %c0_16] : memref<512x1xf32, #tpu.memory_space<vmem>>, vector<512x1xf32>
    %25 = arith.subf %22, %23 : vector<512x1xf32>
    %26 = math.exp %25 : vector<512x1xf32>
    %27 = arith.mulf %24, %26 : vector<512x1xf32>
    %28 = vector.broadcast %23 : vector<512x1xf32> to vector<512x128xf32>
    %29 = arith.subf %5, %28 : vector<512x128xf32>
    %30 = math.exp %29 : vector<512x128xf32>
    %cst_17 = arith.constant dense<0.000000e+00> : vector<512xf32>
    %31 = vector.multi_reduction <add>, %30, %cst_17 [1] : vector<512x128xf32> to vector<512xf32>
    %32 = vector.shape_cast %31 : vector<512xf32> to vector<512x1xf32>
    %33 = arith.addf %27, %32 : vector<512x1xf32>
    %c0_18 = arith.constant 0 : index
    %c0_19 = arith.constant 0 : index
    %34 = vector.load %arg8[%c0_18, %c0_19] : memref<512x1xf32, #tpu.memory_space<vmem>>, vector<512x1xf32>
    tpu.vector_store %arg8[%c0_18, %c0_19], %33 {strides = array<i32>} : memref<512x1xf32, #tpu.memory_space<vmem>>, vector<512x1xf32>,
    %c0_20 = arith.constant 0 : index
    %c0_21 = arith.constant 0 : index
    %35 = vector.load %arg7[%c0_20, %c0_21] : memref<512x1xf32, #tpu.memory_space<vmem>>, vector<512x1xf32>
    tpu.vector_store %arg7[%c0_20, %c0_21], %23 {strides = array<i32>} : memref<512x1xf32, #tpu.memory_space<vmem>>, vector<512x1xf32>,
    %c0_i32_22 = arith.constant 0 : i32
    %36 = arith.cmpi eq, %arg1, %c0_i32_22 : i32
    %37 = arith.extui %36 : i1 to i32
    %c0_i32_23 = arith.constant 0 : i32
    %38 = arith.cmpi ne, %37, %c0_i32_23 : i32
    scf.if %38 {
      %c0_24 = arith.constant 0 : index
      %c0_25 = arith.constant 0 : index
      %39 = vector.load %arg7[%c0_24, %c0_25] : memref<512x1xf32, #tpu.memory_space<vmem>>, vector<512x1xf32>
      %c0_26 = arith.constant 0 : index
      %c0_27 = arith.constant 0 : index
      %40 = vector.load %arg8[%c0_26, %c0_27] : memref<512x1xf32, #tpu.memory_space<vmem>>, vector<512x1xf32>
      %41 = math.log %40 : vector<512x1xf32>
      %42 = arith.addf %39, %41 : vector<512x1xf32>
      %c0_28 = arith.constant 0 : index
      %c0_29 = arith.constant 0 : index
      %43 = vector.load %arg9[%c0_28, %c0_29] : memref<512x1xf32, #tpu.memory_space<vmem>>, vector<512x1xf32>
      %44 = arith.subf %43, %42 : vector<512x1xf32>
      %c0_i32_30 = arith.constant 0 : i32
      %45 = vector.broadcast %c0_i32_30 : i32 to vector<512x1xi32>
      %46 = arith.cmpi ne, %6, %45 : vector<512x1xi32>
      %cst_31 = arith.constant 0.000000e+00 : f32
      %47 = vector.broadcast %cst_31 : f32 to vector<512x1xf32>
      %48 = arith.select %46, %44, %47 : vector<512x1xi1>, vector<512x1xf32>
      %49 = vector.shape_cast %48 : vector<512x1xf32> to vector<1x512x1xf32>
      %cst_32 = arith.constant dense<0.000000e+00> : vector<1xf32>
      %50 = vector.multi_reduction <add>, %49, %cst_32 [1, 2] : vector<1x512x1xf32> to vector<1xf32>
      %51 = vector.shape_cast %50 : vector<1xf32> to vector<1x1x1xf32>
      %52 = vector.extract %51[0, 0, 0] : f32 from vector<1x1x1xf32>
      %53 = vector.broadcast %52 : f32 to vector<1x1xf32>
      %cst_33 = arith.constant 0.000000e+00 : f32
      %54 = vector.broadcast %cst_33 : f32 to vector<1x1xf32>
      %55 = arith.subf %54, %53 : vector<1x1xf32>
      %c0_34 = arith.constant 0 : index
      %c0_35 = arith.constant 0 : index
      %56 = vector.load %arg9[%c0_34, %c0_35] : memref<512x1xf32, #tpu.memory_space<vmem>>, vector<512x1xf32>
      %c0_36 = arith.constant 0 : index
      %c0_37 = arith.constant 0 : index
      %57 = vector.load %arg7[%c0_36, %c0_37] : memref<512x1xf32, #tpu.memory_space<vmem>>, vector<512x1xf32>
      %58 = arith.cmpf oeq, %56, %57 : vector<512x1xf32>
      %59 = arith.andi %58, %46 : vector<512x1xi1>
      %60 = arith.extui %59 : vector<512x1xi1> to vector<512x1xi32>
      %61 = vector.shape_cast %60 : vector<512x1xi32> to vector<1x512x1xi32>
      %cst_38 = arith.constant dense<0> : vector<1xi32>
      %62 = vector.multi_reduction <add>, %61, %cst_38 [1, 2] : vector<1x512x1xi32> to vector<1xi32>
      %63 = vector.shape_cast %62 : vector<1xi32> to vector<1x1x1xi32>
      %64 = vector.extract %63[0, 0, 0] : i32 from vector<1x1x1xi32>
      %65 = vector.broadcast %64 : i32 to vector<1x1xi32>
      %66 = vector.shape_cast %55 : vector<1x1xf32> to vector<1x1x1xf32>
      %c0_39 = arith.constant 0 : index
      %c0_40 = arith.constant 0 : index
      %c0_41 = arith.constant 0 : index
      %67 = vector.load %arg5[%c0_39, %c0_40, %c0_41] : memref<1x1x1xf32, #tpu.memory_space<vmem>>, vector<1x1x1xf32>
      tpu.vector_store %arg5[%c0_39, %c0_40, %c0_41], %66 {strides = array<i32>} : memref<1x1x1xf32, #tpu.memory_space<vmem>>, vector<1x1x1xf32>,
      %68 = vector.shape_cast %65 : vector<1x1xi32> to vector<1x1x1xi32>
      %c0_42 = arith.constant 0 : index
      %c0_43 = arith.constant 0 : index
      %c0_44 = arith.constant 0 : index
      %69 = vector.load %arg6[%c0_42, %c0_43, %c0_44] : memref<1x1x1xi32, #tpu.memory_space<vmem>>, vector<1x1x1xi32>
      tpu.vector_store %arg6[%c0_42, %c0_43, %c0_44], %68 {strides = array<i32>} : memref<1x1x1xi32, #tpu.memory_space<vmem>>, vector<1x1x1xi32>,
    } else {
    }
    return
  }
  func.func @transform_0(%arg0: i32, %arg1: i32) -> (i32, i32) {
    %c0_i32 = arith.constant 0 : i32
    %c0_i32_0 = arith.constant 0 : i32
    return %arg0, %c0_i32 : i32, i32
  }
  func.func @transform_1(%arg0: i32, %arg1: i32) -> (i32, i32) {
    %c0_i32 = arith.constant 0 : i32
    %c0_i32_0 = arith.constant 0 : i32
    return %c0_i32, %arg1 : i32, i32
  }
  func.func @transform_2(%arg0: i32, %arg1: i32) -> (i32, i32) {
    %c0_i32 = arith.constant 0 : i32
    %c0_i32_0 = arith.constant 0 : i32
    return %arg0, %c0_i32 : i32, i32
  }
  func.func @transform_3(%arg0: i32, %arg1: i32) -> (i32, i32, i32) {
    %c0_i32 = arith.constant 0 : i32
    %c0_i32_0 = arith.constant 0 : i32
    %c0_i32_1 = arith.constant 0 : i32
    return %arg0, %c0_i32, %c0_i32_0 : i32, i32, i32
  }
  func.func @transform_4(%arg0: i32, %arg1: i32) -> (i32, i32, i32) {
    %c0_i32 = arith.constant 0 : i32
    %c0_i32_0 = arith.constant 0 : i32
    %c0_i32_1 = arith.constant 0 : i32
    return %arg0, %c0_i32, %c0_i32_0 : i32, i32, i32
  }
}

</mosaic_0001>

<bundles_post_ra>
// kernel: tpu_custom_call.1
= control target key start
LH: loop header
LB: loop body
LE: loop exit
PB: predicated region body
PF: predicated region fallthrough
CT: control target
= control target key end

     0   :  { %10 = vsyncpa [#allocation6], 0  ;;  %s9306_s0 = inlined_call_operand.vmem [shape: bf16[512,256], index: 0, kind: input, shape index: {}]   ;;  %s9307_s1 = inlined_call_operand.hbm [shape: bf16[256,128], index: 1, kind: input, shape index: {}]   ;;  %s9308_s2 = inlined_call_operand.vmem [shape: s32[512,1], index: 2, kind: input, shape index: {}]   ;;  %s9309_s3 = inlined_call_operand.hbm [shape: f32[1,1,1], index: 3, kind: output, shape index: {0}]   ;;  %s9310_s4 = inlined_call_operand.hbm [shape: s32[1,1,1], index: 4, kind: output, shape index: {1}]  }
   0x1   :  { %11 = vsyncpa [#allocation7], 0 }
   0x2   :  { %12 = vsyncpa [#allocation10], 0  ;;  %s19_s17 = sshll.u32 %s9307_s1, 4  ;;  %s5439_s18 = smov [#allocation5]   ;;  %s20_s17 = int_to_ptr.hbm [resolvable:$true] %s19_s17 }
   0x3   :  { %s21_s19 = sshll.u32 %s5439_s18, 4  ;;  %s5440_s20 = smov 64   ;;  %s22_s19 = int_to_ptr.vmem [resolvable:$true] %s21_s19 }
   0x4   :  { %s5441_s21 = smov 4  }
   0x5   :  { %27 = dma.hbm_to_vmem [thread:$0]  %s20_s17, 2048, %s22_s19, [#allocation6], %s5440_s20, %s5440_s20, %s5441_s21  }
   0x6   :  { %5433 = dma.done.wait [#allocation6], 2048  }
   0x7   :  { %5434 = vsyncadd [#allocation6], 4294965248  ;;  %v9311_v0 = vmov 0   ;;  %v1085_v1 = vld [vmem:[%s9308_s2 + $0x20] sm:$0xff]  ;;  %v1083_v2 = vld [vmem:[%s9308_s2 + $0x10] sm:$0xff]  ;;  %s4339_s19 = sshll.u32 %s9310_s4, 4  ;;  %s4340_s19 = int_to_ptr.hbm [resolvable:$true] %s4339_s19 }
   0x8   :  { %4784 = vset.pattern.permute.xlu2 %v9311_v0  ;;  %4783 = vset.pattern.permute.xlu1 %v9311_v0  ;;  %v1081_v3 = vld [vmem:[%s9308_s2] sm:$0xff]  ;;  %v4745_v4 = vld [vmem:[#allocation5 + $0x38] sm:$0xff]  ;;  %v4744_v6 = vld [vmem:[#allocation5 + $0x30] sm:$0xff]  ;;  %s5446_s20 = smov [#allocation8]   ;;  %s4328_s1 = sshll.u32 %s9309_s3, 4  ;;  %s4329_s1 = int_to_ptr.hbm [resolvable:$true] %s4328_s1 }
   0x9   :  { %4782 = vset.pattern.permute.xlu0 %v9311_v0  ;;  %1290 = vperm.xlu2 %4784, %v1085_v1   ;;  %v4753_v5 = vld [vmem:[#allocation5 + $0x78] sm:$0xff]  ;;  %v4752_v7 = vld [vmem:[#allocation5 + $0x70] sm:$0xff]  ;;  %v1086_v8 = vld [vmem:[%s9308_s2 + $0x28] sm:$0xff]  ;;  %s4326_s21 = sshll.u32 %s5446_s20, 4  ;;  %s4327_s21 = int_to_ptr.vmem [resolvable:$true] %s4326_s21 }
   0xa   :  { %1284 = vperm.xlu1 %4783, %v1083_v2   ;;  %1278 = vperm.xlu0 %4782, %v1081_v3   ;;  %v1084_v9 = vld [vmem:[%s9308_s2 + $0x18] sm:$0xff]  ;;  %v1082_v10 = vld [vmem:[%s9308_s2 + $0x8] sm:$0xff]  ;;  %v4742_v13 = vld [vmem:[#allocation5 + $0x20] sm:$0xff] }
   0xb   :  { %743 = vmatpush.bf16.msra.mxu0 %v4745_v4  ;;  %4754 = vmatpush.bf16.msra.mxu2 %v4745_v4  ;;  %v4743_v11 = vld [vmem:[#allocation5 + $0x28] sm:$0xff]  ;;  %v4750_v14 = vld [vmem:[#allocation5 + $0x60] sm:$0xff]  ;;  %v1088_v16 = vld [vmem:[%s9308_s2 + $0x38] sm:$0xff] }
   0xc   :  { %912 = vmatpush.bf16.msra.mxu1 %v4753_v5  ;;  %4762 = vmatpush.bf16.msra.mxu3 %v4753_v5  ;;  %v4751_v12 = vld [vmem:[#allocation5 + $0x68] sm:$0xff]  ;;  %v1089_v15 = vld [vmem:[%s9308_s2 + $0x40] sm:$0xff]  ;;  %v1087_v17 = vld [vmem:[%s9308_s2 + $0x30] sm:$0xff] }
   0xd   :  { %v4741_v18 = vld [vmem:[#allocation5 + $0x18] sm:$0xff]  ;;  %v4740_v20 = vld [vmem:[#allocation5 + $0x10] sm:$0xff]  ;;  %v1090_v24 = vld [vmem:[%s9308_s2 + $0x48] sm:$0xff] }
   0xe   :  { %v4749_v19 = vld [vmem:[#allocation5 + $0x58] sm:$0xff]  ;;  %v4748_v21 = vld [vmem:[#allocation5 + $0x50] sm:$0xff]  ;;  %v4739_v25 = vld [vmem:[#allocation5 + $0x8] sm:$0xff] }
   0xf   :  { %744 = vmatpush.bf16.msra.mxu0 %v4744_v6  ;;  %4755 = vmatpush.bf16.msra.mxu2 %v4744_v6  ;;  %v1092_v22 = vld [vmem:[%s9308_s2 + $0x58] sm:$0xff]  ;;  %v1091_v23 = vld [vmem:[%s9308_s2 + $0x50] sm:$0xff]  ;;  %v4747_v26 = vld [vmem:[#allocation5 + $0x48] sm:$0xff] }
  0x10   :  { %913 = vmatpush.bf16.msra.mxu1 %v4752_v7  ;;  %4763 = vmatpush.bf16.msra.mxu3 %v4752_v7  ;;  %v4738_v27 = vld [vmem:[#allocation5] sm:$0xff]  ;;  %v4675_v30 = vld [vmem:[%s9306_s0 + $0x4] sm:$0xf0]  ;;  %v4358_v34 = vld [vmem:[%s9306_s0 + $0x8] sm:$0xf0] }
  0x11   :  { %1293 = vperm.xlu2 %4784, %v1086_v8   ;;  %v4746_v28 = vld [vmem:[#allocation5 + $0x40] sm:$0xff]  ;;  %v4707_v32 = vld [vmem:[%s9306_s0 + $0x104] sm:$0xf0]  ;;  %v4486_v36 = vld [vmem:[%s9306_s0 + $0x108] sm:$0xf0] }
  0x12   :  { %1287 = vperm.xlu1 %4783, %v1084_v9   ;;  %1281 = vperm.xlu0 %4782, %v1082_v10   ;;  %v4356_v29 = vld [vmem:[%s9306_s0] sm:$0xf]  ;;  %v4674_v33 = vld [vmem:[%s9306_s0 + $0x4] sm:$0xf]  ;;  %v1095_v37 = vld [vmem:[%s9308_s2 + $0x70] sm:$0xff] }
  0x13   :  { %745 = vmatpush.bf16.msra.mxu0 %v4743_v11  ;;  %4756 = vmatpush.bf16.msra.mxu2 %v4743_v11  ;;  %v4484_v31 = vld [vmem:[%s9306_s0 + $0x100] sm:$0xf]  ;;  %v4706_v35 = vld [vmem:[%s9306_s0 + $0x104] sm:$0xf]  ;;  %v1094_v38 = vld [vmem:[%s9308_s2 + $0x68] sm:$0xff]  ;;  %v4357_v39 = vor.u32 %v4675_v30, %v4356_v29  ;;  %v4361_v42 = vor.u32 %v4674_v33, %v4358_v34 }
  0x14   :  { %914 = vmatpush.bf16.msra.mxu1 %v4751_v12  ;;  %4764 = vmatpush.bf16.msra.mxu3 %v4751_v12  ;;  %v1093_v40 = vld [vmem:[%s9308_s2 + $0x60] sm:$0xff]  ;;  %v4485_v41 = vor.u32 %v4707_v32, %v4484_v31  ;;  %v4489_v43 = vor.u32 %v4706_v35, %v4486_v36  ;;  %v1098_v44 = vld [vmem:[%s9308_s2 + $0x88] sm:$0xff]  ;;  %v1096_v46 = vld [vmem:[%s9308_s2 + $0x78] sm:$0xff] }
  0x15   :  { %v1097_v45 = vld [vmem:[%s9308_s2 + $0x80] sm:$0xff]  ;;  %v4364_v47 = vld [vmem:[%s9306_s0 + $0x10] sm:$0xf]  ;;  %v4677_v48 = vld [vmem:[%s9306_s0 + $0x14] sm:$0xf0] }
  0x16   :  { %v4492_v49 = vld [vmem:[%s9306_s0 + $0x110] sm:$0xf]  ;;  %v4709_v50 = vld [vmem:[%s9306_s0 + $0x114] sm:$0xf0]  ;;  %v4676_v51 = vld [vmem:[%s9306_s0 + $0x14] sm:$0xf]  ;;  %v4365_v57 = vor.u32 %v4677_v48, %v4364_v47 }
  0x17   :  { %746 = vmatpush.bf16.msra.mxu0 %v4742_v13  ;;  %4757 = vmatpush.bf16.msra.mxu2 %v4742_v13  ;;  %v4366_v52 = vld [vmem:[%s9306_s0 + $0x18] sm:$0xf0]  ;;  %v4708_v53 = vld [vmem:[%s9306_s0 + $0x114] sm:$0xf]  ;;  %v1101_v55 = vld [vmem:[%s9308_s2 + $0xa0] sm:$0xff]  ;;  %v4493_v59 = vor.u32 %v4709_v50, %v4492_v49 }
  0x18   :  { %915 = vmatpush.bf16.msra.mxu1 %v4750_v14  ;;  %4765 = vmatpush.bf16.msra.mxu3 %v4750_v14  ;;  %v4494_v54 = vld [vmem:[%s9306_s0 + $0x118] sm:$0xf0]  ;;  %v1099_v58 = vld [vmem:[%s9308_s2 + $0x90] sm:$0xff]  ;;  %v4369_v60 = vor.u32 %v4676_v51, %v4366_v52  ;;  %v1102_v1 = vld [vmem:[%s9308_s2 + $0xa8] sm:$0xff] }
  0x19   :  { %1302 = vperm.xlu2 %4784, %v1089_v15   ;;  %v1100_v56 = vld [vmem:[%s9308_s2 + $0x98] sm:$0xff]  ;;  %v4497_v61 = vor.u32 %v4708_v53, %v4494_v54  ;;  %v1103_v63 = vld [vmem:[%s9308_s2 + $0xb0] sm:$0xff]  ;;  %v4372_v2 = vld [vmem:[%s9306_s0 + $0x20] sm:$0xf] }
  0x1a   :  { %1299 = vperm.xlu1 %4783, %v1088_v16   ;;  %1296 = vperm.xlu0 %4782, %v1087_v17   ;;  %v1104_v62 = vld [vmem:[%s9308_s2 + $0xb8] sm:$0xff]  ;;  %v4679_v3 = vld [vmem:[%s9306_s0 + $0x24] sm:$0xf0]  ;;  %v4500_v4 = vld [vmem:[%s9306_s0 + $0x120] sm:$0xf] }
  0x1b   :  { %747 = vmatpush.bf16.msra.mxu0 %v4741_v18  ;;  %4758 = vmatpush.bf16.msra.mxu2 %v4741_v18  ;;  %v4711_v5 = vld [vmem:[%s9306_s0 + $0x124] sm:$0xf0]  ;;  %v4678_v6 = vld [vmem:[%s9306_s0 + $0x24] sm:$0xf]  ;;  %v4374_v7 = vld [vmem:[%s9306_s0 + $0x28] sm:$0xf0]  ;;  %v4373_v12 = vor.u32 %v4679_v3, %v4372_v2 }
  0x1c   :  { %916 = vmatpush.bf16.msra.mxu1 %v4749_v19  ;;  %4766 = vmatpush.bf16.msra.mxu3 %v4749_v19  ;;  %v4710_v8 = vld [vmem:[%s9306_s0 + $0x124] sm:$0xf]  ;;  %v4502_v9 = vld [vmem:[%s9306_s0 + $0x128] sm:$0xf0]  ;;  %v1107_v10 = vld [vmem:[%s9308_s2 + $0xd0] sm:$0xff]  ;;  %v4501_v14 = vor.u32 %v4711_v5, %v4500_v4  ;;  %v4377_v15 = vor.u32 %v4678_v6, %v4374_v7 }
  0x1d   :  { %v1106_v11 = vld [vmem:[%s9308_s2 + $0xc8] sm:$0xff]  ;;  %v1105_v13 = vld [vmem:[%s9308_s2 + $0xc0] sm:$0xff]  ;;  %v4505_v16 = vor.u32 %v4710_v8, %v4502_v9  ;;  %v1108_v19 = vld [vmem:[%s9308_s2 + $0xd8] sm:$0xff] }
  0x1e   :  { %v1110_v17 = vld [vmem:[%s9308_s2 + $0xe8] sm:$0xff]  ;;  %v1109_v18 = vld [vmem:[%s9308_s2 + $0xe0] sm:$0xff]  ;;  %v1112_v29 = vld [vmem:[%s9308_s2 + $0xf8] sm:$0xff] }
  0x1f   :  { %748 = vmatpush.bf16.msra.mxu0 %v4740_v20  ;;  %4759 = vmatpush.bf16.msra.mxu2 %v4740_v20  ;;  %v4380_v20 = vld [vmem:[%s9306_s0 + $0x30] sm:$0xf]  ;;  %v1116_v35 = vld [vmem:[%s9308_s2 + $0x118] sm:$0xff]  ;;  %v1118_v47 = vld [vmem:[%s9308_s2 + $0x128] sm:$0xff] }
  0x20   :  { %917 = vmatpush.bf16.msra.mxu1 %v4748_v21  ;;  %4767 = vmatpush.bf16.msra.mxu3 %v4748_v21  ;;  %v4681_v21 = vld [vmem:[%s9306_s0 + $0x34] sm:$0xf0]  ;;  %v1111_v31 = vld [vmem:[%s9308_s2 + $0xf0] sm:$0xff]  ;;  %v1117_v49 = vld [vmem:[%s9308_s2 + $0x120] sm:$0xff] }
  0x21   :  { %1311 = vperm.xlu2 %4784, %v1092_v22   ;;  %v4508_v22 = vld [vmem:[%s9306_s0 + $0x130] sm:$0xf]  ;;  %v4381_v30 = vor.u32 %v4681_v21, %v4380_v20  ;;  %v1122_v53 = vld [vmem:[%s9308_s2 + $0x148] sm:$0xff]  ;;  %v1121_v54 = vld [vmem:[%s9308_s2 + $0x140] sm:$0xff] }
  0x22   :  { %1308 = vperm.xlu1 %4783, %v1091_v23   ;;  %1305 = vperm.xlu0 %4782, %v1090_v24   ;;  %v4713_v23 = vld [vmem:[%s9306_s0 + $0x134] sm:$0xf0]  ;;  %v4680_v24 = vld [vmem:[%s9306_s0 + $0x34] sm:$0xf]  ;;  %v1125_v2 = vld [vmem:[%s9308_s2 + $0x160] sm:$0xff] }
  0x23   :  { %749 = vmatpush.bf16.msra.mxu0 %v4739_v25  ;;  %4760 = vmatpush.bf16.msra.mxu2 %v4739_v25  ;;  %v4382_v25 = vld [vmem:[%s9306_s0 + $0x38] sm:$0xf0]  ;;  %v4509_v32 = vor.u32 %v4713_v23, %v4508_v22  ;;  %v1115_v36 = vld [vmem:[%s9308_s2 + $0x110] sm:$0xff]  ;;  %v4719_v20 = vld [vmem:[%s9306_s0 + $0x164] sm:$0xf0] }
  0x24   :  { %918 = vmatpush.bf16.msra.mxu1 %v4747_v26  ;;  %4768 = vmatpush.bf16.msra.mxu3 %v4747_v26  ;;  %v4712_v26 = vld [vmem:[%s9306_s0 + $0x134] sm:$0xf]  ;;  %v4385_v33 = vor.u32 %v4680_v24, %v4382_v25  ;;  %v1124_v3 = vld [vmem:[%s9308_s2 + $0x158] sm:$0xff]  ;;  %v4686_v21 = vld [vmem:[%s9306_s0 + $0x64] sm:$0xf] }
  0x25   :  { %v1123_v5 = vld [vmem:[%s9308_s2 + $0x150] sm:$0xff]  ;;  %v4406_v22 = vld [vmem:[%s9306_s0 + $0x68] sm:$0xf0]  ;;  %v4718_v23 = vld [vmem:[%s9306_s0 + $0x164] sm:$0xf] }
  0x26   :  { %v4534_v24 = vld [vmem:[%s9306_s0 + $0x168] sm:$0xf0] }
  0x27   :  { %750 = vmatpush.bf16.msra.mxu0 %v4738_v27  ;;  %4761 = vmatpush.bf16.msra.mxu2 %v4738_v27  ;;  %v4510_v27 = vld [vmem:[%s9306_s0 + $0x138] sm:$0xf0] }
  0x28   :  { %919 = vmatpush.bf16.msra.mxu1 %v4746_v28  ;;  %4769 = vmatpush.bf16.msra.mxu3 %v4746_v28  ;;  %v1113_v28 = vld [vmem:[%s9308_s2 + $0x100] sm:$0xff]  ;;  %v4513_v34 = vor.u32 %v4712_v26, %v4510_v27  ;;  %v1131_v26 = vld [vmem:[%s9308_s2 + $0x190] sm:$0xff]  ;;  %v1130_v27 = vld [vmem:[%s9308_s2 + $0x188] sm:$0xff] }
  0x29   :  { %1320 = vperm.xlu2 %4784, %v1095_v37   ;;  %v1114_v37 = vld [vmem:[%s9308_s2 + $0x108] sm:$0xff] }
  0x2a   :  { %1317 = vperm.xlu1 %4783, %v1094_v38   ;;  %1314 = vperm.xlu0 %4782, %v1093_v40   ;;  %v4388_v38 = vld [vmem:[%s9306_s0 + $0x40] sm:$0xf] }
  0x2b   :  { %751 = vmatmul.bf16.vlgmr.msra.gmra.mxu0 %v4357_v39  ;;  %831 = vmatmul.bf16.vlgmr.msra.gmra.mxu2 %v4485_v41  ;;  %v4683_v39 = vld [vmem:[%s9306_s0 + $0x44] sm:$0xf0]  ;;  %v4516_v40 = vld [vmem:[%s9306_s0 + $0x140] sm:$0xf] }
  0x2c   :  { %920 = vmatmul.bf16.vlgmr.msra.gmra.mxu1 %v4361_v42  ;;  %1000 = vmatmul.bf16.vlgmr.msra.gmra.mxu3 %v4489_v43  ;;  %v4715_v41 = vld [vmem:[%s9306_s0 + $0x144] sm:$0xf0]  ;;  %v4682_v42 = vld [vmem:[%s9306_s0 + $0x44] sm:$0xf]  ;;  %v4390_v43 = vld [vmem:[%s9306_s0 + $0x48] sm:$0xf0]  ;;  %v4389_v48 = vor.u32 %v4683_v39, %v4388_v38 }
  0x2d   :  { %v4517_v50 = vor.u32 %v4715_v41, %v4516_v40  ;;  %v4393_v51 = vor.u32 %v4682_v42, %v4390_v43  ;;  %v4412_v40 = vld [vmem:[%s9306_s0 + $0x70] sm:$0xf]  ;;  %v4689_v41 = vld [vmem:[%s9306_s0 + $0x74] sm:$0xf0] }
  0x2e   :  { %v4540_v42 = vld [vmem:[%s9306_s0 + $0x170] sm:$0xf] }
  0x31   :  { %1329 = vperm.xlu2 %4784, %v1098_v44   ;;  %v4714_v44 = vld [vmem:[%s9306_s0 + $0x144] sm:$0xf] }
  0x32   :  { %1326 = vperm.xlu1 %4783, %v1097_v45   ;;  %1323 = vperm.xlu0 %4782, %v1096_v46   ;;  %v4518_v45 = vld [vmem:[%s9306_s0 + $0x148] sm:$0xf0]  ;;  %v1119_v46 = vld [vmem:[%s9308_s2 + $0x130] sm:$0xff] }
  0x33   :  { %v4521_v52 = vor.u32 %v4714_v44, %v4518_v45  ;;  %v4721_v44 = vld [vmem:[%s9306_s0 + $0x174] sm:$0xf0]  ;;  %v4688_v45 = vld [vmem:[%s9306_s0 + $0x74] sm:$0xf] }
  0x39   :  { %1338 = vperm.xlu2 %4784, %v1101_v55   ;;  %v1120_v55 = vld [vmem:[%s9308_s2 + $0x138] sm:$0xff] }
  0x3a   :  { %1335 = vperm.xlu1 %4783, %v1100_v56   ;;  %1332 = vperm.xlu0 %4782, %v1099_v58   ;;  %v4685_v58 = vld [vmem:[%s9306_s0 + $0x54] sm:$0xf0] }
  0x3b   :  { %756 = vmatmul.bf16.gmra.mxu0 %v4365_v57  ;;  %836 = vmatmul.bf16.gmra.mxu2 %v4493_v59  ;;  %v4396_v57 = vld [vmem:[%s9306_s0 + $0x50] sm:$0xf] }
  0x3c   :  { %925 = vmatmul.bf16.gmra.mxu1 %v4369_v60  ;;  %1005 = vmatmul.bf16.gmra.mxu3 %v4497_v61  ;;  %v4524_v59 = vld [vmem:[%s9306_s0 + $0x150] sm:$0xf]  ;;  %v4717_v60 = vld [vmem:[%s9306_s0 + $0x154] sm:$0xf0]  ;;  %v4684_v61 = vld [vmem:[%s9306_s0 + $0x54] sm:$0xf]  ;;  %v4397_v4 = vor.u32 %v4685_v58, %v4396_v57 }
  0x3d   :  { %v4525_v6 = vor.u32 %v4717_v60, %v4524_v59  ;;  %v1140_v60 = vld [vmem:[%s9308_s2 + $0x1d8] sm:$0xff] }
  0x41   :  { %1347 = vperm.xlu2 %4784, %v1104_v62   ;;  %v4398_v62 = vld [vmem:[%s9306_s0 + $0x58] sm:$0xf0] }
  0x42   :  { %1344 = vperm.xlu1 %4783, %v1103_v63   ;;  %1341 = vperm.xlu0 %4782, %v1102_v1   ;;  %v4716_v63 = vld [vmem:[%s9306_s0 + $0x154] sm:$0xf]  ;;  %v4526_v1 = vld [vmem:[%s9306_s0 + $0x158] sm:$0xf0]  ;;  %v4401_v7 = vor.u32 %v4684_v61, %v4398_v62  ;;  %v1138_v62 = vld [vmem:[%s9308_s2 + $0x1c8] sm:$0xff] }
  0x43   :  { %v4529_v8 = vor.u32 %v4716_v63, %v4526_v1  ;;  %v1139_v61 = vld [vmem:[%s9308_s2 + $0x1d0] sm:$0xff]  ;;  %v4420_v1 = vld [vmem:[%s9306_s0 + $0x80] sm:$0xf] }
  0x49   :  { %1356 = vperm.xlu2 %4784, %v1107_v10  }
  0x4a   :  { %1353 = vperm.xlu1 %4783, %v1106_v11   ;;  %1350 = vperm.xlu0 %4782, %v1105_v13   ;;  %v1127_v13 = vld [vmem:[%s9308_s2 + $0x170] sm:$0xff] }
  0x4b   :  { %761 = vmatmul.bf16.gmra.mxu0 %v4373_v12  ;;  %841 = vmatmul.bf16.gmra.mxu2 %v4501_v14  ;;  %v1128_v12 = vld [vmem:[%s9308_s2 + $0x178] sm:$0xff]  ;;  %v1126_v14 = vld [vmem:[%s9308_s2 + $0x168] sm:$0xff] }
  0x4c   :  { %930 = vmatmul.bf16.gmra.mxu1 %v4377_v15  ;;  %1010 = vmatmul.bf16.gmra.mxu3 %v4505_v16  ;;  %v4404_v16 = vld [vmem:[%s9306_s0 + $0x60] sm:$0xf] }
  0x51   :  { %1365 = vperm.xlu2 %4784, %v1110_v17   ;;  %v4687_v17 = vld [vmem:[%s9306_s0 + $0x64] sm:$0xf0] }
  0x52   :  { %1362 = vperm.xlu1 %4783, %v1109_v18   ;;  %1359 = vperm.xlu0 %4782, %v1108_v19   ;;  %v4532_v18 = vld [vmem:[%s9306_s0 + $0x160] sm:$0xf] }
  0x59   :  { %1374 = vperm.xlu2 %4784, %v1113_v28   ;;  %v4405_v28 = vor.u32 %v4687_v17, %v4404_v16  ;;  %v1142_v16 = vld [vmem:[%s9308_s2 + $0x1e8] sm:$0xff] }
  0x5a   :  { %1371 = vperm.xlu1 %4783, %v1112_v29   ;;  %1368 = vperm.xlu0 %4782, %v1111_v31   ;;  %v1129_v29 = vld [vmem:[%s9308_s2 + $0x180] sm:$0xff]  ;;  %v4409_v31 = vor.u32 %v4686_v21, %v4406_v22 }
  0x5b   :  { %766 = vmatmul.bf16.gmra.mxu0 %v4381_v30  ;;  %846 = vmatmul.bf16.gmra.mxu2 %v4509_v32  ;;  %v4533_v30 = vor.u32 %v4719_v20, %v4532_v18  ;;  %v4537_v32 = vor.u32 %v4718_v23, %v4534_v24  ;;  %v1141_v20 = vld [vmem:[%s9308_s2 + $0x1e0] sm:$0xff] }
  0x5c   :  { %935 = vmatmul.bf16.gmra.mxu1 %v4385_v33  ;;  %1015 = vmatmul.bf16.gmra.mxu3 %v4513_v34 }
  0x61   :  { %1383 = vperm.xlu2 %4784, %v1116_v35   ;;  %v1134_v35 = vld [vmem:[%s9308_s2 + $0x1a8] sm:$0xff] }
  0x62   :  { %1380 = vperm.xlu1 %4783, %v1115_v36   ;;  %1377 = vperm.xlu0 %4782, %v1114_v37   ;;  %v1133_v36 = vld [vmem:[%s9308_s2 + $0x1a0] sm:$0xff]  ;;  %v1132_v37 = vld [vmem:[%s9308_s2 + $0x198] sm:$0xff] }
  0x63   :  { %v5724_v56 = vpop.permute.xlu2 %1290 }
  0x69   :  { %1392 = vperm.xlu2 %4784, %v1119_v46   ;;  %v4414_v46 = vld [vmem:[%s9306_s0 + $0x78] sm:$0xf0] }
  0x6a   :  { %1389 = vperm.xlu1 %4783, %v1118_v47   ;;  %1386 = vperm.xlu0 %4782, %v1117_v49   ;;  %v4720_v47 = vld [vmem:[%s9306_s0 + $0x174] sm:$0xf]  ;;  %v1137_v49 = vld [vmem:[%s9308_s2 + $0x1c0] sm:$0xff] }
  0x6b   :  { %771 = vmatmul.bf16.gmra.mxu0 %v4389_v48  ;;  %851 = vmatmul.bf16.gmra.mxu2 %v4517_v50  ;;  %v5761_v10 = vpop.permute.xlu2 %1293  ;;  %v4542_v48 = vld [vmem:[%s9306_s0 + $0x178] sm:$0xf0] }
  0x6c   :  { %940 = vmatmul.bf16.gmra.mxu1 %v4393_v51  ;;  %1020 = vmatmul.bf16.gmra.mxu3 %v4521_v52  ;;  %v1136_v50 = vld [vmem:[%s9308_s2 + $0x1b8] sm:$0xff]  ;;  %v4413_v51 = vor.u32 %v4689_v41, %v4412_v40  ;;  %v1135_v52 = vld [vmem:[%s9308_s2 + $0x1b0] sm:$0xff] }
  0x6d   :  { %v4556_v40 = vld [vmem:[%s9306_s0 + $0x190] sm:$0xf]  ;;  %v4725_v41 = vld [vmem:[%s9306_s0 + $0x194] sm:$0xf0] }
  0x71   :  { %1401 = vperm.xlu2 %4784, %v1122_v53   ;;  %v4541_v53 = vor.u32 %v4721_v44, %v4540_v42  ;;  %v4692_v42 = vld [vmem:[%s9306_s0 + $0x94] sm:$0xf]  ;;  %v4430_v44 = vld [vmem:[%s9306_s0 + $0x98] sm:$0xf0] }
  0x72   :  { %1398 = vperm.xlu1 %4783, %v1121_v54   ;;  %1395 = vperm.xlu0 %4782, %v1120_v55   ;;  %v4417_v54 = vor.u32 %v4688_v45, %v4414_v46  ;;  %v4545_v55 = vor.u32 %v4720_v47, %v4542_v48  ;;  %v4724_v45 = vld [vmem:[%s9306_s0 + $0x194] sm:$0xf]  ;;  %v4558_v46 = vld [vmem:[%s9306_s0 + $0x198] sm:$0xf0] }
  0x73   :  { %v5802_v25 = vpop.permute.xlu2 %1302 }
  0x79   :  { %1410 = vperm.xlu2 %4784, %v1125_v2   ;;  %v4691_v2 = vld [vmem:[%s9306_s0 + $0x84] sm:$0xf0] }
  0x7a   :  { %1407 = vperm.xlu1 %4783, %v1124_v3   ;;  %1404 = vperm.xlu0 %4782, %v1123_v5   ;;  %v4548_v3 = vld [vmem:[%s9306_s0 + $0x180] sm:$0xf]  ;;  %v4723_v5 = vld [vmem:[%s9306_s0 + $0x184] sm:$0xf0]  ;;  %v4421_v17 = vor.u32 %v4691_v2, %v4420_v1 }
  0x7b   :  { %776 = vmatmul.bf16.gmra.mxu0 %v4397_v4  ;;  %856 = vmatmul.bf16.gmra.mxu2 %v4525_v6  ;;  %v5826_v38 = vpop.permute.xlu2 %1311  ;;  %v4690_v6 = vld [vmem:[%s9306_s0 + $0x84] sm:$0xf]  ;;  %v4549_v21 = vor.u32 %v4723_v5, %v4548_v3 }
  0x7c   :  { %945 = vmatmul.bf16.gmra.mxu1 %v4401_v7  ;;  %v5759_v9 = vpop.permute.xlu1 %1284  ;;  %1025 = vmatmul.bf16.gmra.mxu3 %v4529_v8  ;;  %v5763_v11 = vpop.permute.xlu0 %1278  ;;  %v4422_v7 = vld [vmem:[%s9306_s0 + $0x88] sm:$0xf0]  ;;  %v4722_v8 = vld [vmem:[%s9306_s0 + $0x184] sm:$0xf] }
  0x7d   :  { %v4425_v22 = vor.u32 %v4690_v6, %v4422_v7  ;;  %v4436_v7 = vld [vmem:[%s9306_s0 + $0xa0] sm:$0xf] }
  0x81   :  { %1419 = vperm.xlu2 %4784, %v1128_v12   ;;  %v4550_v12 = vld [vmem:[%s9306_s0 + $0x188] sm:$0xf0] }
  0x82   :  { %1416 = vperm.xlu1 %4783, %v1127_v13   ;;  %1413 = vperm.xlu0 %4782, %v1126_v14   ;;  %v1143_v14 = vld [vmem:[%s9308_s2 + $0x1f0] sm:$0xff]  ;;  %v4553_v24 = vor.u32 %v4722_v8, %v4550_v12  ;;  %v4695_v8 = vld [vmem:[%s9306_s0 + $0xa4] sm:$0xf0]  ;;  %v4564_v12 = vld [vmem:[%s9306_s0 + $0x1a0] sm:$0xf] }
  0x83   :  { %v5865_v57 = vpop.permute.xlu2 %1320 }
  0x84   :  { %v5774_v15 = vpop.permute.xlu1 %1287  ;;  %v5785_v19 = vpop.permute.xlu0 %1281 }
  0x89   :  { %1428 = vperm.xlu2 %4784, %v1131_v26  }
  0x8a   :  { %1425 = vperm.xlu1 %4783, %v1130_v27   ;;  %1422 = vperm.xlu0 %4782, %v1129_v29  }
  0x8b   :  { %781 = vmatmul.bf16.gmra.mxu0 %v4405_v28  ;;  %861 = vmatmul.bf16.gmra.mxu2 %v4533_v30  ;;  %v5891_v4 = vpop.permute.xlu2 %1329 }
  0x8c   :  { %950 = vmatmul.bf16.gmra.mxu1 %v4409_v31  ;;  %v5813_v33 = vpop.permute.xlu1 %1299  ;;  %1030 = vmatmul.bf16.gmra.mxu3 %v4537_v32  ;;  %v5815_v34 = vpop.permute.xlu0 %1296  ;;  %v1144_v31 = vld [vmem:[%s9308_s2 + $0x1f8] sm:$0xff] }
  0x91   :  { %1437 = vperm.xlu2 %4784, %v1134_v35  }
  0x92   :  { %1434 = vperm.xlu1 %4783, %v1133_v36   ;;  %1431 = vperm.xlu0 %4782, %v1132_v37   ;;  %v4428_v36 = vld [vmem:[%s9306_s0 + $0x90] sm:$0xf]  ;;  %v4693_v37 = vld [vmem:[%s9306_s0 + $0x94] sm:$0xf0] }
  0x93   :  { %v5925_v27 = vpop.permute.xlu2 %1338 }
  0x94   :  { %v5828_v39 = vpop.permute.xlu1 %1308  ;;  %v5839_v43 = vpop.permute.xlu0 %1305 }
  0x99   :  { %1446 = vperm.xlu2 %4784, %v1137_v49   ;;  %v4429_v49 = vor.u32 %v4693_v37, %v4428_v36 }
  0x9a   :  { %1443 = vperm.xlu1 %4783, %v1136_v50   ;;  %1440 = vperm.xlu0 %4782, %v1135_v52   ;;  %v4557_v52 = vor.u32 %v4725_v41, %v4556_v40 }
  0x9b   :  { %786 = vmatmul.bf16.gmra.mxu0 %v4413_v51  ;;  %866 = vmatmul.bf16.gmra.mxu2 %v4541_v53  ;;  %v4433_v53 = vor.u32 %v4692_v42, %v4430_v44 }
  0x9c   :  { %955 = vmatmul.bf16.gmra.mxu1 %v4417_v54  ;;  %v5867_v58 = vpop.permute.xlu1 %1317  ;;  %1035 = vmatmul.bf16.gmra.mxu3 %v4545_v55  ;;  %v5869_v59 = vpop.permute.xlu0 %1314  ;;  %v4561_v55 = vor.u32 %v4724_v45, %v4558_v46  ;;  %v1211_v46 = vlaneseq }
  0xa1   :  { %1455 = vperm.xlu2 %4784, %v1140_v60   ;;  %v5970_v60 = vpop.permute.xlu2 %1347 }
  0xa2   :  { %1452 = vperm.xlu1 %4783, %v1139_v61   ;;  %1449 = vperm.xlu0 %4782, %v1138_v62  }
  0xa4   :  { %v5880_v63 = vpop.permute.xlu1 %1326  ;;  %v5908_v13 = vpop.permute.xlu0 %1323 }
  0xa8   :  { %v5916_v18 = vpop.f32.mrf.mxu0 }
  0xa9   :  { %v5921_v23 = vpop.f32.mrf.mxu1  ;;  %1464 = vperm.xlu2 %4784, %v1143_v14   ;;  %v5980_v6 = vpop.permute.xlu2 %1356 }
  0xaa   :  { %1461 = vperm.xlu1 %4783, %v1142_v16   ;;  %1458 = vperm.xlu0 %4782, %v1141_v20   ;;  %9601 = vst [vmem:[#allocation14_spill] sm:$0xff] %v5980_v6  ;;  %v4727_v16 = vld [vmem:[%s9306_s0 + $0x1a4] sm:$0xf0]  ;;  %v4438_v20 = vld [vmem:[%s9306_s0 + $0xa8] sm:$0xf0] }
  0xab   :  { %791 = vmatmul.bf16.gmra.mxu0 %v4421_v17  ;;  %871 = vmatmul.bf16.gmra.mxu2 %v4549_v21  ;;  %v4694_v17 = vld [vmem:[%s9306_s0 + $0xa4] sm:$0xf]  ;;  %v4565_v40 = vor.u32 %v4727_v16, %v4564_v12 }
  0xac   :  { %960 = vmatmul.bf16.gmra.mxu1 %v4425_v22  ;;  %1040 = vmatmul.bf16.gmra.mxu3 %v4553_v24  ;;  %v5923_v26 = vpop.permute.xlu1 %1335  ;;  %v5934_v32 = vpop.permute.xlu0 %1332  ;;  %v4726_v21 = vld [vmem:[%s9306_s0 + $0x1a4] sm:$0xf]  ;;  %v4566_v22 = vld [vmem:[%s9306_s0 + $0x1a8] sm:$0xf0]  ;;  %v4441_v41 = vor.u32 %v4694_v17, %v4438_v20 }
  0xad   :  { %v4569_v44 = vor.u32 %v4726_v21, %v4566_v22  ;;  %v4696_v21 = vld [vmem:[%s9306_s0 + $0xb4] sm:$0xf]  ;;  %v4446_v22 = vld [vmem:[%s9306_s0 + $0xb8] sm:$0xf0] }
  0xae   :  { %v5927_v28 = vpop.f32.mrf.mxu2 }
  0xaf   :  { %v5929_v29 = vpop.f32.mrf.mxu3 }
  0xb0   :  { %v754_v30 = vpop.f32.mrf.mxu0 }
  0xb1   :  { %v923_v35 = vpop.f32.mrf.mxu1 }
  0xb2   :  { %1467 = vperm.xlu0 %4782, %v1144_v31   ;;  %v4437_v31 = vor.u32 %v4695_v8, %v4436_v7  ;;  %v6026_v8 = vand.u32 127, %v1211_v46 }
  0xb4   :  { %v5960_v47 = vpop.permute.xlu1 %1344  ;;  %v5972_v61 = vpop.permute.xlu0 %1341  ;;  %vm1470_vm0 = vcmp.eq.s32.totalorder %v6026_v8, %v5785_v19  ;;  %vm1469_vm1 = vcmp.eq.s32.totalorder %v6026_v8, %v5763_v11  ;;  %v4572_v19 = vld [vmem:[%s9306_s0 + $0x1b0] sm:$0xf]  ;;  %v4729_v11 = vld [vmem:[%s9306_s0 + $0x1b4] sm:$0xf0]  ;;  %vm1472_vm2 = vcmp.eq.s32.totalorder %v6026_v8, %v5774_v15  ;;  %vm1471_vm3 = vcmp.eq.s32.totalorder %v6026_v8, %v5759_v9 }
  0xb5   :  { %vm1473_vm4 = vcmp.eq.s32.totalorder %v6026_v8, %v5724_v56  ;;  %vm1474_vm5 = vcmp.eq.s32.totalorder %v6026_v8, %v5761_v10  ;;  %vm1475_vm7 = vcmp.eq.s32.totalorder %v6026_v8, %v5815_v34  ;;  %v4699_v10 = vld [vmem:[%s9306_s0 + $0xc4] sm:$0xf0]  ;;  %vm1476_vm10 = vcmp.eq.s32.totalorder %v6026_v8, %v5813_v33 }
  0xb6   :  { %v5962_v48 = vpop.f32.mrf.mxu2  ;;  %vm1477_vm11 = vcmp.eq.s32.totalorder %v6026_v8, %v5802_v25  ;;  %v4701_v25 = vld [vmem:[%s9306_s0 + $0xd4] sm:$0xf0]  ;;  %vm1478_vm15 = vcmp.eq.s32.totalorder %v6026_v8, %v5839_v43 }
  0xb7   :  { %v5964_v50 = vpop.f32.mrf.mxu3 }
  0xb8   :  { %v5966_v51 = vpop.f32.mrf.mxu0 }
  0xb9   :  { %v5968_v54 = vpop.f32.mrf.mxu1 }
  0xbb   :  { %796 = vmatmul.bf16.gmra.mxu0 %v4429_v49  ;;  %876 = vmatmul.bf16.gmra.mxu2 %v4557_v52  ;;  %v6014_v49 = vpop.permute.xlu2 %1365  ;;  %v6016_v52 = vadd.f32 %v923_v35, %v754_v30  ;;  %v4697_v35 = vld [vmem:[%s9306_s0 + $0xb4] sm:$0xf0] }
  0xbc   :  { %965 = vmatmul.bf16.gmra.mxu1 %v4433_v53  ;;  %1045 = vmatmul.bf16.gmra.mxu3 %v4561_v55  ;;  %v5978_v3 = vpop.permute.xlu1 %1353  ;;  %v5991_v14 = vpop.permute.xlu0 %1350  ;;  %9603 = vst [vmem:[#allocation16_spill] sm:$0xff] %v6014_v49  ;;  %v6020_v53 = vadd.f32 %v5921_v23, %v5916_v18  ;;  %v4444_v23 = vld [vmem:[%s9306_s0 + $0xb0] sm:$0xf] }
  0xbd   :  { %9604 = vst [vmem:[#allocation17_spill] sm:$0xff] %v6016_v52  ;;  %v1534_v30 = vsel %vm1470_vm0, %v6016_v52, 0.0  ;;  %v4445_v46 = vor.u32 %v4697_v35, %v4444_v23 }
  0xbe   :  { %v5974_v62 = vpop.f32.mrf.mxu2  ;;  %9605 = vst [vmem:[#allocation18_spill] sm:$0xff] %v6020_v53  ;;  %v1533_v18 = vsel %vm1469_vm1, %v6020_v53, 0.0 }
  0xbf   :  { %v5976_v1 = vpop.f32.mrf.mxu3 }
  0xc0   :  { %v759_v2 = vpop.f32.mrf.mxu0 }
  0xc1   :  { %v928_v5 = vpop.f32.mrf.mxu1 }
  0xc4   :  { %v6012_v45 = vpop.permute.xlu1 %1362  ;;  %v6022_v55 = vpop.permute.xlu0 %1359 }
  0xc5   :  { %9602 = vst [vmem:[#allocation15_spill] sm:$0xff] %v6012_v45 }
  0xc6   :  { %v6008_v24 = vpop.f32.mrf.mxu2  ;;  %9606 = vst [vmem:[#allocation19_spill] sm:$0xff] %v6022_v55 }
  0xc7   :  { %v6010_v36 = vpop.f32.mrf.mxu3 }
  0xc8   :  { %v762_v37 = vpop.f32.mrf.mxu0 }
  0xc9   :  { %v931_v42 = vpop.f32.mrf.mxu1 }
  0xca   :  { %v6072_v49 = vadd.f32 %v931_v42, %v762_v37 }
  0xcb   :  { %801 = vmatmul.bf16.gmra.mxu0 %v4437_v31  ;;  %881 = vmatmul.bf16.gmra.mxu2 %v4565_v40  ;;  %v6056_v31 = vadd.f32 %v928_v5, %v759_v2  ;;  %v4728_v40 = vld [vmem:[%s9306_s0 + $0x1b4] sm:$0xf]  ;;  %v4573_v2 = vor.u32 %v4729_v11, %v4572_v19  ;;  %v4449_v5 = vor.u32 %v4696_v21, %v4446_v22  ;;  %v4698_v21 = vld [vmem:[%s9306_s0 + $0xc4] sm:$0xf]  ;;  %v4454_v22 = vld [vmem:[%s9306_s0 + $0xc8] sm:$0xf0] }
  0xcc   :  { %970 = vmatmul.bf16.gmra.mxu1 %v4441_v41  ;;  %1050 = vmatmul.bf16.gmra.mxu3 %v4569_v44  ;;  %v6045_v20 = vpop.permute.xlu1 %1371  ;;  %v4574_v41 = vld [vmem:[%s9306_s0 + $0x1b8] sm:$0xf0]  ;;  %9610 = vst [vmem:[#allocation23_spill] sm:$0xff] %v6072_v49  ;;  %v6076_v6 = vpop.permute.xlu0 %1368  ;;  %v1537_v15 = vsel %vm1473_vm4, %v6072_v49, 0.0  ;;  %vm1480_vm4 = vcmp.eq.s32.totalorder %v6026_v8, %v5826_v38 }
  0xcd   :  { %9607 = vst [vmem:[#allocation20_spill] sm:$0xff] %v6045_v20  ;;  %v1375_v20 = vpop.permute.xlu2 %1374  ;;  %v4577_v55 = vor.u32 %v4728_v40, %v4574_v41  ;;  %v1536_v23 = vsel %vm1472_vm2, %v6056_v31, 0.0  ;;  %v4730_v40 = vld [vmem:[%s9306_s0 + $0x1c4] sm:$0xf]  ;;  %v4582_v41 = vld [vmem:[%s9306_s0 + $0x1c8] sm:$0xf0] }
  0xce   :  { %v6024_v7 = vpop.f32.mrf.mxu2  ;;  %9608 = vst [vmem:[#allocation21_spill] sm:$0xff] %v6056_v31  ;;  %vm1501_vm8 = vcmp.eq.s32.totalorder %v6026_v8, %v1375_v20 }
  0xcf   :  { %v6028_v12 = vpop.f32.mrf.mxu3 }
  0xd0   :  { %v764_v16 = vpop.f32.mrf.mxu0  ;;  %v6161_v33 = vadd.f32 %v6028_v12, %v6024_v7  ;;  %v4588_v12 = vld [vmem:[%s9306_s0 + $0x1d0] sm:$0xf] }
  0xd1   :  { %v933_v17 = vpop.f32.mrf.mxu1 }
  0xd2   :  { %1599 = vadd.xlane.f32.xlu2 %v1534_v30  ;;  %v6068_v30 = vadd.f32 %v5968_v54, %v5966_v51  ;;  %v6085_v54 = vadd.f32 %v933_v17, %v764_v16  ;;  %v6101_v16 = vadd.f32 %v5976_v1, %v5974_v62  ;;  %v4580_v62 = vld [vmem:[%s9306_s0 + $0x1c0] sm:$0xf]  ;;  %v4731_v1 = vld [vmem:[%s9306_s0 + $0x1c4] sm:$0xf0]  ;;  %9618 = vst [vmem:[#allocation31_spill] sm:$0xff] %v6161_v33 }
  0xd4   :  { %1597 = vadd.xlane.f32.xlu1 %v1533_v18  ;;  %9609 = vst [vmem:[#allocation22_spill] sm:$0xff] %v6068_v30  ;;  %v1535_v51 = vsel %vm1471_vm3, %v6068_v30, 0.0  ;;  %v1381_v37 = vpop.permute.xlu1 %1380  ;;  %v1538_v56 = vsel %vm1474_vm5, %v6085_v54, 0.0  ;;  %vm1479_vm3 = vcmp.eq.s32.totalorder %v6026_v8, %v5828_v39 }
  0xd5   :  { %9611 = vst [vmem:[#allocation24_spill] sm:$0xff] %v6085_v54  ;;  %vm1503_vm6 = vcmp.eq.s32.totalorder %v6026_v8, %v1381_v37  ;;  %v4457_v37 = vor.u32 %v4698_v21, %v4454_v22 }
  0xd6   :  { %v6064_v44 = vpop.f32.mrf.mxu2  ;;  %9613 = vst [vmem:[#allocation26_spill] sm:$0xff] %v6101_v16  ;;  %v1567_v34 = vsel %vm1503_vm6, %v6101_v16, 0.0 }
  0xd7   :  { %v6070_v18 = vpop.f32.mrf.mxu3 }
  0xd8   :  { %v767_v0 = vpop.f32.mrf.mxu0  ;;  %v6167_v22 = vadd.f32 %v6070_v18, %v6064_v44  ;;  %v4733_v44 = vld [vmem:[%s9306_s0 + $0x1d4] sm:$0xf0] }
  0xd9   :  { %v936_v45 = vpop.f32.mrf.mxu1 }
  0xda   :  { %1603 = vadd.xlane.f32.xlu2 %v1536_v23  ;;  %v6089_v35 = vadd.f32 %v936_v45, %v767_v0  ;;  %v4452_v0 = vld [vmem:[%s9306_s0 + $0xc0] sm:$0xf]  ;;  %v1378_v45 = vpop.permute.xlu0 %1377  ;;  %9619 = vst [vmem:[#allocation32_spill] sm:$0xff] %v6167_v22 }
  0xdb   :  { %806 = vmatmul.bf16.gmra.mxu0 %v4445_v46  ;;  %886 = vmatmul.bf16.gmra.mxu2 %v4573_v2  ;;  %v4453_v2 = vor.u32 %v4699_v10, %v4452_v0  ;;  %vm1502_vm9 = vcmp.eq.s32.totalorder %v6026_v8, %v1378_v45  ;;  %v6145_v0 = vadd.f32 %v5964_v50, %v5962_v48 }
  0xdc   :  { %975 = vmatmul.bf16.gmra.mxu1 %v4449_v5  ;;  %1055 = vmatmul.bf16.gmra.mxu3 %v4577_v55  ;;  %9612 = vst [vmem:[#allocation25_spill] sm:$0xff] %v6089_v35  ;;  %v6097_v55 = vpop.permute.xlu2 %1383  ;;  %v1539_v17 = vsel %vm1475_vm7, %v6089_v35, 0.0  ;;  %v6136_v5 = vadd.f32 %v5929_v29, %v5927_v28  ;;  %v1390_v50 = vpop.permute.xlu1 %1389 }
  0xdd   :  { %1601 = vadd.xlane.f32.xlu0 %v1535_v51  ;;  %1605 = vadd.xlane.f32.xlu1 %v1537_v15  ;;  %v4581_v15 = vor.u32 %v4731_v1, %v4580_v62  ;;  %9616 = vst [vmem:[#allocation29_spill] sm:$0xff] %v6145_v0  ;;  %v1566_v28 = vsel %vm1502_vm9, %v6145_v0, 0.0  ;;  %vm1506_vm13 = vcmp.eq.s32.totalorder %v6026_v8, %v1390_v50 }
  0xde   :  { %v6087_v42 = vpop.f32.mrf.mxu2  ;;  %9614 = vst [vmem:[#allocation27_spill] sm:$0xff] %v6136_v5  ;;  %v1565_v20 = vsel %vm1501_vm8, %v6136_v5, 0.0  ;;  %v1570_v18 = vsel %vm1506_vm13, %v6167_v22, 0.0  ;;  %vm1504_vm14 = vcmp.eq.s32.totalorder %v6026_v8, %v6097_v55  ;;  %vm1481_vm8 = vcmp.eq.s32.totalorder %v6026_v8, %v5869_v59  ;;  %v4737_v59 = vld [vmem:[%s9306_s0 + $0x1f4] sm:$0xf0] }
  0xdf   :  { %v6091_v9 = vpop.f32.mrf.mxu3  ;;  %vm38_vm13 = vcmask 7168  }
  0xe0   :  { %v769_v19 = vpop.f32.mrf.mxu0  ;;  %v6219_v55 = vadd.f32 %v6091_v9, %v6087_v42  ;;  %v4468_v42 = vld [vmem:[%s9306_s0 + $0xe0] sm:$0xf]  ;;  %v4703_v9 = vld [vmem:[%s9306_s0 + $0xe4] sm:$0xf0] }
  0xe1   :  { %v938_v11 = vpop.f32.mrf.mxu1 }
  0xe2   :  { %1607 = vadd.xlane.f32.xlu2 %v1538_v56  ;;  %v6140_v56 = vadd.f32 %v938_v11, %v769_v19  ;;  %v1387_v11 = vpop.permute.xlu0 %1386  ;;  %9623 = vst [vmem:[#allocation36_spill] sm:$0xff] %v6219_v55 }
  0xe3   :  { %vm1505_vm12 = vcmp.eq.s32.totalorder %v6026_v8, %v1387_v11 }
  0xe4   :  { %9615 = vst [vmem:[#allocation28_spill] sm:$0xff] %v6140_v56  ;;  %v6151_v29 = vpop.permute.xlu2 %1392  ;;  %v1540_v19 = vsel %vm1476_vm10, %v6140_v56, 0.0  ;;  %v1569_v7 = vsel %vm1505_vm12, %v6161_v33, 0.0  ;;  %v1399_v50 = vpop.permute.xlu1 %1398  ;;  %vm1483_vm12 = vcmp.eq.s32.totalorder %v6026_v8, %v5865_v57 }
  0xe5   :  { %1609 = vadd.xlane.f32.xlu0 %v1539_v17  ;;  %1665 = vadd.xlane.f32.xlu1 %v1567_v34  ;;  %v4585_v34 = vor.u32 %v4730_v40, %v4582_v41  ;;  %v4460_v40 = vld [vmem:[%s9306_s0 + $0xd0] sm:$0xf]  ;;  %v4700_v41 = vld [vmem:[%s9306_s0 + $0xd4] sm:$0xf]  ;;  %vm1509_vm0 = vcmp.eq.s32.totalorder %v6026_v8, %v1399_v50  ;;  %vm1507_vm1 = vcmp.eq.s32.totalorder %v6026_v8, %v6151_v29  ;;  %v4735_v29 = vld [vmem:[%s9306_s0 + $0x1e4] sm:$0xf0] }
  0xe6   :  { %v6131_v46 = vpop.f32.mrf.mxu2  ;;  %v4469_v50 = vor.u32 %v4703_v9, %v4468_v42 }
  0xe7   :  { %v6138_v23 = vpop.f32.mrf.mxu3 }
  0xe8   :  { %v772_v51 = vpop.f32.mrf.mxu0  ;;  %v6223_v43 = vadd.f32 %v6138_v23, %v6131_v46  ;;  %v4596_v23 = vld [vmem:[%s9306_s0 + $0x1e0] sm:$0xf] }
  0xe9   :  { %v941_v17 = vpop.f32.mrf.mxu1 }
  0xea   :  { %1661 = vadd.xlane.f32.xlu2 %v1565_v20  ;;  %v6154_v48 = vadd.f32 %v941_v17, %v772_v51  ;;  %v6191_v51 = vadd.f32 %v6010_v36, %v6008_v24  ;;  %v4461_v20 = vor.u32 %v4701_v25, %v4460_v40  ;;  %v4589_v36 = vor.u32 %v4733_v44, %v4588_v12 }
  0xeb   :  { %811 = vmatmul.bf16.gmra.mxu0 %v4453_v2  ;;  %891 = vmatmul.bf16.gmra.mxu2 %v4581_v15  ;;  %v4462_v2 = vld [vmem:[%s9306_s0 + $0xd8] sm:$0xf0]  ;;  %v4732_v15 = vld [vmem:[%s9306_s0 + $0x1d4] sm:$0xf]  ;;  %9624 = vst [vmem:[#allocation37_spill] sm:$0xff] %v6223_v43 }
  0xec   :  { %980 = vmatmul.bf16.gmra.mxu1 %v4457_v37  ;;  %1060 = vmatmul.bf16.gmra.mxu3 %v4585_v34  ;;  %9617 = vst [vmem:[#allocation30_spill] sm:$0xff] %v6154_v48  ;;  %v1541_v21 = vsel %vm1477_vm11, %v6154_v48, 0.0  ;;  %v4590_v37 = vld [vmem:[%s9306_s0 + $0x1d8] sm:$0xf0]  ;;  %v6199_v17 = vpop.permute.xlu2 %1401  ;;  %v4465_v11 = vor.u32 %v4700_v41, %v4462_v2  ;;  %v1568_v22 = vsel %vm1504_vm14, %v6191_v51, 0.0  ;;  %v1571_v41 = vsel %vm1507_vm1, %v6219_v55, 0.0 }
  0xed   :  { %1663 = vadd.xlane.f32.xlu0 %v1566_v28  ;;  %1611 = vadd.xlane.f32.xlu1 %v1540_v19  ;;  %9620 = vst [vmem:[#allocation33_spill] sm:$0xff] %v6191_v51  ;;  %vm1510_vm7 = vcmp.eq.s32.totalorder %v6026_v8, %v6199_v17  ;;  %v4604_v17 = vld [vmem:[%s9306_s0 + $0x1f0] sm:$0xf]  ;;  %vm1482_vm11 = vcmp.eq.s32.totalorder %v6026_v8, %v5867_v58 }
  0xee   :  { %v852_v10 = vpop.f32.mrf.mxu2  ;;  %vm1484_vm14 = vcmp.eq.s32.totalorder %v6026_v8, %v5908_v13 }
  0xef   :  { %v1021_v45 = vpop.f32.mrf.mxu3 }
  0xf0   :  { %v774_v62 = vpop.f32.mrf.mxu0 }
  0xf1   :  { %v943_v1 = vpop.f32.mrf.mxu1 }
  0xf2   :  { %1613 = vadd.xlane.f32.xlu2 %v1541_v21  ;;  %v6203_v28 = vadd.f32 %v943_v1, %v774_v62  ;;  %v6207_v21 = vadd.f32 %v1021_v45, %v852_v10  ;;  %v1396_v10 = vpop.permute.xlu0 %1395 }
  0xf3   :  { %vm1508_vm2 = vcmp.eq.s32.totalorder %v6026_v8, %v1396_v10  ;;  %v4597_v10 = vor.u32 %v4735_v29, %v4596_v23 }
  0xf4   :  { %9621 = vst [vmem:[#allocation34_spill] sm:$0xff] %v6203_v28  ;;  %v1542_v62 = vsel %vm1478_vm15, %v6203_v28, 0.0  ;;  %v1573_v45 = vsel %vm1509_vm0, %v6207_v21, 0.0  ;;  %v6225_v25 = vpop.permute.xlu2 %1410  ;;  %v1572_v46 = vsel %vm1508_vm2, %v6223_v43, 0.0  ;;  %vm1485_vm2 = vcmp.eq.s32.totalorder %v6026_v8, %v5880_v63 }
  0xf5   :  { %1669 = vadd.xlane.f32.xlu0 %v1569_v7  ;;  %1671 = vadd.xlane.f32.xlu1 %v1570_v18  ;;  %9622 = vst [vmem:[#allocation35_spill] sm:$0xff] %v6207_v21  ;;  %v4593_v18 = vor.u32 %v4732_v15, %v4590_v37  ;;  %v4702_v15 = vld [vmem:[%s9306_s0 + $0xe4] sm:$0xf]  ;;  %v4470_v37 = vld [vmem:[%s9306_s0 + $0xe8] sm:$0xf0]  ;;  %vm1513_vm9 = vcmp.eq.s32.totalorder %v6026_v8, %v6225_v25 }
  0xf6   :  { %v6201_v34 = vpop.f32.mrf.mxu2 }
  0xf7   :  { %v6205_v19 = vpop.f32.mrf.mxu3 }
  0xf8   :  { %v777_v24 = vpop.f32.mrf.mxu0  ;;  %v6278_v38 = vadd.f32 %v6205_v19, %v6201_v34  ;;  %v4476_v34 = vld [vmem:[%s9306_s0 + $0xf0] sm:$0xf] }
  0xf9   :  { %v946_v7 = vpop.f32.mrf.mxu1 }
  0xfa   :  { %1667 = vadd.xlane.f32.xlu2 %v1568_v22  ;;  %v6227_v12 = vadd.f32 %v946_v7, %v777_v24  ;;  %v4598_v24 = vld [vmem:[%s9306_s0 + $0x1e8] sm:$0xf0]  ;;  %9628 = vst [vmem:[#allocation41_spill] sm:$0xff] %v6278_v38 }
  0xfb   :  { %816 = vmatmul.bf16.gmra.mxu0 %v4461_v20  ;;  %896 = vmatmul.bf16.gmra.mxu2 %v4589_v36  ;;  %v4734_v20 = vld [vmem:[%s9306_s0 + $0x1e4] sm:$0xf]  ;;  %v1405_v36 = vpop.permute.xlu0 %1404 }
  0xfc   :  { %985 = vmatmul.bf16.gmra.mxu1 %v4465_v11  ;;  %1065 = vmatmul.bf16.gmra.mxu3 %v4593_v18  ;;  %v1543_v2 = vsel %vm1479_vm3, %v6227_v12, 0.0  ;;  %v6270_v21 = vpop.permute.xlu2 %1419  ;;  %vm1511_vm5 = vcmp.eq.s32.totalorder %v6026_v8, %v1405_v36  ;;  %v4704_v36 = vld [vmem:[%s9306_s0 + $0xf4] sm:$0xf]  ;;  %vm1486_vm3 = vcmp.eq.s32.totalorder %v6026_v8, %v5891_v4 }
  0xfd   :  { %1615 = vadd.xlane.f32.xlu0 %v1542_v62  ;;  %1677 = vadd.xlane.f32.xlu1 %v1573_v45  ;;  %v4473_v45 = vor.u32 %v4702_v15, %v4470_v37  ;;  %v1574_v37 = vsel %vm1510_vm7, %v6278_v38, 0.0  ;;  %vm1516_vm0 = vcmp.eq.s32.totalorder %v6026_v8, %v6270_v21  ;;  %vm1488_vm7 = vcmp.eq.s32.totalorder %v6026_v8, %v5923_v26 }
  0xfe   :  { %v857_v1 = vpop.f32.mrf.mxu2 }
  0xff   :  { %v1026_v22 = vpop.f32.mrf.mxu3 }
 0x100   :  { %v779_v40 = vpop.f32.mrf.mxu0  ;;  %v6263_v7 = vadd.f32 %v1026_v22, %v857_v1 }
 0x101   :  { %v948_v44 = vpop.f32.mrf.mxu1 }
 0x102   :  { %1673 = vadd.xlane.f32.xlu2 %v1571_v41  ;;  %v6255_v39 = vadd.f32 %v948_v44, %v779_v40  ;;  %9626 = vst [vmem:[#allocation39_spill] sm:$0xff] %v6263_v7  ;;  %v1408_v40 = vpop.permute.xlu1 %1407  ;;  %v1575_v1 = vsel %vm1511_vm5, %v6263_v7, 0.0 }
 0x103   :  { %vm1512_vm6 = vcmp.eq.s32.totalorder %v6026_v8, %v1408_v40 }
 0x104   :  { %9625 = vst [vmem:[#allocation38_spill] sm:$0xff] %v6255_v39 }
 0x105   :  { %1675 = vadd.xlane.f32.xlu0 %v1572_v46  ;;  %1617 = vadd.xlane.f32.xlu1 %v1543_v2  ;;  %v4601_v46 = vor.u32 %v4734_v20, %v4598_v24  ;;  %v1544_v2 = vsel %vm1480_vm4, %v6255_v39, 0.0  ;;  %v4705_v20 = vld [vmem:[%s9306_s0 + $0xf4] sm:$0xf0]  ;;  %v6297_v24 = vpop.permute.xlu2 %1428  ;;  %vm1487_vm4 = vcmp.eq.s32.totalorder %v6026_v8, %v5934_v32 }
 0x106   :  { %v859_v11 = vpop.f32.mrf.mxu2  ;;  %v4477_v40 = vor.u32 %v4705_v20, %v4476_v34 }
 0x107   :  { %v1028_v18 = vpop.f32.mrf.mxu3 }
 0x108   :  { %v782_v62 = vpop.f32.mrf.mxu0  ;;  %v6265_v44 = vadd.f32 %v1028_v18, %v859_v11  ;;  %v4478_v11 = vld [vmem:[%s9306_s0 + $0xf8] sm:$0xf0]  ;;  %v4736_v18 = vld [vmem:[%s9306_s0 + $0x1f4] sm:$0xf] }
 0x109   :  { %v951_v41 = vpop.f32.mrf.mxu1 }
 0x10a   :  { %9627 = vst [vmem:[#allocation40_spill] sm:$0xff] %v6265_v44  ;;  %1619 = vadd.xlane.f32.xlu2 %v1544_v2  ;;  %v1576_v22 = vsel %vm1512_vm6, %v6265_v44, 0.0  ;;  %v6280_v9 = vadd.f32 %v951_v41, %v782_v62  ;;  %v4606_v62 = vld [vmem:[%s9306_s0 + $0x1f8] sm:$0xf0]  ;;  %v4605_v2 = vor.u32 %v4737_v59, %v4604_v17  ;;  %vm1519_vm6 = vcmp.eq.s32.totalorder %v6026_v8, %v6297_v24 }
 0x10b   :  { %821 = vmatmul.bf16.gmra.mxu0 %v4469_v50  ;;  %901 = vmatmul.bf16.gmra.mxu2 %v4597_v10  ;;  %v1414_v10 = vpop.permute.xlu0 %1413 }
 0x10c   :  { %990 = vmatmul.bf16.gmra.mxu1 %v4473_v45  ;;  %1070 = vmatmul.bf16.gmra.mxu3 %v4601_v46  ;;  %9629 = vst [vmem:[#allocation42_spill] sm:$0xff] %v6280_v9  ;;  %v1545_v19 = vsel %vm1481_vm8, %v6280_v9, 0.0  ;;  %vm1514_vm10 = vcmp.eq.s32.totalorder %v6026_v8, %v1414_v10  ;;  %v5443_v10 = vmov 0.0  }
 0x10d   :  { %1681 = vadd.xlane.f32.xlu0 %v1575_v1  ;;  %1683 = vadd.xlane.f32.xlu1 %v1576_v22  ;;  %v4481_v1 = vor.u32 %v4704_v36, %v4478_v11  ;;  %v6331_v25 = vpop.permute.xlu2 %1437  ;;  %v1417_v36 = vpop.permute.xlu1 %1416  ;;  %168 = vst.msk [vmem:[#allocation4 + $0x8] sm:$0xff] %vm38_vm13, %v5443_v10 }
 0x10e   :  { %v862_v42 = vpop.f32.mrf.mxu2  ;;  %vm1515_vm15 = vcmp.eq.s32.totalorder %v6026_v8, %v1417_v36  ;;  %103 = vst.msk [vmem:[#allocation3] sm:$0xff] %vm38_vm13, %v5443_v10 }
 0x10f   :  { %v1031_v23 = vpop.f32.mrf.mxu3  ;;  %104 = vst.msk [vmem:[#allocation3 + $0x8] sm:$0xff] %vm38_vm13, %v5443_v10 }
 0x110   :  { %v784_v29 = vpop.f32.mrf.mxu0  ;;  %v6308_v50 = vadd.f32 %v1031_v23, %v862_v42  ;;  %105 = vst.msk [vmem:[#allocation3 + $0x10] sm:$0xff] %vm38_vm13, %v5443_v10 }
 0x111   :  { %v953_v15 = vpop.f32.mrf.mxu1  ;;  %106 = vst.msk [vmem:[#allocation3 + $0x18] sm:$0xff] %vm38_vm13, %v5443_v10 }
 0x112   :  { %1679 = vadd.xlane.f32.xlu2 %v1574_v37  ;;  %9630 = vst [vmem:[#allocation43_spill] sm:$0xff] %v6308_v50  ;;  %v6317_v22 = vadd.f32 %v953_v15, %v784_v29  ;;  %v4609_v37 = vor.u32 %v4736_v18, %v4606_v62 }
 0x113   :  { %107 = vst.msk [vmem:[#allocation3 + $0x20] sm:$0xff] %vm38_vm13, %v5443_v10  ;;  %v1423_v21 = vpop.permute.xlu0 %1422 }
 0x114   :  { %v1546_v29 = vsel %vm1482_vm11, %v6317_v22, 0.0  ;;  %108 = vst.msk [vmem:[#allocation3 + $0x28] sm:$0xff] %vm38_vm13, %v5443_v10  ;;  %vm1517_vm1 = vcmp.eq.s32.totalorder %v6026_v8, %v1423_v21  ;;  %vm1490_vm11 = vcmp.eq.s32.totalorder %v6026_v8, %v5972_v61 }
 0x115   :  { %1621 = vadd.xlane.f32.xlu0 %v1545_v19  ;;  %1854 = vmax.xlane.f32.xlu1 %v6020_v53  ;;  %v1577_v19 = vsel %vm1513_vm9, %v6308_v50, 0.0  ;;  %109 = vst.msk [vmem:[#allocation3 + $0x30] sm:$0xff] %vm38_vm13, %v5443_v10  ;;  %vm1489_vm9 = vcmp.eq.s32.totalorder %v6026_v8, %v5925_v27 }
 0x116   :  { %v864_v45 = vpop.f32.mrf.mxu2  ;;  %110 = vst.msk [vmem:[#allocation3 + $0x38] sm:$0xff] %vm38_vm13, %v5443_v10 }
 0x117   :  { %v1033_v41 = vpop.f32.mrf.mxu3  ;;  %111 = vst.msk [vmem:[#allocation3 + $0x40] sm:$0xff] %vm38_vm13, %v5443_v10 }
 0x118   :  { %v787_v46 = vpop.f32.mrf.mxu0  ;;  %v6319_v42 = vadd.f32 %v1033_v41, %v864_v45  ;;  %112 = vst.msk [vmem:[#allocation3 + $0x48] sm:$0xff] %vm38_vm13, %v5443_v10 }
 0x119   :  { %v956_v23 = vpop.f32.mrf.mxu1  ;;  %113 = vst.msk [vmem:[#allocation3 + $0x50] sm:$0xff] %vm38_vm13, %v5443_v10 }
 0x11a   :  { %9631 = vst [vmem:[#allocation44_spill] sm:$0xff] %v6319_v42  ;;  %1685 = vadd.xlane.f32.xlu2 %v1577_v19  ;;  %v1578_v34 = vsel %vm1514_vm10, %v6319_v42, 0.0  ;;  %v6329_v15 = vadd.f32 %v956_v23, %v787_v46 }
 0x11b   :  { %826 = vmatmul.bf16.gmra.mxu0 %v4477_v40  ;;  %906 = vmatmul.bf16.gmra.mxu2 %v4605_v2  ;;  %114 = vst.msk [vmem:[#allocation3 + $0x58] sm:$0xff] %vm38_vm13, %v5443_v10 }
 0x11c   :  { %995 = vmatmul.bf16.gmra.mxu1 %v4481_v1  ;;  %1075 = vmatmul.bf16.gmra.mxu3 %v4609_v37  ;;  %9632 = vst [vmem:[#allocation45_spill] sm:$0xff] %v6329_v15  ;;  %v1547_v62 = vsel %vm1483_vm12, %v6329_v15, 0.0  ;;  %v6361_v1 = vpop.permute.xlu2 %1446  ;;  %vm1522_vm12 = vcmp.eq.s32.totalorder %v6026_v8, %v6331_v25 }
 0x11d   :  { %1687 = vadd.xlane.f32.xlu0 %v1578_v34  ;;  %1623 = vadd.xlane.f32.xlu1 %v1546_v29  ;;  %115 = vst.msk [vmem:[#allocation3 + $0x60] sm:$0xff] %vm38_vm13, %v5443_v10 }
 0x11e   :  { %v867_v20 = vpop.f32.mrf.mxu2  ;;  %116 = vst.msk [vmem:[#allocation3 + $0x68] sm:$0xff] %vm38_vm13, %v5443_v10 }
 0x11f   :  { %v1036_v17 = vpop.f32.mrf.mxu3  ;;  %117 = vst.msk [vmem:[#allocation3 + $0x70] sm:$0xff] %vm38_vm13, %v5443_v10 }
 0x120   :  { %v789_v59 = vpop.f32.mrf.mxu0  ;;  %v6333_v11 = vadd.f32 %v1036_v17, %v867_v20  ;;  %118 = vst.msk [vmem:[#allocation3 + $0x78] sm:$0xff] %vm38_vm13, %v5443_v10 }
 0x121   :  { %v958_v18 = vpop.f32.mrf.mxu1  ;;  %119 = vst.msk [vmem:[#allocation3 + $0x80] sm:$0xff] %vm38_vm13, %v5443_v10 }
 0x122   :  { %9633 = vst [vmem:[#allocation46_spill] sm:$0xff] %v6333_v11  ;;  %v6337_v58 = vadd.f32 %v958_v18, %v789_v59  ;;  %1625 = vadd.xlane.f32.xlu2 %v1547_v62  ;;  %v1579_v57 = vsel %vm1515_vm15, %v6333_v11, 0.0 }
 0x123   :  { %120 = vst.msk [vmem:[#allocation3 + $0x88] sm:$0xff] %vm38_vm13, %v5443_v10 }
 0x124   :  { %9634 = vst [vmem:[#allocation47_spill] sm:$0xff] %v6337_v58  ;;  %v1548_v45 = vsel %vm1484_vm14, %v6337_v58, 0.0  ;;  %v6393_v59 = vpop.permute.xlu2 %1455  ;;  %vm1491_vm14 = vcmp.eq.s32.totalorder %v6026_v8, %v5960_v47 }
 0x125   :  { %1627 = vadd.xlane.f32.xlu0 %v1548_v45  ;;  %1689 = vadd.xlane.f32.xlu1 %v1579_v57  ;;  %121 = vst.msk [vmem:[#allocation3 + $0x90] sm:$0xff] %vm38_vm13, %v5443_v10 }
 0x126   :  { %v869_v13 = vpop.f32.mrf.mxu2  ;;  %122 = vst.msk [vmem:[#allocation3 + $0x98] sm:$0xff] %vm38_vm13, %v5443_v10 }
 0x127   :  { %v1038_v40 = vpop.f32.mrf.mxu3  ;;  %123 = vst.msk [vmem:[#allocation3 + $0xa0] sm:$0xff] %vm38_vm13, %v5443_v10 }
 0x128   :  { %v792_v41 = vpop.f32.mrf.mxu0  ;;  %v6357_v46 = vadd.f32 %v1038_v40, %v869_v13  ;;  %v1426_v13 = vpop.permute.xlu1 %1425  ;;  %124 = vst.msk [vmem:[#allocation3 + $0xa8] sm:$0xff] %vm38_vm13, %v5443_v10 }
 0x129   :  { %v961_v2 = vpop.f32.mrf.mxu1  ;;  %125 = vst.msk [vmem:[#allocation3 + $0xb0] sm:$0xff] %vm38_vm13, %v5443_v10  ;;  %vm1518_vm5 = vcmp.eq.s32.totalorder %v6026_v8, %v1426_v13 }
 0x12a   :  { %9635 = vst [vmem:[#allocation48_spill] sm:$0xff] %v6357_v46  ;;  %v1580_v23 = vsel %vm1516_vm0, %v6357_v46, 0.0  ;;  %v6382_v29 = vadd.f32 %v961_v2, %v792_v41  ;;  %vm1492_vm0 = vcmp.eq.s32.totalorder %v6026_v8, %v5970_v60 }
 0x12b   :  { %1691 = vadd.xlane.f32.xlu2 %v1580_v23  ;;  %126 = vst.msk [vmem:[#allocation3 + $0xb8] sm:$0xff] %vm38_vm13, %v5443_v10 }
 0x12c   :  { %9636 = vst [vmem:[#allocation49_spill] sm:$0xff] %v6382_v29  ;;  %v1549_v18 = vsel %vm1485_vm2, %v6382_v29, 0.0  ;;  %vm1493_vm2 = vcmp.eq.s32.totalorder %v6026_v8, %v5991_v14 }
 0x12d   :  { %1858 = vmax.xlane.f32.xlu0 %v6068_v30  ;;  %1860 = vmax.xlane.f32.xlu1 %v6056_v31  ;;  %127 = vst.msk [vmem:[#allocation3 + $0xc0] sm:$0xff] %vm38_vm13, %v5443_v10 }
 0x12e   :  { %v872_v37 = vpop.f32.mrf.mxu2  ;;  %128 = vst.msk [vmem:[#allocation3 + $0xc8] sm:$0xff] %vm38_vm13, %v5443_v10 }
 0x12f   :  { %v1041_v19 = vpop.f32.mrf.mxu3  ;;  %129 = vst.msk [vmem:[#allocation3 + $0xd0] sm:$0xff] %vm38_vm13, %v5443_v10 }
 0x130   :  { %v794_v34 = vpop.f32.mrf.mxu0  ;;  %v6384_v20 = vadd.f32 %v1041_v19, %v872_v37  ;;  %v6434_v37 = vpop.permute.xlu2 %1464  ;;  %130 = vst.msk [vmem:[#allocation3 + $0xd8] sm:$0xff] %vm38_vm13, %v5443_v10 }
 0x131   :  { %v963_v17 = vpop.f32.mrf.mxu1  ;;  %131 = vst.msk [vmem:[#allocation3 + $0xe0] sm:$0xff] %vm38_vm13, %v5443_v10 }
 0x132   :  { %9637 = vst [vmem:[#allocation50_spill] sm:$0xff] %v6384_v20  ;;  %v1581_v36 = vsel %vm1517_vm1, %v6384_v20, 0.0  ;;  %v6406_v62 = vadd.f32 %v963_v17, %v794_v34 }
 0x133   :  { %1856 = vmax.xlane.f32.xlu2 %v6016_v52  ;;  %132 = vst.msk [vmem:[#allocation3 + $0xe8] sm:$0xff] %vm38_vm13, %v5443_v10 }
 0x134   :  { %9638 = vst [vmem:[#allocation51_spill] sm:$0xff] %v6406_v62  ;;  %v1550_v23 = vsel %vm1486_vm3, %v6406_v62, 0.0  ;;  %vm1525_vm3 = vcmp.eq.s32.totalorder %v6026_v8, %v6361_v1 }
 0x135   :  { %1693 = vadd.xlane.f32.xlu0 %v1581_v36  ;;  %1629 = vadd.xlane.f32.xlu1 %v1549_v18  ;;  %133 = vst.msk [vmem:[#allocation3 + $0xf0] sm:$0xff] %vm38_vm13, %v5443_v10  ;;  %v1214_v36 = vld [vmem:[#allocation4 + $0x8] sm:$0xff] }
 0x136   :  { %v874_v45 = vpop.f32.mrf.mxu2  ;;  %134 = vst.msk [vmem:[#allocation3 + $0xf8] sm:$0xff] %vm38_vm13, %v5443_v10 }
 0x137   :  { %v1043_v63 = vpop.f32.mrf.mxu3  ;;  %135 = vst.msk [vmem:[#allocation3 + $0x100] sm:$0xff] %vm38_vm13, %v5443_v10 }
 0x138   :  { %v797_v57 = vpop.f32.mrf.mxu0  ;;  %v6412_v40 = vadd.f32 %v1043_v63, %v874_v45  ;;  %136 = vst.msk [vmem:[#allocation3 + $0x108] sm:$0xff] %vm38_vm13, %v5443_v10  ;;  %v6495_v45 = vpop.permute.xlu0 %1431 }
 0x139   :  { %v966_v41 = vpop.f32.mrf.mxu1  ;;  %137 = vst.msk [vmem:[#allocation3 + $0x110] sm:$0xff] %vm38_vm13, %v5443_v10  ;;  %v6499_v63 = vpop.permute.xlu1 %1434  ;;  %vm1520_vm8 = vcmp.eq.s32.totalorder %v6026_v8, %v6495_v45 }
 0x13a   :  { %9639 = vst [vmem:[#allocation52_spill] sm:$0xff] %v6412_v40  ;;  %v6416_v2 = vadd.f32 %v966_v41, %v797_v57  ;;  %v1582_v4 = vsel %vm1518_vm5, %v6412_v40, 0.0  ;;  %vm1521_vm10 = vcmp.eq.s32.totalorder %v6026_v8, %v6499_v63 }
 0x13b   :  { %1631 = vadd.xlane.f32.xlu2 %v1550_v23  ;;  %138 = vst.msk [vmem:[#allocation3 + $0x118] sm:$0xff] %vm38_vm13, %v5443_v10 }
 0x13c   :  { %9640 = vst [vmem:[#allocation53_spill] sm:$0xff] %v6416_v2  ;;  %v1551_v21 = vsel %vm1487_vm4, %v6416_v2, 0.0  ;;  %vm1494_vm4 = vcmp.eq.s32.totalorder %v6026_v8, %v5978_v3 }
 0x13d   :  { %1633 = vadd.xlane.f32.xlu0 %v1551_v21  ;;  %1695 = vadd.xlane.f32.xlu1 %v1582_v4  ;;  %139 = vst.msk [vmem:[#allocation3 + $0x120] sm:$0xff] %vm38_vm13, %v5443_v10 }
 0x13e   :  { %v877_v32 = vpop.f32.mrf.mxu2  ;;  %140 = vst.msk [vmem:[#allocation3 + $0x128] sm:$0xff] %vm38_vm13, %v5443_v10 }
 0x13f   :  { %v1046_v19 = vpop.f32.mrf.mxu3  ;;  %141 = vst.msk [vmem:[#allocation3 + $0x130] sm:$0xff] %vm38_vm13, %v5443_v10 }
 0x140   :  { %v6442_v34 = vadd.f32 %v1046_v19, %v877_v32  ;;  %142 = vst.msk [vmem:[#allocation3 + $0x138] sm:$0xff] %vm38_vm13, %v5443_v10  ;;  %v6519_v57 = vpop.permute.xlu0 %1440  ;;  %v799_v21 = vpop.f32.mrf.mxu0 }
 0x141   :  { %143 = vst.msk [vmem:[#allocation3 + $0x140] sm:$0xff] %vm38_vm13, %v5443_v10  ;;  %v6523_v13 = vpop.permute.xlu1 %1443  ;;  %v968_v4 = vpop.f32.mrf.mxu1  ;;  %vm1523_vm15 = vcmp.eq.s32.totalorder %v6026_v8, %v6519_v57 }
 0x142   :  { %9641 = vst [vmem:[#allocation54_spill] sm:$0xff] %v6442_v34  ;;  %v1583_v17 = vsel %vm1519_vm6, %v6442_v34, 0.0  ;;  %vm1524_vm1 = vcmp.eq.s32.totalorder %v6026_v8, %v6523_v13 }
 0x143   :  { %1697 = vadd.xlane.f32.xlu2 %v1583_v17  ;;  %144 = vst.msk [vmem:[#allocation3 + $0x148] sm:$0xff] %vm38_vm13, %v5443_v10  ;;  %v6575_v17 = vadd.f32 %v968_v4, %v799_v21 }
 0x144   :  { %145 = vst.msk [vmem:[#allocation3 + $0x150] sm:$0xff] %vm38_vm13, %v5443_v10 }
 0x145   :  { %1864 = vmax.xlane.f32.xlu0 %v6085_v54  ;;  %1866 = vmax.xlane.f32.xlu1 %v6089_v35  ;;  %v1600_v24 = vpop.xlane.xlu2 %1599  ;;  %146 = vst.msk [vmem:[#allocation3 + $0x158] sm:$0xff] %vm38_vm13, %v5443_v10 }
 0x146   :  { %v1726_v18 = vadd.f32 %v1600_v24, %v1214_v36  ;;  %147 = vst.msk [vmem:[#allocation3 + $0x160] sm:$0xff] %vm38_vm13, %v5443_v10  ;;  %v879_v36 = vpop.f32.mrf.mxu2 }
 0x147   :  { %148 = vst.msk [vmem:[#allocation3 + $0x168] sm:$0xff] %vm38_vm13, %v5443_v10  ;;  %v1048_v24 = vpop.f32.mrf.mxu3 }
 0x148   :  { %1791 = vst.msk [vmem:[#allocation4 + $0x8] sm:$0xff] %vm38_vm13, %v1726_v18  ;;  %v6543_v41 = vpop.permute.xlu0 %1449  ;;  %v1552_v18 = vsel %vm1488_vm7, %v6575_v17, 0.0  ;;  %v6592_v21 = vadd.f32 %v1048_v24, %v879_v36  ;;  %v802_v35 = vpop.f32.mrf.mxu0 }
 0x149   :  { %149 = vst.msk [vmem:[#allocation3 + $0x170] sm:$0xff] %vm38_vm13, %v5443_v10  ;;  %v6547_v23 = vpop.permute.xlu1 %1452  ;;  %vm1526_vm5 = vcmp.eq.s32.totalorder %v6026_v8, %v6543_v41 }
 0x14a   :  { %150 = vst.msk [vmem:[#allocation3 + $0x178] sm:$0xff] %vm38_vm13, %v5443_v10  ;;  %v1584_v24 = vsel %vm1520_vm8, %v6592_v21, 0.0  ;;  %vm1527_vm7 = vcmp.eq.s32.totalorder %v6026_v8, %v6547_v23  ;;  %v9660_v23 = vld [vmem:[#allocation19_spill] sm:$0xff] }
 0x14b   :  { %1862 = vmax.xlane.f32.xlu2 %v6072_v49  ;;  %151 = vst.msk [vmem:[#allocation3 + $0x180] sm:$0xff] %vm38_vm13, %v5443_v10  ;;  %vm1496_vm8 = vcmp.eq.s32.totalorder %v6026_v8, %v9660_v23 }
 0x14c   :  { %152 = vst.msk [vmem:[#allocation3 + $0x188] sm:$0xff] %vm38_vm13, %v5443_v10 }
 0x14d   :  { %153 = vst.msk [vmem:[#allocation3 + $0x190] sm:$0xff] %vm38_vm13, %v5443_v10  ;;  %1635 = vadd.xlane.f32.xlu1 %v1552_v18  ;;  %v971_v18 = vpop.f32.mrf.mxu1  ;;  %1699 = vadd.xlane.f32.xlu0 %v1584_v24 }
 0x14e   :  { %154 = vst.msk [vmem:[#allocation3 + $0x198] sm:$0xff] %vm38_vm13, %v5443_v10  ;;  %v6610_v36 = vadd.f32 %v971_v18, %v802_v35  ;;  %v882_v35 = vpop.f32.mrf.mxu2  ;;  %v6630_v18 = vpop.xlane.xlu2 %1603 }
 0x14f   :  { %155 = vst.msk [vmem:[#allocation3 + $0x1a0] sm:$0xff] %vm38_vm13, %v5443_v10  ;;  %v1051_v45 = vpop.f32.mrf.mxu3 }
 0x150   :  { %156 = vst.msk [vmem:[#allocation3 + $0x1a8] sm:$0xff] %vm38_vm13, %v5443_v10  ;;  %v6567_v32 = vpop.permute.xlu0 %1458  ;;  %v1553_v54 = vsel %vm1489_vm9, %v6610_v36, 0.0  ;;  %v6628_v27 = vadd.f32 %v1051_v45, %v882_v35  ;;  %v804_v31 = vpop.f32.mrf.mxu0  ;;  %vm1528_vm9 = vcmp.eq.s32.totalorder %v6026_v8, %v6393_v59 }
 0x151   :  { %157 = vst.msk [vmem:[#allocation3 + $0x1b0] sm:$0xff] %vm38_vm13, %v5443_v10  ;;  %v6571_v19 = vpop.permute.xlu1 %1461 }
 0x152   :  { %158 = vst.msk [vmem:[#allocation3 + $0x1b8] sm:$0xff] %vm38_vm13, %v5443_v10  ;;  %v1585_v35 = vsel %vm1521_vm10, %v6628_v27, 0.0 }
 0x153   :  { %159 = vst.msk [vmem:[#allocation3 + $0x1c0] sm:$0xff] %vm38_vm13, %v5443_v10  ;;  %1637 = vadd.xlane.f32.xlu2 %v1553_v54 }
 0x154   :  { %160 = vst.msk [vmem:[#allocation3 + $0x1c8] sm:$0xff] %vm38_vm13, %v5443_v10 }
 0x155   :  { %161 = vst.msk [vmem:[#allocation3 + $0x1d0] sm:$0xff] %vm38_vm13, %v5443_v10  ;;  %v973_v30 = vpop.f32.mrf.mxu1  ;;  %1701 = vadd.xlane.f32.xlu1 %v1585_v35 }
 0x156   :  { %162 = vst.msk [vmem:[#allocation3 + $0x1d8] sm:$0xff] %vm38_vm13, %v5443_v10  ;;  %v6645_v45 = vadd.f32 %v973_v30, %v804_v31  ;;  %v884_v31 = vpop.f32.mrf.mxu2  ;;  %v6662_v61 = vpop.xlane.xlu2 %1607 }
 0x157   :  { %163 = vst.msk [vmem:[#allocation3 + $0x1e0] sm:$0xff] %vm38_vm13, %v5443_v10  ;;  %v1053_v30 = vpop.f32.mrf.mxu3 }
 0x158   :  { %164 = vst.msk [vmem:[#allocation3 + $0x1e8] sm:$0xff] %vm38_vm13, %v5443_v10  ;;  %v6600_v26 = vpop.permute.xlu0 %1467  ;;  %v1554_v63 = vsel %vm1490_vm11, %v6645_v45, 0.0  ;;  %v6660_v35 = vadd.f32 %v1053_v30, %v884_v31  ;;  %vm1529_vm11 = vcmp.eq.s32.totalorder %v6026_v8, %v6567_v32 }
 0x159   :  { %165 = vst.msk [vmem:[#allocation3 + $0x1f0] sm:$0xff] %vm38_vm13, %v5443_v10  ;;  %v6598_v4 = vpop.xlane.xlu1 %1597  ;;  %1639 = vadd.xlane.f32.xlu0 %v1554_v63  ;;  %v807_v63 = vpop.f32.mrf.mxu0 }
 0x15a   :  { %166 = vst.msk [vmem:[#allocation3 + $0x1f8] sm:$0xff] %vm38_vm13, %v5443_v10  ;;  %v1586_v31 = vsel %vm1522_vm12, %v6660_v35, 0.0 }
 0x15b   :  { %167 = vst.msk [vmem:[#allocation4] sm:$0xff] %vm38_vm13, %v5443_v10  ;;  %1703 = vadd.xlane.f32.xlu2 %v1586_v31 }
 0x15c   :  { %169 = vst.msk [vmem:[#allocation4 + $0x10] sm:$0xff] %vm38_vm13, %v5443_v10 }
 0x15d   :  { %170 = vst.msk [vmem:[#allocation4 + $0x18] sm:$0xff] %vm38_vm13, %v5443_v10  ;;  %v976_v53 = vpop.f32.mrf.mxu1  ;;  %1872 = vmax.xlane.f32.xlu1 %v6203_v28 }
 0x15e   :  { %171 = vst.msk [vmem:[#allocation4 + $0x20] sm:$0xff] %vm38_vm13, %v5443_v10  ;;  %v6684_v25 = vadd.f32 %v976_v53, %v807_v63  ;;  %v887_v30 = vpop.f32.mrf.mxu2  ;;  %v6691_v28 = vpop.xlane.xlu2 %1661 }
 0x15f   :  { %172 = vst.msk [vmem:[#allocation4 + $0x28] sm:$0xff] %vm38_vm13, %v5443_v10  ;;  %v1056_v31 = vpop.f32.mrf.mxu3 }
 0x160   :  { %173 = vst.msk [vmem:[#allocation4 + $0x30] sm:$0xff] %vm38_vm13, %v5443_v10  ;;  %v6634_v24 = vpop.xlane.xlu0 %1601  ;;  %v1555_v34 = vsel %vm1491_vm14, %v6684_v25, 0.0  ;;  %vm1530_vm14 = vcmp.eq.s32.totalorder %v6026_v8, %v6571_v19 }
 0x161   :  { %174 = vst.msk [vmem:[#allocation4 + $0x38] sm:$0xff] %vm38_vm13, %v5443_v10  ;;  %v6636_v54 = vpop.xlane.xlu1 %1605  ;;  %1870 = vmax.xlane.f32.xlu0 %v6154_v48  ;;  %v809_v63 = vpop.f32.mrf.mxu0 }
 0x162   :  { %175 = vst.msk [vmem:[#allocation4 + $0x40] sm:$0xff] %vm38_vm13, %v5443_v10  ;;  %v1213_v47 = vld [vmem:[#allocation4] sm:$0xff] }
 0x163   :  { %176 = vst.msk [vmem:[#allocation4 + $0x48] sm:$0xff] %vm38_vm13, %v5443_v10  ;;  %1868 = vmax.xlane.f32.xlu2 %v6140_v56  ;;  %v1725_v57 = vadd.f32 %v6598_v4, %v1213_v47 }
 0x164   :  { %177 = vst.msk [vmem:[#allocation4 + $0x50] sm:$0xff] %vm38_vm13, %v5443_v10 }
 0x165   :  { %178 = vst.msk [vmem:[#allocation4 + $0x58] sm:$0xff] %vm38_vm13, %v5443_v10  ;;  %v978_v48 = vpop.f32.mrf.mxu1  ;;  %1641 = vadd.xlane.f32.xlu1 %v1555_v34  ;;  %v1215_v34 = vld [vmem:[#allocation4 + $0x10] sm:$0xff]  ;;  %v1217_v46 = vld [vmem:[#allocation4 + $0x20] sm:$0xff] }
 0x166   :  { %179 = vst.msk [vmem:[#allocation4 + $0x60] sm:$0xff] %vm38_vm13, %v5443_v10  ;;  %v6718_v40 = vadd.f32 %v978_v48, %v809_v63  ;;  %v889_v56 = vpop.f32.mrf.mxu2  ;;  %v1614_v11 = vpop.xlane.xlu2 %1613  ;;  %v1218_v63 = vld [vmem:[#allocation4 + $0x28] sm:$0xff]  ;;  %v1729_v60 = vadd.f32 %v6636_v54, %v1217_v46 }
 0x167   :  { %180 = vst.msk [vmem:[#allocation4 + $0x68] sm:$0xff] %vm38_vm13, %v5443_v10  ;;  %v1730_v13 = vadd.f32 %v6662_v61, %v1218_v63 }
 0x168   :  { %181 = vst.msk [vmem:[#allocation4 + $0x70] sm:$0xff] %vm38_vm13, %v5443_v10  ;;  %v6666_v49 = vpop.xlane.xlu0 %1609  ;;  %v1556_v50 = vsel %vm1492_vm0, %v6718_v40, 0.0  ;;  %v1220_v54 = vld [vmem:[#allocation4 + $0x38] sm:$0xff]  ;;  %vm1531_vm0 = vcmp.eq.s32.totalorder %v6026_v8, %v6434_v37 }
 0x169   :  { %182 = vst.msk [vmem:[#allocation4 + $0x78] sm:$0xff] %vm38_vm13, %v5443_v10  ;;  %v6668_v52 = vpop.xlane.xlu1 %1665  ;;  %v812_v4 = vpop.f32.mrf.mxu0 }
 0x16a   :  { %183 = vst.msk [vmem:[#allocation4 + $0x80] sm:$0xff] %vm38_vm13, %v5443_v10 }
 0x16b   :  { %184 = vst.msk [vmem:[#allocation4 + $0x88] sm:$0xff] %vm38_vm13, %v5443_v10  ;;  %1643 = vadd.xlane.f32.xlu2 %v1556_v50 }
 0x16c   :  { %185 = vst.msk [vmem:[#allocation4 + $0x90] sm:$0xff] %vm38_vm13, %v5443_v10 }
 0x16d   :  { %186 = vst.msk [vmem:[#allocation4 + $0x98] sm:$0xff] %vm38_vm13, %v5443_v10  ;;  %v981_v47 = vpop.f32.mrf.mxu1 }
 0x16e   :  { %9642 = vst [vmem:[#allocation55_spill] sm:$0xff] %v6575_v17  ;;  %v6742_v44 = vadd.f32 %v981_v47, %v812_v4  ;;  %v892_v63 = vpop.f32.mrf.mxu2  ;;  %v1668_v4 = vpop.xlane.xlu2 %1667 }
 0x16f   :  { %187 = vst.msk [vmem:[#allocation4 + $0xa0] sm:$0xff] %vm38_vm13, %v5443_v10 }
 0x170   :  { %188 = vst.msk [vmem:[#allocation4 + $0xa8] sm:$0xff] %vm38_vm13, %v5443_v10  ;;  %v1557_v46 = vsel %vm1493_vm2, %v6742_v44, 0.0  ;;  %vm1532_vm2 = vcmp.eq.s32.totalorder %v6026_v8, %v6600_v26  ;;  %v1228_v26 = vld [vmem:[#allocation4 + $0x78] sm:$0xff] }
 0x171   :  { %189 = vst.msk [vmem:[#allocation4 + $0xb0] sm:$0xff] %vm38_vm13, %v5443_v10  ;;  %v6699_v53 = vpop.xlane.xlu1 %1611 }
 0x172   :  { %190 = vst.msk [vmem:[#allocation4 + $0xb8] sm:$0xff] %vm38_vm13, %v5443_v10 }
 0x173   :  { %191 = vst.msk [vmem:[#allocation4 + $0xc0] sm:$0xff] %vm38_vm13, %v5443_v10 }
 0x174   :  { %192 = vst.msk [vmem:[#allocation4 + $0xc8] sm:$0xff] %vm38_vm13, %v5443_v10 }
 0x175   :  { %9643 = vst [vmem:[#allocation56_spill] sm:$0xff] %v6592_v21  ;;  %v1058_v21 = vpop.f32.mrf.mxu3 }
 0x176   :  { %193 = vst.msk [vmem:[#allocation4 + $0xd0] sm:$0xff] %vm38_vm13, %v5443_v10 }
 0x177   :  { %194 = vst.msk [vmem:[#allocation4 + $0xd8] sm:$0xff] %vm38_vm13, %v5443_v10 }
 0x178   :  { %195 = vst.msk [vmem:[#allocation4 + $0xe0] sm:$0xff] %vm38_vm13, %v5443_v10 }
 0x179   :  { %196 = vst.msk [vmem:[#allocation4 + $0xe8] sm:$0xff] %vm38_vm13, %v5443_v10  ;;  %v1672_v20 = vpop.xlane.xlu1 %1671 }
 0x17a   :  { %197 = vst.msk [vmem:[#allocation4 + $0xf0] sm:$0xff] %vm38_vm13, %v5443_v10 }
 0x17b   :  { %9644 = vst [vmem:[#allocation57_spill] sm:$0xff] %v6610_v36 }
 0x17c   :  { %198 = vst.msk [vmem:[#allocation4 + $0xf8] sm:$0xff] %vm38_vm13, %v5443_v10 }
 0x17d   :  { %199 = vst.msk [vmem:[#allocation4 + $0x100] sm:$0xff] %vm38_vm13, %v5443_v10  ;;  %v1061_v14 = vpop.f32.mrf.mxu3 }
 0x17e   :  { %200 = vst.msk [vmem:[#allocation4 + $0x108] sm:$0xff] %vm38_vm13, %v5443_v10 }
 0x17f   :  { %201 = vst.msk [vmem:[#allocation4 + $0x110] sm:$0xff] %vm38_vm13, %v5443_v10 }
 0x180   :  { %202 = vst.msk [vmem:[#allocation4 + $0x118] sm:$0xff] %vm38_vm13, %v5443_v10 }
 0x181   :  { %203 = vst.msk [vmem:[#allocation4 + $0x120] sm:$0xff] %vm38_vm13, %v5443_v10 }
 0x182   :  { %9645 = vst [vmem:[#allocation58_spill] sm:$0xff] %v6628_v27  ;;  %v6697_v27 = vpop.xlane.xlu0 %1663 }
 0x183   :  { %204 = vst.msk [vmem:[#allocation4 + $0x128] sm:$0xff] %vm38_vm13, %v5443_v10 }
 0x184   :  { %205 = vst.msk [vmem:[#allocation4 + $0x130] sm:$0xff] %vm38_vm13, %v5443_v10 }
 0x185   :  { %206 = vst.msk [vmem:[#allocation4 + $0x138] sm:$0xff] %vm38_vm13, %v5443_v10 }
 0x186   :  { %9646 = vst [vmem:[#allocation59_spill] sm:$0xff] %v6645_v45 }
 0x187   :  { %207 = vst.msk [vmem:[#allocation4 + $0x140] sm:$0xff] %vm38_vm13, %v5443_v10 }
 0x188   :  { %208 = vst.msk [vmem:[#allocation4 + $0x148] sm:$0xff] %vm38_vm13, %v5443_v10 }
 0x189   :  { %209 = vst.msk [vmem:[#allocation4 + $0x150] sm:$0xff] %vm38_vm13, %v5443_v10 }
 0x18a   :  { %210 = vst.msk [vmem:[#allocation4 + $0x158] sm:$0xff] %vm38_vm13, %v5443_v10 }
 0x18b   :  { %211 = vst.msk [vmem:[#allocation4 + $0x160] sm:$0xff] %vm38_vm13, %v5443_v10 }
 0x18c   :  { %9647 = vst [vmem:[#allocation60_spill] sm:$0xff] %v6660_v35  ;;  %v6695_v35 = vadd.f32 %v1056_v31, %v887_v30  ;;  %v1216_v31 = vld [vmem:[#allocation4 + $0x18] sm:$0xff] }
 0x18d   :  { %212 = vst.msk [vmem:[#allocation4 + $0x168] sm:$0xff] %vm38_vm13, %v5443_v10  ;;  %v1728_v48 = vadd.f32 %v6630_v18, %v1216_v31  ;;  %v1247_v31 = vld [vmem:[#allocation4 + $0x110] sm:$0xff] }
 0x18e   :  { %213 = vst.msk [vmem:[#allocation4 + $0x170] sm:$0xff] %vm38_vm13, %v5443_v10  ;;  %v1587_v30 = vsel %vm1523_vm15, %v6695_v35, 0.0  ;;  %v1759_v50 = vadd.f32 %v6668_v52, %v1247_v31  ;;  %v1732_v52 = vadd.f32 %v6699_v53, %v1220_v54  ;;  %v814_v31 = vpop.f32.mrf.mxu0  ;;  %v894_v54 = vpop.f32.mrf.mxu2  ;;  %vm1499_vm15 = vcmp.eq.s32.totalorder %v6026_v8, %v6076_v6 }
 0x18f   :  { %214 = vst.msk [vmem:[#allocation4 + $0x178] sm:$0xff] %vm38_vm13, %v5443_v10  ;;  %1705 = vadd.xlane.f32.xlu0 %v1587_v30  ;;  %v1670_v30 = vpop.xlane.xlu0 %1669 }
 0x190   :  { %215 = vst.msk [vmem:[#allocation4 + $0x180] sm:$0xff] %vm38_vm13, %v5443_v10 }
 0x191   :  { %216 = vst.msk [vmem:[#allocation4 + $0x188] sm:$0xff] %vm38_vm13, %v5443_v10 }
 0x192   :  { %217 = vst.msk [vmem:[#allocation4 + $0x190] sm:$0xff] %vm38_vm13, %v5443_v10 }
 0x193   :  { %9648 = vst [vmem:[#allocation61_spill] sm:$0xff] %v6684_v25 }
 0x194   :  { %218 = vst.msk [vmem:[#allocation4 + $0x198] sm:$0xff] %vm38_vm13, %v5443_v10 }
 0x195   :  { %219 = vst.msk [vmem:[#allocation4 + $0x1a0] sm:$0xff] %vm38_vm13, %v5443_v10 }
 0x196   :  { %220 = vst.msk [vmem:[#allocation4 + $0x1a8] sm:$0xff] %vm38_vm13, %v5443_v10 }
 0x197   :  { %9649 = vst [vmem:[#allocation62_spill] sm:$0xff] %v6695_v35  ;;  %v6725_v35 = vadd.f32 %v1058_v21, %v889_v56  ;;  %v1727_v56 = vadd.f32 %v6634_v24, %v1215_v34  ;;  %v1219_v21 = vld [vmem:[#allocation4 + $0x30] sm:$0xff]  ;;  %v1245_v24 = vld [vmem:[#allocation4 + $0x100] sm:$0xff]  ;;  %1645 = vadd.xlane.f32.xlu0 %v1557_v46  ;;  %v1616_v47 = vpop.xlane.xlu0 %1615 }
 0x198   :  { %221 = vst.msk [vmem:[#allocation4 + $0x1b0] sm:$0xff] %vm38_vm13, %v5443_v10  ;;  %v1731_v34 = vadd.f32 %v6666_v49, %v1219_v21  ;;  %v1757_v61 = vadd.f32 %v6691_v28, %v1245_v24  ;;  %v6757_v21 = vadd.f32 %v1061_v14, %v892_v63  ;;  %v1223_v63 = vld [vmem:[#allocation4 + $0x50] sm:$0xff] }
 0x199   :  { %222 = vst.msk [vmem:[#allocation4 + $0x1b8] sm:$0xff] %vm38_vm13, %v5443_v10  ;;  %v1588_v18 = vsel %vm1524_vm1, %v6725_v35, 0.0 }
 0x19a   :  { %223 = vst.msk [vmem:[#allocation4 + $0x1c0] sm:$0xff] %vm38_vm13, %v5443_v10  ;;  %1707 = vadd.xlane.f32.xlu1 %v1588_v18  ;;  %v1678_v18 = vpop.xlane.xlu1 %1677 }
 0x19b   :  { %224 = vst.msk [vmem:[#allocation4 + $0x1c8] sm:$0xff] %vm38_vm13, %v5443_v10 }
 0x19c   :  { %225 = vst.msk [vmem:[#allocation4 + $0x1d0] sm:$0xff] %vm38_vm13, %v5443_v10 }
 0x19d   :  { %9650 = vst [vmem:[#allocation63_spill] sm:$0xff] %v6718_v40 }
 0x19e   :  { %226 = vst.msk [vmem:[#allocation4 + $0x1d8] sm:$0xff] %vm38_vm13, %v5443_v10 }
 0x19f   :  { %227 = vst.msk [vmem:[#allocation4 + $0x1e0] sm:$0xff] %vm38_vm13, %v5443_v10  ;;  %1876 = vmax.xlane.f32.xlu0 %v6255_v39 }
 0x1a0   :  { %9651 = vst [vmem:[#allocation64_spill] sm:$0xff] %v6725_v35 }
 0x1a1   :  { %228 = vst.msk [vmem:[#allocation4 + $0x1e8] sm:$0xff] %vm38_vm13, %v5443_v10 }
 0x1a2   :  { %229 = vst.msk [vmem:[#allocation4 + $0x1f0] sm:$0xff] %vm38_vm13, %v5443_v10  ;;  %1878 = vmax.xlane.f32.xlu1 %v6280_v9  ;;  %v7801_v9 = vld [vmem:[%s9308_s2 + $0xd8] sm:$0xff] }
 0x1a3   :  { %230 = vst.msk [vmem:[#allocation4 + $0x1f8] sm:$0xff] %vm38_vm13, %v5443_v10  ;;  %v1246_v10 = vld [vmem:[#allocation4 + $0x108] sm:$0xff] }
 0x1a4   :  { %9652 = vst [vmem:[#allocation65_spill] sm:$0xff] %v6742_v44  ;;  %v1758_v49 = vadd.f32 %v6697_v27, %v1246_v10  ;;  %v983_v27 = vpop.f32.mrf.mxu1  ;;  %v1253_v10 = vld [vmem:[#allocation4 + $0x140] sm:$0xff] }
 0x1a5   :  { %1790 = vst.msk [vmem:[#allocation4] sm:$0xff] %vm38_vm13, %v1725_v57  ;;  %v1221_v57 = vld [vmem:[#allocation4 + $0x40] sm:$0xff]  ;;  %v6770_v46 = vadd.f32 %v983_v27, %v814_v31  ;;  %v1224_v31 = vld [vmem:[#allocation4 + $0x58] sm:$0xff]  ;;  %v897_v27 = vpop.f32.mrf.mxu2 }
 0x1a6   :  { %1793 = vst.msk [vmem:[#allocation4 + $0x18] sm:$0xff] %vm38_vm13, %v1728_v48  ;;  %v1249_v48 = vld [vmem:[#allocation4 + $0x120] sm:$0xff]  ;;  %v1733_v28 = vadd.f32 %v1614_v11, %v1221_v57  ;;  %v1252_v57 = vld [vmem:[#allocation4 + $0x138] sm:$0xff] }
 0x1a7   :  { %1792 = vst.msk [vmem:[#allocation4 + $0x10] sm:$0xff] %vm38_vm13, %v1727_v56  ;;  %v1250_v56 = vld [vmem:[#allocation4 + $0x128] sm:$0xff]  ;;  %v1761_v24 = vadd.f32 %v1670_v30, %v1249_v48  ;;  %v1765_v30 = vadd.f32 %v1678_v18, %v1253_v10  ;;  %v1676_v48 = vpop.xlane.xlu0 %1675 }
 0x1a8   :  { %1794 = vst.msk [vmem:[#allocation4 + $0x20] sm:$0xff] %vm38_vm13, %v1729_v60  ;;  %v1248_v60 = vld [vmem:[#allocation4 + $0x118] sm:$0xff]  ;;  %v1762_v53 = vadd.f32 %v1672_v20, %v1250_v56  ;;  %v1674_v20 = vpop.xlane.xlu2 %1673 }
 0x1a9   :  { %1795 = vst.msk [vmem:[#allocation4 + $0x28] sm:$0xff] %vm38_vm13, %v1730_v13  ;;  %v1589_v13 = vsel %vm1525_vm3, %v6757_v21, 0.0  ;;  %v1760_v1 = vadd.f32 %v1668_v4, %v1248_v60  ;;  %v1618_v4 = vpop.xlane.xlu1 %1617 }
 0x1aa   :  { %9653 = vst [vmem:[#allocation66_spill] sm:$0xff] %v6757_v21  ;;  %1709 = vadd.xlane.f32.xlu2 %v1589_v13  ;;  %v1735_v56 = vadd.f32 %v1618_v4, %v1223_v63 }
 0x1ab   :  { %1796 = vst.msk [vmem:[#allocation4 + $0x30] sm:$0xff] %vm38_vm13, %v1731_v34  ;;  %v1222_v34 = vld [vmem:[#allocation4 + $0x48] sm:$0xff] }
 0x1ac   :  { %1824 = vst.msk [vmem:[#allocation4 + $0x110] sm:$0xff] %vm38_vm13, %v1759_v50  ;;  %v1734_v11 = vadd.f32 %v1616_v47, %v1222_v34  ;;  %v1251_v50 = vld [vmem:[#allocation4 + $0x130] sm:$0xff]  ;;  %v817_v47 = vpop.f32.mrf.mxu0  ;;  %v986_v18 = vpop.f32.mrf.mxu1  ;;  %v1256_v34 = vld [vmem:[#allocation4 + $0x158] sm:$0xff] }
 0x1ad   :  { %1822 = vst.msk [vmem:[#allocation4 + $0x100] sm:$0xff] %vm38_vm13, %v1757_v61  ;;  %v1063_v61 = vpop.f32.mrf.mxu3  ;;  %v6790_v60 = vadd.f32 %v986_v18, %v817_v47  ;;  %v1225_v18 = vld [vmem:[#allocation4 + $0x60] sm:$0xff] }
 0x1ae   :  { %1823 = vst.msk [vmem:[#allocation4 + $0x108] sm:$0xff] %vm38_vm13, %v1758_v49  ;;  %v6776_v14 = vadd.f32 %v1063_v61, %v894_v54  ;;  %v1763_v49 = vadd.f32 %v1674_v20, %v1251_v50 }
 0x1af   :  { %1797 = vst.msk [vmem:[#allocation4 + $0x38] sm:$0xff] %vm38_vm13, %v1732_v52  ;;  %v1764_v52 = vadd.f32 %v1676_v48, %v1252_v57 }
 0x1b0   :  { %1798 = vst.msk [vmem:[#allocation4 + $0x40] sm:$0xff] %vm38_vm13, %v1733_v28  ;;  %v1558_v28 = vsel %vm1494_vm4, %v6770_v46, 0.0  ;;  %v1590_v3 = vsel %vm1526_vm5, %v6776_v14, 0.0  ;;  %v1620_v41 = vpop.xlane.xlu2 %1619 }
 0x1b1   :  { %9654 = vst [vmem:[#allocation67_spill] sm:$0xff] %v6770_v46  ;;  %1647 = vadd.xlane.f32.xlu1 %v1558_v28  ;;  %1711 = vadd.xlane.f32.xlu0 %v1590_v3  ;;  %v1684_v50 = vpop.xlane.xlu1 %1683 }
 0x1b2   :  { %1826 = vst.msk [vmem:[#allocation4 + $0x120] sm:$0xff] %vm38_vm13, %v1761_v24  ;;  %1874 = vmax.xlane.f32.xlu2 %v6227_v12  ;;  %v1255_v24 = vld [vmem:[#allocation4 + $0x150] sm:$0xff]  ;;  %v1768_v61 = vadd.f32 %v1684_v50, %v1256_v34 }
 0x1b3   :  { %1827 = vst.msk [vmem:[#allocation4 + $0x128] sm:$0xff] %vm38_vm13, %v1762_v53  ;;  %v5444_v53 = vmov -inf  }
 0x1b4   :  { %1825 = vst.msk [vmem:[#allocation4 + $0x118] sm:$0xff] %vm38_vm13, %v1760_v1  ;;  %v1736_v1 = vadd.f32 %v1620_v41, %v1224_v31  ;;  %v819_v57 = vpop.f32.mrf.mxu0  ;;  %v988_v63 = vpop.f32.mrf.mxu1 }
 0x1b5   :  { %9655 = vst [vmem:[#allocation68_spill] sm:$0xff] %v6776_v14  ;;  %v1066_v13 = vpop.f32.mrf.mxu3  ;;  %v6809_v48 = vadd.f32 %v988_v63, %v819_v57  ;;  %v9665_v57 = vld [vmem:[#allocation15_spill] sm:$0xff] }
 0x1b6   :  { %1799 = vst.msk [vmem:[#allocation4 + $0x48] sm:$0xff] %vm38_vm13, %v1734_v11  ;;  %v6794_v10 = vadd.f32 %v1066_v13, %v897_v27  ;;  %v1682_v11 = vpop.xlane.xlu0 %1681  ;;  %vm1497_vm10 = vcmp.eq.s32.totalorder %v6026_v8, %v9665_v57 }
 0x1b7   :  { %1830 = vst.msk [vmem:[#allocation4 + $0x140] sm:$0xff] %vm38_vm13, %v1765_v30  ;;  %v9658_v30 = vld [vmem:[#allocation14_spill] sm:$0xff]  ;;  %v1767_v54 = vadd.f32 %v1682_v11, %v1255_v24  ;;  %v1560_v4 = vsel %vm1496_vm8, %v6809_v48, 0.0 }
 0x1b8   :  { %1828 = vst.msk [vmem:[#allocation4 + $0x130] sm:$0xff] %vm38_vm13, %v1763_v49  ;;  %vm1495_vm6 = vcmp.eq.s32.totalorder %v6026_v8, %v9658_v30  ;;  %v1591_v49 = vsel %vm1527_vm7, %v6794_v10, 0.0  ;;  %v1680_v31 = vpop.xlane.xlu2 %1679 }
 0x1b9   :  { %1829 = vst.msk [vmem:[#allocation4 + $0x138] sm:$0xff] %vm38_vm13, %v1764_v52  ;;  %v1559_v20 = vsel %vm1495_vm6, %v6790_v60, 0.0  ;;  %1713 = vadd.xlane.f32.xlu1 %v1591_v49  ;;  %1651 = vadd.xlane.f32.xlu0 %v1560_v4  ;;  %v1254_v52 = vld [vmem:[#allocation4 + $0x148] sm:$0xff]  ;;  %v1855_v24 = vpop.xlane.xlu1 %1854 }
 0x1ba   :  { %1800 = vst.msk [vmem:[#allocation4 + $0x50] sm:$0xff] %vm38_vm13, %v1735_v56  ;;  %1649 = vadd.xlane.f32.xlu2 %v1559_v20  ;;  %v899_v56 = vpop.f32.mrf.mxu2  ;;  %v1766_v27 = vadd.f32 %v1680_v31, %v1254_v52 }
 0x1bb   :  { %9656 = vst [vmem:[#allocation69_spill] sm:$0xff] %v6790_v60 }
 0x1bc   :  { %39 = vst.msk [vmem:[#allocation2] sm:$0xff] %vm38_vm13, %v5444_v53  ;;  %v822_v59 = vpop.f32.mrf.mxu0  ;;  %v991_v11 = vpop.f32.mrf.mxu1 }
 0x1bd   :  { %9657 = vst [vmem:[#allocation70_spill] sm:$0xff] %v6794_v10  ;;  %v1068_v47 = vpop.f32.mrf.mxu3  ;;  %v6871_v50 = vadd.f32 %v991_v11, %v822_v59 }
 0x1be   :  { %40 = vst.msk [vmem:[#allocation2 + $0x8] sm:$0xff] %vm38_vm13, %v5444_v53  ;;  %v6822_v3 = vadd.f32 %v1068_v47, %v899_v56  ;;  %v1622_v13 = vpop.xlane.xlu0 %1621 }
 0x1bf   :  { %41 = vst.msk [vmem:[#allocation2 + $0x10] sm:$0xff] %vm38_vm13, %v5444_v53  ;;  %v1737_v34 = vadd.f32 %v1622_v13, %v1225_v18  ;;  %v1561_v63 = vsel %vm1497_vm10, %v6871_v50, 0.0  ;;  %v9668_v18 = vld [vmem:[#allocation16_spill] sm:$0xff] }
 0x1c0   :  { %42 = vst.msk [vmem:[#allocation2 + $0x18] sm:$0xff] %vm38_vm13, %v5444_v53  ;;  %vm1498_vm12 = vcmp.eq.s32.totalorder %v6026_v8, %v9668_v18 }
 0x1c1   :  { %1801 = vst.msk [vmem:[#allocation4 + $0x58] sm:$0xff] %vm38_vm13, %v1736_v1  ;;  %v1592_v1 = vsel %vm1528_vm9, %v6822_v3, 0.0  ;;  %1884 = vmax.xlane.f32.xlu1 %v6337_v58  ;;  %1882 = vmax.xlane.f32.xlu0 %v6329_v15  ;;  %v6898_v23 = vpop.xlane.xlu1 %1623 }
 0x1c2   :  { %9659 = vst [vmem:[#allocation14_spill] sm:$0xff] %v6809_v48  ;;  %1715 = vadd.xlane.f32.xlu2 %v1592_v1  ;;  %v902_v30 = vpop.f32.mrf.mxu2 }
 0x1c3   :  { %1832 = vst.msk [vmem:[#allocation4 + $0x150] sm:$0xff] %vm38_vm13, %v1767_v54  ;;  %v6818_v28 = vld [vmem:[#allocation2] sm:$0xff] }
 0x1c4   :  { %1833 = vst.msk [vmem:[#allocation4 + $0x158] sm:$0xff] %vm38_vm13, %v1768_v61  ;;  %v6831_v41 = vmax.f32 %v6818_v28, %v1855_v24  ;;  %v6879_v61 = vpop.xlane.xlu2 %1685  ;;  %v824_v4 = vpop.f32.mrf.mxu0 }
 0x1c5   :  { %43 = vst.msk [vmem:[#allocation2 + $0x20] sm:$0xff] %vm38_vm13, %v5444_v53  ;;  %v1071_v54 = vpop.f32.mrf.mxu3  ;;  %v993_v52 = vpop.f32.mrf.mxu1 }
 0x1c6   :  { %9661 = vst [vmem:[#allocation19_spill] sm:$0xff] %v6818_v28  ;;  %v6890_v20 = vadd.f32 %v1071_v54, %v902_v30  ;;  %v6896_v49 = vpop.xlane.xlu0 %1687  ;;  %v6906_v56 = vadd.f32 %v993_v52, %v824_v4  ;;  %v1227_v28 = vld [vmem:[#allocation4 + $0x70] sm:$0xff] }
 0x1c7   :  { %44 = vst.msk [vmem:[#allocation2 + $0x28] sm:$0xff] %vm38_vm13, %v5444_v53 }
 0x1c8   :  { %9662 = vst [vmem:[#allocation71_spill] sm:$0xff] %v6822_v3  ;;  %v1593_v47 = vsel %vm1529_vm11, %v6890_v20, 0.0  ;;  %v1562_v32 = vsel %vm1498_vm12, %v6906_v56, 0.0 }
 0x1c9   :  { %45 = vst.msk [vmem:[#allocation2 + $0x30] sm:$0xff] %vm38_vm13, %v5444_v53  ;;  %1653 = vadd.xlane.f32.xlu1 %v1561_v63  ;;  %1717 = vadd.xlane.f32.xlu0 %v1593_v47  ;;  %v6933_v59 = vpop.xlane.xlu1 %1689 }
 0x1ca   :  { %46 = vst.msk [vmem:[#allocation2 + $0x38] sm:$0xff] %vm38_vm13, %v5444_v53  ;;  %1880 = vmax.xlane.f32.xlu2 %v6317_v22  ;;  %v904_v31 = vpop.f32.mrf.mxu2 }
 0x1cb   :  { %9663 = vst [vmem:[#allocation72_spill] sm:$0xff] %v6831_v41 }
 0x1cc   :  { %47 = vst.msk [vmem:[#allocation2 + $0x40] sm:$0xff] %vm38_vm13, %v5444_v53  ;;  %v6920_v24 = vpop.xlane.xlu2 %1625  ;;  %v827_v11 = vpop.f32.mrf.mxu0 }
 0x1cd   :  { %1831 = vst.msk [vmem:[#allocation4 + $0x148] sm:$0xff] %vm38_vm13, %v1766_v27  ;;  %v1073_v27 = vpop.f32.mrf.mxu3  ;;  %v996_v30 = vpop.f32.mrf.mxu1 }
 0x1ce   :  { %1802 = vst.msk [vmem:[#allocation4 + $0x60] sm:$0xff] %vm38_vm13, %v1737_v34  ;;  %v6918_v13 = vadd.f32 %v1073_v27, %v904_v31  ;;  %v6931_v1 = vpop.xlane.xlu0 %1627  ;;  %v6939_v19 = vadd.f32 %v996_v30, %v827_v11  ;;  %v9673_v30 = vld [vmem:[#allocation20_spill] sm:$0xff] }
 0x1cf   :  { %3198 = vst.msk [vmem:[#allocation2] sm:$0xff] %vm38_vm13, %v6831_v41  ;;  %vm1500_vm1 = vcmp.eq.s32.totalorder %v6026_v8, %v9673_v30 }
 0x1d0   :  { %48 = vst.msk [vmem:[#allocation2 + $0x48] sm:$0xff] %vm38_vm13, %v5444_v53  ;;  %v1594_v34 = vsel %vm1530_vm14, %v6918_v13, 0.0  ;;  %v1563_v54 = vsel %vm1499_vm15, %v6939_v19, 0.0 }
 0x1d1   :  { %49 = vst.msk [vmem:[#allocation2 + $0x50] sm:$0xff] %vm38_vm13, %v5444_v53  ;;  %1719 = vadd.xlane.f32.xlu1 %v1594_v34  ;;  %1657 = vadd.xlane.f32.xlu0 %v1563_v54  ;;  %v6962_v47 = vpop.xlane.xlu1 %1860 }
 0x1d2   :  { %50 = vst.msk [vmem:[#allocation2 + $0x58] sm:$0xff] %vm38_vm13, %v5444_v53  ;;  %1655 = vadd.xlane.f32.xlu2 %v1562_v32  ;;  %v907_v57 = vpop.f32.mrf.mxu2 }
 0x1d3   :  { %51 = vst.msk [vmem:[#allocation2 + $0x60] sm:$0xff] %vm38_vm13, %v5444_v53 }
 0x1d4   :  { %52 = vst.msk [vmem:[#allocation2 + $0x68] sm:$0xff] %vm38_vm13, %v5444_v53  ;;  %v6952_v52 = vpop.xlane.xlu2 %1691  ;;  %v829_v18 = vpop.f32.mrf.mxu0 }
 0x1d5   :  { %53 = vst.msk [vmem:[#allocation2 + $0x70] sm:$0xff] %vm38_vm13, %v5444_v53  ;;  %v1076_v63 = vpop.f32.mrf.mxu3  ;;  %v998_v31 = vpop.f32.mrf.mxu1 }
 0x1d6   :  { %54 = vst.msk [vmem:[#allocation2 + $0x78] sm:$0xff] %vm38_vm13, %v5444_v53  ;;  %v6950_v4 = vadd.f32 %v1076_v63, %v907_v57  ;;  %v6960_v6 = vpop.xlane.xlu0 %1858  ;;  %v6974_v32 = vadd.f32 %v998_v31, %v829_v18  ;;  %v1257_v31 = vld [vmem:[#allocation4 + $0x160] sm:$0xff] }
 0x1d7   :  { %55 = vst.msk [vmem:[#allocation2 + $0x80] sm:$0xff] %vm38_vm13, %v5444_v53 }
 0x1d8   :  { %56 = vst.msk [vmem:[#allocation2 + $0x88] sm:$0xff] %vm38_vm13, %v5444_v53  ;;  %v1595_v27 = vsel %vm1531_vm0, %v6950_v4, 0.0  ;;  %v1564_v54 = vsel %vm1500_vm1, %v6974_v32, 0.0 }
 0x1d9   :  { %57 = vst.msk [vmem:[#allocation2 + $0x90] sm:$0xff] %vm38_vm13, %v5444_v53  ;;  %1890 = vmax.xlane.f32.xlu1 %v6416_v2  ;;  %1888 = vmax.xlane.f32.xlu0 %v6406_v62  ;;  %v1630_v18 = vpop.xlane.xlu1 %1629  ;;  %v1259_v62 = vld [vmem:[#allocation4 + $0x170] sm:$0xff] }
 0x1da   :  { %58 = vst.msk [vmem:[#allocation2 + $0x98] sm:$0xff] %vm38_vm13, %v5444_v53  ;;  %1721 = vadd.xlane.f32.xlu2 %v1595_v27  ;;  %v909_v37 = vpop.f32.mrf.mxu2  ;;  %v1258_v27 = vld [vmem:[#allocation4 + $0x168] sm:$0xff] }
 0x1db   :  { %59 = vst.msk [vmem:[#allocation2 + $0xa0] sm:$0xff] %vm38_vm13, %v5444_v53  ;;  %v1770_v8 = vadd.f32 %v6896_v49, %v1258_v27  ;;  %v1740_v49 = vadd.f32 %v6931_v1, %v1228_v26  ;;  %v7021_v27 = vld [vmem:[#allocation2 + $0x10] sm:$0xff]  ;;  %v1261_v1 = vld [vmem:[#allocation4 + $0x180] sm:$0xff] }
 0x1dc   :  { %60 = vst.msk [vmem:[#allocation2 + $0xa8] sm:$0xff] %vm38_vm13, %v5444_v53  ;;  %v1857_v11 = vpop.xlane.xlu2 %1856 }
 0x1dd   :  { %61 = vst.msk [vmem:[#allocation2 + $0xb0] sm:$0xff] %vm38_vm13, %v5444_v53  ;;  %v1078_v34 = vpop.f32.mrf.mxu3 }
 0x1de   :  { %9664 = vst [vmem:[#allocation73_spill] sm:$0xff] %v6871_v50  ;;  %v6990_v57 = vadd.f32 %v1078_v34, %v909_v37  ;;  %v1694_v63 = vpop.xlane.xlu0 %1693  ;;  %v1226_v34 = vld [vmem:[#allocation4 + $0x68] sm:$0xff] }
 0x1df   :  { %62 = vst.msk [vmem:[#allocation2 + $0xb8] sm:$0xff] %vm38_vm13, %v5444_v53  ;;  %v1738_v2 = vadd.f32 %v6898_v23, %v1226_v34  ;;  %v1771_v23 = vadd.f32 %v6933_v59, %v1259_v62  ;;  %v7026_v34 = vld [vmem:[#allocation2 + $0x18] sm:$0xff] }
 0x1e0   :  { %63 = vst.msk [vmem:[#allocation2 + $0xc0] sm:$0xff] %vm38_vm13, %v5444_v53  ;;  %v1596_v37 = vsel %vm1532_vm2, %v6990_v57, 0.0  ;;  %v7041_v62 = vmax.f32 %v7026_v34, %v6962_v47 }
 0x1e1   :  { %64 = vst.msk [vmem:[#allocation2 + $0xc8] sm:$0xff] %vm38_vm13, %v5444_v53  ;;  %1659 = vadd.xlane.f32.xlu1 %v1564_v54  ;;  %1723 = vadd.xlane.f32.xlu0 %v1596_v37  ;;  %v1769_v54 = vadd.f32 %v6879_v61, %v1257_v31  ;;  %v1696_v58 = vpop.xlane.xlu1 %1695  ;;  %v1739_v61 = vadd.f32 %v6920_v24, %v1227_v28  ;;  %v1260_v31 = vld [vmem:[#allocation4 + $0x178] sm:$0xff]  ;;  %v7030_v28 = vld [vmem:[#allocation2 + $0x8] sm:$0xff] }
 0x1e2   :  { %65 = vst.msk [vmem:[#allocation2 + $0xd0] sm:$0xff] %vm38_vm13, %v5444_v53  ;;  %1886 = vmax.xlane.f32.xlu2 %v6382_v29  ;;  %v7035_v24 = vmax.f32 %v7021_v27, %v6960_v6  ;;  %v7045_v59 = vmax.f32 %v7030_v28, %v1857_v11  ;;  %v1773_v6 = vadd.f32 %v1694_v63, %v1261_v1  ;;  %v1263_v11 = vld [vmem:[#allocation4 + $0x190] sm:$0xff] }
 0x1e3   :  { %66 = vst.msk [vmem:[#allocation2 + $0xd8] sm:$0xff] %vm38_vm13, %v5444_v53  ;;  %v7059_v1 = vld [vmem:[#allocation2 + $0x30] sm:$0xff] }
 0x1e4   :  { %67 = vst.msk [vmem:[#allocation2 + $0xe0] sm:$0xff] %vm38_vm13, %v5444_v53  ;;  %v1632_v30 = vpop.xlane.xlu2 %1631 }
 0x1e5   :  { %9666 = vst [vmem:[#allocation15_spill] sm:$0xff] %v6890_v20 }
 0x1e6   :  { %68 = vst.msk [vmem:[#allocation2 + $0xe8] sm:$0xff] %vm38_vm13, %v5444_v53  ;;  %v1634_v37 = vpop.xlane.xlu0 %1633 }
 0x1e7   :  { %69 = vst.msk [vmem:[#allocation2 + $0xf0] sm:$0xff] %vm38_vm13, %v5444_v53 }
 0x1e8   :  { %70 = vst.msk [vmem:[#allocation2 + $0xf8] sm:$0xff] %vm38_vm13, %v5444_v53 }
 0x1e9   :  { %71 = vst.msk [vmem:[#allocation2 + $0x100] sm:$0xff] %vm38_vm13, %v5444_v53  ;;  %1896 = vmax.xlane.f32.xlu1 %v6645_v45  ;;  %1894 = vmax.xlane.f32.xlu0 %v6610_v36 }
 0x1ea   :  { %9667 = vst [vmem:[#allocation74_spill] sm:$0xff] %v6906_v56  ;;  %1892 = vmax.xlane.f32.xlu2 %v6575_v17 }
 0x1eb   :  { %72 = vst.msk [vmem:[#allocation2 + $0x108] sm:$0xff] %vm38_vm13, %v5444_v53 }
 0x1ec   :  { %73 = vst.msk [vmem:[#allocation2 + $0x110] sm:$0xff] %vm38_vm13, %v5444_v53 }
 0x1ed   :  { %74 = vst.msk [vmem:[#allocation2 + $0x118] sm:$0xff] %vm38_vm13, %v5444_v53 }
 0x1ee   :  { %9669 = vst [vmem:[#allocation16_spill] sm:$0xff] %v6918_v13  ;;  %v1865_v26 = vpop.xlane.xlu0 %1864 }
 0x1ef   :  { %75 = vst.msk [vmem:[#allocation2 + $0x120] sm:$0xff] %vm38_vm13, %v5444_v53 }
 0x1f0   :  { %76 = vst.msk [vmem:[#allocation2 + $0x128] sm:$0xff] %vm38_vm13, %v5444_v53 }
 0x1f1   :  { %77 = vst.msk [vmem:[#allocation2 + $0x130] sm:$0xff] %vm38_vm13, %v5444_v53  ;;  %1902 = vmax.xlane.f32.xlu1 %v6742_v44  ;;  %1900 = vmax.xlane.f32.xlu0 %v6718_v40  ;;  %v7616_v44 = vld [vmem:[%s9308_s2 + $0x90] sm:$0xff] }
 0x1f2   :  { %78 = vst.msk [vmem:[#allocation2 + $0x138] sm:$0xff] %vm38_vm13, %v5444_v53  ;;  %1898 = vmax.xlane.f32.xlu2 %v6684_v25  ;;  %v7636_v25 = vld [vmem:[%s9308_s2 + $0xa0] sm:$0xff] }
 0x1f3   :  { %79 = vst.msk [vmem:[#allocation2 + $0x140] sm:$0xff] %vm38_vm13, %v5444_v53 }
 0x1f4   :  { %9670 = vst [vmem:[#allocation75_spill] sm:$0xff] %v6939_v19 }
 0x1f5   :  { %80 = vst.msk [vmem:[#allocation2 + $0x148] sm:$0xff] %vm38_vm13, %v5444_v53 }
 0x1f6   :  { %81 = vst.msk [vmem:[#allocation2 + $0x150] sm:$0xff] %vm38_vm13, %v5444_v53 }
 0x1f7   :  { %82 = vst.msk [vmem:[#allocation2 + $0x158] sm:$0xff] %vm38_vm13, %v5444_v53 }
 0x1f8   :  { %9671 = vst [vmem:[#allocation76_spill] sm:$0xff] %v6950_v4 }
 0x1f9   :  { %83 = vst.msk [vmem:[#allocation2 + $0x160] sm:$0xff] %vm38_vm13, %v5444_v53  ;;  %1908 = vmax.xlane.f32.xlu1 %v6809_v48  ;;  %1906 = vmax.xlane.f32.xlu0 %v6790_v60  ;;  %v7591_v60 = vld [vmem:[%s9308_s2 + $0x80] sm:$0xff]  ;;  %v7597_v48 = vld [vmem:[%s9308_s2 + $0x78] sm:$0xff] }
 0x1fa   :  { %84 = vst.msk [vmem:[#allocation2 + $0x168] sm:$0xff] %vm38_vm13, %v5444_v53  ;;  %1904 = vmax.xlane.f32.xlu2 %v6770_v46 }
 0x1fb   :  { %85 = vst.msk [vmem:[#allocation2 + $0x170] sm:$0xff] %vm38_vm13, %v5444_v53 }
 0x1fc   :  { %86 = vst.msk [vmem:[#allocation2 + $0x178] sm:$0xff] %vm38_vm13, %v5444_v53 }
 0x1fd   :  { %87 = vst.msk [vmem:[#allocation2 + $0x180] sm:$0xff] %vm38_vm13, %v5444_v53 }
 0x1fe   :  { %88 = vst.msk [vmem:[#allocation2 + $0x188] sm:$0xff] %vm38_vm13, %v5444_v53 }
 0x1ff   :  { %9672 = vst [vmem:[#allocation77_spill] sm:$0xff] %v6974_v32 }
 0x200   :  { %89 = vst.msk [vmem:[#allocation2 + $0x190] sm:$0xff] %vm38_vm13, %v5444_v53 }
 0x201   :  { %90 = vst.msk [vmem:[#allocation2 + $0x198] sm:$0xff] %vm38_vm13, %v5444_v53  ;;  %1914 = vmax.xlane.f32.xlu1 %v6939_v19  ;;  %1912 = vmax.xlane.f32.xlu0 %v6906_v56 }
 0x202   :  { %91 = vst.msk [vmem:[#allocation2 + $0x1a0] sm:$0xff] %vm38_vm13, %v5444_v53  ;;  %1910 = vmax.xlane.f32.xlu2 %v6871_v50  ;;  %v7610_v50 = vld [vmem:[%s9308_s2 + $0x98] sm:$0xff] }
 0x203   :  { %92 = vst.msk [vmem:[#allocation2 + $0x1a8] sm:$0xff] %vm38_vm13, %v5444_v53 }
 0x204   :  { %93 = vst.msk [vmem:[#allocation2 + $0x1b0] sm:$0xff] %vm38_vm13, %v5444_v53 }
 0x205   :  { %9674 = vst [vmem:[#allocation20_spill] sm:$0xff] %v6990_v57 }
 0x206   :  { %94 = vst.msk [vmem:[#allocation2 + $0x1b8] sm:$0xff] %vm38_vm13, %v5444_v53 }
 0x207   :  { %95 = vst.msk [vmem:[#allocation2 + $0x1c0] sm:$0xff] %vm38_vm13, %v5444_v53 }
 0x208   :  { %96 = vst.msk [vmem:[#allocation2 + $0x1c8] sm:$0xff] %vm38_vm13, %v5444_v53 }
 0x209   :  { %97 = vst.msk [vmem:[#allocation2 + $0x1d0] sm:$0xff] %vm38_vm13, %v5444_v53  ;;  %1920 = vmax.xlane.f32.xlu1 %v6145_v0  ;;  %1918 = vmax.xlane.f32.xlu0 %v6136_v5  ;;  %v3593_v0 = vld [vmem:[#allocation4 + $0x40] sm:$0xff] }
 0x20a   :  { %98 = vst.msk [vmem:[#allocation2 + $0x1d8] sm:$0xff] %vm38_vm13, %v5444_v53  ;;  %1916 = vmax.xlane.f32.xlu2 %v6974_v32 }
 0x20b   :  { %99 = vst.msk [vmem:[#allocation2 + $0x1e0] sm:$0xff] %vm38_vm13, %v5444_v53 }
 0x20c   :  { %100 = vst.msk [vmem:[#allocation2 + $0x1e8] sm:$0xff] %vm38_vm13, %v5444_v53 }
 0x20d   :  { %101 = vst.msk [vmem:[#allocation2 + $0x1f0] sm:$0xff] %vm38_vm13, %v5444_v53 }
 0x20e   :  { %102 = vst.msk [vmem:[#allocation2 + $0x1f8] sm:$0xff] %vm38_vm13, %v5444_v53  ;;  %v1772_v53 = vadd.f32 %v6952_v52, %v1260_v31  ;;  %v1230_v52 = vld [vmem:[#allocation4 + $0x88] sm:$0xff] }
 0x20f   :  { %1834 = vst.msk [vmem:[#allocation4 + $0x160] sm:$0xff] %vm38_vm13, %v1769_v54  ;;  %v1698_v54 = vpop.xlane.xlu2 %1697  ;;  %v1262_v31 = vld [vmem:[#allocation4 + $0x188] sm:$0xff] }
 0x210   :  { %9675 = vst [vmem:[#allocation78_spill] sm:$0xff] %v7021_v27 }
 0x211   :  { %1835 = vst.msk [vmem:[#allocation4 + $0x168] sm:$0xff] %vm38_vm13, %v1770_v8  ;;  %v1231_v8 = vld [vmem:[#allocation4 + $0x90] sm:$0xff]  ;;  %1926 = vmax.xlane.f32.xlu1 %v6161_v33  ;;  %1924 = vmax.xlane.f32.xlu0 %v6191_v51 }
 0x212   :  { %9676 = vst [vmem:[#allocation79_spill] sm:$0xff] %v7026_v34  ;;  %v1743_v63 = vadd.f32 %v1634_v37, %v1231_v8  ;;  %v1264_v37 = vld [vmem:[#allocation4 + $0x198] sm:$0xff]  ;;  %v1700_v8 = vpop.xlane.xlu0 %1699  ;;  %1922 = vmax.xlane.f32.xlu2 %v6101_v16  ;;  %v1271_v33 = vld [vmem:[#allocation4 + $0x1d0] sm:$0xff] }
 0x213   :  { %1803 = vst.msk [vmem:[#allocation4 + $0x68] sm:$0xff] %vm38_vm13, %v1738_v2  ;;  %v1229_v2 = vld [vmem:[#allocation4 + $0x80] sm:$0xff] }
 0x214   :  { %9677 = vst [vmem:[#allocation80_spill] sm:$0xff] %v7030_v28  ;;  %v1741_v47 = vadd.f32 %v1630_v18, %v1229_v2  ;;  %v1775_v18 = vadd.f32 %v1698_v54, %v1263_v11  ;;  %v7063_v2 = vld [vmem:[#allocation2 + $0x20] sm:$0xff] }
 0x215   :  { %1804 = vst.msk [vmem:[#allocation4 + $0x70] sm:$0xff] %vm38_vm13, %v1739_v61  ;;  %v1867_v61 = vpop.xlane.xlu1 %1866  ;;  %v3585_v11 = vld [vmem:[#allocation4] sm:$0xff] }
 0x216   :  { %9678 = vst [vmem:[#allocation81_spill] sm:$0xff] %v7035_v24 }
 0x217   :  { %1805 = vst.msk [vmem:[#allocation4 + $0x78] sm:$0xff] %vm38_vm13, %v1740_v49  ;;  %v1742_v49 = vadd.f32 %v1632_v30, %v1230_v52  ;;  %v1863_v30 = vpop.xlane.xlu2 %1862 }
 0x218   :  { %9679 = vst [vmem:[#allocation82_spill] sm:$0xff] %v7041_v62  ;;  %v7075_v54 = vmax.f32 %v7063_v2, %v1863_v30  ;;  %v1234_v30 = vld [vmem:[#allocation4 + $0xa8] sm:$0xff] }
 0x219   :  { %1836 = vst.msk [vmem:[#allocation4 + $0x170] sm:$0xff] %vm38_vm13, %v1771_v23  ;;  %v7056_v23 = vld [vmem:[#allocation2 + $0x28] sm:$0xff]  ;;  %1932 = vmax.xlane.f32.xlu1 %v6223_v43  ;;  %1930 = vmax.xlane.f32.xlu0 %v6219_v55  ;;  %v9704_v55 = vld [vmem:[#allocation40_spill] sm:$0xff] }
 0x21a   :  { %9680 = vst [vmem:[#allocation83_spill] sm:$0xff] %v7045_v59  ;;  %v7067_v52 = vmax.f32 %v7056_v23, %v1865_v26  ;;  %v1776_v26 = vadd.f32 %v1700_v8, %v1264_v37  ;;  %v1265_v37 = vld [vmem:[#allocation4 + $0x1a0] sm:$0xff]  ;;  %v1240_v43 = vld [vmem:[#allocation4 + $0xd8] sm:$0xff] }
 0x21b   :  { %1837 = vst.msk [vmem:[#allocation4 + $0x178] sm:$0xff] %vm38_vm13, %v1772_v53  ;;  %v1774_v53 = vadd.f32 %v1696_v58, %v1262_v31  ;;  %v7071_v58 = vmax.f32 %v7059_v1, %v1867_v61  ;;  %v3265_v61 = vld [vmem:[#allocation2] sm:$0xff] }
 0x21c   :  { %3200 = vst.msk [vmem:[#allocation2 + $0x10] sm:$0xff] %vm38_vm13, %v7035_v24  ;;  %vm3979_vm4 = vcmp.eq.f32.partialorder %v3585_v11, %v3265_v61  ;;  %v9689_v11 = vmov 0  }
 0x21d   :  { %3201 = vst.msk [vmem:[#allocation2 + $0x18] sm:$0xff] %vm38_vm13, %v7041_v62 }
 0x21e   :  { %3199 = vst.msk [vmem:[#allocation2 + $0x8] sm:$0xff] %vm38_vm13, %v7045_v59 }
 0x21f   :  { %9681 = vst [vmem:[#allocation84_spill] sm:$0xff] %v7056_v23  ;;  %v7102_v23 = vld [vmem:[%s9308_s2 + $0x20] sm:$0xff] }
 0x220   :  { %1838 = vst.msk [vmem:[#allocation4 + $0x180] sm:$0xff] %vm38_vm13, %v1773_v6  ;;  %v1232_v6 = vld [vmem:[#allocation4 + $0x98] sm:$0xff]  ;;  %vm9443_vm6 = vcmp.ne.s32.totalorder %v7102_v23, 0 }
 0x221   :  { %9682 = vst [vmem:[#allocation85_spill] sm:$0xff] %v7059_v1  ;;  %v1237_v1 = vld [vmem:[#allocation4 + $0xc0] sm:$0xff]  ;;  %1938 = vmax.xlane.f32.xlu1 %v6263_v7  ;;  %1936 = vmax.xlane.f32.xlu0 %v6278_v38  ;;  %v1239_v38 = vld [vmem:[#allocation4 + $0xd0] sm:$0xff] }
 0x222   :  { %1806 = vst.msk [vmem:[#allocation4 + $0x80] sm:$0xff] %vm38_vm13, %v1741_v47  ;;  %v1636_v47 = vpop.xlane.xlu1 %1635 }
 0x223   :  { %9683 = vst [vmem:[#allocation86_spill] sm:$0xff] %v7063_v2  ;;  %v1744_v31 = vadd.f32 %v1636_v47, %v1232_v6  ;;  %v1640_v6 = vpop.xlane.xlu0 %1639  ;;  %v1268_v2 = vld [vmem:[#allocation4 + $0x1b8] sm:$0xff] }
 0x224   :  { %1807 = vst.msk [vmem:[#allocation4 + $0x88] sm:$0xff] %vm38_vm13, %v1742_v49  ;;  %v1233_v49 = vld [vmem:[#allocation4 + $0xa0] sm:$0xff]  ;;  %v1746_v47 = vadd.f32 %v1640_v6, %v1234_v30  ;;  %v7114_v6 = vld [vmem:[#allocation2 + $0x48] sm:$0xff] }
 0x225   :  { %9684 = vst [vmem:[#allocation87_spill] sm:$0xff] %v7067_v52 }
 0x226   :  { %1808 = vst.msk [vmem:[#allocation4 + $0x90] sm:$0xff] %vm38_vm13, %v1743_v63  ;;  %v1638_v63 = vpop.xlane.xlu2 %1637 }
 0x227   :  { %9685 = vst [vmem:[#allocation88_spill] sm:$0xff] %v7071_v58 }
 0x228   :  { %1839 = vst.msk [vmem:[#allocation4 + $0x188] sm:$0xff] %vm38_vm13, %v1774_v53  ;;  %v7091_v53 = vld [vmem:[%s9308_s2] sm:$0xff] }
 0x229   :  { %9686 = vst [vmem:[#allocation89_spill] sm:$0xff] %v7075_v54  ;;  %vm9455_vm3 = vcmp.ne.s32.totalorder %v7091_v53, 0  ;;  %1944 = vmax.xlane.f32.xlu1 %v6319_v42  ;;  %v9706_v42 = vld [vmem:[#allocation50_spill] sm:$0xff] }
 0x22a   :  { %1840 = vst.msk [vmem:[#allocation4 + $0x190] sm:$0xff] %vm38_vm13, %v1775_v18  ;;  %v1745_v18 = vadd.f32 %v1638_v63, %v1233_v49  ;;  %v1702_v8 = vpop.xlane.xlu1 %1701  ;;  %vm4043_vm5 = vmand %vm3979_vm4, %vm9455_vm3  ;;  %v1266_v49 = vld [vmem:[#allocation4 + $0x1a8] sm:$0xff] }
 0x22b   :  { %3203 = vst.msk [vmem:[#allocation2 + $0x28] sm:$0xff] %vm38_vm13, %v7067_v52  ;;  %v4107_v63 = vsel %vm4043_vm5, 1, %v9689_v11 }
 0x22c   :  { %3204 = vst.msk [vmem:[#allocation2 + $0x30] sm:$0xff] %vm38_vm13, %v7071_v58 }
 0x22d   :  { %3202 = vst.msk [vmem:[#allocation2 + $0x20] sm:$0xff] %vm38_vm13, %v7075_v54 }
 0x22e   :  { %1841 = vst.msk [vmem:[#allocation4 + $0x198] sm:$0xff] %vm38_vm13, %v1776_v26  ;;  %v1777_v26 = vadd.f32 %v1702_v8, %v1265_v37  ;;  %v7112_v37 = vld [vmem:[#allocation2 + $0x40] sm:$0xff] }
 0x22f   :  { %9687 = vst [vmem:[#allocation90_spill] sm:$0xff] %v7091_v53 }
 0x230   :  { %1809 = vst.msk [vmem:[#allocation4 + $0x98] sm:$0xff] %vm38_vm13, %v1744_v31  ;;  %v3589_v31 = vld [vmem:[#allocation4 + $0x20] sm:$0xff] }
 0x231   :  { %1810 = vst.msk [vmem:[#allocation4 + $0xa0] sm:$0xff] %vm38_vm13, %v1745_v18  ;;  %v1704_v18 = vpop.xlane.xlu2 %1703  ;;  %1950 = vmax.xlane.f32.xlu1 %v9706_v42 }
 0x232   :  { %9688 = vst [vmem:[#allocation91_spill] sm:$0xff] %v7102_v23  ;;  %v1778_v30 = vadd.f32 %v1704_v18, %v1266_v49 }
 0x233   :  { %1811 = vst.msk [vmem:[#allocation4 + $0xa8] sm:$0xff] %vm38_vm13, %v1746_v47  ;;  %v4171_v47 = vsel %vm38_vm13, %v4107_v63, 0  ;;  %v7132_v63 = vld [vmem:[#allocation2 + $0x38] sm:$0xff] }
 0x234   :  { %v3269_v61 = vld [vmem:[#allocation2 + $0x20] sm:$0xff]  ;;  %1842 = vst.msk [vmem:[#allocation4 + $0x1a0] sm:$0xff] %vm38_vm13, %v1777_v26 }
 0x235   :  { %vm3983_vm7 = vcmp.eq.f32.partialorder %v3589_v31, %v3269_v61  ;;  %9690 = vst [vmem:[#allocation92_spill] sm:$0xff] %v7112_v37  ;;  %v1871_v31 = vpop.xlane.xlu0 %1870  ;;  %v1873_v61 = vpop.xlane.xlu1 %1872 }
 0x236   :  { %vm4047_vm8 = vmand %vm3983_vm7, %vm9443_vm6  ;;  %9691 = vst [vmem:[#allocation93_spill] sm:$0xff] %v7114_v6  ;;  %v7124_v49 = vmax.f32 %v7112_v37, %v1871_v31  ;;  %v7127_v18 = vmax.f32 %v7114_v6, %v1873_v61  ;;  %v1236_v6 = vld [vmem:[#allocation4 + $0xb8] sm:$0xff] }
 0x237   :  { %v4111_v8 = vsel %vm4047_vm8, 1, %v9689_v11  ;;  %1843 = vst.msk [vmem:[#allocation4 + $0x1a8] sm:$0xff] %vm38_vm13, %v1778_v30 }
 0x238   :  { %v4175_v26 = vsel %vm38_vm13, %v4111_v8, 0  ;;  %9692 = vst [vmem:[#allocation94_spill] sm:$0xff] %v7124_v49 }
 0x239   :  { %v7121_v53 = vadd.s32 %v4175_v26, %v4171_v47  ;;  %9693 = vst [vmem:[#allocation95_spill] sm:$0xff] %v7127_v18  ;;  %v1869_v30 = vpop.xlane.xlu2 %1868  ;;  %v1267_v47 = vld [vmem:[#allocation4 + $0x1b0] sm:$0xff] }
 0x23a   :  { %3206 = vst.msk [vmem:[#allocation2 + $0x40] sm:$0xff] %vm38_vm13, %v7124_v49  ;;  %v7138_v8 = vmax.f32 %v7132_v63, %v1869_v30  ;;  %v1235_v26 = vld [vmem:[#allocation4 + $0xb0] sm:$0xff] }
 0x23b   :  { %9694 = vst [vmem:[#allocation96_spill] sm:$0xff] %v7132_v63 }
 0x23c   :  { %3207 = vst.msk [vmem:[#allocation2 + $0x48] sm:$0xff] %vm38_vm13, %v7127_v18 }
 0x23d   :  { %9695 = vst [vmem:[#allocation97_spill] sm:$0xff] %v7138_v8  ;;  %v1706_v31 = vpop.xlane.xlu0 %1705  ;;  %v1642_v61 = vpop.xlane.xlu1 %1641 }
 0x23e   :  { %3205 = vst.msk [vmem:[#allocation2 + $0x38] sm:$0xff] %vm38_vm13, %v7138_v8  ;;  %v1779_v23 = vadd.f32 %v1706_v31, %v1267_v47  ;;  %v1747_v37 = vadd.f32 %v1642_v61, %v1235_v26  ;;  %v9696_v31 = vld [vmem:[#allocation32_spill] sm:$0xff] }
 0x23f   :  { %1928 = vmax.xlane.f32.xlu2 %v9696_v31  ;;  %v7153_v61 = vld [vmem:[#allocation2 + $0x58] sm:$0xff]  ;;  %9800 = vst [vmem:[#allocation175_spill] sm:$0xff] %v7591_v60 }
 0x240   :  { %1844 = vst.msk [vmem:[#allocation4 + $0x1b0] sm:$0xff] %vm38_vm13, %v1779_v23  ;;  %v1269_v23 = vld [vmem:[#allocation4 + $0x1c0] sm:$0xff] }
 0x241   :  { %1812 = vst.msk [vmem:[#allocation4 + $0xb0] sm:$0xff] %vm38_vm13, %v1747_v37  ;;  %v1644_v30 = vpop.xlane.xlu2 %1643 }
 0x242   :  { %v1748_v63 = vadd.f32 %v1644_v30, %v1236_v6  ;;  %9697 = vst [vmem:[#allocation98_spill] sm:$0xff] %v7153_v61 }
 0x243   :  { %9801 = vst [vmem:[#allocation176_spill] sm:$0xff] %v7597_v48 }
 0x244   :  { %1813 = vst.msk [vmem:[#allocation4 + $0xb8] sm:$0xff] %vm38_vm13, %v1748_v63  ;;  %v7155_v63 = vld [vmem:[#allocation2 + $0x60] sm:$0xff] }
 0x245   :  { %v1646_v27 = vpop.xlane.xlu0 %1645  ;;  %v1708_v34 = vpop.xlane.xlu1 %1707  ;;  %9698 = vst [vmem:[#allocation99_spill] sm:$0xff] %v7155_v63  ;;  %v3272_v16 = vld [vmem:[#allocation2 + $0x38] sm:$0xff] }
 0x246   :  { %v1749_v47 = vadd.f32 %v1646_v27, %v1237_v1  ;;  %v1780_v26 = vadd.f32 %v1708_v34, %v1268_v2  ;;  %v9701_v2 = vld [vmem:[#allocation35_spill] sm:$0xff]  ;;  %9805 = vst [vmem:[#allocation180_spill] sm:$0xff] %v7610_v50 }
 0x247   :  { %1934 = vmax.xlane.f32.xlu2 %v9701_v2  ;;  %9806 = vst [vmem:[#allocation181_spill] sm:$0xff] %v7616_v44 }
 0x248   :  { %1814 = vst.msk [vmem:[#allocation4 + $0xc0] sm:$0xff] %vm38_vm13, %v1749_v47  ;;  %v7168_v47 = vld [vmem:[#allocation2 + $0x50] sm:$0xff] }
 0x249   :  { %1845 = vst.msk [vmem:[#allocation4 + $0x1b8] sm:$0xff] %vm38_vm13, %v1780_v26  ;;  %v1710_v37 = vpop.xlane.xlu2 %1709  ;;  %v3607_v39 = vld [vmem:[#allocation4 + $0xb0] sm:$0xff] }
 0x24a   :  { %v1781_v6 = vadd.f32 %v1710_v37, %v1269_v23  ;;  %9702 = vst [vmem:[#allocation102_spill] sm:$0xff] %v7168_v47  ;;  %v1270_v37 = vld [vmem:[#allocation4 + $0x1c8] sm:$0xff] }
 0x24b   :  { %9809 = vst [vmem:[#allocation182_spill] sm:$0xff] %v7636_v25 }
 0x24c   :  { %1846 = vst.msk [vmem:[#allocation4 + $0x1c0] sm:$0xff] %vm38_vm13, %v1781_v6  ;;  %v1238_v6 = vld [vmem:[#allocation4 + $0xc8] sm:$0xff] }
 0x24d   :  { %v1877_v30 = vpop.xlane.xlu0 %1876  ;;  %v1879_v27 = vpop.xlane.xlu1 %1878  ;;  %9843 = vst [vmem:[#allocation195_spill] sm:$0xff] %v7801_v9 }
 0x24e   :  { %v7160_v34 = vmax.f32 %v7153_v61, %v1877_v30  ;;  %v7163_v1 = vmax.f32 %v7155_v63, %v1879_v27 }
 0x24f   :  { %1940 = vmax.xlane.f32.xlu2 %v9704_v55 }
 0x250   :  { %9699 = vst [vmem:[#allocation100_spill] sm:$0xff] %v7160_v34 }
 0x251   :  { %9700 = vst [vmem:[#allocation101_spill] sm:$0xff] %v7163_v1  ;;  %v1875_v26 = vpop.xlane.xlu2 %1874 }
 0x252   :  { %3209 = vst.msk [vmem:[#allocation2 + $0x58] sm:$0xff] %vm38_vm13, %v7160_v34  ;;  %v7174_v23 = vmax.f32 %v7168_v47, %v1875_v26  ;;  %v9705_v26 = vld [vmem:[#allocation43_spill] sm:$0xff] }
 0x253   :  { %3210 = vst.msk [vmem:[#allocation2 + $0x60] sm:$0xff] %vm38_vm13, %v7163_v1  ;;  %1942 = vmax.xlane.f32.xlu0 %v9705_v26  ;;  %v9719_v26 = vld [vmem:[#allocation58_spill] sm:$0xff] }
 0x254   :  { %9703 = vst [vmem:[#allocation103_spill] sm:$0xff] %v7174_v23  ;;  %v1274_v47 = vld [vmem:[#allocation4 + $0x1e8] sm:$0xff] }
 0x255   :  { %3208 = vst.msk [vmem:[#allocation2 + $0x50] sm:$0xff] %vm38_vm13, %v7174_v23  ;;  %v1712_v30 = vpop.xlane.xlu0 %1711  ;;  %v1648_v27 = vpop.xlane.xlu1 %1647 }
 0x256   :  { %v1782_v2 = vadd.f32 %v1712_v30, %v1270_v37  ;;  %v1750_v7 = vadd.f32 %v1648_v27, %v1238_v6  ;;  %v9707_v30 = vld [vmem:[#allocation46_spill] sm:$0xff]  ;;  %v7189_v27 = vld [vmem:[#allocation2 + $0x70] sm:$0xff] }
 0x257   :  { %1946 = vmax.xlane.f32.xlu2 %v9707_v30  ;;  %9709 = vst [vmem:[#allocation104_spill] sm:$0xff] %v7189_v27  ;;  %v9718_v30 = vld [vmem:[#allocation62_spill] sm:$0xff] }
 0x258   :  { %1847 = vst.msk [vmem:[#allocation4 + $0x1c8] sm:$0xff] %vm38_vm13, %v1782_v2  ;;  %v1272_v2 = vld [vmem:[#allocation4 + $0x1d8] sm:$0xff] }
 0x259   :  { %1815 = vst.msk [vmem:[#allocation4 + $0xc8] sm:$0xff] %vm38_vm13, %v1750_v7  ;;  %v1650_v31 = vpop.xlane.xlu2 %1649  ;;  %v9708_v7 = vld [vmem:[#allocation48_spill] sm:$0xff] }
 0x25a   :  { %v1751_v51 = vadd.f32 %v1650_v31, %v1239_v38 }
 0x25b   :  { %1948 = vmax.xlane.f32.xlu0 %v9708_v7  ;;  %v1241_v7 = vld [vmem:[#allocation4 + $0xe0] sm:$0xff] }
 0x25c   :  { %1816 = vst.msk [vmem:[#allocation4 + $0xd0] sm:$0xff] %vm38_vm13, %v1751_v51  ;;  %v7191_v51 = vld [vmem:[#allocation2 + $0x78] sm:$0xff] }
 0x25d   :  { %v1652_v61 = vpop.xlane.xlu0 %1651  ;;  %v1714_v63 = vpop.xlane.xlu1 %1713  ;;  %9710 = vst [vmem:[#allocation105_spill] sm:$0xff] %v7191_v51 }
 0x25e   :  { %v1752_v37 = vadd.f32 %v1652_v61, %v1240_v43  ;;  %v1783_v6 = vadd.f32 %v1714_v63, %v1271_v33  ;;  %v9711_v33 = vld [vmem:[#allocation56_spill] sm:$0xff] }
 0x25f   :  { %1956 = vmax.xlane.f32.xlu1 %v9711_v33 }
 0x260   :  { %1817 = vst.msk [vmem:[#allocation4 + $0xd8] sm:$0xff] %vm38_vm13, %v1752_v37  ;;  %v9714_v37 = vld [vmem:[#allocation52_spill] sm:$0xff] }
 0x261   :  { %1848 = vst.msk [vmem:[#allocation4 + $0x1d0] sm:$0xff] %vm38_vm13, %v1783_v6  ;;  %v1716_v38 = vpop.xlane.xlu2 %1715  ;;  %1952 = vmax.xlane.f32.xlu2 %v9714_v37  ;;  %v7204_v6 = vld [vmem:[#allocation2 + $0x68] sm:$0xff] }
 0x262   :  { %v1784_v31 = vadd.f32 %v1716_v38, %v1272_v2  ;;  %9715 = vst [vmem:[#allocation108_spill] sm:$0xff] %v7204_v6  ;;  %v9716_v2 = vld [vmem:[#allocation54_spill] sm:$0xff] }
 0x263   :  { %1954 = vmax.xlane.f32.xlu0 %v9716_v2  ;;  %v1242_v2 = vld [vmem:[#allocation4 + $0xe8] sm:$0xff] }
 0x264   :  { %1849 = vst.msk [vmem:[#allocation4 + $0x1d8] sm:$0xff] %vm38_vm13, %v1784_v31 }
 0x265   :  { %v1883_v55 = vpop.xlane.xlu0 %1882  ;;  %v1885_v43 = vpop.xlane.xlu1 %1884 }
 0x266   :  { %v7196_v61 = vmax.f32 %v7189_v27, %v1883_v55  ;;  %v7199_v63 = vmax.f32 %v7191_v51, %v1885_v43  ;;  %v1273_v55 = vld [vmem:[#allocation4 + $0x1e0] sm:$0xff] }
 0x267   :  { %1962 = vmax.xlane.f32.xlu1 %v9718_v30 }
 0x268   :  { %9712 = vst [vmem:[#allocation106_spill] sm:$0xff] %v7196_v61 }
 0x269   :  { %9713 = vst [vmem:[#allocation107_spill] sm:$0xff] %v7199_v63  ;;  %v1881_v38 = vpop.xlane.xlu2 %1880  ;;  %1958 = vmax.xlane.f32.xlu2 %v9719_v26  ;;  %v7308_v26 = vld [vmem:[#allocation2 + $0xd8] sm:$0xff] }
 0x26a   :  { %3212 = vst.msk [vmem:[#allocation2 + $0x70] sm:$0xff] %vm38_vm13, %v7196_v61  ;;  %v7210_v31 = vmax.f32 %v7204_v6, %v1881_v38  ;;  %v9720_v38 = vld [vmem:[#allocation60_spill] sm:$0xff] }
 0x26b   :  { %3213 = vst.msk [vmem:[#allocation2 + $0x78] sm:$0xff] %vm38_vm13, %v7199_v63  ;;  %1960 = vmax.xlane.f32.xlu0 %v9720_v38  ;;  %v1243_v6 = vld [vmem:[#allocation4 + $0xf0] sm:$0xff] }
 0x26c   :  { %9717 = vst [vmem:[#allocation109_spill] sm:$0xff] %v7210_v31 }
 0x26d   :  { %3211 = vst.msk [vmem:[#allocation2 + $0x68] sm:$0xff] %vm38_vm13, %v7210_v31  ;;  %v1718_v43 = vpop.xlane.xlu0 %1717  ;;  %v1654_v37 = vpop.xlane.xlu1 %1653 }
 0x26e   :  { %v1785_v33 = vadd.f32 %v1718_v43, %v1273_v55  ;;  %v1753_v42 = vadd.f32 %v1654_v37, %v1241_v7  ;;  %9739 = vst [vmem:[#allocation128_spill] sm:$0xff] %v7308_v26 }
 0x26f   :  { %1968 = vmax.xlane.f32.xlu1 %v6776_v14  ;;  %v7260_v14 = vld [vmem:[#allocation2 + $0xa0] sm:$0xff] }
 0x270   :  { %1850 = vst.msk [vmem:[#allocation4 + $0x1e0] sm:$0xff] %vm38_vm13, %v1785_v33  ;;  %v1275_v33 = vld [vmem:[#allocation4 + $0x1f0] sm:$0xff] }
 0x271   :  { %1818 = vst.msk [vmem:[#allocation4 + $0xe0] sm:$0xff] %vm38_vm13, %v1753_v42  ;;  %v1656_v27 = vpop.xlane.xlu2 %1655  ;;  %1964 = vmax.xlane.f32.xlu2 %v6725_v35 }
 0x272   :  { %v1754_v51 = vadd.f32 %v1656_v27, %v1242_v2  ;;  %v7225_v2 = vld [vmem:[#allocation2 + $0x88] sm:$0xff]  ;;  %9729 = vst [vmem:[#allocation118_spill] sm:$0xff] %v7260_v14  ;;  %v3280_v46 = vld [vmem:[#allocation2 + $0x78] sm:$0xff] }
 0x273   :  { %1966 = vmax.xlane.f32.xlu0 %v6757_v21  ;;  %9721 = vst [vmem:[#allocation110_spill] sm:$0xff] %v7225_v2 }
 0x274   :  { %1819 = vst.msk [vmem:[#allocation4 + $0xe8] sm:$0xff] %vm38_vm13, %v1754_v51  ;;  %v7227_v51 = vld [vmem:[#allocation2 + $0x90] sm:$0xff] }
 0x275   :  { %v1658_v28 = vpop.xlane.xlu0 %1657  ;;  %v1720_v5 = vpop.xlane.xlu1 %1719  ;;  %9722 = vst [vmem:[#allocation111_spill] sm:$0xff] %v7227_v51 }
 0x276   :  { %v1755_v7 = vadd.f32 %v1658_v28, %v1243_v6  ;;  %v1786_v37 = vadd.f32 %v1720_v5, %v1274_v47  ;;  %v7240_v6 = vld [vmem:[#allocation2 + $0x80] sm:$0xff] }
 0x277   :  { %1974 = vmax.xlane.f32.xlu1 %v6890_v20  ;;  %9725 = vst [vmem:[#allocation114_spill] sm:$0xff] %v7240_v6  ;;  %v7253_v20 = vld [vmem:[#allocation2 + $0x98] sm:$0xff] }
 0x278   :  { %1820 = vst.msk [vmem:[#allocation4 + $0xf0] sm:$0xff] %vm38_vm13, %v1755_v7 }
 0x279   :  { %1851 = vst.msk [vmem:[#allocation4 + $0x1e8] sm:$0xff] %vm38_vm13, %v1786_v37  ;;  %v1722_v42 = vpop.xlane.xlu2 %1721  ;;  %1970 = vmax.xlane.f32.xlu2 %v6794_v10  ;;  %v1276_v37 = vld [vmem:[#allocation4 + $0x1f8] sm:$0xff]  ;;  %v7262_v10 = vld [vmem:[#allocation2 + $0xa8] sm:$0xff] }
 0x27a   :  { %v1787_v27 = vadd.f32 %v1722_v42, %v1275_v33  ;;  %v1244_v33 = vld [vmem:[#allocation4 + $0xf8] sm:$0xff]  ;;  %9727 = vst [vmem:[#allocation116_spill] sm:$0xff] %v7253_v20 }
 0x27b   :  { %1972 = vmax.xlane.f32.xlu0 %v6822_v3  ;;  %9730 = vst [vmem:[#allocation119_spill] sm:$0xff] %v7262_v10 }
 0x27c   :  { %1852 = vst.msk [vmem:[#allocation4 + $0x1f0] sm:$0xff] %vm38_vm13, %v1787_v27 }
 0x27d   :  { %v1889_v55 = vpop.xlane.xlu0 %1888  ;;  %v1891_v28 = vpop.xlane.xlu1 %1890 }
 0x27e   :  { %v7232_v5 = vmax.f32 %v7225_v2, %v1889_v55  ;;  %v7235_v47 = vmax.f32 %v7227_v51, %v1891_v28 }
 0x27f   :  { %1980 = vmax.xlane.f32.xlu1 %v6990_v57 }
 0x280   :  { %9723 = vst [vmem:[#allocation112_spill] sm:$0xff] %v7232_v5 }
 0x281   :  { %9724 = vst [vmem:[#allocation113_spill] sm:$0xff] %v7235_v47  ;;  %v1887_v43 = vpop.xlane.xlu2 %1886  ;;  %1976 = vmax.xlane.f32.xlu2 %v6918_v13 }
 0x282   :  { %3215 = vst.msk [vmem:[#allocation2 + $0x88] sm:$0xff] %vm38_vm13, %v7232_v5  ;;  %v7246_v7 = vmax.f32 %v7240_v6, %v1887_v43  ;;  %v7386_v6 = vld [vmem:[#allocation2 + $0x120] sm:$0xff] }
 0x283   :  { %3216 = vst.msk [vmem:[#allocation2 + $0x90] sm:$0xff] %vm38_vm13, %v7235_v47  ;;  %1978 = vmax.xlane.f32.xlu0 %v6950_v4  ;;  %v7285_v4 = vld [vmem:[#allocation2 + $0xc0] sm:$0xff] }
 0x284   :  { %9726 = vst [vmem:[#allocation115_spill] sm:$0xff] %v7246_v7 }
 0x285   :  { %3214 = vst.msk [vmem:[#allocation2 + $0x80] sm:$0xff] %vm38_vm13, %v7246_v7  ;;  %v1724_v42 = vpop.xlane.xlu0 %1723  ;;  %v1660_v27 = vpop.xlane.xlu1 %1659 }
 0x286   :  { %v1788_v55 = vadd.f32 %v1724_v42, %v1276_v37  ;;  %v1756_v28 = vadd.f32 %v1660_v27, %v1244_v33  ;;  %9734 = vst [vmem:[#allocation123_spill] sm:$0xff] %v7285_v4 }
 0x287   :  { %9757 = vst [vmem:[#allocation146_spill] sm:$0xff] %v7386_v6 }
 0x288   :  { %1853 = vst.msk [vmem:[#allocation4 + $0x1f8] sm:$0xff] %vm38_vm13, %v1788_v55 }
 0x289   :  { %1821 = vst.msk [vmem:[#allocation4 + $0xf8] sm:$0xff] %vm38_vm13, %v1756_v28  ;;  %v1893_v43 = vpop.xlane.xlu2 %1892  ;;  %v7276_v28 = vld [vmem:[#allocation2 + $0xb0] sm:$0xff] }
 0x28a   :  { %v7258_v3 = vmax.f32 %v7253_v20, %v1893_v43  ;;  %9732 = vst [vmem:[#allocation121_spill] sm:$0xff] %v7276_v28  ;;  %v7360_v20 = vld [vmem:[#allocation2 + $0x108] sm:$0xff] }
 0x28b   :  { %9751 = vst [vmem:[#allocation140_spill] sm:$0xff] %v7360_v20 }
 0x28c   :  { %9728 = vst [vmem:[#allocation117_spill] sm:$0xff] %v7258_v3 }
 0x28d   :  { %3217 = vst.msk [vmem:[#allocation2 + $0x98] sm:$0xff] %vm38_vm13, %v7258_v3  ;;  %v1895_v37 = vpop.xlane.xlu0 %1894  ;;  %v1897_v33 = vpop.xlane.xlu1 %1896 }
 0x28e   :  { %v7267_v42 = vmax.f32 %v7260_v14, %v1895_v37  ;;  %v7270_v27 = vmax.f32 %v7262_v10, %v1897_v33  ;;  %v7283_v37 = vld [vmem:[#allocation2 + $0xb8] sm:$0xff]  ;;  %v7334_v14 = vld [vmem:[#allocation2 + $0xf0] sm:$0xff] }
 0x28f   :  { %9733 = vst [vmem:[#allocation122_spill] sm:$0xff] %v7283_v37 }
 0x290   :  { %9731 = vst [vmem:[#allocation120_spill] sm:$0xff] %v7267_v42 }
 0x291   :  { %3218 = vst.msk [vmem:[#allocation2 + $0xa0] sm:$0xff] %vm38_vm13, %v7267_v42  ;;  %v1899_v43 = vpop.xlane.xlu2 %1898 }
 0x292   :  { %3219 = vst.msk [vmem:[#allocation2 + $0xa8] sm:$0xff] %vm38_vm13, %v7270_v27  ;;  %v7281_v57 = vmax.f32 %v7276_v28, %v1899_v43  ;;  %v7299_v43 = vld [vmem:[#allocation2 + $0xc8] sm:$0xff] }
 0x293   :  { %9736 = vst [vmem:[#allocation125_spill] sm:$0xff] %v7299_v43 }
 0x294   :  { %3220 = vst.msk [vmem:[#allocation2 + $0xb0] sm:$0xff] %vm38_vm13, %v7281_v57 }
 0x295   :  { %v1901_v33 = vpop.xlane.xlu0 %1900  ;;  %v1903_v55 = vpop.xlane.xlu1 %1902  ;;  %9745 = vst [vmem:[#allocation134_spill] sm:$0xff] %v7334_v14 }
 0x296   :  { %v7290_v13 = vmax.f32 %v7283_v37, %v1901_v33  ;;  %v7293_v21 = vmax.f32 %v7285_v4, %v1903_v55  ;;  %v7306_v33 = vld [vmem:[#allocation2 + $0xd0] sm:$0xff] }
 0x297   :  { %9738 = vst [vmem:[#allocation127_spill] sm:$0xff] %v7306_v33  ;;  %2437 = vperm.xlu0 %4782, %v7045_v59   ;;  %v7457_v59 = vld [vmem:[%s9308_s2 + $0x28] sm:$0xff] }
 0x298   :  { %9735 = vst [vmem:[#allocation124_spill] sm:$0xff] %v7290_v13  ;;  %2442 = vperm.xlu1 %4783, %v7035_v24   ;;  %v7452_v24 = vld [vmem:[#allocation2 + $0x150] sm:$0xff]  ;;  %vm9449_vm0 = vcmp.ne.s32.totalorder %v7457_v59, 0 }
 0x299   :  { %3221 = vst.msk [vmem:[#allocation2 + $0xb8] sm:$0xff] %vm38_vm13, %v7290_v13  ;;  %v1905_v38 = vpop.xlane.xlu2 %1904  ;;  %2432 = vperm.xlu2 %4784, %v6831_v41   ;;  %v3591_v41 = vld [vmem:[#allocation4 + $0x30] sm:$0xff] }
 0x29a   :  { %3222 = vst.msk [vmem:[#allocation2 + $0xc0] sm:$0xff] %vm38_vm13, %v7293_v21  ;;  %v7304_v35 = vmax.f32 %v7299_v43, %v1905_v38  ;;  %v7325_v43 = vld [vmem:[#allocation2 + $0xe0] sm:$0xff] }
 0x29b   :  { %9742 = vst [vmem:[#allocation131_spill] sm:$0xff] %v7325_v43 }
 0x29c   :  { %9737 = vst [vmem:[#allocation126_spill] sm:$0xff] %v7304_v35 }
 0x29d   :  { %3223 = vst.msk [vmem:[#allocation2 + $0xc8] sm:$0xff] %vm38_vm13, %v7304_v35  ;;  %v1907_v55 = vpop.xlane.xlu0 %1906  ;;  %v1909_v30 = vpop.xlane.xlu1 %1908 }
 0x29e   :  { %v7313_v37 = vmax.f32 %v7306_v33, %v1907_v55  ;;  %v7316_v4 = vmax.f32 %v7308_v26, %v1909_v30  ;;  %v7332_v26 = vld [vmem:[#allocation2 + $0xe8] sm:$0xff]  ;;  %9771 = vst [vmem:[#allocation160_spill] sm:$0xff] %v7452_v24 }
 0x29f   :  { %9744 = vst [vmem:[#allocation133_spill] sm:$0xff] %v7332_v26  ;;  %2447 = vperm.xlu0 %4782, %v7041_v62   ;;  %v3273_v62 = vld [vmem:[#allocation2 + $0x40] sm:$0xff] }
 0x2a0   :  { %9740 = vst [vmem:[#allocation129_spill] sm:$0xff] %v7313_v37  ;;  %2457 = vperm.xlu1 %4783, %v7067_v52   ;;  %v3266_v52 = vld [vmem:[#allocation2 + $0x8] sm:$0xff]  ;;  %v3288_v40 = vld [vmem:[#allocation2 + $0xb8] sm:$0xff] }
 0x2a1   :  { %9741 = vst [vmem:[#allocation130_spill] sm:$0xff] %v7316_v4  ;;  %v1911_v55 = vpop.xlane.xlu2 %1910  ;;  %2452 = vperm.xlu2 %4784, %v7075_v54   ;;  %v7444_v54 = vld [vmem:[%s9308_s2 + $0x8] sm:$0xff] }
 0x2a2   :  { %3224 = vst.msk [vmem:[#allocation2 + $0xd0] sm:$0xff] %vm38_vm13, %v7313_v37  ;;  %v7330_v30 = vmax.f32 %v7325_v43, %v1911_v55  ;;  %v7351_v43 = vld [vmem:[#allocation2 + $0xf8] sm:$0xff]  ;;  %vm9451_vm14 = vcmp.ne.s32.totalorder %v7444_v54, 0 }
 0x2a3   :  { %3225 = vst.msk [vmem:[#allocation2 + $0xd8] sm:$0xff] %vm38_vm13, %v7316_v4 }
 0x2a4   :  { %9743 = vst [vmem:[#allocation132_spill] sm:$0xff] %v7330_v30 }
 0x2a5   :  { %3226 = vst.msk [vmem:[#allocation2 + $0xe0] sm:$0xff] %vm38_vm13, %v7330_v30  ;;  %v1913_v38 = vpop.xlane.xlu0 %1912  ;;  %v1915_v33 = vpop.xlane.xlu1 %1914 }
 0x2a6   :  { %v7339_v28 = vmax.f32 %v7332_v26, %v1913_v38  ;;  %v7342_v10 = vmax.f32 %v7334_v14, %v1915_v33  ;;  %9748 = vst [vmem:[#allocation137_spill] sm:$0xff] %v7351_v43  ;;  %v7358_v14 = vld [vmem:[#allocation2 + $0x100] sm:$0xff] }
 0x2a7   :  { %9750 = vst [vmem:[#allocation139_spill] sm:$0xff] %v7358_v14  ;;  %2462 = vperm.xlu0 %4782, %v7071_v58   ;;  %v7425_v58 = vld [vmem:[#allocation2 + $0x140] sm:$0xff] }
 0x2a8   :  { %9746 = vst [vmem:[#allocation135_spill] sm:$0xff] %v7339_v28  ;;  %2472 = vperm.xlu1 %4783, %v7124_v49  }
 0x2a9   :  { %9747 = vst [vmem:[#allocation136_spill] sm:$0xff] %v7342_v10  ;;  %v1917_v38 = vpop.xlane.xlu2 %1916  ;;  %2467 = vperm.xlu2 %4784, %v7138_v8  }
 0x2aa   :  { %3227 = vst.msk [vmem:[#allocation2 + $0xe8] sm:$0xff] %vm38_vm13, %v7339_v28  ;;  %v7356_v33 = vmax.f32 %v7351_v43, %v1917_v38  ;;  %v7377_v43 = vld [vmem:[#allocation2 + $0x110] sm:$0xff] }
 0x2ab   :  { %3228 = vst.msk [vmem:[#allocation2 + $0xf0] sm:$0xff] %vm38_vm13, %v7342_v10 }
 0x2ac   :  { %9749 = vst [vmem:[#allocation138_spill] sm:$0xff] %v7356_v33 }
 0x2ad   :  { %3229 = vst.msk [vmem:[#allocation2 + $0xf8] sm:$0xff] %vm38_vm13, %v7356_v33  ;;  %v1919_v55 = vpop.xlane.xlu0 %1918  ;;  %v1921_v26 = vpop.xlane.xlu1 %1920 }
 0x2ae   :  { %v7365_v2 = vmax.f32 %v7358_v14, %v1919_v55  ;;  %v7368_v51 = vmax.f32 %v7360_v20, %v1921_v26  ;;  %9754 = vst [vmem:[#allocation143_spill] sm:$0xff] %v7377_v43  ;;  %v7384_v20 = vld [vmem:[#allocation2 + $0x118] sm:$0xff] }
 0x2af   :  { %9756 = vst [vmem:[#allocation145_spill] sm:$0xff] %v7384_v20  ;;  %2477 = vperm.xlu0 %4782, %v7127_v18  }
 0x2b0   :  { %9752 = vst [vmem:[#allocation141_spill] sm:$0xff] %v7365_v2  ;;  %2487 = vperm.xlu1 %4783, %v7160_v34  }
 0x2b1   :  { %9753 = vst [vmem:[#allocation142_spill] sm:$0xff] %v7368_v51  ;;  %v1923_v55 = vpop.xlane.xlu2 %1922  ;;  %2482 = vperm.xlu2 %4784, %v7174_v23   ;;  %v3267_v23 = vld [vmem:[#allocation2 + $0x10] sm:$0xff] }
 0x2b2   :  { %3230 = vst.msk [vmem:[#allocation2 + $0x100] sm:$0xff] %vm38_vm13, %v7365_v2  ;;  %v7382_v26 = vmax.f32 %v7377_v43, %v1923_v55  ;;  %v7401_v55 = vld [vmem:[#allocation2 + $0x128] sm:$0xff] }
 0x2b3   :  { %3231 = vst.msk [vmem:[#allocation2 + $0x108] sm:$0xff] %vm38_vm13, %v7368_v51 }
 0x2b4   :  { %9755 = vst [vmem:[#allocation144_spill] sm:$0xff] %v7382_v26 }
 0x2b5   :  { %3232 = vst.msk [vmem:[#allocation2 + $0x110] sm:$0xff] %vm38_vm13, %v7382_v26  ;;  %v1925_v38 = vpop.xlane.xlu0 %1924  ;;  %v1927_v14 = vpop.xlane.xlu1 %1926 }
 0x2b6   :  { %v7391_v49 = vmax.f32 %v7384_v20, %v1925_v38  ;;  %v7394_v8 = vmax.f32 %v7386_v6, %v1927_v14  ;;  %9760 = vst [vmem:[#allocation149_spill] sm:$0xff] %v7401_v55  ;;  %v7408_v14 = vld [vmem:[#allocation2 + $0x130] sm:$0xff]  ;;  %v7410_v20 = vld [vmem:[#allocation2 + $0x138] sm:$0xff] }
 0x2b7   :  { %9761 = vst [vmem:[#allocation150_spill] sm:$0xff] %v7408_v14  ;;  %2492 = vperm.xlu0 %4782, %v7163_v1  }
 0x2b8   :  { %9758 = vst [vmem:[#allocation147_spill] sm:$0xff] %v7391_v49  ;;  %2502 = vperm.xlu1 %4783, %v7196_v61   ;;  %v3586_v61 = vld [vmem:[#allocation4 + $0x8] sm:$0xff] }
 0x2b9   :  { %9759 = vst [vmem:[#allocation148_spill] sm:$0xff] %v7394_v8  ;;  %v1929_v43 = vpop.xlane.xlu2 %1928  ;;  %2497 = vperm.xlu2 %4784, %v7210_v31   ;;  %v3590_v31 = vld [vmem:[#allocation4 + $0x28] sm:$0xff]  ;;  %vm3980_vm15 = vcmp.eq.f32.partialorder %v3586_v61, %v3266_v52  ;;  %v7520_v61 = vld [vmem:[%s9308_s2 + $0x58] sm:$0xff] }
 0x2ba   :  { %3233 = vst.msk [vmem:[#allocation2 + $0x118] sm:$0xff] %vm38_vm13, %v7391_v49  ;;  %v7406_v38 = vmax.f32 %v7401_v55, %v1929_v43  ;;  %v3268_v43 = vld [vmem:[#allocation2 + $0x18] sm:$0xff]  ;;  %v3587_v55 = vld [vmem:[#allocation4 + $0x10] sm:$0xff] }
 0x2bb   :  { %3234 = vst.msk [vmem:[#allocation2 + $0x120] sm:$0xff] %vm38_vm13, %v7394_v8  ;;  %vm3981_vm10 = vcmp.eq.f32.partialorder %v3587_v55, %v3267_v23  ;;  %v7450_v8 = vld [vmem:[#allocation2 + $0x148] sm:$0xff]  ;;  %v7485_v55 = vld [vmem:[%s9308_s2 + $0x40] sm:$0xff] }
 0x2bc   :  { %9762 = vst [vmem:[#allocation151_spill] sm:$0xff] %v7410_v20  ;;  %vm9462_vm8 = vcmp.ne.s32.totalorder %v7485_v55, 0 }
 0x2bd   :  { %3235 = vst.msk [vmem:[#allocation2 + $0x128] sm:$0xff] %vm38_vm13, %v7406_v38  ;;  %v1931_v6 = vpop.xlane.xlu0 %1930  ;;  %v1933_v34 = vpop.xlane.xlu1 %1932 }
 0x2be   :  { %v7415_v49 = vmax.f32 %v7408_v14, %v1931_v6  ;;  %v7418_v18 = vmax.f32 %v7410_v20, %v1933_v34  ;;  %9765 = vst [vmem:[#allocation154_spill] sm:$0xff] %v7425_v58  ;;  %v7430_v6 = vld [vmem:[%s9308_s2 + $0x10] sm:$0xff]  ;;  %v3588_v34 = vld [vmem:[#allocation4 + $0x18] sm:$0xff]  ;;  %v3270_v14 = vld [vmem:[#allocation2 + $0x28] sm:$0xff] }
 0x2bf   :  { %9766 = vst [vmem:[#allocation155_spill] sm:$0xff] %v7430_v6  ;;  %vm9445_vm9 = vcmp.ne.s32.totalorder %v7430_v6, 0  ;;  %v7438_v20 = vld [vmem:[%s9308_s2 + $0x18] sm:$0xff]  ;;  %vm3982_vm12 = vcmp.eq.f32.partialorder %v3588_v34, %v3268_v43  ;;  %vm3984_vm1 = vcmp.eq.f32.partialorder %v3590_v31, %v3270_v14  ;;  %2507 = vperm.xlu0 %4782, %v7199_v63   ;;  %v3274_v43 = vld [vmem:[#allocation2 + $0x48] sm:$0xff]  ;;  %v7537_v14 = vld [vmem:[%s9308_s2 + $0x50] sm:$0xff] }
 0x2c0   :  { %9763 = vst [vmem:[#allocation152_spill] sm:$0xff] %v7415_v49  ;;  %vm9446_vm11 = vcmp.ne.s32.totalorder %v7438_v20, 0  ;;  %vm7463_vm2 = vmand %vm3981_vm10, %vm9445_vm9  ;;  %v3592_v6 = vld [vmem:[#allocation4 + $0x38] sm:$0xff]  ;;  %2517 = vperm.xlu1 %4783, %v7232_v5   ;;  %vm3987_vm10 = vcmp.eq.f32.partialorder %v3593_v0, %v3273_v62  ;;  %v3275_v5 = vld [vmem:[#allocation2 + $0x50] sm:$0xff] }
 0x2c1   :  { %9764 = vst [vmem:[#allocation153_spill] sm:$0xff] %v7418_v18  ;;  %v1935_v1 = vpop.xlane.xlu2 %1934  ;;  %vm7478_vm7 = vmand %vm3982_vm12, %vm9446_vm11  ;;  %2512 = vperm.xlu2 %4784, %v7246_v7   ;;  %vm3986_vm9 = vcmp.eq.f32.partialorder %v3592_v6, %v3272_v16  ;;  %v7566_v7 = vld [vmem:[%s9308_s2 + $0x68] sm:$0xff]  ;;  %v3597_v63 = vld [vmem:[#allocation4 + $0x60] sm:$0xff]  ;;  %v4109_v45 = vsel %vm7463_vm2, 1, %v9689_v11 }
 0x2c2   :  { %3236 = vst.msk [vmem:[#allocation2 + $0x130] sm:$0xff] %vm38_vm13, %v7415_v49  ;;  %v3271_v49 = vld [vmem:[#allocation2 + $0x30] sm:$0xff]  ;;  %vm7499_vm12 = vmand %vm3980_vm15, %vm9451_vm14  ;;  %vm9482_vm15 = vcmp.ne.s32.totalorder %v7520_v61, 0  ;;  %v7578_v0 = vld [vmem:[%s9308_s2 + $0x88] sm:$0xff]  ;;  %v4110_v17 = vsel %vm7478_vm7, 1, %v9689_v11 }
 0x2c3   :  { %3237 = vst.msk [vmem:[#allocation2 + $0x138] sm:$0xff] %vm38_vm13, %v7418_v18  ;;  %v7448_v18 = vmax.f32 %v7425_v58, %v1935_v1  ;;  %v7470_v58 = vld [vmem:[%s9308_s2 + $0x30] sm:$0xff]  ;;  %vm3985_vm5 = vcmp.eq.f32.partialorder %v3591_v41, %v3271_v49  ;;  %vm7513_vm11 = vmand %vm3984_vm1, %vm9449_vm0  ;;  %v7603_v6 = vld [vmem:[#allocation2 + $0x160] sm:$0xff]  ;;  %vm9504_vm0 = vcmp.ne.s32.totalorder %v7616_v44, 0  ;;  %v4108_v52 = vsel %vm7499_vm12, 1, %v9689_v11 }
 0x2c4   :  { %9767 = vst [vmem:[#allocation156_spill] sm:$0xff] %v7438_v20  ;;  %vm9454_vm4 = vcmp.ne.s32.totalorder %v7470_v58, 0  ;;  %v3277_v20 = vld [vmem:[#allocation2 + $0x60] sm:$0xff]  ;;  %v7549_v41 = vld [vmem:[%s9308_s2 + $0x70] sm:$0xff]  ;;  %vm7559_vm3 = vmand %vm3987_vm10, %vm9462_vm8  ;;  %v4112_v36 = vsel %vm7513_vm11, 1, %v9689_v11 }
 0x2c5   :  { %9768 = vst [vmem:[#allocation157_spill] sm:$0xff] %v7444_v54  ;;  %v1937_v56 = vpop.xlane.xlu0 %1936  ;;  %v1939_v32 = vpop.xlane.xlu1 %1938  ;;  %vm7530_vm1 = vmand %vm3985_vm5, %vm9454_vm4  ;;  %v7552_v49 = vld [vmem:[#allocation4 + $0x50] sm:$0xff]  ;;  %v3598_v34 = vld [vmem:[#allocation4 + $0x68] sm:$0xff]  ;;  %vm9815_vm7 = vcmp.eq.f32.partialorder %v3597_v63, %v3277_v20 }
 0x2c6   :  { %9769 = vst [vmem:[#allocation158_spill] sm:$0xff] %v7448_v18  ;;  %v7492_v19 = vmax.f32 %v7452_v24, %v1939_v32  ;;  %v3594_v32 = vld [vmem:[#allocation4 + $0x48] sm:$0xff]  ;;  %v3276_v24 = vld [vmem:[#allocation2 + $0x58] sm:$0xff]  ;;  %vm3989_vm10 = vcmp.eq.f32.partialorder %v7552_v49, %v3275_v5  ;;  %v3283_v20 = vld [vmem:[#allocation2 + $0x90] sm:$0xff]  ;;  %v4174_v49 = vsel %vm38_vm13, %v4110_v17, 0 }
 0x2c7   :  { %9770 = vst [vmem:[#allocation159_spill] sm:$0xff] %v7450_v8  ;;  %vm3988_vm4 = vcmp.eq.f32.partialorder %v3594_v32, %v3274_v43  ;;  %2522 = vperm.xlu0 %4782, %v7235_v47   ;;  %v3602_v63 = vld [vmem:[#allocation4 + $0x88] sm:$0xff] }
 0x2c8   :  { %9772 = vst [vmem:[#allocation161_spill] sm:$0xff] %v7457_v59  ;;  %v7543_v59 = vld [vmem:[%s9308_s2 + $0x48] sm:$0xff]  ;;  %2532 = vperm.xlu1 %4783, %v7267_v42   ;;  %v7706_v42 = vld [vmem:[#allocation4 + $0x80] sm:$0xff] }
 0x2c9   :  { %9775 = vst [vmem:[#allocation162_spill] sm:$0xff] %v7470_v58  ;;  %vm9488_vm14 = vcmp.ne.s32.totalorder %v7543_v59, 0  ;;  %v3596_v58 = vld [vmem:[#allocation4 + $0x58] sm:$0xff]  ;;  %v1941_v62 = vpop.xlane.xlu2 %1940  ;;  %2527 = vperm.xlu2 %4784, %v7258_v3   ;;  %v7745_v3 = vld [vmem:[%s9308_s2 + $0xc0] sm:$0xff]  ;;  %v7764_v47 = vld [vmem:[%s9308_s2 + $0xc8] sm:$0xff] }
 0x2ca   :  { %3238 = vst.msk [vmem:[#allocation2 + $0x140] sm:$0xff] %vm38_vm13, %v7448_v18  ;;  %v7489_v18 = vmax.f32 %v7450_v8, %v1937_v56  ;;  %v7506_v56 = vld [vmem:[%s9308_s2 + $0x38] sm:$0xff]  ;;  %vm3990_vm8 = vcmp.eq.f32.partialorder %v3596_v58, %v3276_v24  ;;  %v3282_v58 = vld [vmem:[#allocation2 + $0x88] sm:$0xff] }
 0x2cb   :  { %9778 = vst [vmem:[#allocation163_spill] sm:$0xff] %v7485_v55  ;;  %vm9470_vm6 = vcmp.ne.s32.totalorder %v7506_v56, 0  ;;  %v7525_v8 = vld [vmem:[#allocation2 + $0x158] sm:$0xff]  ;;  %v3279_v55 = vld [vmem:[#allocation2 + $0x70] sm:$0xff]  ;;  %vm7644_vm2 = vmand %vm3990_vm8, %vm9482_vm15 }
 0x2cc   :  { %9779 = vst [vmem:[#allocation164_spill] sm:$0xff] %v7489_v18  ;;  %vm7584_vm5 = vmand %vm3986_vm9, %vm9470_vm6  ;;  %v7601_v16 = vmax.f32 %v7525_v8, %v1941_v62  ;;  %v3278_v62 = vld [vmem:[#allocation2 + $0x68] sm:$0xff]  ;;  %vm9514_vm6 = vcmp.ne.s32.totalorder %v7636_v25, 0  ;;  %v8218_v25 = vld [vmem:[#allocation4 + $0x140] sm:$0xff] }
 0x2cd   :  { %9780 = vst [vmem:[#allocation165_spill] sm:$0xff] %v7492_v19  ;;  %vm7623_vm9 = vmand %vm3988_vm4, %vm9488_vm14  ;;  %v1943_v43 = vpop.xlane.xlu0 %1942  ;;  %v1945_v32 = vpop.xlane.xlu1 %1944  ;;  %v4114_v54 = vsel %vm7584_vm5, 1, %v9689_v11  ;;  %vm9820_vm5 = vcmp.ne.s32.totalorder %v7537_v14, 0  ;;  %vm9824_vm14 = vcmp.ne.s32.totalorder %v7549_v41, 0  ;;  %v3286_v1 = vld [vmem:[#allocation2 + $0xa8] sm:$0xff] }
 0x2ce   :  { %9783 = vst [vmem:[#allocation166_spill] sm:$0xff] %v7506_v56  ;;  %v7605_v56 = vld [vmem:[#allocation2 + $0x168] sm:$0xff]  ;;  %v7658_v15 = vmax.f32 %v7603_v6, %v1943_v43  ;;  %v7678_v43 = vld [vmem:[%s9308_s2 + $0xb0] sm:$0xff]  ;;  %vm7692_vm15 = vmand %vm3989_vm10, %vm9820_vm5  ;;  %v4116_v17 = vsel %vm7623_vm9, 1, %v9689_v11  ;;  %vm9522_vm5 = vcmp.ne.s32.totalorder %v7745_v3, 0 }
 0x2cf   :  { %9786 = vst [vmem:[#allocation167_spill] sm:$0xff] %v7520_v61  ;;  %v7661_v24 = vmax.f32 %v7605_v56, %v1945_v32  ;;  %v7684_v32 = vld [vmem:[%s9308_s2 + $0xa8] sm:$0xff]  ;;  %v7702_v61 = vld [vmem:[#allocation2 + $0x170] sm:$0xff]  ;;  %v4185_v29 = vsel %vm38_vm13, %v4116_v17, 0  ;;  %2537 = vperm.xlu0 %4782, %v7270_v27  }
 0x2d0   :  { %3239 = vst.msk [vmem:[#allocation2 + $0x148] sm:$0xff] %vm38_vm13, %v7489_v18  ;;  %v7572_v18 = vld [vmem:[%s9308_s2 + $0x60] sm:$0xff]  ;;  %2547 = vperm.xlu1 %4783, %v7290_v13   ;;  %v7988_v13 = vld [vmem:[%s9308_s2 + $0x118] sm:$0xff] }
 0x2d1   :  { %9787 = vst [vmem:[#allocation168_spill] sm:$0xff] %v7525_v8  ;;  %v3599_v8 = vld [vmem:[#allocation4 + $0x70] sm:$0xff]  ;;  %vm9814_vm8 = vcmp.ne.s32.totalorder %v7572_v18, 0  ;;  %2542 = vperm.xlu2 %4784, %v7281_v57  }
 0x2d2   :  { %9790 = vst [vmem:[#allocation169_spill] sm:$0xff] %v7537_v14  ;;  %vm3993_vm4 = vcmp.eq.f32.partialorder %v3599_v8, %v3279_v55  ;;  %vm7668_vm12 = vmand %vm9815_vm7, %vm9814_vm8  ;;  %vm9510_vm8 = vcmp.ne.s32.totalorder %v7684_v32, 0  ;;  %vm3992_vm7 = vcmp.eq.f32.partialorder %v3598_v34, %v3278_v62  ;;  %v7723_v14 = vld [vmem:[%s9308_s2 + $0xb8] sm:$0xff]  ;;  %v3603_v55 = vld [vmem:[#allocation4 + $0x90] sm:$0xff] }
 0x2d3   :  { %9791 = vst [vmem:[#allocation170_spill] sm:$0xff] %v7543_v59  ;;  %v3600_v59 = vld [vmem:[#allocation4 + $0x78] sm:$0xff]  ;;  %vm7711_vm10 = vmand %vm3993_vm4, %vm9824_vm14  ;;  %vm3996_vm14 = vcmp.eq.f32.partialorder %v3602_v63, %v3282_v58 }
 0x2d4   :  { %9792 = vst [vmem:[#allocation171_spill] sm:$0xff] %v7549_v41  ;;  %vm3994_vm11 = vcmp.eq.f32.partialorder %v3600_v59, %v3280_v46  ;;  %v7728_v8 = vld [vmem:[#allocation2 + $0x98] sm:$0xff]  ;;  %v1947_v46 = vpop.xlane.xlu2 %1946  ;;  %v3285_v59 = vld [vmem:[#allocation2 + $0xa0] sm:$0xff] }
 0x2d5   :  { %3240 = vst.msk [vmem:[#allocation2 + $0x150] sm:$0xff] %vm38_vm13, %v7492_v19  ;;  %v7768_v62 = vmax.f32 %v7702_v61, %v1947_v46  ;;  %v7770_v34 = vld [vmem:[#allocation2 + $0x178] sm:$0xff]  ;;  %v7786_v46 = vld [vmem:[#allocation2 + $0xb0] sm:$0xff]  ;;  %v1949_v58 = vpop.xlane.xlu0 %1948  ;;  %v1951_v63 = vpop.xlane.xlu1 %1950  ;;  %v3614_v19 = vld [vmem:[#allocation4 + $0xe8] sm:$0xff] }
 0x2d6   :  { %9795 = vst [vmem:[#allocation172_spill] sm:$0xff] %v7566_v7 }
 0x2d7   :  { %9796 = vst [vmem:[#allocation173_spill] sm:$0xff] %v7572_v18  ;;  %v4177_v18 = vsel %vm38_vm13, %v4112_v36, 0  ;;  %v4113_v36 = vsel %vm7530_vm1, 1, %v9689_v11  ;;  %vm9828_vm1 = vcmp.ne.s32.totalorder %v7597_v48, 0  ;;  %v3604_v48 = vld [vmem:[#allocation4 + $0x98] sm:$0xff]  ;;  %2552 = vperm.xlu0 %4782, %v7293_v21  }
 0x2d8   :  { %9797 = vst [vmem:[#allocation174_spill] sm:$0xff] %v7578_v0  ;;  %vm7733_vm4 = vmand %vm3994_vm11, %vm9828_vm1  ;;  %vm3997_vm11 = vcmp.eq.f32.partialorder %v3603_v55, %v3283_v20  ;;  %vm9832_vm1 = vcmp.ne.s32.totalorder %v7566_v7, 0  ;;  %v7772_v7 = vld [vmem:[#allocation2 + $0x180] sm:$0xff]  ;;  %v4179_v23 = vsel %vm38_vm13, %v4113_v36, 0  ;;  %v7825_v20 = vmax.f32 %v7770_v34, %v1949_v58  ;;  %2562 = vperm.xlu1 %4783, %v7313_v37  }
 0x2d9   :  { %9802 = vst [vmem:[#allocation177_spill] sm:$0xff] %v7601_v16  ;;  %v7828_v55 = vmax.f32 %v7772_v7, %v1951_v63  ;;  %v7845_v63 = vld [vmem:[%s9308_s2 + $0xe8] sm:$0xff]  ;;  %2557 = vperm.xlu2 %4784, %v7304_v35   ;;  %v8030_v37 = vld [vmem:[#allocation2 + $0x100] sm:$0xff] }
 0x2da   :  { %9803 = vst [vmem:[#allocation178_spill] sm:$0xff] %v7603_v6  ;;  %v7704_v6 = vld [vmem:[#allocation2 + $0x80] sm:$0xff] }
 0x2db   :  { %9804 = vst [vmem:[#allocation179_spill] sm:$0xff] %v7605_v56  ;;  %v7697_v56 = vsel %vm38_vm13, %v4109_v45, 0  ;;  %v4172_v45 = vsel %vm38_vm13, %v4108_v52, 0  ;;  %v4181_v52 = vsel %vm38_vm13, %v4114_v54, 0  ;;  %v4119_v54 = vsel %vm7668_vm12, 1, %v9689_v11  ;;  %v8032_v35 = vld [vmem:[#allocation4 + $0x100] sm:$0xff] }
 0x2dc   :  { %3241 = vst.msk [vmem:[#allocation2 + $0x158] sm:$0xff] %vm38_vm13, %v7601_v16  ;;  %v4115_v16 = vsel %vm7559_vm3, 1, %v9689_v11  ;;  %vm7751_vm3 = vmand %vm3992_vm7, %vm9832_vm1  ;;  %vm3998_vm7 = vcmp.eq.f32.partialorder %v3604_v48, %v7728_v8  ;;  %vm9840_vm1 = vcmp.ne.s32.totalorder %v7578_v0, 0  ;;  %v4182_v36 = vadd.s32 %v4181_v52, %v4174_v49  ;;  %v3606_v0 = vld [vmem:[#allocation4 + $0xa8] sm:$0xff]  ;;  %v7821_v52 = vld [vmem:[%s9308_s2 + $0xe0] sm:$0xff] }
 0x2dd   :  { %9812 = vst [vmem:[#allocation183_spill] sm:$0xff] %v7658_v15  ;;  %v4183_v41 = vsel %vm38_vm13, %v4115_v16, 0  ;;  %v4118_v16 = vsel %vm7644_vm2, 1, %v9689_v11  ;;  %vm3995_vm2 = vcmp.eq.f32.partialorder %v7706_v42, %v7704_v6  ;;  %vm7792_vm9 = vmand %vm3996_vm14, %vm9840_vm1  ;;  %v4191_v17 = vsel %vm38_vm13, %v4119_v54, 0  ;;  %v7869_v48 = vld [vmem:[#allocation2 + $0xc8] sm:$0xff]  ;;  %v3293_v54 = vld [vmem:[#allocation2 + $0xe0] sm:$0xff] }
 0x2de   :  { %9813 = vst [vmem:[#allocation184_spill] sm:$0xff] %v7661_v24  ;;  %vm7809_vm1 = vmand %vm3997_vm11, %vm9504_vm0  ;;  %v4189_v49 = vsel %vm38_vm13, %v4118_v16, 0  ;;  %v3608_v16 = vld [vmem:[#allocation4 + $0xb8] sm:$0xff]  ;;  %vm9847_vm11 = vcmp.ne.s32.totalorder %v7591_v60, 0  ;;  %vm4001_vm12 = vcmp.eq.f32.partialorder %v3607_v39, %v7786_v46  ;;  %v4121_v6 = vsel %vm7711_vm10, 1, %v9689_v11  ;;  %v7934_v46 = vld [vmem:[#allocation2 + $0x190] sm:$0xff] }
 0x2df   :  { %9818 = vst [vmem:[#allocation185_spill] sm:$0xff] %v7678_v43  ;;  %vm7837_vm0 = vmand %vm3995_vm2, %vm9847_vm11  ;;  %vm9851_vm2 = vcmp.ne.s32.totalorder %v7610_v50, 0  ;;  %v4180_v44 = vadd.s32 %v4179_v23, %v7697_v56  ;;  %v7867_v50 = vld [vmem:[#allocation2 + $0x188] sm:$0xff]  ;;  %v7878_v60 = vadd.s32 %v4189_v49, %v4182_v36  ;;  %v7886_v23 = vld [vmem:[%s9308_s2 + $0xf0] sm:$0xff]  ;;  %2567 = vperm.xlu0 %4782, %v7316_v4  }
 0x2e0   :  { %9819 = vst [vmem:[#allocation186_spill] sm:$0xff] %v7684_v32  ;;  %vm7854_vm11 = vmand %vm3998_vm7, %vm9851_vm2  ;;  %vm9535_vm10 = vcmp.ne.s32.totalorder %v7886_v23, 0  ;;  %v3611_v49 = vld [vmem:[#allocation4 + $0xd0] sm:$0xff]  ;;  %v7945_v32 = vld [vmem:[%s9308_s2 + $0x108] sm:$0xff]  ;;  %2577 = vperm.xlu1 %4783, %v7339_v28  }
 0x2e1   :  { %3242 = vst.msk [vmem:[#allocation2 + $0x160] sm:$0xff] %vm38_vm13, %v7658_v15  ;;  %v4178_v15 = vadd.s32 %v4177_v18, %v4172_v45  ;;  %v4117_v18 = vsel %vm7692_vm15, 1, %v9689_v11  ;;  %v7783_v45 = vld [vmem:[%s9308_s2 + $0xd0] sm:$0xff]  ;;  %vm9530_vm15 = vcmp.ne.s32.totalorder %v7845_v63, 0  ;;  %v3300_v8 = vld [vmem:[#allocation2 + $0x118] sm:$0xff]  ;;  %2572 = vperm.xlu2 %4784, %v7330_v30   ;;  %v8308_v30 = vld [vmem:[#allocation4 + $0x160] sm:$0xff] }
 0x2e2   :  { %9823 = vst [vmem:[#allocation187_spill] sm:$0xff] %v7702_v61  ;;  %v3605_v61 = vld [vmem:[#allocation4 + $0xa0] sm:$0xff]  ;;  %v4187_v58 = vsel %vm38_vm13, %v4117_v18, 0  ;;  %v4122_v18 = vsel %vm7733_vm4, 1, %v9689_v11  ;;  %vm4002_vm4 = vcmp.eq.f32.partialorder %v3608_v16, %v3288_v40  ;;  %v1955_v40 = vpop.xlane.xlu0 %1954  ;;  %v1957_v16 = vpop.xlane.xlu1 %1956 }
 0x2e3   :  { %9827 = vst [vmem:[#allocation188_spill] sm:$0xff] %v7723_v14  ;;  %vm3999_vm14 = vcmp.eq.f32.partialorder %v3605_v61, %v3285_v59  ;;  %v4186_v5 = vadd.s32 %v4185_v29, %v4178_v15  ;;  %v7891_v61 = vld [vmem:[#allocation2 + $0xd0] sm:$0xff]  ;;  %v3610_v59 = vld [vmem:[#allocation4 + $0xc8] sm:$0xff]  ;;  %v4124_v29 = vsel %vm7792_vm9, 1, %v9689_v11  ;;  %v4188_v36 = vadd.s32 %v4187_v58, %v4180_v44  ;;  %v7928_v58 = vld [vmem:[%s9308_s2 + $0x100] sm:$0xff] }
 0x2e4   :  { %3243 = vst.msk [vmem:[#allocation2 + $0x168] sm:$0xff] %vm38_vm13, %v7661_v24  ;;  %v4184_v24 = vadd.s32 %v4183_v41, %v7121_v53  ;;  %v4120_v41 = vsel %vm7751_vm3, 1, %v9689_v11  ;;  %vm4000_vm3 = vcmp.eq.f32.partialorder %v3606_v0, %v3286_v1  ;;  %vm7874_vm7 = vmand %vm3999_vm14, %vm9514_vm6  ;;  %v1953_v0 = vpop.xlane.xlu2 %1952  ;;  %v3292_v1 = vld [vmem:[#allocation2 + $0xd8] sm:$0xff]  ;;  %v4123_v44 = vsel %vm7837_vm0, 1, %v9689_v11  ;;  %v3295_v15 = vld [vmem:[#allocation2 + $0xf0] sm:$0xff] }
 0x2e5   :  { %9831 = vst [vmem:[#allocation189_spill] sm:$0xff] %v7745_v3  ;;  %v4193_v56 = vsel %vm38_vm13, %v4120_v41, 0  ;;  %vm7896_vm14 = vmand %vm4000_vm3, %vm9510_vm8  ;;  %v7909_v41 = vld [vmem:[%s9308_s2 + $0xf8] sm:$0xff]  ;;  %vm9861_vm8 = vcmp.ne.s32.totalorder %v7678_v43, 0  ;;  %v4195_v53 = vsel %vm38_vm13, %v4121_v6, 0  ;;  %v7932_v39 = vmax.f32 %v7867_v50, %v1953_v0  ;;  %v7948_v0 = vld [vmem:[#allocation2 + $0xe8] sm:$0xff] }
 0x2e6   :  { %9835 = vst [vmem:[#allocation190_spill] sm:$0xff] %v7764_v47  ;;  %v7880_v31 = vadd.s32 %v4191_v17, %v4184_v24  ;;  %v4125_v24 = vsel %vm7809_vm1, 1, %v9689_v11  ;;  %vm9536_vm2 = vcmp.ne.s32.totalorder %v7909_v41, 0  ;;  %vm7916_vm9 = vmand %vm4001_vm12, %vm9861_vm8  ;;  %v4197_v17 = vsel %vm38_vm13, %v4122_v18, 0  ;;  %v7936_v43 = vld [vmem:[#allocation2 + $0x198] sm:$0xff]  ;;  %v8028_v3 = vld [vmem:[#allocation2 + $0x1a0] sm:$0xff] }
 0x2e7   :  { %9836 = vst [vmem:[#allocation191_spill] sm:$0xff] %v7768_v62  ;;  %vm4004_vm0 = vcmp.eq.f32.partialorder %v3610_v59, %v7869_v48  ;;  %v4126_v6 = vsel %vm7854_vm11, 1, %v9689_v11  ;;  %v4194_v18 = vadd.s32 %v4193_v56, %v4186_v5  ;;  %vm9541_vm8 = vcmp.ne.s32.totalorder %v7945_v32, 0  ;;  %v3620_v48 = vld [vmem:[#allocation4 + $0x118] sm:$0xff]  ;;  %2582 = vperm.xlu0 %4782, %v7342_v10  }
 0x2e8   :  { %9837 = vst [vmem:[#allocation192_spill] sm:$0xff] %v7770_v34  ;;  %v3289_v34 = vld [vmem:[#allocation2 + $0xc0] sm:$0xff]  ;;  %vm4005_vm12 = vcmp.eq.f32.partialorder %v3611_v49, %v7891_v61  ;;  %vm9869_vm6 = vcmp.ne.s32.totalorder %v7723_v14, 0  ;;  %v4127_v42 = vsel %vm7874_vm7, 1, %v9689_v11  ;;  %v4201_v5 = vsel %vm38_vm13, %v4124_v29, 0  ;;  %2592 = vperm.xlu1 %4783, %v7365_v2   ;;  %v8404_v2 = vld [vmem:[%s9308_s2 + $0x1a8] sm:$0xff] }
 0x2e9   :  { %9838 = vst [vmem:[#allocation193_spill] sm:$0xff] %v7772_v7  ;;  %v3609_v7 = vld [vmem:[#allocation4 + $0xc0] sm:$0xff]  ;;  %vm7954_vm1 = vmand %vm4002_vm4, %vm9869_vm6  ;;  %v4203_v56 = vsel %vm38_vm13, %v4125_v24, 0  ;;  %v4128_v29 = vsel %vm7896_vm14, 1, %v9689_v11  ;;  %v4129_v24 = vsel %vm7916_vm9, 1, %v9689_v11  ;;  %vm4008_vm4 = vcmp.eq.f32.partialorder %v3614_v19, %v7948_v0  ;;  %v8091_v19 = vld [vmem:[#allocation2 + $0x1a8] sm:$0xff]  ;;  %2587 = vperm.xlu2 %4784, %v7356_v33  }
 0x2ea   :  { %9839 = vst [vmem:[#allocation194_spill] sm:$0xff] %v7783_v45  ;;  %vm4003_vm3 = vcmp.eq.f32.partialorder %v3609_v7, %v3289_v34  ;;  %v3613_v14 = vld [vmem:[#allocation4 + $0xe0] sm:$0xff]  ;;  %v7992_v7 = vmax.f32 %v7934_v46, %v1955_v40  ;;  %v7995_v34 = vmax.f32 %v7936_v43, %v1957_v16  ;;  %v4205_v40 = vsel %vm38_vm13, %v4126_v6, 0  ;;  %v3635_v33 = vld [vmem:[#allocation4 + $0x190] sm:$0xff]  ;;  %v3636_v10 = vld [vmem:[#allocation4 + $0x198] sm:$0xff] }
 0x2eb   :  { %3244 = vst.msk [vmem:[#allocation2 + $0x170] sm:$0xff] %vm38_vm13, %v7768_v62  ;;  %v7966_v62 = vld [vmem:[%s9308_s2 + $0x110] sm:$0xff]  ;;  %vm7974_vm7 = vmand %vm4003_vm3, %vm9522_vm5  ;;  %vm4007_vm14 = vcmp.eq.f32.partialorder %v3613_v14, %v3293_v54  ;;  %vm9876_vm3 = vcmp.ne.s32.totalorder %v7764_v47, 0  ;;  %v8011_v16 = vld [vmem:[%s9308_s2 + $0x120] sm:$0xff]  ;;  %v4196_v59 = vadd.s32 %v4195_v53, %v4188_v36  ;;  %v4198_v6 = vadd.s32 %v4197_v17, %v7878_v60 }
 0x2ec   :  { %9846 = vst [vmem:[#allocation196_spill] sm:$0xff] %v7821_v52  ;;  %vm8003_vm9 = vmand %vm4004_vm0, %vm9876_vm3  ;;  %vm9880_vm0 = vcmp.ne.s32.totalorder %v7783_v45, 0  ;;  %v4207_v47 = vsel %vm38_vm13, %v4127_v42, 0  ;;  %vm9884_vm5 = vcmp.ne.s32.totalorder %v7801_v9, 0  ;;  %v4202_v36 = vadd.s32 %v4201_v5, %v4194_v18  ;;  %v8047_v17 = vld [vmem:[%s9308_s2 + $0x128] sm:$0xff]  ;;  %v8065_v5 = vld [vmem:[%s9308_s2 + $0x130] sm:$0xff] }
 0x2ed   :  { %9850 = vst [vmem:[#allocation197_spill] sm:$0xff] %v7845_v63  ;;  %vm8020_vm3 = vmand %vm4005_vm12, %vm9880_vm0  ;;  %v4209_v49 = vsel %vm38_vm13, %v4128_v29, 0  ;;  %v4211_v53 = vsel %vm38_vm13, %v4129_v24, 0  ;;  %v4204_v18 = vadd.s32 %v4203_v56, %v4196_v59  ;;  %v4206_v42 = vadd.s32 %v4205_v40, %v4198_v6  ;;  %v1959_v29 = vpop.xlane.xlu2 %1958  ;;  %v3299_v24 = vld [vmem:[#allocation2 + $0x110] sm:$0xff]  ;;  %v3618_v14 = vld [vmem:[#allocation4 + $0x108] sm:$0xff] }
 0x2ee   :  { %3245 = vst.msk [vmem:[#allocation2 + $0x178] sm:$0xff] %vm38_vm13, %v7825_v20  ;;  %vm9559_vm0 = vcmp.ne.s32.totalorder %v8065_v5, 0  ;;  %v4131_v54 = vsel %vm7974_vm7, 1, %v9689_v11  ;;  %v4132_v56 = vsel %vm8003_vm9, 1, %v9689_v11  ;;  %v8085_v59 = vld [vmem:[%s9308_s2 + $0x138] sm:$0xff]  ;;  %v8089_v0 = vmax.f32 %v8028_v3, %v1959_v29  ;;  %v8093_v6 = vld [vmem:[#allocation2 + $0x1b0] sm:$0xff] }
 0x2ef   :  { %9854 = vst [vmem:[#allocation198_spill] sm:$0xff] %v7867_v50  ;;  %v3612_v50 = vld [vmem:[#allocation4 + $0xd8] sm:$0xff]  ;;  %vm4011_vm7 = vcmp.eq.f32.partialorder %v8032_v35, %v8030_v37  ;;  %v8105_v29 = vld [vmem:[#allocation2 + $0x120] sm:$0xff]  ;;  %v8144_v9 = vld [vmem:[%s9308_s2 + $0x150] sm:$0xff]  ;;  %2597 = vperm.xlu0 %4782, %v7368_v51  }
 0x2f0   :  { %9857 = vst [vmem:[#allocation199_spill] sm:$0xff] %v7886_v23  ;;  %vm4006_vm6 = vcmp.eq.f32.partialorder %v3612_v50, %v3292_v1  ;;  %v3298_v50 = vld [vmem:[#allocation2 + $0x108] sm:$0xff]  ;;  %v3616_v1 = vld [vmem:[#allocation4 + $0xf8] sm:$0xff]  ;;  %v4215_v23 = vsel %vm38_vm13, %v4131_v54, 0  ;;  %v3621_v54 = vld [vmem:[#allocation4 + $0x120] sm:$0xff] }
 0x2f1   :  { %3246 = vst.msk [vmem:[#allocation2 + $0x180] sm:$0xff] %vm38_vm13, %v7828_v55  ;;  %vm8037_vm12 = vmand %vm4006_vm6, %vm9884_vm5  ;;  %vm9888_vm6 = vcmp.ne.s32.totalorder %v7821_v52, 0  ;;  %vm4012_vm9 = vcmp.eq.f32.partialorder %v3618_v14, %v3298_v50  ;;  %v4217_v52 = vsel %vm38_vm13, %v4132_v56, 0  ;;  %v8191_v50 = vld [vmem:[#allocation2 + $0x1b8] sm:$0xff]  ;;  %v8211_v45 = vld [vmem:[%s9308_s2 + $0x168] sm:$0xff]  ;;  %2602 = vperm.xlu2 %4784, %v7382_v26  }
 0x2f2   :  { %9860 = vst [vmem:[#allocation200_spill] sm:$0xff] %v7909_v41  ;;  %vm8055_vm11 = vmand %vm4007_vm14, %vm9888_vm6  ;;  %v8186_v41 = vld [vmem:[%s9308_s2 + $0x160] sm:$0xff]  ;;  %v8193_v14 = vld [vmem:[#allocation2 + $0x138] sm:$0xff] }
 0x2f3   :  { %9864 = vst [vmem:[#allocation201_spill] sm:$0xff] %v7928_v58  ;;  %vm8072_vm6 = vmand %vm4008_vm4, %vm9530_vm15  ;;  %v3624_v63 = vld [vmem:[#allocation4 + $0x138] sm:$0xff]  ;;  %v8272_v35 = vld [vmem:[#allocation4 + $0x150] sm:$0xff] }
 0x2f4   :  { %9865 = vst [vmem:[#allocation202_spill] sm:$0xff] %v7932_v39 }
 0x2f5   :  { %9866 = vst [vmem:[#allocation203_spill] sm:$0xff] %v7934_v46  ;;  %v3296_v46 = vld [vmem:[#allocation2 + $0xf8] sm:$0xff] }
 0x2f6   :  { %9867 = vst [vmem:[#allocation204_spill] sm:$0xff] %v7936_v43  ;;  %v3615_v43 = vld [vmem:[#allocation4 + $0xf0] sm:$0xff]  ;;  %vm4010_vm14 = vcmp.eq.f32.partialorder %v3616_v1, %v3296_v46 }
 0x2f7   :  { %9868 = vst [vmem:[#allocation205_spill] sm:$0xff] %v7945_v32  ;;  %vm4009_vm5 = vcmp.eq.f32.partialorder %v3615_v43, %v3295_v15  ;;  %v1961_v43 = vpop.xlane.xlu0 %1960  ;;  %v1963_v15 = vpop.xlane.xlu1 %1962 }
 0x2f8   :  { %9872 = vst [vmem:[#allocation206_spill] sm:$0xff] %v7966_v62  ;;  %vm8110_vm15 = vmand %vm4009_vm5, %vm9535_vm10  ;;  %v8148_v46 = vmax.f32 %v8091_v19, %v1961_v43  ;;  %v8151_v1 = vmax.f32 %v8093_v6, %v1963_v15  ;;  %v8167_v43 = vld [vmem:[%s9308_s2 + $0x158] sm:$0xff]  ;;  %v8171_v15 = vld [vmem:[#allocation2 + $0x130] sm:$0xff]  ;;  %vm4015_vm5 = vcmp.eq.f32.partialorder %v3621_v54, %v8105_v29 }
 0x2f9   :  { %3247 = vst.msk [vmem:[#allocation2 + $0x188] sm:$0xff] %vm38_vm13, %v7932_v39  ;;  %v4199_v39 = vsel %vm38_vm13, %v4123_v44, 0  ;;  %v4210_v44 = vadd.s32 %v4209_v49, %v4202_v36  ;;  %v4133_v36 = vsel %vm8020_vm3, 1, %v9689_v11  ;;  %v4134_v49 = vsel %vm8037_vm12, 1, %v9689_v11  ;;  %vm8132_vm12 = vmand %vm4010_vm14, %vm9536_vm2  ;;  %v8266_v54 = vld [vmem:[#allocation2 + $0x1c0] sm:$0xff]  ;;  %2617 = vperm.xlu2 %4784, %v7406_v38  }
 0x2fa   :  { %9875 = vst [vmem:[#allocation207_spill] sm:$0xff] %v7988_v13  ;;  %v4200_v60 = vadd.s32 %v4199_v39, %v7880_v31  ;;  %v4130_v39 = vsel %vm7954_vm1, 1, %v9689_v11  ;;  %vm9563_vm1 = vcmp.ne.s32.totalorder %v8085_v59, 0  ;;  %v3302_v31 = vld [vmem:[#allocation2 + $0x128] sm:$0xff]  ;;  %vm9907_vm14 = vcmp.ne.s32.totalorder %v7928_v58, 0 }
 0x2fb   :  { %9879 = vst [vmem:[#allocation208_spill] sm:$0xff] %v8011_v16  ;;  %vm8160_vm2 = vmand %vm4011_vm7, %vm9907_vm14  ;;  %vm9572_vm10 = vcmp.ne.s32.totalorder %v8167_v43, 0  ;;  %v4221_v58 = vsel %vm38_vm13, %v4134_v49, 0  ;;  %vm9578_vm14 = vcmp.ne.s32.totalorder %v8211_v45, 0 }
 0x2fc   :  { %3248 = vst.msk [vmem:[#allocation2 + $0x190] sm:$0xff] %vm38_vm13, %v7992_v7  ;;  %v4208_v40 = vadd.s32 %v4207_v47, %v4200_v60  ;;  %v8097_v47 = vadd.s32 %v4211_v53, %v4204_v18  ;;  %v8102_v60 = vld [vmem:[%s9308_s2 + $0x140] sm:$0xff]  ;;  %v4213_v53 = vsel %vm38_vm13, %v4130_v39, 0  ;;  %v8124_v18 = vld [vmem:[%s9308_s2 + $0x148] sm:$0xff]  ;;  %v4135_v39 = vsel %vm8055_vm11, 1, %v9689_v11  ;;  %vm8177_vm7 = vmand %vm4012_vm9, %vm9541_vm8 }
 0x2fd   :  { %9883 = vst [vmem:[#allocation209_spill] sm:$0xff] %v8028_v3  ;;  %vm9565_vm4 = vcmp.ne.s32.totalorder %v8102_v60, 0  ;;  %v3619_v3 = vld [vmem:[#allocation4 + $0x110] sm:$0xff]  ;;  %vm4014_vm11 = vcmp.eq.f32.partialorder %v3620_v48, %v3300_v8  ;;  %v4214_v37 = vadd.s32 %v4213_v53, %v4206_v42  ;;  %vm9915_vm9 = vcmp.ne.s32.totalorder %v7966_v62, 0  ;;  %v1965_v48 = vpop.xlane.xlu2 %1964  ;;  %v3310_v42 = vld [vmem:[#allocation2 + $0x168] sm:$0xff] }
 0x2fe   :  { %9887 = vst [vmem:[#allocation210_spill] sm:$0xff] %v8047_v17  ;;  %vm4013_vm3 = vcmp.eq.f32.partialorder %v3619_v3, %v3299_v24  ;;  %v4216_v49 = vadd.s32 %v4215_v23, %v4208_v40  ;;  %v8205_v53 = vadd.s32 %v4217_v52, %v4210_v44  ;;  %v4223_v32 = vsel %vm38_vm13, %v4135_v39, 0  ;;  %v8216_v3 = vld [vmem:[#allocation2 + $0x140] sm:$0xff]  ;;  %v3623_v24 = vld [vmem:[#allocation4 + $0x130] sm:$0xff]  ;;  %v8242_v39 = vld [vmem:[#allocation2 + $0x148] sm:$0xff] }
 0x2ff   :  { %3249 = vst.msk [vmem:[#allocation2 + $0x198] sm:$0xff] %vm38_vm13, %v7995_v34  ;;  %vm8198_vm8 = vmand %vm4013_vm3, %vm9915_vm9  ;;  %vm9919_vm3 = vcmp.ne.s32.totalorder %v7988_v13, 0  ;;  %v4137_v23 = vsel %vm8110_vm15, 1, %v9689_v11  ;;  %v4138_v40 = vsel %vm8132_vm12, 1, %v9689_v11  ;;  %v4139_v44 = vsel %vm8160_vm2, 1, %v9689_v11  ;;  %v8239_v8 = vld [vmem:[%s9308_s2 + $0x170] sm:$0xff] }
 0x300   :  { %9891 = vst [vmem:[#allocation211_spill] sm:$0xff] %v8065_v5  ;;  %vm8223_vm9 = vmand %vm4014_vm11, %vm9919_vm3  ;;  %vm4017_vm15 = vcmp.eq.f32.partialorder %v3623_v24, %v8171_v15  ;;  %vm9923_vm3 = vcmp.ne.s32.totalorder %v8011_v16, 0  ;;  %v4140_v56 = vsel %vm8177_vm7, 1, %v9689_v11  ;;  %v4222_v62 = vadd.s32 %v4221_v58, %v4214_v37  ;;  %v8268_v16 = vld [vmem:[#allocation2 + $0x1c8] sm:$0xff]  ;;  %v8282_v37 = vld [vmem:[#allocation2 + $0x158] sm:$0xff] }
 0x301   :  { %9894 = vst [vmem:[#allocation212_spill] sm:$0xff] %v8085_v59  ;;  %vm8249_vm12 = vmand %vm4015_vm5, %vm9923_vm3  ;;  %v8264_v29 = vmax.f32 %v8191_v50, %v1965_v48  ;;  %vm4018_vm5 = vcmp.eq.f32.partialorder %v3624_v63, %v8193_v14  ;;  %v4224_v58 = vadd.s32 %v4223_v32, %v4216_v49  ;;  %v3626_v48 = vld [vmem:[#allocation4 + $0x148] sm:$0xff]  ;;  %vm4019_vm3 = vcmp.eq.f32.partialorder %v8218_v25, %v8216_v3  ;;  %v8329_v5 = vld [vmem:[%s9308_s2 + $0x190] sm:$0xff] }
 0x302   :  { %9895 = vst [vmem:[#allocation213_spill] sm:$0xff] %v8089_v0  ;;  %vm9930_vm2 = vcmp.ne.s32.totalorder %v8047_v17, 0  ;;  %v4229_v49 = vsel %vm38_vm13, %v4138_v40, 0  ;;  %v4231_v28 = vsel %vm38_vm13, %v4139_v44, 0  ;;  %v8306_v17 = vld [vmem:[#allocation2 + $0x160] sm:$0xff]  ;;  %v4141_v40 = vsel %vm8198_vm8, 1, %v9689_v11 }
 0x303   :  { %9896 = vst [vmem:[#allocation214_spill] sm:$0xff] %v8091_v19  ;;  %v4219_v19 = vsel %vm38_vm13, %v4133_v36, 0  ;;  %v4136_v36 = vsel %vm8072_vm6, 1, %v9689_v11  ;;  %v4142_v44 = vsel %vm8223_vm9, 1, %v9689_v11  ;;  %v4233_v4 = vsel %vm38_vm13, %v4140_v56, 0  ;;  %v3630_v52 = vld [vmem:[#allocation4 + $0x168] sm:$0xff]  ;;  %vm8346_vm9 = vmand %vm4018_vm5, %vm9563_vm1 }
 0x304   :  { %9897 = vst [vmem:[#allocation215_spill] sm:$0xff] %v8093_v6  ;;  %v3622_v6 = vld [vmem:[#allocation4 + $0x128] sm:$0xff]  ;;  %v4220_v13 = vadd.s32 %v4219_v19, %v8097_v47  ;;  %v4225_v19 = vsel %vm38_vm13, %v4136_v36, 0  ;;  %v8279_v47 = vld [vmem:[%s9308_s2 + $0x180] sm:$0xff]  ;;  %v4227_v36 = vsel %vm38_vm13, %v4137_v23, 0  ;;  %v8362_v14 = vld [vmem:[#allocation4 + $0x170] sm:$0xff] }
 0x305   :  { %9898 = vst [vmem:[#allocation216_spill] sm:$0xff] %v8102_v60  ;;  %vm4016_vm6 = vcmp.eq.f32.partialorder %v3622_v6, %v3302_v31  ;;  %v1967_v6 = vpop.xlane.xlu0 %1966  ;;  %v1969_v31 = vpop.xlane.xlu1 %1968  ;;  %v4226_v61 = vadd.s32 %v4225_v19, %v8205_v53  ;;  %v8379_v59 = vld [vmem:[%s9308_s2 + $0x1a0] sm:$0xff]  ;;  %v8384_v60 = vld [vmem:[#allocation2 + $0x1d0] sm:$0xff]  ;;  %v8386_v3 = vld [vmem:[#allocation2 + $0x178] sm:$0xff]  ;;  %v4230_v53 = vadd.s32 %v4229_v49, %v4222_v62  ;;  %v4232_v19 = vadd.s32 %v4231_v28, %v4224_v58 }
 0x306   :  { %9901 = vst [vmem:[#allocation217_spill] sm:$0xff] %v8124_v18  ;;  %vm8291_vm11 = vmand %vm4016_vm6, %vm9930_vm2  ;;  %vm4020_vm6 = vcmp.eq.f32.partialorder %v3626_v48, %v8242_v39  ;;  %v8333_v15 = vmax.f32 %v8266_v54, %v1967_v6  ;;  %v8336_v24 = vmax.f32 %v8268_v16, %v1969_v31  ;;  %v4143_v6 = vsel %vm8249_vm12, 1, %v9689_v11  ;;  %v8356_v31 = vld [vmem:[%s9308_s2 + $0x198] sm:$0xff]  ;;  %v8411_v39 = vld [vmem:[#allocation4 + $0x180] sm:$0xff] }
 0x307   :  { %3250 = vst.msk [vmem:[#allocation2 + $0x1a0] sm:$0xff] %vm38_vm13, %v8089_v0  ;;  %v8270_v0 = vld [vmem:[#allocation2 + $0x150] sm:$0xff]  ;;  %vm8315_vm2 = vmand %vm4017_vm15, %vm9559_vm0  ;;  %v8388_v25 = vld [vmem:[#allocation4 + $0x178] sm:$0xff]  ;;  %v8422_v62 = vadd.s32 %v4233_v4, %v4226_v61  ;;  %v4237_v58 = vsel %vm38_vm13, %v4142_v44, 0  ;;  %v4239_v48 = vsel %vm38_vm13, %v4143_v6, 0  ;;  %v4144_v44 = vsel %vm8291_vm11, 1, %v9689_v11 }
 0x308   :  { %9904 = vst [vmem:[#allocation218_spill] sm:$0xff] %v8144_v9  ;;  %vm4021_vm8 = vcmp.eq.f32.partialorder %v8272_v35, %v8270_v0  ;;  %vm8371_vm12 = vmand %vm4019_vm3, %vm9565_vm4  ;;  %vm4023_vm3 = vcmp.eq.f32.partialorder %v8308_v30, %v8306_v17  ;;  %vm9942_vm4 = vcmp.ne.s32.totalorder %v8124_v18, 0  ;;  %v8409_v18 = vld [vmem:[#allocation2 + $0x180] sm:$0xff]  ;;  %v8429_v49 = vld [vmem:[%s9308_s2 + $0x1b0] sm:$0xff]  ;;  %v4145_v6 = vsel %vm8315_vm2, 1, %v9689_v11 }
 0x309   :  { %9905 = vst [vmem:[#allocation219_spill] sm:$0xff] %v8148_v46  ;;  %vm8396_vm0 = vmand %vm4020_vm6, %vm9942_vm4  ;;  %vm4024_vm4 = vcmp.eq.f32.partialorder %v3630_v52, %v3310_v42  ;;  %vm9945_vm6 = vcmp.ne.s32.totalorder %v8144_v9, 0  ;;  %v8432_v9 = vld [vmem:[#allocation2 + $0x1d8] sm:$0xff]  ;;  %v8434_v0 = vld [vmem:[#allocation2 + $0x188] sm:$0xff]  ;;  %v4146_v61 = vsel %vm8346_vm9, 1, %v9689_v11  ;;  %vm4026_vm11 = vcmp.eq.f32.partialorder %v8388_v25, %v8386_v3 }
 0x30a   :  { %9906 = vst [vmem:[#allocation220_spill] sm:$0xff] %v8151_v1  ;;  %vm8418_vm15 = vmand %vm4021_vm8, %vm9945_vm6  ;;  %v8436_v35 = vld [vmem:[#allocation4 + $0x188] sm:$0xff]  ;;  %v8467_v32 = vld [vmem:[#allocation2 + $0x1e0] sm:$0xff]  ;;  %vm9954_vm2 = vcmp.ne.s32.totalorder %v8186_v41, 0  ;;  %v4147_v56 = vsel %vm8371_vm12, 1, %v9689_v11  ;;  %v4148_v17 = vsel %vm8396_vm0, 1, %v9689_v11  ;;  %v4240_v63 = vadd.s32 %v4239_v48, %v4232_v19 }
 0x30b   :  { %9910 = vst [vmem:[#allocation221_spill] sm:$0xff] %v8167_v43  ;;  %v3315_v43 = vld [vmem:[#allocation2 + $0x190] sm:$0xff]  ;;  %vm8476_vm9 = vmand %vm4023_vm3, %vm9954_vm2  ;;  %vm4027_vm3 = vcmp.eq.f32.partialorder %v8411_v39, %v8409_v18  ;;  %vm9961_vm0 = vcmp.ne.s32.totalorder %v8239_v8, 0  ;;  %v4243_v19 = vsel %vm38_vm13, %v4145_v6, 0  ;;  %vm9970_vm1 = vcmp.ne.s32.totalorder %v8279_v47, 0  ;;  %v8577_v18 = vld [vmem:[#allocation2 + $0x1e8] sm:$0xff] }
 0x30c   :  { %9913 = vst [vmem:[#allocation222_spill] sm:$0xff] %v8186_v41  ;;  %v3316_v41 = vld [vmem:[#allocation2 + $0x198] sm:$0xff]  ;;  %vm8494_vm2 = vmand %vm4024_vm4, %vm9578_vm14  ;;  %vm4028_vm4 = vcmp.eq.f32.partialorder %v8436_v35, %v8434_v0  ;;  %v8526_v48 = vld [vmem:[%s9308_s2 + $0x1d0] sm:$0xff]  ;;  %v4149_v25 = vsel %vm8418_vm15, 1, %v9689_v11  ;;  %v4151_v4 = vsel %vm8476_vm9, 1, %v9689_v11 }
 0x30d   :  { %3251 = vst.msk [vmem:[#allocation2 + $0x1a8] sm:$0xff] %vm38_vm13, %v8148_v46  ;;  %v8301_v46 = vld [vmem:[%s9308_s2 + $0x188] sm:$0xff]  ;;  %v1973_v42 = vpop.xlane.xlu0 %1972  ;;  %v1975_v52 = vpop.xlane.xlu1 %1974 }
 0x30e   :  { %9914 = vst [vmem:[#allocation223_spill] sm:$0xff] %v8191_v50  ;;  %v8284_v50 = vld [vmem:[#allocation4 + $0x158] sm:$0xff]  ;;  %vm9591_vm7 = vcmp.ne.s32.totalorder %v8301_v46, 0 }
 0x30f   :  { %9918 = vst [vmem:[#allocation224_spill] sm:$0xff] %v8211_v45  ;;  %vm4022_vm5 = vcmp.eq.f32.partialorder %v8284_v50, %v8282_v37  ;;  %v8461_v50 = vld [vmem:[%s9308_s2 + $0x1b8] sm:$0xff]  ;;  %v3317_v45 = vld [vmem:[#allocation2 + $0x1a0] sm:$0xff] }
 0x310   :  { %3252 = vst.msk [vmem:[#allocation2 + $0x1b0] sm:$0xff] %vm38_vm13, %v8151_v1  ;;  %v8260_v1 = vld [vmem:[%s9308_s2 + $0x178] sm:$0xff]  ;;  %vm8445_vm6 = vmand %vm4022_vm5, %vm9572_vm10  ;;  %vm4030_vm5 = vcmp.eq.f32.partialorder %v3636_v10, %v3316_v41 }
 0x311   :  { %9922 = vst [vmem:[#allocation225_spill] sm:$0xff] %v8239_v8  ;;  %v8530_v8 = vmax.f32 %v8432_v9, %v1973_v42  ;;  %v8549_v42 = vld [vmem:[%s9308_s2 + $0x1d8] sm:$0xff] }
 0x312   :  { %9926 = vst [vmem:[#allocation226_spill] sm:$0xff] %v8260_v1 }
 0x313   :  { %9927 = vst [vmem:[#allocation227_spill] sm:$0xff] %v8266_v54  ;;  %v4228_v54 = vadd.s32 %v4227_v36, %v4220_v13  ;;  %v4235_v36 = vsel %vm38_vm13, %v4141_v40, 0  ;;  %v1971_v40 = vpop.xlane.xlu2 %1970 }
 0x314   :  { %9928 = vst [vmem:[#allocation228_spill] sm:$0xff] %v8268_v16  ;;  %v8360_v16 = vld [vmem:[#allocation2 + $0x170] sm:$0xff]  ;;  %v8465_v37 = vmax.f32 %v8384_v60, %v1971_v40 }
 0x315   :  { %9929 = vst [vmem:[#allocation229_spill] sm:$0xff] %v8279_v47  ;;  %vm4025_vm8 = vcmp.eq.f32.partialorder %v8362_v14, %v8360_v16  ;;  %v4236_v40 = vadd.s32 %v4235_v36, %v4228_v54  ;;  %v4238_v54 = vadd.s32 %v4237_v58, %v4230_v53  ;;  %v8504_v36 = vld [vmem:[%s9308_s2 + $0x1c8] sm:$0xff]  ;;  %v4241_v53 = vsel %vm38_vm13, %v4144_v44, 0  ;;  %v8572_v47 = vld [vmem:[%s9308_s2 + $0x1e0] sm:$0xff] }
 0x316   :  { %9933 = vst [vmem:[#allocation230_spill] sm:$0xff] %v8301_v46  ;;  %vm8516_vm14 = vmand %vm4025_vm8, %vm9961_vm0  ;;  %v4245_v58 = vsel %vm38_vm13, %v4146_v61, 0  ;;  %v8533_v16 = vmax.f32 %v8467_v32, %v1975_v52  ;;  %v3318_v14 = vld [vmem:[#allocation2 + $0x1a8] sm:$0xff]  ;;  %vm4029_vm8 = vcmp.eq.f32.partialorder %v3635_v33, %v3315_v43  ;;  %vm9966_vm0 = vcmp.ne.s32.totalorder %v8260_v1, 0  ;;  %v3639_v1 = vld [vmem:[#allocation4 + $0x1b0] sm:$0xff] }
 0x317   :  { %3253 = vst.msk [vmem:[#allocation2 + $0x1b8] sm:$0xff] %vm38_vm13, %v8264_v29  ;;  %v3638_v44 = vld [vmem:[#allocation4 + $0x1a8] sm:$0xff]  ;;  %vm8541_vm10 = vmand %vm4026_vm11, %vm9966_vm0  ;;  %v4247_v61 = vsel %vm38_vm13, %v4147_v56, 0  ;;  %v3319_v52 = vld [vmem:[#allocation2 + $0x1b0] sm:$0xff]  ;;  %v4150_v56 = vsel %vm8445_vm6, 1, %v9689_v11  ;;  %v4244_v35 = vadd.s32 %v4243_v19, %v4236_v40  ;;  %v4246_v23 = vadd.s32 %v4245_v58, %v4238_v54 }
 0x318   :  { %9936 = vst [vmem:[#allocation231_spill] sm:$0xff] %v8336_v24  ;;  %vm8558_vm11 = vmand %vm4027_vm3, %vm9970_vm1  ;;  %vm4032_vm3 = vcmp.eq.f32.partialorder %v3638_v44, %v3318_v14  ;;  %v4248_v26 = vadd.s32 %v4247_v61, %v4240_v63  ;;  %vm4033_vm9 = vcmp.eq.f32.partialorder %v3639_v1, %v3319_v52  ;;  %v4251_v33 = vsel %vm38_vm13, %v4149_v25, 0  ;;  %v8616_v54 = vld [vmem:[#allocation2 + $0x1f0] sm:$0xff]  ;;  %v8618_v63 = vld [vmem:[#allocation2 + $0x1f8] sm:$0xff]  ;;  %v1979_v14 = vpop.xlane.xlu0 %1978  ;;  %v1981_v44 = vpop.xlane.xlu1 %1980 }
 0x319   :  { %3254 = vst.msk [vmem:[#allocation2 + $0x1c0] sm:$0xff] %vm38_vm13, %v8333_v15  ;;  %vm8584_vm6 = vmand %vm4028_vm4, %vm9591_vm7  ;;  %vm9976_vm4 = vcmp.ne.s32.totalorder %v8329_v5, 0  ;;  %v4253_v43 = vsel %vm38_vm13, %v4150_v56, 0  ;;  %vm9985_vm1 = vcmp.ne.s32.totalorder %v8404_v2, 0  ;;  %v4155_v58 = vsel %vm8558_vm11, 1, %v9689_v11  ;;  %v8660_v25 = vld [vmem:[%s9308_s2 + $0x1e8] sm:$0xff] }
 0x31a   :  { %9941 = vst [vmem:[#allocation232_spill] sm:$0xff] %v8384_v60  ;;  %v8486_v60 = vld [vmem:[%s9308_s2 + $0x1c0] sm:$0xff]  ;;  %vm8600_vm0 = vmand %vm4029_vm8, %vm9976_vm4  ;;  %vm9982_vm4 = vcmp.ne.s32.totalorder %v8379_v59, 0  ;;  %v4156_v6 = vsel %vm8584_vm6, 1, %v9689_v11  ;;  %v4252_v61 = vadd.s32 %v4251_v33, %v4244_v35  ;;  %v4254_v3 = vadd.s32 %v4253_v43, %v4246_v23  ;;  %v3643_v52 = vld [vmem:[#allocation4 + $0x1d0] sm:$0xff] }
 0x31b   :  { %3255 = vst.msk [vmem:[#allocation2 + $0x1c8] sm:$0xff] %vm38_vm13, %v8336_v24  ;;  %v3637_v24 = vld [vmem:[#allocation4 + $0x1a0] sm:$0xff]  ;;  %v1977_v30 = vpop.xlane.xlu2 %1976  ;;  %vm8632_vm12 = vmand %vm4032_vm3, %vm9985_vm1  ;;  %v8664_v56 = vmax.f32 %v8616_v54, %v1979_v14  ;;  %v8667_v1 = vmax.f32 %v8618_v63, %v1981_v44  ;;  %v8679_v23 = vld [vmem:[%s9308_s2 + $0x1f0] sm:$0xff]  ;;  %v4263_v43 = vsel %vm38_vm13, %v4155_v58, 0 }
 0x31c   :  { %9948 = vst [vmem:[#allocation233_spill] sm:$0xff] %v8432_v9  ;;  %vm4031_vm15 = vcmp.eq.f32.partialorder %v3637_v24, %v3317_v45  ;;  %v4242_v9 = vadd.s32 %v4241_v53, %v8422_v62  ;;  %v8614_v40 = vmax.f32 %v8577_v18, %v1977_v30  ;;  %v4153_v45 = vsel %vm8516_vm14, 1, %v9689_v11  ;;  %v3645_v33 = vld [vmem:[#allocation4 + $0x1e0] sm:$0xff] }
 0x31d   :  { %9951 = vst [vmem:[#allocation234_spill] sm:$0xff] %v8461_v50  ;;  %v4154_v24 = vsel %vm8541_vm10, 1, %v9689_v11  ;;  %vm3774_vm10 = vcmp.ne.s32.totalorder %v8660_v25, 0  ;;  %vm9992_vm14 = vcmp.ne.s32.totalorder %v8461_v50, 0  ;;  %vm3775_vm6 = vcmp.ne.s32.totalorder %v8679_v23, 0  ;;  %v2151_v50 = vld [vmem:[#allocation3 + $0x148] sm:$0xff] }
 0x31e   :  { %9952 = vst [vmem:[#allocation235_spill] sm:$0xff] %v8465_v37  ;;  %v3320_v39 = vld [vmem:[#allocation2 + $0x1b8] sm:$0xff]  ;;  %v4160_v62 = vsel %vm8632_vm12, 1, %v9689_v11 }
 0x31f   :  { %9953 = vst [vmem:[#allocation236_spill] sm:$0xff] %v8467_v32  ;;  %v4249_v32 = vsel %vm38_vm13, %v4148_v17, 0  ;;  %v4152_v17 = vsel %vm8494_vm2, 1, %v9689_v11  ;;  %vm9979_vm2 = vcmp.ne.s32.totalorder %v8356_v31, 0 }
 0x320   :  { %9957 = vst [vmem:[#allocation237_spill] sm:$0xff] %v8486_v60  ;;  %v3321_v46 = vld [vmem:[#allocation2 + $0x1c0] sm:$0xff]  ;;  %vm8607_vm7 = vmand %vm4030_vm5, %vm9979_vm2  ;;  %v4250_v53 = vadd.s32 %v4249_v32, %v4242_v9  ;;  %v4255_v9 = vsel %vm38_vm13, %v4151_v4, 0  ;;  %v4257_v41 = vsel %vm38_vm13, %v4152_v17, 0  ;;  %v3642_v32 = vld [vmem:[#allocation4 + $0x1c8] sm:$0xff] }
 0x321   :  { %9960 = vst [vmem:[#allocation238_spill] sm:$0xff] %v8504_v36  ;;  %vm8623_vm5 = vmand %vm4031_vm15, %vm9982_vm4  ;;  %vm9988_vm15 = vcmp.ne.s32.totalorder %v8429_v49, 0  ;;  %v3644_v4 = vld [vmem:[#allocation4 + $0x1d8] sm:$0xff]  ;;  %v4256_v17 = vadd.s32 %v4255_v9, %v4248_v26  ;;  %v4157_v26 = vsel %vm8600_vm0, 1, %v9689_v11 }
 0x322   :  { %3256 = vst.msk [vmem:[#allocation2 + $0x1d0] sm:$0xff] %vm38_vm13, %v8465_v37  ;;  %v3322_v51 = vld [vmem:[#allocation2 + $0x1c8] sm:$0xff]  ;;  %v3641_v37 = vld [vmem:[#allocation4 + $0x1c0] sm:$0xff]  ;;  %vm8650_vm3 = vmand %vm4033_vm9, %vm9988_vm15  ;;  %v4258_v35 = vadd.s32 %v4257_v41, %v4250_v53  ;;  %vm9996_vm9 = vcmp.ne.s32.totalorder %v8486_v60, 0  ;;  %v4261_v53 = vsel %vm38_vm13, %v4154_v24, 0  ;;  %v4159_v0 = vsel %vm8623_vm5, 1, %v9689_v11 }
 0x323   :  { %9964 = vst [vmem:[#allocation239_spill] sm:$0xff] %v8526_v48  ;;  %vm4035_vm2 = vcmp.eq.f32.partialorder %v3641_v37, %v3321_v46  ;;  %vm4036_vm1 = vcmp.eq.f32.partialorder %v3642_v32, %v3322_v51  ;;  %v4158_v37 = vsel %vm8607_vm7, 1, %v9689_v11  ;;  %v4161_v10 = vsel %vm8650_vm3, 1, %v9689_v11  ;;  %v2433_v32 = vpop.permute.xlu2 %2432 }
 0x324   :  { %9965 = vst [vmem:[#allocation240_spill] sm:$0xff] %v8530_v8  ;;  %vm10005_vm7 = vcmp.ne.s32.totalorder %v8549_v42, 0  ;;  %v4262_v14 = vadd.s32 %v4261_v53, %v4254_v3  ;;  %v4267_v44 = vsel %vm38_vm13, %v4157_v26, 0  ;;  %v4264_v19 = vadd.s32 %v4263_v43, %v4256_v17 }
 0x325   :  { %9969 = vst [vmem:[#allocation241_spill] sm:$0xff] %v8549_v42  ;;  %v4269_v13 = vsel %vm38_vm13, %v4158_v37, 0  ;;  %v4273_v3 = vsel %vm38_vm13, %v4160_v62, 0  ;;  %v4275_v28 = vsel %vm38_vm13, %v4161_v10, 0  ;;  %v3648_v10 = vld [vmem:[#allocation4 + $0x1f8] sm:$0xff] }
 0x326   :  { %9973 = vst [vmem:[#allocation242_spill] sm:$0xff] %v8572_v47 }
 0x327   :  { %3257 = vst.msk [vmem:[#allocation2 + $0x1d8] sm:$0xff] %vm38_vm13, %v8530_v8  ;;  %v3640_v8 = vld [vmem:[#allocation4 + $0x1b8] sm:$0xff] }
 0x328   :  { %3258 = vst.msk [vmem:[#allocation2 + $0x1e0] sm:$0xff] %vm38_vm13, %v8533_v16  ;;  %vm4034_vm8 = vcmp.eq.f32.partialorder %v3640_v8, %v3320_v39  ;;  %v4259_v39 = vsel %vm38_vm13, %v4153_v45, 0  ;;  %v4265_v45 = vsel %vm38_vm13, %v4156_v6, 0  ;;  %v8752_v8 = vld [vmem:[%s9308_s2 + $0x1f8] sm:$0xff]  ;;  %s5445_s2 = smov [#allocation9]  }
 0x329   :  { %3259 = vst.msk [vmem:[#allocation2 + $0x1e8] sm:$0xff] %vm38_vm13, %v8614_v40  ;;  %vm8672_vm11 = vmand %vm4034_vm8, %vm9992_vm14  ;;  %v3323_v30 = vld [vmem:[#allocation2 + $0x1d0] sm:$0xff]  ;;  %v4260_v58 = vadd.s32 %v4259_v39, %v4252_v61  ;;  %v4266_v6 = vadd.s32 %v4265_v45, %v4258_v35  ;;  %vm3776_vm12 = vcmp.ne.s32.totalorder %v8752_v8, 0  ;;  %v4270_v39 = vadd.s32 %v4269_v13, %v4262_v14  ;;  %v10008_v14 = vld [vmem:[#allocation18_spill] sm:$0xff]  ;;  %s4337_s16 = sshll.u32 %s5445_s2, 4  ;;  %s4338_s16 = int_to_ptr.vmem [resolvable:$true] %s4337_s16 }
 0x32a   :  { %9991 = vst [vmem:[#allocation243_spill] sm:$0xff] %v8660_v25  ;;  %vm8686_vm8 = vmand %vm4035_vm2, %vm9996_vm9  ;;  %vm4037_vm4 = vcmp.eq.f32.partialorder %v3643_v52, %v3323_v30  ;;  %vm9999_vm2 = vcmp.ne.s32.totalorder %v8504_v36, 0  ;;  %v4162_v24 = vsel %vm8672_vm11, 1, %v9689_v11  ;;  %v4271_v52 = vsel %vm38_vm13, %v4159_v0, 0 }
 0x32b   :  { %9995 = vst [vmem:[#allocation244_spill] sm:$0xff] %v8679_v23  ;;  %vm8701_vm15 = vmand %vm4036_vm1, %vm9999_vm2  ;;  %vm10002_vm1 = vcmp.ne.s32.totalorder %v8526_v48, 0  ;;  %v4268_v30 = vadd.s32 %v4267_v44, %v4260_v58  ;;  %v4272_v53 = vadd.s32 %v4271_v52, %v4264_v19  ;;  %v4274_v46 = vadd.s32 %v4273_v3, %v4266_v6  ;;  %v2453_v13 = vpop.permute.xlu2 %2452  ;;  %v10090_v48 = vld [vmem:[#allocation110_spill] sm:$0xff] }
 0x32c   :  { %3260 = vst.msk [vmem:[#allocation2 + $0x1f0] sm:$0xff] %vm38_vm13, %v8664_v56  ;;  %vm8716_vm9 = vmand %vm4037_vm4, %vm10002_vm1  ;;  %vm10006_vm4 = vcmp.ne.s32.totalorder %v8572_v47, 0  ;;  %v4164_v61 = vsel %vm8701_vm15, 1, %v9689_v11  ;;  %v2750_v19 = vsub.f32 %v10008_v14, %v2433_v32 }
 0x32d   :  { %3261 = vst.msk [vmem:[#allocation2 + $0x1f8] sm:$0xff] %vm38_vm13, %v8667_v1  ;;  %v4165_v17 = vsel %vm8716_vm9, 1, %v9689_v11  ;;  %v4276_v37 = vadd.s32 %v4275_v28, %v4268_v30  ;;  %v4281_v45 = vsel %vm38_vm13, %v4164_v61, 0 }
 0x32e   :  { %v3324_v9 = vld [vmem:[#allocation2 + $0x1d8] sm:$0xff]  ;;  %10007 = vst [vmem:[#allocation245_spill] sm:$0xff] %v8752_v8  ;;  %v4283_v58 = vsel %vm38_vm13, %v4165_v17, 0  ;;  %v4282_v61 = vadd.s32 %v4281_v45, %v4274_v46  ;;  %v2438_v46 = vpop.permute.xlu0 %2437 }
 0x32f   :  { %v3325_v41 = vld [vmem:[#allocation2 + $0x1e0] sm:$0xff]  ;;  %vm4038_vm0 = vcmp.eq.f32.partialorder %v3644_v4, %v3324_v9  ;;  %v4163_v4 = vsel %vm8686_vm8, 1, %v9689_v11  ;;  %v3646_v9 = vld [vmem:[#allocation4 + $0x1e8] sm:$0xff]  ;;  %v4284_v3 = vadd.s32 %v4283_v58, %v4276_v37 }
 0x330   :  { %vm4039_vm14 = vcmp.eq.f32.partialorder %v3645_v33, %v3325_v41  ;;  %vm4102_vm5 = vmand %vm4038_vm0, %vm10005_vm7  ;;  %v4277_v33 = vsel %vm38_vm13, %v4162_v24, 0  ;;  %v3326_v43 = vld [vmem:[#allocation2 + $0x1e8] sm:$0xff]  ;;  %v3647_v41 = vld [vmem:[#allocation4 + $0x1f0] sm:$0xff]  ;;  %v4279_v0 = vsel %vm38_vm13, %v4163_v4, 0 }
 0x331   :  { %vm4103_vm2 = vmand %vm4039_vm14, %vm10006_vm4  ;;  %v4166_v35 = vsel %vm4102_vm5, 1, %v9689_v11  ;;  %vm4040_vm3 = vcmp.eq.f32.partialorder %v3646_v9, %v3326_v43  ;;  %v4278_v24 = vadd.s32 %v4277_v33, %v4270_v39  ;;  %v4280_v4 = vadd.s32 %v4279_v0, %v4272_v53  ;;  %v2443_v0 = vpop.permute.xlu1 %2442  ;;  %v10009_v37 = vld [vmem:[#allocation17_spill] sm:$0xff]  ;;  %v10010_v58 = vld [vmem:[#allocation23_spill] sm:$0xff] }
 0x332   :  { %v4167_v26 = vsel %vm4103_vm2, 1, %v9689_v11  ;;  %v4285_v44 = vsel %vm38_vm13, %v4166_v35, 0  ;;  %vm4104_vm15 = vmand %vm4040_vm3, %vm3774_vm10  ;;  %v2814_v39 = vmul.f32 1.442695, %v2750_v19 }
 0x333   :  { %v3327_v51 = vld [vmem:[#allocation2 + $0x1f0] sm:$0xff]  ;;  %v4287_v6 = vsel %vm38_vm13, %v4167_v26, 0  ;;  %v4168_v52 = vsel %vm4104_vm15, 1, %v9689_v11  ;;  %v4286_v28 = vadd.s32 %v4285_v44, %v4278_v24  ;;  %v2754_v44 = vsub.f32 %v10010_v58, %v2453_v13 }
 0x334   :  { %v3328_v62 = vld [vmem:[#allocation2 + $0x1f8] sm:$0xff]  ;;  %vm4041_vm11 = vcmp.eq.f32.partialorder %v3647_v41, %v3327_v51  ;;  %v4289_v17 = vsel %vm38_vm13, %v4168_v52, 0  ;;  %v4288_v30 = vadd.s32 %v4287_v6, %v4280_v4  ;;  %4785 = vpow2.f32 %v2814_v39  ;;  %v10011_v6 = vld [vmem:[#allocation22_spill] sm:$0xff] }
 0x335   :  { %vm4042_vm8 = vcmp.eq.f32.partialorder %v3648_v10, %v3328_v62  ;;  %vm4105_vm0 = vmand %vm4041_vm11, %vm3775_vm6  ;;  %v4290_v33 = vadd.s32 %v4289_v17, %v4282_v61  ;;  %v2751_v51 = vsub.f32 %v10009_v37, %v2438_v46  ;;  %v2468_v62 = vpop.permute.xlu2 %2467  ;;  %v2752_v52 = vsub.f32 %v10011_v6, %v2443_v0  ;;  %v10012_v4 = vld [vmem:[#allocation21_spill] sm:$0xff]  ;;  %v10014_v39 = vld [vmem:[#allocation24_spill] sm:$0xff] }
 0x336   :  { %vm4106_vm14 = vmand %vm4042_vm8, %vm3776_vm12  ;;  %v4169_v32 = vsel %vm4105_vm0, 1, %v9689_v11  ;;  %v2448_v14 = vpop.permute.xlu0 %2447 }
 0x337   :  { %v4170_v35 = vsel %vm4106_vm14, 1, %v9689_v11  ;;  %v4291_v26 = vsel %vm38_vm13, %v4169_v32, 0  ;;  %v4295_v41 = vadd.s32 %v4290_v33, %v4288_v30  ;;  %v2816_v11 = vmul.f32 1.442695, %v2751_v51  ;;  %v10013_v30 = vld [vmem:[#allocation28_spill] sm:$0xff] }
 0x338   :  { %v4292_v43 = vadd.s32 %v4291_v26, %v4284_v3  ;;  %v4293_v53 = vsel %vm38_vm13, %v4170_v35, 0  ;;  %v2753_v61 = vsub.f32 %v10012_v4, %v2448_v14  ;;  %v2818_v17 = vmul.f32 1.442695, %v2752_v52 }
 0x339   :  { %v4294_v9 = vadd.s32 %v4293_v53, %v4286_v28  ;;  %v2458_v19 = vpop.permute.xlu1 %2457  ;;  %4787 = vpow2.f32 %v2816_v11  ;;  %v2822_v28 = vmul.f32 1.442695, %v2754_v44  ;;  %v2757_v33 = vsub.f32 %v10013_v30, %v2468_v62  ;;  %v10015_v53 = vld [vmem:[#allocation25_spill] sm:$0xff]  ;;  %v10016_v44 = vld [vmem:[#allocation30_spill] sm:$0xff] }
 0x33a   :  { %v4786_v24 = vpop.eup %4785  ;;  %v2820_v3 = vmul.f32 1.442695, %v2753_v61 }
 0x33b   :  { %v4296_v45 = vadd.s32 %v4294_v9, %v4292_v43  ;;  %2942 = vadd.xlane.f32.xlu1 %v4786_v24  ;;  %v2755_v43 = vsub.f32 %v10014_v39, %v2458_v19  ;;  %v10017_v19 = vld [vmem:[#allocation34_spill] sm:$0xff] }
 0x33c   :  { %4789 = vpow2.f32 %v2820_v3 }
 0x33d   :  { %v8775_v10 = vadd.s32 %v4296_v45, %v4295_v41  ;;  %v2483_v32 = vpop.permute.xlu2 %2482  ;;  %4791 = vpow2.f32 %v2822_v28  ;;  %v2828_v45 = vmul.f32 1.442695, %v2757_v33  ;;  %v2824_v37 = vmul.f32 1.442695, %v2755_v43  ;;  %v10018_v33 = vld [vmem:[#allocation38_spill] sm:$0xff] }
 0x33e   :  { %v2463_v26 = vpop.permute.xlu0 %2462  ;;  %4793 = vpow2.f32 %v2818_v17  ;;  %v2760_v62 = vsub.f32 %v6227_v12, %v2483_v32 }
 0x33f   :  { %v4788_v35 = vpop.eup %4787  ;;  %v2756_v9 = vsub.f32 %v10015_v53, %v2463_v26 }
 0x340   :  { %2944 = vadd.xlane.f32.xlu0 %v4788_v35  ;;  %v2834_v3 = vmul.f32 1.442695, %v2760_v62 }
 0x341   :  { %v2473_v13 = vpop.permute.xlu1 %2472  ;;  %v2826_v0 = vmul.f32 1.442695, %v2756_v9 }
 0x342   :  { %v4790_v46 = vpop.eup %4789  ;;  %v2758_v14 = vsub.f32 %v10016_v44, %v2473_v13  ;;  %v10019_v13 = vld [vmem:[#allocation42_spill] sm:$0xff] }
 0x343   :  { %2948 = vadd.xlane.f32.xlu1 %v4790_v46  ;;  %4795 = vpow2.f32 %v2826_v0  ;;  %v4792_v51 = vpop.eup %4791 }
 0x344   :  { %v4794_v11 = vpop.eup %4793  ;;  %4797 = vpow2.f32 %v2828_v45  ;;  %v2830_v28 = vmul.f32 1.442695, %v2758_v14 }
 0x345   :  { %v2498_v41 = vpop.permute.xlu2 %2497  ;;  %2946 = vadd.xlane.f32.xlu2 %v4794_v11  ;;  %4799 = vpow2.f32 %v2824_v37  ;;  %v10021_v11 = vld [vmem:[#allocation45_spill] sm:$0xff] }
 0x346   :  { %v2478_v24 = vpop.permute.xlu0 %2477  ;;  %v2763_v12 = vsub.f32 %v6317_v22, %v2498_v41  ;;  %v10020_v22 = vld [vmem:[#allocation49_spill] sm:$0xff] }
 0x347   :  { %v2759_v6 = vsub.f32 %v10017_v19, %v2478_v24  ;;  %v10022_v24 = vld [vmem:[#allocation47_spill] sm:$0xff] }
 0x348   :  { %2950 = vadd.xlane.f32.xlu0 %v4792_v51  ;;  %v2840_v46 = vmul.f32 1.442695, %v2763_v12  ;;  %v10024_v12 = vld [vmem:[#allocation51_spill] sm:$0xff] }
 0x349   :  { %v2488_v58 = vpop.permute.xlu1 %2487  ;;  %v4796_v4 = vpop.eup %4795  ;;  %v2832_v61 = vmul.f32 1.442695, %v2759_v6 }
 0x34a   :  { %v4798_v17 = vpop.eup %4797  ;;  %v2761_v26 = vsub.f32 %v10018_v33, %v2488_v58 }
 0x34b   :  { %2954 = vadd.xlane.f32.xlu1 %v4796_v4  ;;  %4801 = vpow2.f32 %v2832_v61  ;;  %v4800_v35 = vpop.eup %4799 }
 0x34c   :  { %4803 = vpow2.f32 %v2834_v3  ;;  %v2836_v0 = vmul.f32 1.442695, %v2761_v26 }
 0x34d   :  { %v2513_v52 = vpop.permute.xlu2 %2512  ;;  %2952 = vadd.xlane.f32.xlu2 %v4800_v35  ;;  %4805 = vpow2.f32 %v2830_v28 }
 0x34e   :  { %v2493_v32 = vpop.permute.xlu0 %2492  ;;  %v2766_v41 = vsub.f32 %v10020_v22, %v2513_v52  ;;  %v10023_v52 = vld [vmem:[#allocation55_spill] sm:$0xff] }
 0x34f   :  { %v2762_v39 = vsub.f32 %v10019_v13, %v2493_v32 }
 0x350   :  { %2956 = vadd.xlane.f32.xlu0 %v4798_v17  ;;  %v2846_v6 = vmul.f32 1.442695, %v2766_v41  ;;  %v10027_v41 = vld [vmem:[#allocation57_spill] sm:$0xff] }
 0x351   :  { %v2503_v30 = vpop.permute.xlu1 %2502  ;;  %v4802_v43 = vpop.eup %4801  ;;  %v2838_v53 = vmul.f32 1.442695, %v2762_v39 }
 0x352   :  { %v4804_v45 = vpop.eup %4803  ;;  %v2764_v62 = vsub.f32 %v10021_v11, %v2503_v30  ;;  %v10025_v30 = vld [vmem:[#allocation53_spill] sm:$0xff]  ;;  %v10028_v11 = vld [vmem:[#allocation59_spill] sm:$0xff] }
 0x353   :  { %2960 = vadd.xlane.f32.xlu1 %v4802_v43  ;;  %4807 = vpow2.f32 %v2838_v53  ;;  %v4806_v37 = vpop.eup %4805 }
 0x354   :  { %4809 = vpow2.f32 %v2840_v46  ;;  %v2842_v4 = vmul.f32 1.442695, %v2764_v62 }
 0x355   :  { %v2528_v9 = vpop.permute.xlu2 %2527  ;;  %2958 = vadd.xlane.f32.xlu2 %v4806_v37  ;;  %4811 = vpow2.f32 %v2836_v0 }
 0x356   :  { %v2508_v51 = vpop.permute.xlu0 %2507  ;;  %v2769_v17 = vsub.f32 %v10023_v52, %v2528_v9  ;;  %v10026_v9 = vld [vmem:[#allocation61_spill] sm:$0xff] }
 0x357   :  { %v2765_v58 = vsub.f32 %v10022_v24, %v2508_v51 }
 0x358   :  { %2962 = vadd.xlane.f32.xlu0 %v4804_v45  ;;  %v2852_v39 = vmul.f32 1.442695, %v2769_v17  ;;  %v10030_v17 = vld [vmem:[#allocation65_spill] sm:$0xff] }
 0x359   :  { %v2518_v44 = vpop.permute.xlu1 %2517  ;;  %v4808_v14 = vpop.eup %4807  ;;  %v2844_v19 = vmul.f32 1.442695, %v2765_v58 }
 0x35a   :  { %v4810_v3 = vpop.eup %4809  ;;  %v2767_v32 = vsub.f32 %v10024_v12, %v2518_v44 }
 0x35b   :  { %2966 = vadd.xlane.f32.xlu1 %v4808_v14  ;;  %4813 = vpow2.f32 %v2844_v19  ;;  %v4812_v28 = vpop.eup %4811 }
 0x35c   :  { %4815 = vpow2.f32 %v2846_v6  ;;  %v2848_v53 = vmul.f32 1.442695, %v2767_v32 }
 0x35d   :  { %v2543_v61 = vpop.permute.xlu2 %2542  ;;  %2964 = vadd.xlane.f32.xlu2 %v4812_v28  ;;  %4817 = vpow2.f32 %v2842_v4  ;;  %v10029_v28 = vld [vmem:[#allocation63_spill] sm:$0xff] }
 0x35e   :  { %v2523_v35 = vpop.permute.xlu0 %2522  ;;  %v2772_v37 = vsub.f32 %v10026_v9, %v2543_v61  ;;  %v10033_v9 = vld [vmem:[#allocation14_spill] sm:$0xff] }
 0x35f   :  { %v2768_v33 = vsub.f32 %v10025_v30, %v2523_v35  ;;  %v10031_v30 = vld [vmem:[#allocation73_spill] sm:$0xff] }
 0x360   :  { %2968 = vadd.xlane.f32.xlu0 %v4810_v3  ;;  %v2858_v44 = vmul.f32 1.442695, %v2772_v37 }
 0x361   :  { %v4814_v26 = vpop.eup %4813  ;;  %v2850_v13 = vmul.f32 1.442695, %v2768_v33  ;;  %v2533_v43 = vpop.permute.xlu1 %2532 }
 0x362   :  { %v4816_v46 = vpop.eup %4815  ;;  %v2770_v51 = vsub.f32 %v10027_v41, %v2533_v43 }
 0x363   :  { %2972 = vadd.xlane.f32.xlu1 %v4814_v26  ;;  %4819 = vpow2.f32 %v2850_v13  ;;  %v4818_v0 = vpop.eup %4817 }
 0x364   :  { %4821 = vpow2.f32 %v2852_v39  ;;  %v2854_v14 = vmul.f32 1.442695, %v2770_v51 }
 0x365   :  { %v2558_v45 = vpop.permute.xlu2 %2557  ;;  %2970 = vadd.xlane.f32.xlu2 %v4818_v0  ;;  %4823 = vpow2.f32 %v2848_v53 }
 0x366   :  { %v2538_v22 = vpop.permute.xlu0 %2537 }
 0x367   :  { %v2771_v62 = vsub.f32 %v10028_v11, %v2538_v22 }
 0x368   :  { %2974 = vadd.xlane.f32.xlu0 %v4816_v46  ;;  %v10032_v46 = vld [vmem:[#allocation67_spill] sm:$0xff] }
 0x369   :  { %v4820_v24 = vpop.eup %4819  ;;  %v2856_v58 = vmul.f32 1.442695, %v2771_v62  ;;  %v2548_v6 = vpop.permute.xlu1 %2547  ;;  %v2775_v0 = vsub.f32 %v10032_v46, %v2558_v45  ;;  %v10039_v46 = vld [vmem:[#allocation26_spill] sm:$0xff] }
 0x36a   :  { %v4822_v19 = vpop.eup %4821  ;;  %v2773_v52 = vsub.f32 %v10029_v28, %v2548_v6 }
 0x36b   :  { %2978 = vadd.xlane.f32.xlu1 %v4820_v24  ;;  %4825 = vpow2.f32 %v2856_v58  ;;  %v4824_v4 = vpop.eup %4823  ;;  %v2864_v11 = vmul.f32 1.442695, %v2775_v0 }
 0x36c   :  { %4827 = vpow2.f32 %v2858_v44  ;;  %v2860_v26 = vmul.f32 1.442695, %v2773_v52  ;;  %v10034_v44 = vld [vmem:[#allocation69_spill] sm:$0xff] }
 0x36d   :  { %2976 = vadd.xlane.f32.xlu2 %v4824_v4  ;;  %4829 = vpow2.f32 %v2854_v14  ;;  %v2573_v61 = vpop.permute.xlu2 %2572 }
 0x36e   :  { %v2553_v3 = vpop.permute.xlu0 %2552  ;;  %v2778_v33 = vsub.f32 %v10031_v30, %v2573_v61  ;;  %v10036_v61 = vld [vmem:[#allocation77_spill] sm:$0xff]  ;;  %v10037_v30 = vld [vmem:[#allocation74_spill] sm:$0xff] }
 0x36f   :  { %v2774_v35 = vsub.f32 %v10030_v17, %v2553_v3 }
 0x370   :  { %2980 = vadd.xlane.f32.xlu0 %v4822_v19  ;;  %v2870_v43 = vmul.f32 1.442695, %v2778_v33  ;;  %v10035_v19 = vld [vmem:[#allocation75_spill] sm:$0xff] }
 0x371   :  { %v4826_v12 = vpop.eup %4825  ;;  %v2862_v32 = vmul.f32 1.442695, %v2774_v35  ;;  %v2563_v22 = vpop.permute.xlu1 %2562 }
 0x372   :  { %v4828_v13 = vpop.eup %4827  ;;  %v2776_v14 = vsub.f32 %v10034_v44, %v2563_v22 }
 0x373   :  { %2984 = vadd.xlane.f32.xlu1 %v4826_v12  ;;  %4831 = vpow2.f32 %v2862_v32  ;;  %v4830_v39 = vpop.eup %4829 }
 0x374   :  { %4833 = vpow2.f32 %v2860_v26  ;;  %v2866_v17 = vmul.f32 1.442695, %v2776_v14  ;;  %v10038_v26 = vld [vmem:[#allocation29_spill] sm:$0xff]  ;;  %v10041_v14 = vld [vmem:[#allocation72_spill] sm:$0xff] }
 0x375   :  { %2982 = vadd.xlane.f32.xlu2 %v4830_v39  ;;  %4835 = vpow2.f32 %v2870_v43  ;;  %v2588_v24 = vpop.permute.xlu2 %2587 }
 0x376   :  { %v2568_v53 = vpop.permute.xlu0 %2567  ;;  %v2781_v28 = vsub.f32 %v10036_v61, %v2588_v24  ;;  %v10043_v61 = vld [vmem:[#allocation83_spill] sm:$0xff] }
 0x377   :  { %v2777_v37 = vsub.f32 %v10033_v9, %v2568_v53 }
 0x378   :  { %2986 = vadd.xlane.f32.xlu0 %v4828_v13  ;;  %v2876_v12 = vmul.f32 1.442695, %v2781_v28  ;;  %v10044_v28 = vld [vmem:[#allocation80_spill] sm:$0xff] }
 0x379   :  { %v4832_v41 = vpop.eup %4831  ;;  %v2868_v51 = vmul.f32 1.442695, %v2777_v37  ;;  %v2578_v52 = vpop.permute.xlu1 %2577 }
 0x37a   :  { %v4834_v62 = vpop.eup %4833  ;;  %v2779_v33 = vsub.f32 %v10037_v30, %v2578_v52  ;;  %v2175_v52 = vsub.f32 %v10044_v28, %v10043_v61  ;;  %v10057_v61 = vld [vmem:[#allocation97_spill] sm:$0xff]  ;;  %v10058_v28 = vld [vmem:[#allocation96_spill] sm:$0xff] }
 0x37b   :  { %2990 = vadd.xlane.f32.xlu1 %v4832_v41  ;;  %4837 = vpow2.f32 %v2868_v51  ;;  %v4836_v45 = vpop.eup %4835  ;;  %v10040_v51 = vld [vmem:[#allocation27_spill] sm:$0xff] }
 0x37c   :  { %4839 = vpow2.f32 %v2864_v11  ;;  %v2872_v9 = vmul.f32 1.442695, %v2779_v33  ;;  %v2110_v33 = vld [vmem:[#allocation3] sm:$0xff] }
 0x37d   :  { %2988 = vadd.xlane.f32.xlu2 %v4834_v62  ;;  %v2603_v39 = vpop.permute.xlu2 %2602 }
 0x37e   :  { %v2583_v58 = vpop.permute.xlu0 %2582  ;;  %v2784_v0 = vsub.f32 %v10039_v46, %v2603_v39  ;;  %v10050_v46 = vld [vmem:[#allocation89_spill] sm:$0xff] }
 0x37f   :  { %v2780_v6 = vsub.f32 %v10035_v19, %v2583_v58  ;;  %v10042_v19 = vld [vmem:[#allocation19_spill] sm:$0xff] }
 0x380   :  { %v2882_v41 = vmul.f32 1.442695, %v2784_v0  ;;  %v10051_v0 = vld [vmem:[#allocation86_spill] sm:$0xff] }
 0x381   :  { %v4838_v4 = vpop.eup %4837  ;;  %v2874_v3 = vmul.f32 1.442695, %v2780_v6  ;;  %v2593_v37 = vpop.permute.xlu1 %2592  ;;  %v2174_v6 = vsub.f32 %v10042_v19, %v10041_v14  ;;  %v2111_v14 = vld [vmem:[#allocation3 + $0x8] sm:$0xff] }
 0x382   :  { %2996 = vadd.xlane.f32.xlu0 %v4838_v4  ;;  %v4840_v35 = vpop.eup %4839  ;;  %v2782_v11 = vsub.f32 %v10040_v51, %v2593_v37  ;;  %v10054_v19 = vld [vmem:[#allocation87_spill] sm:$0xff] }
 0x383   :  { %2998 = vadd.xlane.f32.xlu1 %v4836_v45  ;;  %4841 = vpow2.f32 %v2874_v3  ;;  %v2238_v4 = vmul.f32 1.442695, %v2174_v6  ;;  %v10055_v6 = vld [vmem:[#allocation84_spill] sm:$0xff] }
 0x384   :  { %4843 = vpow2.f32 %v2866_v17  ;;  %v2878_v58 = vmul.f32 1.442695, %v2782_v11  ;;  %v10045_v17 = vld [vmem:[#allocation82_spill] sm:$0xff]  ;;  %v10052_v11 = vld [vmem:[#allocation88_spill] sm:$0xff] }
 0x385   :  { %2992 = vadd.xlane.f32.xlu2 %v4840_v35  ;;  %4845 = vpow2.f32 %v2876_v12  ;;  %v10046_v35 = vld [vmem:[#allocation79_spill] sm:$0xff] }
 0x386   :  { %v2598_v32 = vpop.permute.xlu0 %2597  ;;  %v2177_v12 = vsub.f32 %v10046_v35, %v10045_v17 }
 0x387   :  { %v2783_v13 = vsub.f32 %v10038_v26, %v2598_v32  ;;  %v2240_v32 = vmul.f32 1.442695, %v2175_v52  ;;  %v10047_v26 = vld [vmem:[#allocation81_spill] sm:$0xff]  ;;  %v2181_v52 = vsub.f32 %v10058_v28, %v10057_v61 }
 0x389   :  { %v4842_v43 = vpop.eup %4841  ;;  %v2880_v53 = vmul.f32 1.442695, %v2783_v13  ;;  %v10048_v13 = vld [vmem:[#allocation78_spill] sm:$0xff] }
 0x38a   :  { %v4844_v22 = vpop.eup %4843  ;;  %v2176_v39 = vsub.f32 %v10048_v13, %v10047_v26  ;;  %v10059_v13 = vld [vmem:[#allocation95_spill] sm:$0xff] }
 0x38b   :  { %3002 = vadd.xlane.f32.xlu1 %v4842_v43  ;;  %4847 = vpow2.f32 %v2880_v53  ;;  %v4846_v62 = vpop.eup %4845  ;;  %v10049_v43 = vld [vmem:[#allocation148_spill] sm:$0xff]  ;;  %v2244_v53 = vmul.f32 1.442695, %v2177_v12  ;;  %v8829_v12 = vpop.permute.xlu2 %2617 }
 0x38c   :  { %4849 = vpow2.f32 %v2872_v9  ;;  %v2178_v9 = vsub.f32 %v10051_v0, %v10050_v46  ;;  %v2252_v46 = vmul.f32 1.442695, %v2181_v52 }
 0x38d   :  { %2994 = vadd.xlane.f32.xlu2 %v4844_v22  ;;  %4851 = vpow2.f32 %v2882_v41  ;;  %v2242_v41 = vmul.f32 1.442695, %v2176_v39  ;;  %v10060_v39 = vld [vmem:[#allocation93_spill] sm:$0xff] }
 0x38e   :  { %4853 = vpow2.f32 %v2878_v58  ;;  %v2246_v58 = vmul.f32 1.442695, %v2178_v9  ;;  %v10061_v9 = vld [vmem:[#allocation147_spill] sm:$0xff] }
 0x38f   :  { %4855 = vpow2.f32 %v2238_v4  ;;  %v10056_v4 = vld [vmem:[#allocation153_spill] sm:$0xff] }
 0x390   :  { %4857 = vpow2.f32 %v2240_v32 }
 0x391   :  { %v4848_v24 = vpop.eup %4847  ;;  %4859 = vpow2.f32 %v2244_v53  ;;  %v2183_v53 = vsub.f32 %v10060_v39, %v10059_v13 }
 0x392   :  { %3008 = vadd.xlane.f32.xlu0 %v4848_v24  ;;  %v4850_v44 = vpop.eup %4849  ;;  %4861 = vpow2.f32 %v2242_v41 }
 0x393   :  { %3004 = vadd.xlane.f32.xlu1 %v4846_v62  ;;  %v4852_v45 = vpop.eup %4851  ;;  %v10053_v62 = vld [vmem:[#allocation85_spill] sm:$0xff]  ;;  %4863 = vpow2.f32 %v2246_v58  ;;  %v10063_v58 = vld [vmem:[#allocation92_spill] sm:$0xff] }
 0x394   :  { %v4854_v3 = vpop.eup %4853  ;;  %v2180_v24 = vsub.f32 %v10053_v62, %v10052_v11  ;;  %v2114_v11 = vld [vmem:[#allocation3 + $0x20] sm:$0xff]  ;;  %v2112_v62 = vld [vmem:[#allocation3 + $0x10] sm:$0xff] }
 0x395   :  { %3000 = vadd.xlane.f32.xlu2 %v4850_v44  ;;  %v4856_v30 = vpop.eup %4855 }
 0x396   :  { %v2366_v37 = vmul.f32 %v4856_v30, %v2110_v33  ;;  %v4858_v44 = vpop.eup %4857  ;;  %v2113_v30 = vld [vmem:[#allocation3 + $0x18] sm:$0xff] }
 0x397   :  { %v2367_v17 = vmul.f32 %v4858_v44, %v2111_v14  ;;  %v4860_v35 = vpop.eup %4859 }
 0x39b   :  { %3010 = vadd.xlane.f32.xlu1 %v4852_v45  ;;  %v2179_v45 = vsub.f32 %v10055_v6, %v10054_v19  ;;  %v10064_v19 = vld [vmem:[#allocation165_spill] sm:$0xff]  ;;  %v2256_v6 = vmul.f32 1.442695, %v2183_v53 }
 0x39d   :  { %3006 = vadd.xlane.f32.xlu2 %v4854_v3  ;;  %v2250_v3 = vmul.f32 1.442695, %v2180_v24  ;;  %v2248_v33 = vmul.f32 1.442695, %v2179_v45  ;;  %v10062_v24 = vld [vmem:[#allocation94_spill] sm:$0xff]  ;;  %v10065_v45 = vld [vmem:[#allocation103_spill] sm:$0xff] }
 0x39e   :  { %v2182_v44 = vsub.f32 %v10063_v58, %v10062_v24  ;;  %v10069_v58 = vld [vmem:[#allocation152_spill] sm:$0xff] }
 0x39f   :  { %4865 = vpow2.f32 %v2250_v3  ;;  %v10066_v3 = vld [vmem:[#allocation102_spill] sm:$0xff] }
 0x3a0   :  { %v2184_v61 = vsub.f32 %v10066_v3, %v10065_v45  ;;  %v10071_v45 = vld [vmem:[#allocation98_spill] sm:$0xff] }
 0x3a6   :  { %2612 = vperm.xlu0 %4782, %v10049_v43  }
 0x3ae   :  { %v2943_v22 = vpop.xlane.xlu1 %2942  ;;  %2627 = vperm.xlu0 %4782, %v10056_v4  }
 0x3af   :  { %v3070_v51 = vadd.f32 %v2943_v22, %v2366_v37  ;;  %v4862_v37 = vpop.eup %4861  ;;  %v2369_v22 = vmul.f32 %v4860_v35, %v2113_v30  ;;  %v2116_v30 = vld [vmem:[#allocation3 + $0x30] sm:$0xff] }
 0x3b0   :  { %v4864_v41 = vpop.eup %4863  ;;  %v2368_v52 = vmul.f32 %v4862_v37, %v2112_v62  ;;  %v2117_v62 = vld [vmem:[#allocation3 + $0x38] sm:$0xff] }
 0x3b1   :  { %3134 = vst.msk [vmem:[#allocation3] sm:$0xff] %vm38_vm13, %v3070_v51  ;;  %v2370_v28 = vmul.f32 %v4864_v41, %v2114_v11 }
 0x3b3   :  { %v2945_v32 = vpop.xlane.xlu0 %2944 }
 0x3b4   :  { %v3071_v26 = vadd.f32 %v2945_v32, %v2367_v17  ;;  %2607 = vperm.xlu1 %4783, %v10061_v9   ;;  %v4866_v17 = vpop.eup %4865 }
 0x3b5   :  { %v2372_v37 = vmul.f32 %v4866_v17, %v2116_v30 }
 0x3b6   :  { %3135 = vst.msk [vmem:[#allocation3 + $0x8] sm:$0xff] %vm38_vm13, %v3071_v26  ;;  %v2949_v51 = vpop.xlane.xlu1 %2948  ;;  %2642 = vperm.xlu0 %4782, %v10064_v19   ;;  %v2254_v26 = vmul.f32 1.442695, %v2182_v44  ;;  %v2115_v44 = vld [vmem:[#allocation3 + $0x28] sm:$0xff] }
 0x3b7   :  { %v3073_v14 = vadd.f32 %v2949_v51, %v2369_v22  ;;  %v10068_v22 = vld [vmem:[#allocation99_spill] sm:$0xff] }
 0x3b8   :  { %v3329_v0 = vld [vmem:[#allocation3] sm:$0xff]  ;;  %v2947_v32 = vpop.xlane.xlu2 %2946 }
 0x3b9   :  { %4867 = vlog2.f32 %v3329_v0  ;;  %3137 = vst.msk [vmem:[#allocation3 + $0x18] sm:$0xff] %vm38_vm13, %v3073_v14  ;;  %v3072_v39 = vadd.f32 %v2947_v32, %v2368_v52  ;;  %v10067_v0 = vld [vmem:[#allocation101_spill] sm:$0xff] }
 0x3ba   :  { %4869 = vpow2.f32 %v2248_v33  ;;  %v2186_v53 = vsub.f32 %v10068_v22, %v10067_v0  ;;  %v10075_v22 = vld [vmem:[#allocation107_spill] sm:$0xff] }
 0x3bb   :  { %4871 = vpow2.f32 %v2252_v46  ;;  %v2951_v35 = vpop.xlane.xlu0 %2950  ;;  %v2258_v46 = vmul.f32 1.442695, %v2184_v61  ;;  %3136 = vst.msk [vmem:[#allocation3 + $0x10] sm:$0xff] %vm38_vm13, %v3072_v39  ;;  %v5233_v61 = vld [vmem:[#allocation2] sm:$0xff] }
 0x3bc   :  { %v3074_v13 = vadd.f32 %v2951_v35, %v2370_v28  ;;  %4873 = vpow2.f32 %v2256_v6  ;;  %2622 = vperm.xlu1 %4783, %v10069_v58   ;;  %v10070_v6 = vld [vmem:[#allocation100_spill] sm:$0xff]  ;;  %v2262_v32 = vmul.f32 1.442695, %v2186_v53  ;;  %v5234_v53 = vld [vmem:[#allocation4] sm:$0xff] }
 0x3bd   :  { %v3330_v24 = vld [vmem:[#allocation3 + $0x8] sm:$0xff]  ;;  %v2185_v3 = vsub.f32 %v10071_v45, %v10070_v6  ;;  %v10072_v35 = vld [vmem:[#allocation184_spill] sm:$0xff] }
 0x3be   :  { %4875 = vlog2.f32 %v3330_v24  ;;  %3138 = vst.msk [vmem:[#allocation3 + $0x20] sm:$0xff] %vm38_vm13, %v3074_v13  ;;  %v2955_v11 = vpop.xlane.xlu1 %2954  ;;  %2657 = vperm.xlu0 %4782, %v10072_v35   ;;  %v10074_v13 = vld [vmem:[#allocation108_spill] sm:$0xff]  ;;  %v10076_v24 = vld [vmem:[#allocation105_spill] sm:$0xff] }
 0x3bf   :  { %v4868_v33 = vpop.eup %4867  ;;  %4877 = vpow2.f32 %v2254_v26  ;;  %v3076_v52 = vadd.f32 %v2955_v11, %v2372_v37  ;;  %v2189_v6 = vsub.f32 %v10076_v24, %v10075_v22  ;;  %v2119_v37 = vld [vmem:[#allocation3 + $0x48] sm:$0xff]  ;;  %v10079_v24 = vld [vmem:[#allocation104_spill] sm:$0xff] }
 0x3c0   :  { %v3394_v51 = vmul.f32 0.6931472, %v4868_v33  ;;  %v4870_v14 = vpop.eup %4869  ;;  %4879 = vpow2.f32 %v2258_v46  ;;  %v10073_v33 = vld [vmem:[#allocation109_spill] sm:$0xff]  ;;  %v10078_v22 = vld [vmem:[#allocation106_spill] sm:$0xff] }
 0x3c1   :  { %v4872_v41 = vpop.eup %4871  ;;  %v2187_v17 = vsub.f32 %v10074_v13, %v10073_v33  ;;  %v3332_v30 = vld [vmem:[#allocation3 + $0x18] sm:$0xff]  ;;  %3140 = vst.msk [vmem:[#allocation3 + $0x30] sm:$0xff] %vm38_vm13, %v3076_v52  ;;  %v2371_v0 = vmul.f32 %v4870_v14, %v2115_v44  ;;  %v2268_v25 = vmul.f32 1.442695, %v2189_v6 }
 0x3c2   :  { %v3521_v28 = vadd.f32 %v5233_v61, %v3394_v51  ;;  %4881 = vlog2.f32 %v3332_v30  ;;  %v2373_v39 = vmul.f32 %v4872_v41, %v2117_v62  ;;  %v4874_v26 = vpop.eup %4873  ;;  %v2953_v51 = vpop.xlane.xlu2 %2952  ;;  %v2260_v61 = vmul.f32 1.442695, %v2185_v3  ;;  %v10077_v52 = vld [vmem:[#allocation164_spill] sm:$0xff] }
 0x3c3   :  { %v2957_v45 = vpop.xlane.xlu0 %2956  ;;  %v3075_v23 = vadd.f32 %v2953_v51, %v2371_v0  ;;  %4883 = vpow2.f32 %v2262_v32  ;;  %v2264_v33 = vmul.f32 1.442695, %v2187_v17  ;;  %v3331_v41 = vld [vmem:[#allocation3 + $0x10] sm:$0xff]  ;;  %v2375_v62 = vmul.f32 %v4874_v26, %v2119_v37  ;;  %v2118_v0 = vld [vmem:[#allocation3 + $0x40] sm:$0xff] }
 0x3c4   :  { %v4876_v11 = vpop.eup %4875  ;;  %v3649_v46 = vsub.f32 %v5234_v53, %v3521_v28  ;;  %v3077_v8 = vadd.f32 %v2957_v45, %v2373_v39  ;;  %2637 = vperm.xlu1 %4783, %v10077_v52   ;;  %v2188_v3 = vsub.f32 %v10079_v24, %v10078_v22  ;;  %v5235_v28 = vld [vmem:[#allocation2 + $0x8] sm:$0xff]  ;;  %v2120_v17 = vld [vmem:[#allocation3 + $0x50] sm:$0xff] }
 0x3c5   :  { %v3396_v13 = vmul.f32 0.6931472, %v4876_v11  ;;  %v3333_v30 = vld [vmem:[#allocation3 + $0x20] sm:$0xff]  ;;  %v4878_v14 = vpop.eup %4877  ;;  %3139 = vst.msk [vmem:[#allocation3 + $0x28] sm:$0xff] %vm38_vm13, %v3075_v23  ;;  %v10082_v26 = vld [vmem:[#allocation115_spill] sm:$0xff] }
 0x3c6   :  { %4885 = vlog2.f32 %v3333_v30  ;;  %3141 = vst.msk [vmem:[#allocation3 + $0x38] sm:$0xff] %vm38_vm13, %v3077_v8  ;;  %v4880_v44 = vpop.eup %4879  ;;  %v2961_v32 = vpop.xlane.xlu1 %2960  ;;  %v10080_v51 = vld [vmem:[#allocation90_spill] sm:$0xff]  ;;  %2672 = vperm.xlu0 %4782, %v7828_v55   ;;  %v2266_v24 = vmul.f32 1.442695, %v2188_v3 }
 0x3c7   :  { %v3522_v39 = vadd.f32 %v5235_v28, %v3396_v13  ;;  %4887 = vlog2.f32 %v3331_v41  ;;  %vm10081_vm1 = vcmp.ne.s32.totalorder %v10080_v51, 0  ;;  %v3079_v8 = vadd.f32 %v2961_v32, %v2375_v62  ;;  %v10083_v37 = vld [vmem:[#allocation114_spill] sm:$0xff] }
 0x3c8   :  { %v4882_v45 = vpop.eup %4881  ;;  %4889 = vpow2.f32 %v2260_v61  ;;  %v3777_v11 = vsel %vm10081_vm1, %v3649_v46, 0.0  ;;  %v2190_v6 = vsub.f32 %v10083_v37, %v10082_v26  ;;  %v5236_v53 = vld [vmem:[#allocation4 + $0x8] sm:$0xff]  ;;  %v2376_v23 = vmul.f32 %v4880_v44, %v2120_v17  ;;  %v10084_v46 = vld [vmem:[#allocation157_spill] sm:$0xff] }
 0x3c9   :  { %4891 = vpow2.f32 %v2264_v33  ;;  %v3650_v13 = vsub.f32 %v5236_v53, %v3522_v39  ;;  %v3400_v30 = vmul.f32 0.6931472, %v4882_v45  ;;  %3143 = vst.msk [vmem:[#allocation3 + $0x48] sm:$0xff] %vm38_vm13, %v3079_v8  ;;  %v2374_v41 = vmul.f32 %v4878_v14, %v2118_v0  ;;  %v4884_v22 = vpop.eup %4883  ;;  %v2122_v32 = vld [vmem:[#allocation3 + $0x60] sm:$0xff]  ;;  %v5237_v39 = vld [vmem:[#allocation2 + $0x18] sm:$0xff]  ;;  %v10087_v17 = vld [vmem:[#allocation111_spill] sm:$0xff] }
 0x3ca   :  { %4893 = vpow2.f32 %v2268_v25  ;;  %v3841_v61 = vsel %vm38_vm13, %v3777_v11, 0.0  ;;  %vm10085_vm9 = vcmp.ne.s32.totalorder %v10084_v46, 0  ;;  %v2959_v33 = vpop.xlane.xlu2 %2958  ;;  %v10086_v14 = vld [vmem:[#allocation113_spill] sm:$0xff]  ;;  %v2270_v25 = vmul.f32 1.442695, %v2190_v6  ;;  %v10088_v53 = vld [vmem:[#allocation183_spill] sm:$0xff] }
 0x3cb   :  { %v3778_v62 = vsel %vm10085_vm9, %v3650_v13, 0.0  ;;  %v2963_v28 = vpop.xlane.xlu0 %2962  ;;  %v3524_v45 = vadd.f32 %v5237_v39, %v3400_v30  ;;  %v3078_v8 = vadd.f32 %v2959_v33, %v2374_v41  ;;  %v2192_v3 = vsub.f32 %v10087_v17, %v10086_v14  ;;  %v2123_v33 = vld [vmem:[#allocation3 + $0x68] sm:$0xff]  ;;  %v2121_v6 = vld [vmem:[#allocation3 + $0x58] sm:$0xff]  ;;  %v5241_v17 = vld [vmem:[#allocation4 + $0x20] sm:$0xff] }
 0x3cc   :  { %v4886_v51 = vpop.eup %4885  ;;  %v3842_v26 = vsel %vm38_vm13, %v3778_v62, 0.0  ;;  %v3080_v37 = vadd.f32 %v2963_v28, %v2376_v23  ;;  %2652 = vperm.xlu1 %4783, %v10088_v53   ;;  %v2378_v47 = vmul.f32 %v4884_v22, %v2122_v32  ;;  %v10089_v62 = vld [vmem:[#allocation112_spill] sm:$0xff]  ;;  %v5238_v23 = vld [vmem:[#allocation2 + $0x20] sm:$0xff]  ;;  %4895 = vpow2.f32 %v2266_v24 }
 0x3cd   :  { %v4888_v44 = vpop.eup %4887  ;;  %v3843_v0 = vadd.f32 %v3842_v26, %v3841_v61  ;;  %v3402_v11 = vmul.f32 0.6931472, %v4886_v51  ;;  %v2191_v30 = vsub.f32 %v10090_v48, %v10089_v62  ;;  %3142 = vst.msk [vmem:[#allocation3 + $0x40] sm:$0xff] %vm38_vm13, %v3078_v8  ;;  %v5239_v61 = vld [vmem:[#allocation4 + $0x18] sm:$0xff]  ;;  %v5240_v26 = vld [vmem:[#allocation2 + $0x10] sm:$0xff]  ;;  %4897 = vpow2.f32 %v2270_v25 }
 0x3ce   :  { %v4890_v13 = vpop.eup %4889  ;;  %v3398_v46 = vmul.f32 0.6931472, %v4888_v44  ;;  %3144 = vst.msk [vmem:[#allocation3 + $0x50] sm:$0xff] %vm38_vm13, %v3080_v37  ;;  %v2967_v28 = vpop.xlane.xlu1 %2966  ;;  %v3652_v51 = vsub.f32 %v5239_v61, %v3524_v45  ;;  %2682 = vperm.xlu0 %4782, %v7992_v7   ;;  %v2274_v32 = vmul.f32 1.442695, %v2192_v3  ;;  %v10091_v37 = vld [vmem:[#allocation117_spill] sm:$0xff] }
 0x3cf   :  { %v4892_v42 = vpop.eup %4891  ;;  %v3525_v41 = vadd.f32 %v5238_v23, %v3402_v11  ;;  %v3082_v44 = vadd.f32 %v2967_v28, %v2378_v47  ;;  %v10092_v48 = vld [vmem:[#allocation116_spill] sm:$0xff]  ;;  %v2377_v23 = vmul.f32 %v4890_v13, %v2121_v6  ;;  %v2272_v45 = vmul.f32 1.442695, %v2191_v30  ;;  %v10095_v3 = vld [vmem:[#allocation155_spill] sm:$0xff] }
 0x3d0   :  { %v3523_v39 = vadd.f32 %v5240_v26, %v3398_v46  ;;  %v4894_v22 = vpop.eup %4893  ;;  %v2193_v14 = vsub.f32 %v10092_v48, %v10091_v37  ;;  %v5242_v8 = vld [vmem:[#allocation4 + $0x10] sm:$0xff]  ;;  %v2379_v24 = vmul.f32 %v4892_v42, %v2123_v33  ;;  %v2125_v47 = vld [vmem:[#allocation3 + $0x78] sm:$0xff]  ;;  %vm10096_vm5 = vcmp.ne.s32.totalorder %v10095_v3, 0 }
 0x3d1   :  { %v3653_v11 = vsub.f32 %v5241_v17, %v3525_v41  ;;  %3146 = vst.msk [vmem:[#allocation3 + $0x60] sm:$0xff] %vm38_vm13, %v3082_v44  ;;  %v10093_v28 = vld [vmem:[#allocation156_spill] sm:$0xff]  ;;  %4899 = vpow2.f32 %v2274_v32  ;;  %v10098_v30 = vld [vmem:[#allocation91_spill] sm:$0xff] }
 0x3d2   :  { %v3651_v62 = vsub.f32 %v5242_v8, %v3523_v39  ;;  %v2965_v46 = vpop.xlane.xlu2 %2964  ;;  %vm10094_vm7 = vcmp.ne.s32.totalorder %v10093_v28, 0  ;;  %v2276_v41 = vmul.f32 1.442695, %v2193_v14  ;;  %v10097_v39 = vld [vmem:[#allocation119_spill] sm:$0xff]  ;;  %v4896_v13 = vpop.eup %4895  ;;  %vm10099_vm4 = vcmp.ne.s32.totalorder %v10098_v30, 0  ;;  %v2126_v14 = vld [vmem:[#allocation3 + $0x80] sm:$0xff] }
 0x3d3   :  { %v2969_v61 = vpop.xlane.xlu0 %2968  ;;  %v3780_v26 = vsel %vm10094_vm7, %v3652_v51, 0.0  ;;  %v3081_v37 = vadd.f32 %v2965_v46, %v2377_v23  ;;  %v2195_v48 = vsub.f32 %v10097_v39, %v7270_v27  ;;  %v3781_v33 = vsel %vm10099_vm4, %v3653_v11, 0.0  ;;  %v4898_v44 = vpop.eup %4897  ;;  %v2124_v27 = vld [vmem:[#allocation3 + $0x70] sm:$0xff] }
 0x3d4   :  { %v3779_v25 = vsel %vm10096_vm5, %v3651_v62, 0.0  ;;  %v3083_v36 = vadd.f32 %v2969_v61, %v2379_v24  ;;  %2667 = vperm.xlu1 %4783, %v7825_v20   ;;  %v2381_v51 = vmul.f32 %v4894_v22, %v2125_v47  ;;  %v3846_v17 = vsel %vm38_vm13, %v3780_v26, 0.0  ;;  %v2128_v28 = vld [vmem:[#allocation3 + $0x90] sm:$0xff]  ;;  %v10101_v26 = vld [vmem:[#allocation118_spill] sm:$0xff] }
 0x3d5   :  { %v3844_v42 = vsel %vm38_vm13, %v3779_v25, 0.0  ;;  %3145 = vst.msk [vmem:[#allocation3 + $0x58] sm:$0xff] %vm38_vm13, %v3081_v37  ;;  %4901 = vpow2.f32 %v2272_v45  ;;  %v2280_v24 = vmul.f32 1.442695, %v2195_v48  ;;  %v2382_v23 = vmul.f32 %v4898_v44, %v2126_v14  ;;  %v10102_v3 = vld [vmem:[#allocation120_spill] sm:$0xff]  ;;  %v10104_v48 = vld [vmem:[#allocation123_spill] sm:$0xff] }
 0x3d6   :  { %v3845_v6 = vadd.f32 %v3844_v42, %v3843_v0  ;;  %3147 = vst.msk [vmem:[#allocation3 + $0x68] sm:$0xff] %vm38_vm13, %v3083_v36  ;;  %v2973_v32 = vpop.xlane.xlu1 %2972  ;;  %2707 = vperm.xlu0 %4782, %v8264_v29   ;;  %4903 = vpow2.f32 %v2276_v41  ;;  %v10100_v0 = vld [vmem:[#allocation121_spill] sm:$0xff]  ;;  %v3848_v36 = vsel %vm38_vm13, %v3781_v33, 0.0  ;;  %v2380_v61 = vmul.f32 %v4896_v13, %v2124_v27  ;;  %v2127_v44 = vld [vmem:[#allocation3 + $0x88] sm:$0xff] }
 0x3d7   :  { %v3085_v62 = vadd.f32 %v2973_v32, %v2381_v51  ;;  %v2196_v11 = vsub.f32 %v10100_v0, %v7281_v57  ;;  %v4900_v46 = vpop.eup %4899  ;;  %v10103_v25 = vsub.f32 %v10101_v26, %v10102_v3  ;;  %4905 = vpow2.f32 %v2280_v24  ;;  %v2129_v51 = vld [vmem:[#allocation3 + $0x98] sm:$0xff]  ;;  %v2131_v24 = vld [vmem:[#allocation3 + $0xa8] sm:$0xff] }
 0x3d8   :  { %v3847_v8 = vadd.f32 %v3846_v17, %v3845_v6  ;;  %v2198_v42 = vsub.f32 %v10104_v48, %v7293_v21  ;;  %v2384_v13 = vmul.f32 %v4900_v46, %v2128_v28  ;;  %v10105_v0 = vld [vmem:[#allocation130_spill] sm:$0xff]  ;;  %v10110_v26 = vld [vmem:[#allocation132_spill] sm:$0xff]  ;;  %v10111_v3 = vld [vmem:[#allocation131_spill] sm:$0xff] }
 0x3d9   :  { %3149 = vst.msk [vmem:[#allocation3 + $0x78] sm:$0xff] %vm38_vm13, %v3085_v62  ;;  %v2278_v37 = vmul.f32 1.442695, %v10103_v25  ;;  %v2282_v57 = vmul.f32 1.442695, %v2196_v11  ;;  %v10106_v11 = vld [vmem:[#allocation128_spill] sm:$0xff]  ;;  %v2202_v25 = vsub.f32 %v10111_v3, %v10110_v26 }
 0x3da   :  { %v8897_v22 = vadd.f32 %v3848_v36, %v3847_v8  ;;  %v2971_v45 = vpop.xlane.xlu2 %2970  ;;  %v2286_v32 = vmul.f32 1.442695, %v2198_v42  ;;  %v2201_v36 = vsub.f32 %v10106_v11, %v10105_v0  ;;  %v10107_v46 = vld [vmem:[#allocation122_spill] sm:$0xff]  ;;  %v2132_v42 = vld [vmem:[#allocation3 + $0xb0] sm:$0xff]  ;;  %v2133_v3 = vld [vmem:[#allocation3 + $0xb8] sm:$0xff] }
 0x3db   :  { %v2975_v47 = vpop.xlane.xlu0 %2974  ;;  %v3084_v39 = vadd.f32 %v2971_v45, %v2380_v61  ;;  %v4902_v30 = vpop.eup %4901  ;;  %4907 = vpow2.f32 %v2278_v37  ;;  %v10112_v37 = vld [vmem:[#allocation219_spill] sm:$0xff] }
 0x3dc   :  { %v3086_v41 = vadd.f32 %v2975_v47, %v2382_v23  ;;  %2687 = vperm.xlu1 %4783, %v7995_v34   ;;  %v4904_v33 = vpop.eup %4903  ;;  %4909 = vpow2.f32 %v2282_v57  ;;  %v2383_v14 = vmul.f32 %v4902_v30, %v2127_v44  ;;  %v10108_v47 = vld [vmem:[#allocation124_spill] sm:$0xff]  ;;  %v2130_v30 = vld [vmem:[#allocation3 + $0xa0] sm:$0xff] }
 0x3dd   :  { %3148 = vst.msk [vmem:[#allocation3 + $0x70] sm:$0xff] %vm38_vm13, %v3084_v39  ;;  %v2385_v21 = vmul.f32 %v4904_v33, %v2129_v51  ;;  %v4906_v27 = vpop.eup %4905  ;;  %v10109_v45 = vsub.f32 %v10107_v46, %v10108_v47  ;;  %4911 = vpow2.f32 %v2286_v32  ;;  %v10114_v51 = vld [vmem:[#allocation126_spill] sm:$0xff]  ;;  %v10115_v44 = vld [vmem:[#allocation125_spill] sm:$0xff]  ;;  %v2294_v32 = vmul.f32 1.442695, %v2202_v25  ;;  %v10118_v47 = vld [vmem:[#allocation235_spill] sm:$0xff] }
 0x3de   :  { %3150 = vst.msk [vmem:[#allocation3 + $0x80] sm:$0xff] %vm38_vm13, %v3086_v41  ;;  %v2979_v6 = vpop.xlane.xlu1 %2978  ;;  %2712 = vperm.xlu0 %4782, %v8333_v15   ;;  %v2387_v39 = vmul.f32 %v4906_v27, %v2131_v24  ;;  %v2134_v24 = vld [vmem:[#allocation3 + $0xc0] sm:$0xff] }
 0x3df   :  { %v3088_v17 = vadd.f32 %v2979_v6, %v2384_v13  ;;  %v2284_v28 = vmul.f32 1.442695, %v10109_v45  ;;  %v2292_v13 = vmul.f32 1.442695, %v2201_v36  ;;  %v10113_v6 = vld [vmem:[#allocation231_spill] sm:$0xff] }
 0x3e1   :  { %3152 = vst.msk [vmem:[#allocation3 + $0x90] sm:$0xff] %vm38_vm13, %v3088_v17  ;;  %v4908_v41 = vpop.eup %4907  ;;  %4913 = vpow2.f32 %v2284_v28  ;;  %v2199_v17 = vsub.f32 %v10115_v44, %v10114_v51  ;;  %v10120_v51 = vld [vmem:[#allocation137_spill] sm:$0xff] }
 0x3e2   :  { %v2977_v62 = vpop.xlane.xlu2 %2976  ;;  %v4910_v57 = vpop.eup %4909  ;;  %4915 = vpow2.f32 %v2292_v13  ;;  %v2138_v13 = vld [vmem:[#allocation3 + $0xe0] sm:$0xff] }
 0x3e3   :  { %v2981_v8 = vpop.xlane.xlu0 %2980  ;;  %v3087_v61 = vadd.f32 %v2977_v62, %v2383_v14  ;;  %v2386_v14 = vmul.f32 %v4908_v41, %v2130_v30  ;;  %v4912_v27 = vpop.eup %4911  ;;  %v2288_v36 = vmul.f32 1.442695, %v2199_v17  ;;  %4917 = vpow2.f32 %v2294_v32  ;;  %v2137_v30 = vld [vmem:[#allocation3 + $0xd8] sm:$0xff]  ;;  %v10121_v32 = vld [vmem:[#allocation127_spill] sm:$0xff] }
 0x3e4   :  { %v3089_v23 = vadd.f32 %v2981_v8, %v2385_v21  ;;  %2697 = vperm.xlu1 %4783, %v10112_v37   ;;  %v2388_v21 = vmul.f32 %v4910_v57, %v2132_v42  ;;  %v2390_v45 = vmul.f32 %v4912_v27, %v2134_v24 }
 0x3e5   :  { %3151 = vst.msk [vmem:[#allocation3 + $0x88] sm:$0xff] %vm38_vm13, %v3087_v61  ;;  %v10117_v61 = vld [vmem:[#allocation134_spill] sm:$0xff]  ;;  %4919 = vpow2.f32 %v2288_v36 }
 0x3e6   :  { %3153 = vst.msk [vmem:[#allocation3 + $0x98] sm:$0xff] %vm38_vm13, %v3089_v23  ;;  %v2985_v48 = vpop.xlane.xlu1 %2984  ;;  %2717 = vperm.xlu0 %4782, %v10113_v6   ;;  %v10116_v23 = vld [vmem:[#allocation136_spill] sm:$0xff] }
 0x3e7   :  { %v3091_v33 = vadd.f32 %v2985_v48, %v2387_v39  ;;  %v2204_v46 = vsub.f32 %v10117_v61, %v10116_v23  ;;  %v4914_v28 = vpop.eup %4913 }
 0x3e8   :  { %v4916_v39 = vpop.eup %4915  ;;  %v2389_v57 = vmul.f32 %v4914_v28, %v2133_v3 }
 0x3e9   :  { %3155 = vst.msk [vmem:[#allocation3 + $0xa8] sm:$0xff] %vm38_vm13, %v3091_v33  ;;  %v2298_v41 = vmul.f32 1.442695, %v2204_v46  ;;  %v4918_v48 = vpop.eup %4917  ;;  %v10119_v33 = vld [vmem:[#allocation138_spill] sm:$0xff] }
 0x3ea   :  { %v2983_v62 = vpop.xlane.xlu2 %2982  ;;  %v2205_v44 = vsub.f32 %v10120_v51, %v10119_v33  ;;  %v2135_v46 = vld [vmem:[#allocation3 + $0xc8] sm:$0xff]  ;;  %v10129_v51 = vld [vmem:[#allocation144_spill] sm:$0xff] }
 0x3eb   :  { %v2987_v8 = vpop.xlane.xlu0 %2986  ;;  %v3090_v11 = vadd.f32 %v2983_v62, %v2386_v14  ;;  %4921 = vpow2.f32 %v2298_v41  ;;  %v10125_v62 = vld [vmem:[#allocation140_spill] sm:$0xff]  ;;  %v4920_v36 = vpop.eup %4919 }
 0x3ec   :  { %v3092_v0 = vadd.f32 %v2987_v8, %v2388_v21  ;;  %2722 = vperm.xlu1 %4783, %v10118_v47   ;;  %v10122_v21 = vld [vmem:[#allocation129_spill] sm:$0xff]  ;;  %v10124_v8 = vld [vmem:[#allocation142_spill] sm:$0xff] }
 0x3ed   :  { %3154 = vst.msk [vmem:[#allocation3 + $0xa0] sm:$0xff] %vm38_vm13, %v3090_v11  ;;  %v10123_v14 = vsub.f32 %v10121_v32, %v10122_v21  ;;  %v2207_v24 = vsub.f32 %v10125_v62, %v10124_v8  ;;  %v2394_v11 = vmul.f32 %v4918_v48, %v2138_v13  ;;  %v10126_v48 = vld [vmem:[#allocation133_spill] sm:$0xff] }
 0x3ee   :  { %3156 = vst.msk [vmem:[#allocation3 + $0xb0] sm:$0xff] %vm38_vm13, %v3092_v0  ;;  %v2991_v26 = vpop.xlane.xlu1 %2990  ;;  %2737 = vperm.xlu0 %4782, %v8614_v40   ;;  %v2393_v0 = vmul.f32 %v4916_v39, %v2137_v30  ;;  %v10127_v30 = vld [vmem:[#allocation135_spill] sm:$0xff] }
 0x3ef   :  { %v3094_v25 = vadd.f32 %v2991_v26, %v2390_v45  ;;  %v2290_v27 = vmul.f32 1.442695, %v10123_v14  ;;  %v2300_v45 = vmul.f32 1.442695, %v2205_v44  ;;  %v2304_v3 = vmul.f32 1.442695, %v2207_v24 }
 0x3f0   :  { %v10128_v13 = vsub.f32 %v10126_v48, %v10127_v30  ;;  %v10130_v44 = vld [vmem:[#allocation143_spill] sm:$0xff] }
 0x3f1   :  { %3158 = vst.msk [vmem:[#allocation3 + $0xc0] sm:$0xff] %vm38_vm13, %v3094_v25  ;;  %4923 = vpow2.f32 %v2290_v27  ;;  %v2391_v25 = vmul.f32 %v4920_v36, %v2135_v46  ;;  %v4922_v41 = vpop.eup %4921  ;;  %v2136_v27 = vld [vmem:[#allocation3 + $0xd0] sm:$0xff]  ;;  %v2139_v48 = vld [vmem:[#allocation3 + $0xe8] sm:$0xff] }
 0x3f2   :  { %v2989_v42 = vpop.xlane.xlu2 %2988  ;;  %4925 = vpow2.f32 %v2300_v45  ;;  %v2296_v33 = vmul.f32 1.442695, %v10128_v13  ;;  %v10131_v45 = vld [vmem:[#allocation139_spill] sm:$0xff] }
 0x3f3   :  { %v3093_v17 = vadd.f32 %v2989_v42, %v2389_v57  ;;  %v2140_v42 = vld [vmem:[#allocation3 + $0xf0] sm:$0xff]  ;;  %4927 = vpow2.f32 %v2304_v3 }
 0x3f4   :  { %2742 = vperm.xlu1 %4783, %v8664_v56   ;;  %v2396_v32 = vmul.f32 %v4922_v41, %v2140_v42  ;;  %4929 = vpow2.f32 %v2296_v33 }
 0x3f5   :  { %3157 = vst.msk [vmem:[#allocation3 + $0xb8] sm:$0xff] %vm38_vm13, %v3093_v17  ;;  %v2997_v23 = vpop.xlane.xlu0 %2996  ;;  %v2208_v17 = vsub.f32 %v10130_v44, %v10129_v51 }
 0x3f6   :  { %v2999_v61 = vpop.xlane.xlu1 %2998  ;;  %v3097_v28 = vadd.f32 %v2997_v23, %v2393_v0  ;;  %v2143_v23 = vld [vmem:[#allocation3 + $0x108] sm:$0xff] }
 0x3f7   :  { %v3098_v26 = vadd.f32 %v2999_v61, %v2394_v11  ;;  %v4924_v21 = vpop.eup %4923  ;;  %v2306_v62 = vmul.f32 1.442695, %v2208_v17  ;;  %v2141_v61 = vld [vmem:[#allocation3 + $0xf8] sm:$0xff]  ;;  %v2144_v17 = vld [vmem:[#allocation3 + $0x110] sm:$0xff] }
 0x3f8   :  { %3161 = vst.msk [vmem:[#allocation3 + $0xd8] sm:$0xff] %vm38_vm13, %v3097_v28  ;;  %v4926_v24 = vpop.eup %4925  ;;  %v2392_v0 = vmul.f32 %v4924_v21, %v2136_v27  ;;  %v10132_v28 = vld [vmem:[#allocation141_spill] sm:$0xff] }
 0x3f9   :  { %3162 = vst.msk [vmem:[#allocation3 + $0xe0] sm:$0xff] %vm38_vm13, %v3098_v26  ;;  %v4928_v11 = vpop.eup %4927  ;;  %v10133_v26 = vsub.f32 %v10131_v45, %v10132_v28  ;;  %4931 = vpow2.f32 %v2306_v62  ;;  %v2397_v41 = vmul.f32 %v4926_v24, %v2141_v61  ;;  %v10135_v28 = vld [vmem:[#allocation37_spill] sm:$0xff] }
 0x3fa   :  { %v2993_v57 = vpop.xlane.xlu2 %2992 }
 0x3fb   :  { %v3095_v39 = vadd.f32 %v2993_v57, %v2391_v25  ;;  %v2302_v3 = vmul.f32 1.442695, %v10133_v26  ;;  %v2399_v25 = vmul.f32 %v4928_v11, %v2143_v23  ;;  %v4930_v57 = vpop.eup %4929  ;;  %v10134_v23 = vld [vmem:[#allocation31_spill] sm:$0xff] }
 0x3fc   :  { %v2395_v33 = vmul.f32 %v4930_v57, %v2139_v48  ;;  %v10136_v57 = vld [vmem:[#allocation33_spill] sm:$0xff]  ;;  %v10137_v48 = vld [vmem:[#allocation32_spill] sm:$0xff] }
 0x3fd   :  { %3159 = vst.msk [vmem:[#allocation3 + $0xc8] sm:$0xff] %vm38_vm13, %v3095_v39  ;;  %4933 = vpow2.f32 %v2302_v3 }
 0x3fe   :  { %v3003_v14 = vpop.xlane.xlu1 %3002 }
 0x3ff   :  { %v3100_v8 = vadd.f32 %v3003_v14, %v2396_v32  ;;  %v4932_v51 = vpop.eup %4931 }
 0x400   :  { %v2400_v21 = vmul.f32 %v4932_v51, %v2144_v17 }
 0x401   :  { %3164 = vst.msk [vmem:[#allocation3 + $0xf0] sm:$0xff] %vm38_vm13, %v3100_v8  ;;  %v2142_v8 = vld [vmem:[#allocation3 + $0x100] sm:$0xff] }
 0x402   :  { %v2995_v36 = vpop.xlane.xlu2 %2994 }
 0x403   :  { %v3096_v46 = vadd.f32 %v2995_v36, %v2392_v0  ;;  %v4934_v14 = vpop.eup %4933 }
 0x404   :  { %v2398_v24 = vmul.f32 %v4934_v14, %v2142_v8  ;;  %v10139_v8 = vld [vmem:[#allocation41_spill] sm:$0xff] }
 0x405   :  { %3160 = vst.msk [vmem:[#allocation3 + $0xd0] sm:$0xff] %vm38_vm13, %v3096_v46  ;;  %v3009_v42 = vpop.xlane.xlu0 %3008 }
 0x406   :  { %v3005_v39 = vpop.xlane.xlu1 %3004  ;;  %v3103_v30 = vadd.f32 %v3009_v42, %v2399_v25 }
 0x407   :  { %v3101_v13 = vadd.f32 %v3005_v39, %v2397_v41 }
 0x408   :  { %3167 = vst.msk [vmem:[#allocation3 + $0x108] sm:$0xff] %vm38_vm13, %v3103_v30  ;;  %v2787_v30 = vsub.f32 %v10137_v48, %v8829_v12  ;;  %v10140_v12 = vld [vmem:[#allocation39_spill] sm:$0xff] }
 0x409   :  { %3165 = vst.msk [vmem:[#allocation3 + $0xf8] sm:$0xff] %vm38_vm13, %v3101_v13  ;;  %v10144_v48 = vld [vmem:[#allocation191_spill] sm:$0xff] }
 0x40a   :  { %v3001_v44 = vpop.xlane.xlu2 %3000 }
 0x40b   :  { %v3099_v32 = vadd.f32 %v3001_v44, %v2395_v33  ;;  %v2888_v33 = vmul.f32 1.442695, %v2787_v30  ;;  %v10138_v44 = vld [vmem:[#allocation36_spill] sm:$0xff] }
 0x40d   :  { %3163 = vst.msk [vmem:[#allocation3 + $0xe8] sm:$0xff] %vm38_vm13, %v3099_v32 }
 0x40e   :  { %v3011_v27 = vpop.xlane.xlu1 %3010 }
 0x40f   :  { %v3104_v62 = vadd.f32 %v3011_v27, %v2400_v21 }
 0x411   :  { %3168 = vst.msk [vmem:[#allocation3 + $0x110] sm:$0xff] %vm38_vm13, %v3104_v62 }
 0x412   :  { %v3007_v0 = vpop.xlane.xlu2 %3006 }
 0x413   :  { %v3102_v11 = vadd.f32 %v3007_v0, %v2398_v24 }
 0x415   :  { %3166 = vst.msk [vmem:[#allocation3 + $0x100] sm:$0xff] %vm38_vm13, %v3102_v11 }
 0x418   :  { %v2613_v36 = vpop.permute.xlu0 %2612 }
 0x419   :  { %v2786_v61 = vsub.f32 %v10134_v23, %v2613_v36 }
 0x41b   :  { %v2886_v46 = vmul.f32 1.442695, %v2786_v61 }
 0x41d   :  { %4935 = vpow2.f32 %v2886_v46  ;;  %v10141_v46 = vld [vmem:[#allocation43_spill] sm:$0xff] }
 0x420   :  { %v2628_v45 = vpop.permute.xlu0 %2627 }
 0x421   :  { %v2789_v26 = vsub.f32 %v10135_v28, %v2628_v45 }
 0x423   :  { %v4936_v3 = vpop.eup %4935  ;;  %v2892_v25 = vmul.f32 1.442695, %v2789_v26 }
 0x424   :  { %3014 = vadd.xlane.f32.xlu0 %v4936_v3 }
 0x425   :  { %4937 = vpow2.f32 %v2892_v25 }
 0x426   :  { %v2608_v41 = vpop.permute.xlu1 %2607 }
 0x427   :  { %v2785_v42 = vsub.f32 %v10136_v57, %v2608_v41  ;;  %v10142_v41 = vld [vmem:[#allocation158_spill] sm:$0xff] }
 0x428   :  { %v2643_v27 = vpop.permute.xlu0 %2642 }
 0x429   :  { %v2884_v39 = vmul.f32 1.442695, %v2785_v42  ;;  %v2792_v36 = vsub.f32 %v10140_v12, %v2643_v27  ;;  %v10143_v42 = vld [vmem:[#allocation177_spill] sm:$0xff] }
 0x42b   :  { %4939 = vpow2.f32 %v2884_v39  ;;  %v4938_v13 = vpop.eup %4937  ;;  %v2898_v23 = vmul.f32 1.442695, %v2792_v36 }
 0x42c   :  { %3020 = vadd.xlane.f32.xlu0 %v4938_v13  ;;  %4941 = vpow2.f32 %v2888_v33  ;;  %v10145_v13 = vld [vmem:[#allocation202_spill] sm:$0xff] }
 0x42e   :  { %v2623_v51 = vpop.permute.xlu1 %2622 }
 0x42f   :  { %v2788_v17 = vsub.f32 %v10138_v44, %v2623_v51  ;;  %v10146_v51 = vld [vmem:[#allocation213_spill] sm:$0xff]  ;;  %v10147_v44 = vld [vmem:[#allocation220_spill] sm:$0xff] }
 0x430   :  { %v8968_v57 = vpop.permute.xlu0 %2657 }
 0x431   :  { %v4940_v32 = vpop.eup %4939  ;;  %v2890_v21 = vmul.f32 1.442695, %v2788_v17 }
 0x432   :  { %3012 = vadd.xlane.f32.xlu2 %v4940_v32  ;;  %v4942_v24 = vpop.eup %4941 }
 0x433   :  { %4943 = vpow2.f32 %v2890_v21  ;;  %v10148_v21 = vld [vmem:[#allocation240_spill] sm:$0xff] }
 0x436   :  { %v2638_v14 = vpop.permute.xlu1 %2637 }
 0x437   :  { %v2791_v62 = vsub.f32 %v10139_v8, %v2638_v14  ;;  %v10149_v14 = vld [vmem:[#allocation146_spill] sm:$0xff] }
 0x438   :  { %v8971_v39 = vpop.permute.xlu0 %2672  ;;  %v2210_v27 = vsub.f32 %v10149_v14, %v10049_v43  ;;  %v10151_v43 = vld [vmem:[#allocation145_spill] sm:$0xff] }
 0x439   :  { %v4944_v0 = vpop.eup %4943  ;;  %v2896_v11 = vmul.f32 1.442695, %v2791_v62  ;;  %v10152_v14 = vld [vmem:[#allocation149_spill] sm:$0xff] }
 0x43a   :  { %3018 = vadd.xlane.f32.xlu1 %v4944_v0  ;;  %3016 = vadd.xlane.f32.xlu2 %v4942_v24  ;;  %v2310_v24 = vmul.f32 1.442695, %v2210_v27  ;;  %v10150_v0 = vld [vmem:[#allocation151_spill] sm:$0xff]  ;;  %v10153_v27 = vld [vmem:[#allocation150_spill] sm:$0xff] }
 0x43b   :  { %4945 = vpow2.f32 %v2896_v11  ;;  %v2213_v11 = vsub.f32 %v10150_v0, %v10056_v4  ;;  %v2211_v4 = vsub.f32 %v10152_v14, %v7406_v38  ;;  %v10154_v38 = vld [vmem:[#allocation159_spill] sm:$0xff] }
 0x43c   :  { %4947 = vpow2.f32 %v2898_v23 }
 0x43d   :  { %v2316_v23 = vmul.f32 1.442695, %v2213_v11 }
 0x43e   :  { %v2653_v61 = vpop.permute.xlu1 %2652 }
 0x43f   :  { %v2794_v45 = vsub.f32 %v10141_v46, %v2653_v61  ;;  %v2209_v61 = vsub.f32 %v10151_v43, %v10061_v9  ;;  %v2149_v9 = vld [vmem:[#allocation3 + $0x138] sm:$0xff]  ;;  %v2312_v43 = vmul.f32 1.442695, %v2211_v4 }
 0x440   :  { %v8974_v30 = vpop.permute.xlu0 %2682 }
 0x441   :  { %v4946_v28 = vpop.eup %4945  ;;  %v2902_v26 = vmul.f32 1.442695, %v2794_v45  ;;  %v2146_v45 = vld [vmem:[#allocation3 + $0x120] sm:$0xff] }
 0x442   :  { %3024 = vadd.xlane.f32.xlu0 %v4946_v28  ;;  %v4948_v3 = vpop.eup %4947  ;;  %v2308_v28 = vmul.f32 1.442695, %v2209_v61 }
 0x443   :  { %4949 = vpow2.f32 %v2902_v26 }
 0x444   :  { %4951 = vpow2.f32 %v2310_v24  ;;  %v2212_v24 = vsub.f32 %v10153_v27, %v10069_v58 }
 0x445   :  { %4953 = vpow2.f32 %v2316_v23 }
 0x446   :  { %v8983_v32 = vpop.permute.xlu1 %2667  ;;  %4955 = vpow2.f32 %v2308_v28  ;;  %v2314_v60 = vmul.f32 1.442695, %v2212_v24  ;;  %v2215_v28 = vsub.f32 %v10154_v38, %v10077_v52  ;;  %v10156_v52 = vld [vmem:[#allocation178_spill] sm:$0xff] }
 0x447   :  { %4957 = vpow2.f32 %v2312_v43  ;;  %v10155_v43 = vld [vmem:[#allocation160_spill] sm:$0xff] }
 0x448   :  { %v8977_v33 = vpop.permute.xlu0 %2707  ;;  %4959 = vpow2.f32 %v2314_v60  ;;  %v2320_v27 = vmul.f32 1.442695, %v2215_v28  ;;  %v2216_v60 = vsub.f32 %v10155_v43, %v10064_v19 }
 0x449   :  { %v4950_v25 = vpop.eup %4949 }
 0x44a   :  { %3026 = vadd.xlane.f32.xlu0 %v4948_v3  ;;  %3030 = vadd.xlane.f32.xlu1 %v4950_v25  ;;  %v4952_v46 = vpop.eup %4951  ;;  %4961 = vpow2.f32 %v2320_v27  ;;  %v2322_v38 = vmul.f32 1.442695, %v2216_v60 }
 0x44b   :  { %v2402_v26 = vmul.f32 %v4952_v46, %v2146_v45  ;;  %v4954_v11 = vpop.eup %4953 }
 0x44c   :  { %v2405_v23 = vmul.f32 %v4954_v11, %v2149_v9  ;;  %v4956_v46 = vpop.eup %4955  ;;  %v2148_v11 = vld [vmem:[#allocation3 + $0x130] sm:$0xff]  ;;  %v2147_v9 = vld [vmem:[#allocation3 + $0x128] sm:$0xff]  ;;  %4963 = vpow2.f32 %v2322_v38 }
 0x44d   :  { %v4958_v4 = vpop.eup %4957 }
 0x44e   :  { %v8990_v62 = vpop.permute.xlu1 %2687  ;;  %v4960_v24 = vpop.eup %4959 }
 0x450   :  { %v8981_v17 = vpop.permute.xlu0 %2712 }
 0x452   :  { %2632 = vperm.xlu2 %4784, %v10142_v41  }
 0x456   :  { %v8997_v36 = vpop.permute.xlu1 %2697 }
 0x458   :  { %v8988_v8 = vpop.permute.xlu0 %2717 }
 0x45a   :  { %2647 = vperm.xlu2 %4784, %v10143_v42  }
 0x45e   :  { %v9006_v0 = vpop.permute.xlu1 %2722 }
 0x460   :  { %v8995_v12 = vpop.permute.xlu0 %2737 }
 0x462   :  { %2662 = vperm.xlu2 %4784, %v10144_v48  }
 0x46a   :  { %2677 = vperm.xlu2 %4784, %v10145_v13  }
 0x472   :  { %2692 = vperm.xlu2 %4784, %v10146_v51  }
 0x47a   :  { %2702 = vperm.xlu2 %4784, %v10147_v44  }
 0x482   :  { %2727 = vperm.xlu2 %4784, %v10148_v21  }
 0x48a   :  { %2732 = vperm.xlu2 %4784, %v8533_v16  }
 0x492   :  { %2747 = vperm.xlu2 %4784, %v8667_v1  }
 0x497   :  { %v3015_v3 = vpop.xlane.xlu0 %3014 }
 0x498   :  { %v3106_v25 = vadd.f32 %v3015_v3, %v2402_v26  ;;  %v2145_v26 = vld [vmem:[#allocation3 + $0x118] sm:$0xff]  ;;  %v9012_v3 = vpop.permute.xlu1 %2742 }
 0x499   :  { %v2401_v58 = vmul.f32 %v4956_v46, %v2145_v26  ;;  %v2403_v46 = vmul.f32 %v4958_v4, %v2147_v9 }
 0x49a   :  { %3170 = vst.msk [vmem:[#allocation3 + $0x120] sm:$0xff] %vm38_vm13, %v3106_v25 }
 0x49f   :  { %v3021_v61 = vpop.xlane.xlu0 %3020 }
 0x4a0   :  { %v3109_v45 = vadd.f32 %v3021_v61, %v2405_v23  ;;  %v2218_v23 = vsub.f32 %v10156_v52, %v10088_v53  ;;  %v2404_v61 = vmul.f32 %v4960_v24, %v2148_v11  ;;  %v10157_v24 = vld [vmem:[#allocation35_spill] sm:$0xff] }
 0x4a1   :  { %v2152_v52 = vld [vmem:[#allocation3 + $0x150] sm:$0xff] }
 0x4a2   :  { %3173 = vst.msk [vmem:[#allocation3 + $0x138] sm:$0xff] %vm38_vm13, %v3109_v45 }
 0x4a5   :  { %v3013_v25 = vpop.xlane.xlu2 %3012 }
 0x4a6   :  { %v3105_v14 = vadd.f32 %v3013_v25, %v2401_v58  ;;  %v2326_v25 = vmul.f32 1.442695, %v2218_v23  ;;  %v2154_v23 = vld [vmem:[#allocation3 + $0x160] sm:$0xff] }
 0x4a8   :  { %3169 = vst.msk [vmem:[#allocation3 + $0x118] sm:$0xff] %vm38_vm13, %v3105_v14  ;;  %v4962_v14 = vpop.eup %4961  ;;  %4965 = vpow2.f32 %v2326_v25 }
 0x4a9   :  { %v2407_v19 = vmul.f32 %v4962_v14, %v2151_v50  ;;  %v4964_v11 = vpop.eup %4963 }
 0x4ad   :  { %v3019_v45 = vpop.xlane.xlu1 %3018  ;;  %v3017_v26 = vpop.xlane.xlu2 %3016 }
 0x4ae   :  { %v3108_v58 = vadd.f32 %v3019_v45, %v2404_v61  ;;  %v3107_v28 = vadd.f32 %v3017_v26, %v2403_v46  ;;  %v4966_v60 = vpop.eup %4965  ;;  %v10158_v61 = vld [vmem:[#allocation50_spill] sm:$0xff]  ;;  %v2408_v45 = vmul.f32 %v4964_v11, %v2152_v52  ;;  %v10161_v11 = vld [vmem:[#allocation56_spill] sm:$0xff] }
 0x4af   :  { %v2798_v46 = vsub.f32 %v10158_v61, %v8971_v39  ;;  %v2410_v26 = vmul.f32 %v4966_v60, %v2154_v23  ;;  %v3335_v60 = vld [vmem:[#allocation3 + $0x30] sm:$0xff] }
 0x4b0   :  { %3172 = vst.msk [vmem:[#allocation3 + $0x130] sm:$0xff] %vm38_vm13, %v3108_v58 }
 0x4b1   :  { %3171 = vst.msk [vmem:[#allocation3 + $0x128] sm:$0xff] %vm38_vm13, %v3107_v28  ;;  %v2910_v58 = vmul.f32 1.442695, %v2798_v46  ;;  %v10162_v46 = vld [vmem:[#allocation46_spill] sm:$0xff] }
 0x4b5   :  { %v3025_v27 = vpop.xlane.xlu0 %3024  ;;  %v2633_v43 = vpop.permute.xlu2 %2632 }
 0x4b6   :  { %v3111_v53 = vadd.f32 %v3025_v27, %v2407_v19  ;;  %v2790_v4 = vsub.f32 %v10157_v24, %v2633_v43  ;;  %v10159_v19 = vld [vmem:[#allocation40_spill] sm:$0xff] }
 0x4b7   :  { %v10160_v24 = vld [vmem:[#allocation44_spill] sm:$0xff] }
 0x4b8   :  { %3175 = vst.msk [vmem:[#allocation3 + $0x148] sm:$0xff] %vm38_vm13, %v3111_v53  ;;  %v2894_v9 = vmul.f32 1.442695, %v2790_v4  ;;  %v3334_v53 = vld [vmem:[#allocation3 + $0x28] sm:$0xff]  ;;  %v2795_v4 = vsub.f32 %v10160_v24, %v8968_v57 }
 0x4ba   :  { %4967 = vpow2.f32 %v2894_v9  ;;  %v2801_v9 = vsub.f32 %v10161_v11, %v8990_v62  ;;  %v2904_v52 = vmul.f32 1.442695, %v2795_v4  ;;  %v3337_v62 = vld [vmem:[#allocation3 + $0x40] sm:$0xff]  ;;  %v10164_v4 = vld [vmem:[#allocation52_spill] sm:$0xff] }
 0x4bb   :  { %4969 = vpow2.f32 %v2910_v58  ;;  %v10163_v58 = vld [vmem:[#allocation48_spill] sm:$0xff] }
 0x4bc   :  { %v2916_v23 = vmul.f32 1.442695, %v2801_v9 }
 0x4bd   :  { %v3027_v38 = vpop.xlane.xlu0 %3026  ;;  %v3031_v50 = vpop.xlane.xlu1 %3030 }
 0x4be   :  { %v3112_v28 = vadd.f32 %v3027_v38, %v2408_v45  ;;  %v3114_v25 = vadd.f32 %v3031_v50, %v2410_v26  ;;  %v2648_v14 = vpop.permute.xlu2 %2647 }
 0x4bf   :  { %v2793_v27 = vsub.f32 %v10159_v19, %v2648_v14 }
 0x4c0   :  { %v4968_v43 = vpop.eup %4967  ;;  %3176 = vst.msk [vmem:[#allocation3 + $0x150] sm:$0xff] %vm38_vm13, %v3112_v28  ;;  %v3336_v28 = vld [vmem:[#allocation3 + $0x38] sm:$0xff] }
 0x4c1   :  { %3178 = vst.msk [vmem:[#allocation3 + $0x160] sm:$0xff] %vm38_vm13, %v3114_v25  ;;  %v2900_v39 = vmul.f32 1.442695, %v2793_v27  ;;  %3022 = vadd.xlane.f32.xlu2 %v4968_v43  ;;  %v4970_v26 = vpop.eup %4969  ;;  %v2797_v25 = vsub.f32 %v10163_v58, %v8983_v32  ;;  %v3338_v27 = vld [vmem:[#allocation3 + $0x48] sm:$0xff]  ;;  %v5245_v58 = vld [vmem:[#allocation2 + $0x30] sm:$0xff] }
 0x4c3   :  { %4971 = vpow2.f32 %v2900_v39  ;;  %v2908_v43 = vmul.f32 1.442695, %v2797_v25 }
 0x4c4   :  { %4973 = vlog2.f32 %v3334_v53 }
 0x4c5   :  { %4975 = vlog2.f32 %v3335_v60  ;;  %v5243_v60 = vld [vmem:[#allocation2 + $0x28] sm:$0xff] }
 0x4c6   :  { %v2663_v61 = vpop.permute.xlu2 %2662  ;;  %4977 = vpow2.f32 %v2904_v52 }
 0x4c7   :  { %v2796_v45 = vsub.f32 %v10162_v46, %v2663_v61  ;;  %4979 = vpow2.f32 %v2916_v23  ;;  %v10165_v61 = vld [vmem:[#allocation54_spill] sm:$0xff] }
 0x4c8   :  { %v2800_v46 = vsub.f32 %v10165_v61, %v8974_v30  ;;  %v5247_v61 = vld [vmem:[#allocation2 + $0x38] sm:$0xff] }
 0x4c9   :  { %v4972_v38 = vpop.eup %4971  ;;  %v2906_v57 = vmul.f32 1.442695, %v2796_v45  ;;  %3038 = vadd.xlane.f32.xlu2 %v4970_v26 }
 0x4ca   :  { %v4974_v50 = vpop.eup %4973  ;;  %3028 = vadd.xlane.f32.xlu0 %v4972_v38  ;;  %v3339_v38 = vld [vmem:[#allocation3 + $0x50] sm:$0xff] }
 0x4cb   :  { %4981 = vpow2.f32 %v2906_v57  ;;  %v3404_v14 = vmul.f32 0.6931472, %v4974_v50  ;;  %v4976_v19 = vpop.eup %4975  ;;  %v5244_v57 = vld [vmem:[#allocation4 + $0x28] sm:$0xff] }
 0x4cc   :  { %4983 = vlog2.f32 %v3336_v28  ;;  %v4978_v24 = vpop.eup %4977  ;;  %v3406_v23 = vmul.f32 0.6931472, %v4976_v19  ;;  %v3340_v28 = vld [vmem:[#allocation3 + $0x58] sm:$0xff] }
 0x4cd   :  { %4985 = vlog2.f32 %v3337_v62  ;;  %v4980_v11 = vpop.eup %4979  ;;  %v3526_v52 = vadd.f32 %v5243_v60, %v3404_v14  ;;  %v2914_v14 = vmul.f32 1.442695, %v2800_v46 }
 0x4ce   :  { %v2678_v53 = vpop.permute.xlu2 %2677  ;;  %4987 = vlog2.f32 %v3338_v27  ;;  %v3527_v25 = vadd.f32 %v5245_v58, %v3406_v23 }
 0x4cf   :  { %v2799_v39 = vsub.f32 %v10164_v4, %v2678_v53  ;;  %4989 = vpow2.f32 %v2908_v43  ;;  %v3654_v50 = vsub.f32 %v5244_v57, %v3526_v52  ;;  %v10166_v4 = vld [vmem:[#allocation58_spill] sm:$0xff] }
 0x4d0   :  { %v5248_v57 = vld [vmem:[#allocation2 + $0x40] sm:$0xff] }
 0x4d1   :  { %v4982_v9 = vpop.eup %4981  ;;  %v2912_v32 = vmul.f32 1.442695, %v2799_v39  ;;  %3044 = vadd.xlane.f32.xlu2 %v4980_v11  ;;  %v10167_v39 = vld [vmem:[#allocation161_spill] sm:$0xff] }
 0x4d2   :  { %3032 = vadd.xlane.f32.xlu0 %v4978_v24  ;;  %3034 = vadd.xlane.f32.xlu1 %v4982_v9  ;;  %v4984_v45 = vpop.eup %4983  ;;  %vm10168_vm2 = vcmp.ne.s32.totalorder %v10167_v39, 0  ;;  %v10169_v9 = vld [vmem:[#allocation64_spill] sm:$0xff] }
 0x4d3   :  { %4991 = vpow2.f32 %v2912_v32  ;;  %v4986_v26 = vpop.eup %4985  ;;  %v3408_v62 = vmul.f32 0.6931472, %v4984_v45  ;;  %v3782_v11 = vsel %vm10168_vm2, %v3654_v50, 0.0  ;;  %v2805_v60 = vsub.f32 %v10169_v9, %v8977_v33  ;;  %v5246_v32 = vld [vmem:[#allocation4 + $0x30] sm:$0xff]  ;;  %v3341_v45 = vld [vmem:[#allocation3 + $0x60] sm:$0xff]  ;;  %v5249_v39 = vld [vmem:[#allocation4 + $0x38] sm:$0xff] }
 0x4d4   :  { %v4988_v53 = vpop.eup %4987  ;;  %4993 = vlog2.f32 %v3339_v38  ;;  %v3410_v19 = vmul.f32 0.6931472, %v4986_v26  ;;  %v3655_v23 = vsub.f32 %v5246_v32, %v3527_v25  ;;  %v10170_v26 = vld [vmem:[#allocation60_spill] sm:$0xff]  ;;  %v3850_v50 = vsel %vm38_vm13, %v3782_v11, 0.0  ;;  %v5250_v11 = vld [vmem:[#allocation4 + $0x40] sm:$0xff] }
 0x4d5   :  { %v4990_v43 = vpop.eup %4989  ;;  %4995 = vlog2.f32 %v3340_v28  ;;  %v3528_v46 = vadd.f32 %v5247_v61, %v3408_v62  ;;  %v2803_v38 = vsub.f32 %v10170_v26, %v8997_v36  ;;  %v3412_v58 = vmul.f32 0.6931472, %v4988_v53  ;;  %v10171_v62 = vld [vmem:[#allocation162_spill] sm:$0xff] }
 0x4d6   :  { %v2693_v27 = vpop.permute.xlu2 %2692  ;;  %4997 = vpow2.f32 %v2914_v14  ;;  %v3529_v28 = vadd.f32 %v5248_v57, %v3410_v19  ;;  %v2924_v25 = vmul.f32 1.442695, %v2805_v60  ;;  %vm10172_vm3 = vcmp.ne.s32.totalorder %v10171_v62, 0  ;;  %v10173_v19 = vld [vmem:[#allocation62_spill] sm:$0xff] }
 0x4d7   :  { %v2802_v30 = vsub.f32 %v10166_v4, %v2693_v27  ;;  %v3342_v27 = vld [vmem:[#allocation3 + $0x68] sm:$0xff]  ;;  %v3343_v4 = vld [vmem:[#allocation3 + $0x70] sm:$0xff]  ;;  %v3783_v14 = vsel %vm10172_vm3, %v3655_v23, 0.0  ;;  %v3656_v9 = vsub.f32 %v5249_v39, %v3528_v46  ;;  %v2920_v36 = vmul.f32 1.442695, %v2803_v38 }
 0x4d8   :  { %v3657_v53 = vsub.f32 %v5250_v11, %v3529_v28  ;;  %v3852_v46 = vsel %vm38_vm13, %v3783_v14, 0.0  ;;  %v10174_v38 = vld [vmem:[#allocation166_spill] sm:$0xff]  ;;  %v10180_v14 = vld [vmem:[#allocation68_spill] sm:$0xff] }
 0x4d9   :  { %v4992_v24 = vpop.eup %4991  ;;  %v2918_v52 = vmul.f32 1.442695, %v2802_v30  ;;  %vm10175_vm11 = vcmp.ne.s32.totalorder %v10174_v38, 0  ;;  %v2807_v39 = vsub.f32 %v10180_v14, %v8988_v8  ;;  %v3345_v11 = vld [vmem:[#allocation3 + $0x80] sm:$0xff] }
 0x4da   :  { %3036 = vadd.xlane.f32.xlu0 %v4990_v43  ;;  %3040 = vadd.xlane.f32.xlu1 %v4992_v24  ;;  %v4994_v33 = vpop.eup %4993  ;;  %v3851_v24 = vadd.f32 %v3850_v50, %v8897_v22  ;;  %v3784_v62 = vsel %vm10175_vm11, %v3656_v9, 0.0  ;;  %v10176_v22 = vld [vmem:[#allocation66_spill] sm:$0xff]  ;;  %v5252_v9 = vld [vmem:[#allocation2 + $0x50] sm:$0xff] }
 0x4db   :  { %4999 = vpow2.f32 %v2918_v52  ;;  %v4996_v30 = vpop.eup %4995  ;;  %v3414_v61 = vmul.f32 0.6931472, %v4994_v33  ;;  %v2806_v50 = vsub.f32 %v10176_v22, %v8981_v17 }
 0x4dc   :  { %5001 = vlog2.f32 %v3341_v45  ;;  %v4998_v32 = vpop.eup %4997  ;;  %v5251_v45 = vld [vmem:[#allocation2 + $0x48] sm:$0xff]  ;;  %v3416_v57 = vmul.f32 0.6931472, %v4996_v30  ;;  %v3344_v30 = vld [vmem:[#allocation3 + $0x78] sm:$0xff] }
 0x4dd   :  { %5003 = vlog2.f32 %v3342_v27  ;;  %v3530_v60 = vadd.f32 %v5251_v45, %v3412_v58  ;;  %v10177_v27 = vld [vmem:[#allocation70_spill] sm:$0xff]  ;;  %v10178_v58 = vld [vmem:[#allocation163_spill] sm:$0xff] }
 0x4de   :  { %v2703_v43 = vpop.permute.xlu2 %2702  ;;  %5005 = vlog2.f32 %v3343_v4  ;;  %v2808_v33 = vsub.f32 %v10177_v27, %v9006_v0  ;;  %vm10179_vm8 = vcmp.ne.s32.totalorder %v10178_v58, 0  ;;  %v5255_v27 = vld [vmem:[#allocation4 + $0x50] sm:$0xff] }
 0x4df   :  { %v2804_v52 = vsub.f32 %v10173_v19, %v2703_v43  ;;  %5007 = vpow2.f32 %v2924_v25  ;;  %v3785_v4 = vsel %vm10179_vm8, %v3657_v53, 0.0  ;;  %v3853_v25 = vadd.f32 %v3852_v46, %v3851_v24  ;;  %v5253_v19 = vld [vmem:[#allocation4 + $0x48] sm:$0xff] }
 0x4e0   :  { %5009 = vpow2.f32 %v2920_v36  ;;  %v3531_v43 = vadd.f32 %v5252_v9, %v3414_v61  ;;  %v3658_v17 = vsub.f32 %v5253_v19, %v3530_v60  ;;  %v3856_v24 = vsel %vm38_vm13, %v3785_v4, 0.0 }
 0x4e1   :  { %v5000_v26 = vpop.eup %4999  ;;  %v2922_v23 = vmul.f32 1.442695, %v2804_v52  ;;  %v3854_v52 = vsel %vm38_vm13, %v3784_v62, 0.0  ;;  %v2930_v8 = vmul.f32 1.442695, %v2808_v33  ;;  %v10181_v62 = vld [vmem:[#allocation170_spill] sm:$0xff] }
 0x4e2   :  { %3042 = vadd.xlane.f32.xlu0 %v4998_v32  ;;  %3046 = vadd.xlane.f32.xlu1 %v5000_v26  ;;  %v5002_v28 = vpop.eup %5001  ;;  %v5254_v32 = vld [vmem:[#allocation2 + $0x58] sm:$0xff]  ;;  %v3346_v26 = vld [vmem:[#allocation3 + $0x88] sm:$0xff]  ;;  %v3855_v22 = vadd.f32 %v3854_v52, %v3853_v25  ;;  %v2928_v60 = vmul.f32 1.442695, %v2807_v39  ;;  %v3659_v58 = vsub.f32 %v5255_v27, %v3531_v43  ;;  %vm10182_vm15 = vcmp.ne.s32.totalorder %v10181_v62, 0  ;;  %v5257_v25 = vld [vmem:[#allocation2 + $0x60] sm:$0xff] }
 0x4e3   :  { %5011 = vpow2.f32 %v2922_v23  ;;  %v5004_v36 = vpop.eup %5003  ;;  %v3532_v45 = vadd.f32 %v5254_v32, %v3416_v57  ;;  %v2926_v23 = vmul.f32 1.442695, %v2806_v50  ;;  %v3418_v53 = vmul.f32 0.6931472, %v5002_v28  ;;  %v10183_v50 = vld [vmem:[#allocation16_spill] sm:$0xff]  ;;  %v5259_v27 = vld [vmem:[#allocation2 + $0x68] sm:$0xff] }
 0x4e4   :  { %v5006_v0 = vpop.eup %5005  ;;  %5013 = vlog2.f32 %v3344_v30  ;;  %v3786_v14 = vsel %vm10182_vm15, %v3658_v17, 0.0  ;;  %v2811_v9 = vsub.f32 %v10183_v50, %v8995_v12  ;;  %v5256_v28 = vld [vmem:[#allocation4 + $0x58] sm:$0xff]  ;;  %v3857_v4 = vadd.f32 %v3856_v24, %v3855_v22  ;;  %v10184_v30 = vld [vmem:[#allocation71_spill] sm:$0xff] }
 0x4e5   :  { %v5008_v46 = vpop.eup %5007  ;;  %5015 = vlog2.f32 %v3345_v11  ;;  %v3660_v19 = vsub.f32 %v5256_v28, %v3532_v45  ;;  %v3533_v39 = vadd.f32 %v5257_v25, %v3418_v53  ;;  %v3420_v43 = vmul.f32 0.6931472, %v5004_v36  ;;  %v3347_v32 = vld [vmem:[#allocation3 + $0x90] sm:$0xff]  ;;  %v3348_v25 = vld [vmem:[#allocation3 + $0x98] sm:$0xff] }
 0x4e6   :  { %v2728_v38 = vpop.permute.xlu2 %2727  ;;  %v5010_v61 = vpop.eup %5009  ;;  %5017 = vlog2.f32 %v3346_v26  ;;  %v3422_v52 = vmul.f32 0.6931472, %v5006_v0  ;;  %v3858_v17 = vsel %vm38_vm13, %v3786_v14, 0.0  ;;  %v2936_v12 = vmul.f32 1.442695, %v2811_v9  ;;  %v10185_v26 = vld [vmem:[#allocation169_spill] sm:$0xff] }
 0x4e7   :  { %5019 = vpow2.f32 %v2926_v23  ;;  %v2809_v33 = vsub.f32 %v10184_v30, %v2728_v38  ;;  %vm10186_vm0 = vcmp.ne.s32.totalorder %v10185_v26, 0  ;;  %v10187_v23 = vld [vmem:[#allocation167_spill] sm:$0xff]  ;;  %v3859_v24 = vadd.f32 %v3858_v17, %v3857_v4 }
 0x4e8   :  { %5021 = vpow2.f32 %v2930_v8  ;;  %v3787_v45 = vsel %vm10186_vm0, %v3659_v58, 0.0  ;;  %vm10188_vm14 = vcmp.ne.s32.totalorder %v10187_v23, 0  ;;  %v5258_v8 = vld [vmem:[#allocation4 + $0x60] sm:$0xff]  ;;  %v10189_v0 = vld [vmem:[#allocation15_spill] sm:$0xff]  ;;  %v3534_v62 = vadd.f32 %v5259_v27, %v3420_v43 }
 0x4e9   :  { %v5012_v57 = vpop.eup %5011  ;;  %5023 = vpow2.f32 %v2928_v60  ;;  %v3788_v38 = vsel %vm10188_vm14, %v3660_v19, 0.0  ;;  %v2932_v22 = vmul.f32 1.442695, %v2809_v33  ;;  %v5260_v14 = vld [vmem:[#allocation2 + $0x70] sm:$0xff]  ;;  %v3860_v58 = vsel %vm38_vm13, %v3787_v45, 0.0  ;;  %v10191_v43 = vld [vmem:[#allocation173_spill] sm:$0xff] }
 0x4ea   :  { %3048 = vadd.xlane.f32.xlu0 %v5010_v61  ;;  %3052 = vadd.xlane.f32.xlu1 %v5008_v46  ;;  %v5014_v11 = vpop.eup %5013  ;;  %v3661_v61 = vsub.f32 %v5258_v8, %v3533_v39  ;;  %5025 = vlog2.f32 %v3347_v32  ;;  %v3862_v28 = vsel %vm38_vm13, %v3788_v38, 0.0  ;;  %v3861_v30 = vadd.f32 %v3860_v58, %v3859_v24  ;;  %v10190_v39 = vld [vmem:[#allocation76_spill] sm:$0xff]  ;;  %v5261_v32 = vld [vmem:[#allocation4 + $0x68] sm:$0xff] }
 0x4eb   :  { %3050 = vadd.xlane.f32.xlu2 %v5012_v57  ;;  %v5016_v46 = vpop.eup %5015  ;;  %v3535_v57 = vadd.f32 %v5260_v14, %v3422_v52  ;;  %v3424_v9 = vmul.f32 0.6931472, %v5014_v11  ;;  %5027 = vpow2.f32 %v2936_v12  ;;  %v2812_v17 = vsub.f32 %v10190_v39, %v9012_v3  ;;  %v3349_v11 = vld [vmem:[#allocation3 + $0xa0] sm:$0xff]  ;;  %v5262_v45 = vld [vmem:[#allocation4 + $0x70] sm:$0xff]  ;;  %v5263_v38 = vld [vmem:[#allocation2 + $0x78] sm:$0xff] }
 0x4ec   :  { %v5018_v36 = vpop.eup %5017  ;;  %5029 = vpow2.f32 %v2932_v22  ;;  %vm10192_vm1 = vcmp.ne.s32.totalorder %v10191_v43, 0  ;;  %v3662_v26 = vsub.f32 %v5261_v32, %v3534_v62  ;;  %v3863_v23 = vadd.f32 %v3862_v28, %v3861_v30  ;;  %v10193_v14 = vld [vmem:[#allocation20_spill] sm:$0xff]  ;;  %v5266_v39 = vld [vmem:[#allocation2 + $0x88] sm:$0xff] }
 0x4ed   :  { %v5020_v50 = vpop.eup %5019  ;;  %v3789_v52 = vsel %vm10192_vm1, %v3661_v61, 0.0  ;;  %v3663_v12 = vsub.f32 %v5262_v45, %v3535_v57  ;;  %v3536_v24 = vadd.f32 %v5263_v38, %v3424_v9  ;;  %v3428_v8 = vmul.f32 0.6931472, %v5018_v36  ;;  %v10194_v58 = vld [vmem:[#allocation172_spill] sm:$0xff]  ;;  %v10196_v57 = vld [vmem:[#allocation171_spill] sm:$0xff] }
 0x4ee   :  { %v2733_v53 = vpop.permute.xlu2 %2732  ;;  %v5022_v19 = vpop.eup %5021  ;;  %v2938_v22 = vmul.f32 1.442695, %v2812_v17  ;;  %v3864_v61 = vsel %vm38_vm13, %v3789_v52, 0.0  ;;  %vm10195_vm9 = vcmp.ne.s32.totalorder %v10194_v58, 0  ;;  %vm10197_vm7 = vcmp.ne.s32.totalorder %v10196_v57, 0  ;;  %v3352_v38 = vld [vmem:[#allocation3 + $0xb8] sm:$0xff] }
 0x4ef   :  { %v2810_v60 = vsub.f32 %v10189_v0, %v2733_v53  ;;  %v5024_v33 = vpop.eup %5023  ;;  %v3426_v53 = vmul.f32 0.6931472, %v5016_v46  ;;  %v3790_v62 = vsel %vm10195_vm9, %v3662_v26, 0.0  ;;  %v3791_v28 = vsel %vm10197_vm7, %v3663_v12, 0.0  ;;  %v5264_v46 = vld [vmem:[#allocation4 + $0x78] sm:$0xff]  ;;  %v3351_v12 = vld [vmem:[#allocation3 + $0xb0] sm:$0xff] }
 0x4f0   :  { %v5026_v3 = vpop.eup %5025  ;;  %v3865_v9 = vadd.f32 %v3864_v61, %v3863_v23  ;;  %v3664_v36 = vsub.f32 %v5264_v46, %v3536_v24  ;;  %v3538_v17 = vadd.f32 %v5266_v39, %v3428_v8  ;;  %v3866_v43 = vsel %vm38_vm13, %v3790_v62, 0.0  ;;  %v5267_v24 = vld [vmem:[#allocation4 + $0x80] sm:$0xff]  ;;  %v5268_v8 = vld [vmem:[#allocation4 + $0x88] sm:$0xff]  ;;  %v5269_v58 = vld [vmem:[#allocation2 + $0x90] sm:$0xff] }
 0x4f1   :  { %v2934_v4 = vmul.f32 1.442695, %v2810_v60  ;;  %v3350_v60 = vld [vmem:[#allocation3 + $0xa8] sm:$0xff]  ;;  %v5028_v27 = vpop.eup %5027  ;;  %v3868_v52 = vsel %vm38_vm13, %v3791_v28, 0.0  ;;  %v3430_v32 = vmul.f32 0.6931472, %v5026_v3 }
 0x4f2   :  { %3054 = vadd.xlane.f32.xlu0 %v5020_v50  ;;  %3058 = vadd.xlane.f32.xlu1 %v5022_v19  ;;  %v5030_v19 = vpop.eup %5029  ;;  %v3867_v26 = vadd.f32 %v3866_v43, %v3865_v9  ;;  %v4299_v23 = vshrl.u32 %v8775_v10, 16  ;;  %v5270_v39 = vld [vmem:[#allocation2 + $0x98] sm:$0xff]  ;;  %v5271_v43 = vld [vmem:[#allocation2 + $0xa0] sm:$0xff] }
 0x4f3   :  { %5031 = vpow2.f32 %v2934_v4  ;;  %3056 = vadd.xlane.f32.xlu2 %v5024_v33  ;;  %v5265_v33 = vld [vmem:[#allocation2 + $0x80] sm:$0xff]  ;;  %v3539_v3 = vadd.f32 %v5269_v58, %v3430_v32 }
 0x4f4   :  { %5033 = vlog2.f32 %v3348_v25  ;;  %v3537_v25 = vadd.f32 %v5265_v33, %v3426_v53  ;;  %v3869_v61 = vadd.f32 %v3868_v52, %v3867_v26  ;;  %v4301_v28 = vcvt.s32.f32 %v4299_v23  ;;  %v3353_v33 = vld [vmem:[#allocation3 + $0xc0] sm:$0xff] }
 0x4f5   :  { %5035 = vlog2.f32 %v3349_v11  ;;  %v4298_v23 = vand.u32 65535, %v8775_v10 }
 0x4f6   :  { %v2748_v0 = vpop.permute.xlu2 %2747  ;;  %5037 = vlog2.f32 %v3350_v60  ;;  %v3665_v53 = vsub.f32 %v5267_v24, %v3537_v25  ;;  %v3354_v25 = vld [vmem:[#allocation3 + $0xc8] sm:$0xff]  ;;  %v3355_v24 = vld [vmem:[#allocation3 + $0xd0] sm:$0xff] }
 0x4f7   :  { %v2813_v50 = vsub.f32 %v10193_v14, %v2748_v0  ;;  %5039 = vpow2.f32 %v2938_v22  ;;  %v3666_v22 = vsub.f32 %v5268_v8, %v3538_v17  ;;  %v10198_v0 = vld [vmem:[#allocation176_spill] sm:$0xff] }
 0x4f8   :  { %vm10199_vm5 = vcmp.ne.s32.totalorder %v10198_v0, 0 }
 0x4f9   :  { %v5032_v4 = vpop.eup %5031  ;;  %v2940_v30 = vmul.f32 1.442695, %v2813_v50  ;;  %v3792_v60 = vsel %vm10199_vm5, %v3664_v36, 0.0 }
 0x4fa   :  { %3064 = vadd.xlane.f32.xlu1 %v5028_v27  ;;  %3060 = vadd.xlane.f32.xlu0 %v5030_v19  ;;  %v5034_v11 = vpop.eup %5033  ;;  %v3870_v57 = vsel %vm38_vm13, %v3792_v60, 0.0  ;;  %v10200_v19 = vld [vmem:[#allocation175_spill] sm:$0xff]  ;;  %v5274_v60 = vld [vmem:[#allocation4 + $0xa0] sm:$0xff] }
 0x4fb   :  { %5041 = vpow2.f32 %v2940_v30  ;;  %3062 = vadd.xlane.f32.xlu2 %v5032_v4  ;;  %v5036_v45 = vpop.eup %5035  ;;  %v3432_v14 = vmul.f32 0.6931472, %v5034_v11  ;;  %vm10201_vm4 = vcmp.ne.s32.totalorder %v10200_v19, 0  ;;  %v10202_v4 = vld [vmem:[#allocation174_spill] sm:$0xff]  ;;  %v3871_v36 = vadd.f32 %v3870_v57, %v3869_v61  ;;  %v5272_v11 = vld [vmem:[#allocation4 + $0x90] sm:$0xff] }
 0x4fc   :  { %v5038_v27 = vpop.eup %5037  ;;  %v3434_v50 = vmul.f32 0.6931472, %v5036_v45  ;;  %5043 = vlog2.f32 %v3351_v12  ;;  %v3793_v46 = vsel %vm10201_vm4, %v3665_v53, 0.0  ;;  %vm10203_vm2 = vcmp.ne.s32.totalorder %v10202_v4, 0 }
 0x4fd   :  { %v5040_v62 = vpop.eup %5039  ;;  %5045 = vlog2.f32 %v3352_v38  ;;  %v3794_v30 = vsel %vm10203_vm2, %v3666_v22, 0.0  ;;  %v3540_v17 = vadd.f32 %v5270_v39, %v3432_v14  ;;  %v3667_v32 = vsub.f32 %v5272_v11, %v3539_v3  ;;  %v5273_v22 = vld [vmem:[#allocation4 + $0x98] sm:$0xff]  ;;  %v5275_v3 = vld [vmem:[#allocation2 + $0xa8] sm:$0xff]  ;;  %v5276_v39 = vld [vmem:[#allocation2 + $0xb0] sm:$0xff] }
 0x4fe   :  { %v3541_v52 = vadd.f32 %v5271_v43, %v3434_v50  ;;  %v3436_v26 = vmul.f32 0.6931472, %v5038_v27  ;;  %v3872_v45 = vsel %vm38_vm13, %v3793_v46, 0.0  ;;  %v3874_v12 = vsel %vm38_vm13, %v3794_v30, 0.0  ;;  %v10204_v14 = vld [vmem:[#allocation181_spill] sm:$0xff]  ;;  %v10206_v46 = vld [vmem:[#allocation180_spill] sm:$0xff] }
 0x4ff   :  { %5047 = vlog2.f32 %v3353_v33  ;;  %v3873_v53 = vadd.f32 %v3872_v45, %v3871_v36  ;;  %v3668_v0 = vsub.f32 %v5273_v22, %v3540_v17  ;;  %vm10205_vm3 = vcmp.ne.s32.totalorder %v10204_v14, 0  ;;  %v10208_v30 = vld [vmem:[#allocation182_spill] sm:$0xff]  ;;  %v5278_v11 = vld [vmem:[#allocation2 + $0xb8] sm:$0xff]  ;;  %v5279_v22 = vld [vmem:[#allocation4 + $0xb0] sm:$0xff] }
 0x500   :  { %5049 = vlog2.f32 %v3354_v25  ;;  %v3669_v61 = vsub.f32 %v5274_v60, %v3541_v52  ;;  %v3795_v50 = vsel %vm10205_vm3, %v3667_v32, 0.0  ;;  %v4300_v57 = vcvt.s32.f32 %v4298_v23  ;;  %v5277_v43 = vld [vmem:[#allocation4 + $0xa8] sm:$0xff]  ;;  %v3357_v45 = vld [vmem:[#allocation3 + $0xe0] sm:$0xff] }
 0x501   :  { %v5042_v9 = vpop.eup %5041  ;;  %v3875_v27 = vadd.f32 %v3874_v12, %v3873_v53  ;;  %5051 = vlog2.f32 %v3355_v24  ;;  %vm10207_vm11 = vcmp.ne.s32.totalorder %v10206_v46, 0  ;;  %vm10209_vm8 = vcmp.ne.s32.totalorder %v10208_v30, 0  ;;  %v3358_v24 = vld [vmem:[#allocation3 + $0xe8] sm:$0xff]  ;;  %v5283_v46 = vld [vmem:[#allocation2 + $0xd0] sm:$0xff]  ;;  %v10212_v30 = vld [vmem:[#allocation185_spill] sm:$0xff] }
 0x502   :  { %3066 = vadd.xlane.f32.xlu0 %v5040_v62  ;;  %4304 = vadd.xlane.f32.xlu1 %v4301_v28  ;;  %v5044_v38 = vpop.eup %5043  ;;  %v3542_v62 = vadd.f32 %v5275_v3, %v3436_v26  ;;  %v3356_v28 = vld [vmem:[#allocation3 + $0xd8] sm:$0xff]  ;;  %v3796_v4 = vsel %vm10207_vm11, %v3668_v0, 0.0  ;;  %v3797_v36 = vsel %vm10209_vm8, %v3669_v61, 0.0  ;;  %v10210_v60 = vld [vmem:[#allocation186_spill] sm:$0xff]  ;;  %vm10213_vm0 = vcmp.ne.s32.totalorder %v10212_v30, 0 }
 0x503   :  { %3068 = vadd.xlane.f32.xlu2 %v5042_v9  ;;  %v5046_v8 = vpop.eup %5045  ;;  %v3438_v58 = vmul.f32 0.6931472, %v5044_v38  ;;  %v3876_v9 = vsel %vm38_vm13, %v3795_v50, 0.0  ;;  %5053 = vlog2.f32 %v3356_v28  ;;  %v3878_v23 = vsel %vm38_vm13, %v3796_v4, 0.0  ;;  %v5280_v50 = vld [vmem:[#allocation4 + $0xb8] sm:$0xff]  ;;  %v5281_v3 = vld [vmem:[#allocation2 + $0xc0] sm:$0xff] }
 0x504   :  { %v3440_v10 = vmul.f32 0.6931472, %v5046_v8  ;;  %v3877_v33 = vadd.f32 %v3876_v9, %v3875_v27  ;;  %v3670_v52 = vsub.f32 %v5277_v43, %v3542_v62  ;;  %v3880_v38 = vsel %vm38_vm13, %v3797_v36, 0.0  ;;  %v5284_v43 = vld [vmem:[#allocation4 + $0xc0] sm:$0xff] }
 0x505   :  { %v5048_v19 = vpop.eup %5047  ;;  %v3543_v17 = vadd.f32 %v5276_v39, %v3438_v58  ;;  %vm10211_vm15 = vcmp.ne.s32.totalorder %v10210_v60, 0  ;;  %5055 = vlog2.f32 %v3357_v45  ;;  %v5287_v60 = vld [vmem:[#allocation2 + $0xd8] sm:$0xff] }
 0x506   :  { %v5050_v25 = vpop.eup %5049  ;;  %v3544_v32 = vadd.f32 %v5278_v11, %v3440_v10  ;;  %v3442_v12 = vmul.f32 0.6931472, %v5048_v19  ;;  %v3879_v8 = vadd.f32 %v3878_v23, %v3877_v33  ;;  %v3798_v61 = vsel %vm10211_vm15, %v3670_v52, 0.0  ;;  %v5282_v10 = vld [vmem:[#allocation2 + $0xc8] sm:$0xff]  ;;  %v3359_v19 = vld [vmem:[#allocation3 + $0xf0] sm:$0xff] }
 0x507   :  { %v5052_v26 = vpop.eup %5051  ;;  %v3444_v53 = vmul.f32 0.6931472, %v5050_v25  ;;  %v3671_v0 = vsub.f32 %v5279_v22, %v3543_v17  ;;  %5057 = vlog2.f32 %v3358_v24  ;;  %v3882_v9 = vsel %vm38_vm13, %v3798_v61, 0.0  ;;  %v10214_v33 = vld [vmem:[#allocation188_spill] sm:$0xff]  ;;  %v3361_v24 = vld [vmem:[#allocation3 + $0x100] sm:$0xff] }
 0x508   :  { %v3446_v14 = vmul.f32 0.6931472, %v5052_v26  ;;  %v3672_v27 = vsub.f32 %v5280_v50, %v3544_v32  ;;  %v3881_v58 = vadd.f32 %v3880_v38, %v3879_v8  ;;  %v3545_v62 = vadd.f32 %v5281_v3, %v3442_v12  ;;  %v5285_v32 = vld [vmem:[#allocation4 + $0xc8] sm:$0xff]  ;;  %v3360_v12 = vld [vmem:[#allocation3 + $0xf8] sm:$0xff] }
 0x509   :  { %v3546_v28 = vadd.f32 %v5282_v10, %v3444_v53  ;;  %v3799_v36 = vsel %vm10213_vm0, %v3671_v0, 0.0  ;;  %vm10215_vm14 = vcmp.ne.s32.totalorder %v10214_v33, 0  ;;  %5059 = vlog2.f32 %v3359_v19  ;;  %v5286_v53 = vld [vmem:[#allocation4 + $0xd0] sm:$0xff] }
 0x50a   :  { %4302 = vadd.xlane.f32.xlu0 %v4300_v57  ;;  %v5054_v57 = vpop.eup %5053  ;;  %v3547_v4 = vadd.f32 %v5283_v46, %v3446_v14  ;;  %v3800_v25 = vsel %vm10215_vm14, %v3672_v27, 0.0  ;;  %v3883_v39 = vadd.f32 %v3882_v9, %v3881_v58  ;;  %v3673_v52 = vsub.f32 %v5284_v43, %v3545_v62  ;;  %v10216_v14 = vld [vmem:[#allocation189_spill] sm:$0xff]  ;;  %v10218_v58 = vld [vmem:[#allocation190_spill] sm:$0xff] }
 0x50b   :  { %v3448_v17 = vmul.f32 0.6931472, %v5054_v57  ;;  %v5056_v11 = vpop.eup %5055  ;;  %v3674_v26 = vsub.f32 %v5285_v32, %v3546_v28  ;;  %v3884_v23 = vsel %vm38_vm13, %v3799_v36, 0.0  ;;  %v3886_v38 = vsel %vm38_vm13, %v3800_v25, 0.0  ;;  %v10220_v57 = vld [vmem:[#allocation194_spill] sm:$0xff]  ;;  %v5290_v25 = vld [vmem:[#allocation4 + $0xd8] sm:$0xff] }
 0x50c   :  { %v3675_v8 = vsub.f32 %v5286_v53, %v3547_v4  ;;  %v3885_v22 = vadd.f32 %v3884_v23, %v3883_v39  ;;  %v3450_v0 = vmul.f32 0.6931472, %v5056_v11  ;;  %vm10217_vm1 = vcmp.ne.s32.totalorder %v10216_v14, 0  ;;  %v3362_v46 = vld [vmem:[#allocation3 + $0x108] sm:$0xff]  ;;  %v5288_v4 = vld [vmem:[#allocation2 + $0xe0] sm:$0xff]  ;;  %v3363_v23 = vld [vmem:[#allocation3 + $0x110] sm:$0xff] }
 0x50d   :  { %v5058_v45 = vpop.eup %5057  ;;  %v3548_v61 = vadd.f32 %v5287_v60, %v3448_v17  ;;  %v3801_v50 = vsel %vm10217_vm1, %v3673_v52, 0.0  ;;  %5061 = vlog2.f32 %v3360_v12  ;;  %vm10219_vm9 = vcmp.ne.s32.totalorder %v10218_v58, 0  ;;  %v5289_v36 = vld [vmem:[#allocation2 + $0xe8] sm:$0xff] }
 0x50e   :  { %v3452_v27 = vmul.f32 0.6931472, %v5058_v45  ;;  %v3802_v3 = vsel %vm10219_vm9, %v3674_v26, 0.0  ;;  %v3887_v62 = vadd.f32 %v3886_v38, %v3885_v22  ;;  %5063 = vlog2.f32 %v3361_v24  ;;  %v10222_v45 = vld [vmem:[#allocation154_spill] sm:$0xff]  ;;  %v3364_v38 = vld [vmem:[#allocation3 + $0x118] sm:$0xff] }
 0x50f   :  { %vm10221_vm7 = vcmp.ne.s32.totalorder %v10220_v57, 0  ;;  %v5060_v28 = vpop.eup %5059  ;;  %v3888_v9 = vsel %vm38_vm13, %v3801_v50, 0.0  ;;  %v3890_v19 = vsel %vm38_vm13, %v3802_v3, 0.0  ;;  %v3549_v30 = vadd.f32 %v5288_v4, %v3450_v0  ;;  %v5291_v24 = vld [vmem:[#allocation4 + $0xe0] sm:$0xff]  ;;  %v10223_v0 = vld [vmem:[#allocation195_spill] sm:$0xff] }
 0x510   :  { %v3803_v10 = vsel %vm10221_vm7, %v3675_v8, 0.0  ;;  %v3550_v33 = vadd.f32 %v5289_v36, %v3452_v27  ;;  %v3676_v39 = vsub.f32 %v5290_v25, %v3548_v61  ;;  %v3889_v17 = vadd.f32 %v3888_v9, %v3887_v62  ;;  %v5292_v8 = vld [vmem:[#allocation4 + $0xe8] sm:$0xff]  ;;  %v5293_v27 = vld [vmem:[#allocation2 + $0xf0] sm:$0xff] }
 0x511   :  { %v3892_v43 = vsel %vm38_vm13, %v3803_v10, 0.0  ;;  %v3454_v11 = vmul.f32 0.6931472, %v5060_v28  ;;  %v2214_v12 = vsub.f32 %v10222_v45, %v10142_v41  ;;  %5065 = vlog2.f32 %v3362_v46  ;;  %v10225_v62 = vld [vmem:[#allocation196_spill] sm:$0xff]  ;;  %v10227_v10 = vld [vmem:[#allocation197_spill] sm:$0xff]  ;;  %v3366_v25 = vld [vmem:[#allocation3 + $0x128] sm:$0xff] }
 0x512   :  { %v3891_v32 = vadd.f32 %v3890_v19, %v3889_v17  ;;  %v3677_v53 = vsub.f32 %v5291_v24, %v3549_v30  ;;  %v3678_v22 = vsub.f32 %v5292_v8, %v3550_v33  ;;  %vm10224_vm5 = vcmp.ne.s32.totalorder %v10223_v0, 0  ;;  %v10229_v46 = vld [vmem:[#allocation168_spill] sm:$0xff]  ;;  %v10230_v30 = vld [vmem:[#allocation193_spill] sm:$0xff] }
 0x513   :  { %v5062_v52 = vpop.eup %5061  ;;  %v3804_v60 = vsel %vm10224_vm5, %v3676_v39, 0.0  ;;  %5067 = vlog2.f32 %v3363_v23  ;;  %v3551_v58 = vadd.f32 %v5293_v27, %v3454_v11  ;;  %v2318_v3 = vmul.f32 1.442695, %v2214_v12  ;;  %v3365_v33 = vld [vmem:[#allocation3 + $0x120] sm:$0xff]  ;;  %v5294_v39 = vld [vmem:[#allocation2 + $0xf8] sm:$0xff]  ;;  %v5296_v11 = vld [vmem:[#allocation4 + $0xf0] sm:$0xff] }
 0x514   :  { %v5064_v26 = vpop.eup %5063  ;;  %v3893_v61 = vadd.f32 %v3892_v43, %v3891_v32  ;;  %v3456_v14 = vmul.f32 0.6931472, %v5062_v52  ;;  %5069 = vlog2.f32 %v3364_v38  ;;  %v3894_v41 = vsel %vm38_vm13, %v3804_v60, 0.0  ;;  %v5295_v43 = vld [vmem:[#allocation2 + $0x100] sm:$0xff]  ;;  %v10231_v60 = vld [vmem:[#allocation199_spill] sm:$0xff] }
 0x515   :  { %v3458_v50 = vmul.f32 0.6931472, %v5064_v26  ;;  %vm10226_vm4 = vcmp.ne.s32.totalorder %v10225_v62, 0  ;;  %vm10228_vm2 = vcmp.ne.s32.totalorder %v10227_v10, 0  ;;  %v2217_v4 = vsub.f32 %v10229_v46, %v10143_v42  ;;  %v3367_v62 = vld [vmem:[#allocation3 + $0x130] sm:$0xff]  ;;  %v5299_v10 = vld [vmem:[#allocation2 + $0x108] sm:$0xff] }
 0x516   :  { %v3805_v57 = vsel %vm10226_vm4, %v3677_v53, 0.0  ;;  %v3806_v28 = vsel %vm10228_vm2, %v3678_v22, 0.0  ;;  %v3895_v9 = vadd.f32 %v3894_v41, %v3893_v61  ;;  %v2222_v36 = vsub.f32 %v10230_v30, %v7828_v55  ;;  %v5297_v53 = vld [vmem:[#allocation4 + $0xf8] sm:$0xff]  ;;  %v5298_v22 = vld [vmem:[#allocation4 + $0x100] sm:$0xff] }
 0x517   :  { %v5066_v19 = vpop.eup %5065  ;;  %v3552_v17 = vadd.f32 %v5294_v39, %v3456_v14  ;;  %v3553_v52 = vadd.f32 %v5295_v43, %v3458_v50  ;;  %v3679_v32 = vsub.f32 %v5296_v11, %v3551_v58  ;;  %5071 = vpow2.f32 %v2318_v3  ;;  %v10233_v50 = vld [vmem:[#allocation179_spill] sm:$0xff]  ;;  %v2150_v46 = vld [vmem:[#allocation3 + $0x140] sm:$0xff]  ;;  %v3368_v30 = vld [vmem:[#allocation3 + $0x138] sm:$0xff] }
 0x518   :  { %v3896_v26 = vsel %vm38_vm13, %v3805_v57, 0.0  ;;  %v3898_v45 = vsel %vm38_vm13, %v3806_v28, 0.0  ;;  %v3460_v23 = vmul.f32 0.6931472, %v5066_v19  ;;  %5073 = vlog2.f32 %v3365_v33  ;;  %v10234_v3 = vld [vmem:[#allocation187_spill] sm:$0xff]  ;;  %v10239_v43 = vld [vmem:[#allocation204_spill] sm:$0xff] }
 0x519   :  { %v5068_v12 = vpop.eup %5067  ;;  %v3897_v42 = vadd.f32 %v3896_v26, %v3895_v9  ;;  %v2324_v24 = vmul.f32 1.442695, %v2217_v4  ;;  %v2334_v55 = vmul.f32 1.442695, %v2222_v36  ;;  %5075 = vlog2.f32 %v3366_v25  ;;  %v10235_v36 = vld [vmem:[#allocation200_spill] sm:$0xff] }
 0x51a   :  { %v5070_v38 = vpop.eup %5069  ;;  %v3680_v8 = vsub.f32 %v5297_v53, %v3552_v17  ;;  %v3681_v0 = vsub.f32 %v5298_v22, %v3553_v52  ;;  %vm10232_vm3 = vcmp.ne.s32.totalorder %v10231_v60, 0  ;;  %v2219_v27 = vsub.f32 %v10233_v50, %v10072_v35  ;;  %v10237_v35 = vld [vmem:[#allocation201_spill] sm:$0xff]  ;;  %v5300_v11 = vld [vmem:[#allocation2 + $0x110] sm:$0xff] }
 0x51b   :  { %v3807_v61 = vsel %vm10232_vm3, %v3679_v32, 0.0  ;;  %v3899_v14 = vadd.f32 %v3898_v45, %v3897_v42  ;;  %v3462_v58 = vmul.f32 0.6931472, %v5068_v12  ;;  %v2220_v41 = vsub.f32 %v10234_v3, %v10144_v48  ;;  %v5301_v45 = vld [vmem:[#allocation2 + $0x118] sm:$0xff] }
 0x51c   :  { %v3464_v57 = vmul.f32 0.6931472, %v5070_v38  ;;  %v3554_v28 = vadd.f32 %v5299_v10, %v3460_v23  ;;  %5077 = vpow2.f32 %v2324_v24  ;;  %v3900_v19 = vsel %vm38_vm13, %v3807_v61, 0.0  ;;  %v5302_v23 = vld [vmem:[#allocation4 + $0x108] sm:$0xff]  ;;  %v10240_v24 = vld [vmem:[#allocation192_spill] sm:$0xff] }
 0x51d   :  { %v5072_v9 = vpop.eup %5071  ;;  %5079 = vpow2.f32 %v2334_v55  ;;  %vm10236_vm11 = vcmp.ne.s32.totalorder %v10235_v36, 0  ;;  %vm10238_vm8 = vcmp.ne.s32.totalorder %v10237_v35, 0  ;;  %v3901_v39 = vadd.f32 %v3900_v19, %v3899_v14  ;;  %v5305_v36 = vld [vmem:[#allocation2 + $0x120] sm:$0xff]  ;;  %v5306_v35 = vld [vmem:[#allocation2 + $0x128] sm:$0xff] }
 0x51e   :  { %v5074_v4 = vpop.eup %5073  ;;  %v3808_v33 = vsel %vm10236_vm11, %v3680_v8, 0.0  ;;  %v3809_v25 = vsel %vm10238_vm8, %v3681_v0, 0.0  ;;  %v2328_v17 = vmul.f32 1.442695, %v2219_v27  ;;  %v2225_v52 = vsub.f32 %v10239_v43, %v7995_v34  ;;  %v5303_v27 = vld [vmem:[#allocation4 + $0x110] sm:$0xff]  ;;  %v10244_v43 = vld [vmem:[#allocation206_spill] sm:$0xff] }
 0x51f   :  { %v5076_v48 = vpop.eup %5075  ;;  %5081 = vlog2.f32 %v3367_v62  ;;  %v3555_v32 = vadd.f32 %v5300_v11, %v3462_v58  ;;  %v2330_v26 = vmul.f32 1.442695, %v2220_v41  ;;  %v3556_v12 = vadd.f32 %v5301_v45, %v3464_v57  ;;  %v5304_v41 = vld [vmem:[#allocation4 + $0x118] sm:$0xff]  ;;  %v10246_v45 = vld [vmem:[#allocation207_spill] sm:$0xff] }
 0x520   :  { %v3682_v42 = vsub.f32 %v5302_v23, %v3554_v28  ;;  %v2406_v38 = vmul.f32 %v5072_v9, %v2150_v46  ;;  %v2221_v55 = vsub.f32 %v10240_v24, %v7825_v20  ;;  %5083 = vlog2.f32 %v3368_v30  ;;  %v10241_v57 = vld [vmem:[#allocation205_spill] sm:$0xff]  ;;  %v3370_v46 = vld [vmem:[#allocation3 + $0x148] sm:$0xff] }
 0x521   :  { %v3902_v53 = vsel %vm38_vm13, %v3808_v33, 0.0  ;;  %v3904_v8 = vsel %vm38_vm13, %v3809_v25, 0.0  ;;  %v3466_v0 = vmul.f32 0.6931472, %v5074_v4  ;;  %v3468_v34 = vmul.f32 0.6931472, %v5076_v48 }
 0x522   :  { %v3903_v60 = vadd.f32 %v3902_v53, %v3901_v39  ;;  %v5078_v14 = vpop.eup %5077  ;;  %v2340_v50 = vmul.f32 1.442695, %v2225_v52  ;;  %v3683_v58 = vsub.f32 %v5303_v27, %v3555_v32  ;;  %v3684_v62 = vsub.f32 %v5304_v41, %v3556_v12  ;;  %v2158_v28 = vld [vmem:[#allocation3 + $0x180] sm:$0xff]  ;;  %v2153_v39 = vld [vmem:[#allocation3 + $0x158] sm:$0xff]  ;;  %v5308_v53 = vld [vmem:[#allocation4 + $0x128] sm:$0xff] }
 0x523   :  { %v5080_v3 = vpop.eup %5079  ;;  %vm10242_vm15 = vcmp.ne.s32.totalorder %v10241_v57, 0  ;;  %5085 = vpow2.f32 %v2328_v17  ;;  %v2332_v19 = vmul.f32 1.442695, %v2221_v55  ;;  %v10243_v4 = vld [vmem:[#allocation198_spill] sm:$0xff]  ;;  %v3557_v33 = vadd.f32 %v5305_v36, %v3466_v0 }
 0x524   :  { %v3810_v20 = vsel %vm10242_vm15, %v3682_v42, 0.0  ;;  %v3905_v10 = vadd.f32 %v3904_v8, %v3903_v60  ;;  %5087 = vpow2.f32 %v2330_v26  ;;  %v2223_v30 = vsub.f32 %v10243_v4, %v10145_v13  ;;  %v3371_v42 = vld [vmem:[#allocation3 + $0x150] sm:$0xff]  ;;  %v5307_v24 = vld [vmem:[#allocation4 + $0x120] sm:$0xff] }
 0x525   :  { %v5082_v9 = vpop.eup %5081  ;;  %v3558_v25 = vadd.f32 %v5306_v35, %v3468_v34  ;;  %5089 = vpow2.f32 %v2340_v50  ;;  %vm10245_vm0 = vcmp.ne.s32.totalorder %v10244_v43, 0  ;;  %v3906_v11 = vsel %vm38_vm13, %v3810_v20, 0.0 }
 0x526   :  { %v5084_v48 = vpop.eup %5083  ;;  %v3811_v52 = vsel %vm10245_vm0, %v3683_v58, 0.0  ;;  %v2414_v32 = vmul.f32 %v5080_v3, %v2158_v28  ;;  %v3470_v17 = vmul.f32 0.6931472, %v5082_v9  ;;  %5091 = vlog2.f32 %v3370_v46  ;;  %v2161_v9 = vld [vmem:[#allocation3 + $0x198] sm:$0xff] }
 0x527   :  { %vm10247_vm14 = vcmp.ne.s32.totalorder %v10246_v45, 0  ;;  %v3907_v12 = vadd.f32 %v3906_v11, %v3905_v10  ;;  %5093 = vpow2.f32 %v2332_v19  ;;  %v2409_v13 = vmul.f32 %v5078_v14, %v2153_v39  ;;  %v10248_v14 = vld [vmem:[#allocation203_spill] sm:$0xff]  ;;  %v5310_v46 = vld [vmem:[#allocation2 + $0x138] sm:$0xff] }
 0x528   :  { %v3812_v26 = vsel %vm10247_vm14, %v3684_v62, 0.0  ;;  %v3685_v55 = vsub.f32 %v5307_v24, %v3557_v33  ;;  %v3686_v8 = vsub.f32 %v5308_v53, %v3558_v25  ;;  %v2336_v60 = vmul.f32 1.442695, %v2223_v30  ;;  %v5309_v62 = vld [vmem:[#allocation2 + $0x130] sm:$0xff]  ;;  %v2155_v10 = vld [vmem:[#allocation3 + $0x168] sm:$0xff] }
 0x529   :  { %v5086_v34 = vpop.eup %5085  ;;  %v3910_v50 = vsel %vm38_vm13, %v3812_v26, 0.0  ;;  %v2224_v41 = vsub.f32 %v10248_v14, %v7992_v7  ;;  %v3559_v57 = vadd.f32 %v5309_v62, %v3470_v17  ;;  %v10249_v30 = vld [vmem:[#allocation208_spill] sm:$0xff]  ;;  %v10251_v33 = vld [vmem:[#allocation210_spill] sm:$0xff]  ;;  %v10256_v62 = vld [vmem:[#allocation211_spill] sm:$0xff] }
 0x52a   :  { %v5088_v3 = vpop.eup %5087  ;;  %vm10250_vm1 = vcmp.ne.s32.totalorder %v10249_v30, 0  ;;  %vm10252_vm9 = vcmp.ne.s32.totalorder %v10251_v33, 0  ;;  %v2156_v25 = vld [vmem:[#allocation3 + $0x170] sm:$0xff]  ;;  %vm10257_vm7 = vcmp.ne.s32.totalorder %v10256_v62, 0 }
 0x52b   :  { %v5090_v28 = vpop.eup %5089  ;;  %v3813_v36 = vsel %vm10250_vm1, %v3685_v55, 0.0  ;;  %v3814_v7 = vsel %vm10252_vm9, %v3686_v8, 0.0  ;;  %v2338_v43 = vmul.f32 1.442695, %v2224_v41  ;;  %v5311_v17 = vld [vmem:[#allocation4 + $0x130] sm:$0xff]  ;;  %v10254_v55 = vld [vmem:[#allocation214_spill] sm:$0xff] }
 0x52c   :  { %v5092_v19 = vpop.eup %5091  ;;  %v3687_v45 = vsub.f32 %v5311_v17, %v3559_v57  ;;  %v2417_v26 = vmul.f32 %v5090_v28, %v2161_v9  ;;  %v2227_v53 = vsub.f32 %v10254_v55, %v10112_v37  ;;  %v5312_v8 = vld [vmem:[#allocation4 + $0x138] sm:$0xff]  ;;  %v10255_v41 = vld [vmem:[#allocation215_spill] sm:$0xff] }
 0x52d   :  { %v5094_v39 = vpop.eup %5093  ;;  %v5313_v28 = vld [vmem:[#allocation2 + $0x148] sm:$0xff] }
 0x52e   :  { %v3815_v57 = vsel %vm10257_vm7, %v3687_v45, 0.0  ;;  %v2344_v30 = vmul.f32 1.442695, %v2227_v53  ;;  %v5317_v53 = vld [vmem:[#allocation2 + $0x150] sm:$0xff]  ;;  %vm10286_vm7 = vcmp.ne.s32.totalorder %v8356_v31, 0 }
 0x534   :  { %v3023_v22 = vpop.xlane.xlu2 %3022 }
 0x535   :  { %v3110_v61 = vadd.f32 %v3023_v22, %v2406_v38  ;;  %v3472_v38 = vmul.f32 0.6931472, %v5084_v48  ;;  %v2411_v48 = vmul.f32 %v5086_v34, %v2155_v10 }
 0x537   :  { %3174 = vst.msk [vmem:[#allocation3 + $0x140] sm:$0xff] %vm38_vm13, %v3110_v61  ;;  %v3908_v61 = vsel %vm38_vm13, %v3811_v52, 0.0  ;;  %v3560_v4 = vadd.f32 %v5310_v46, %v3472_v38  ;;  %v10253_v52 = vld [vmem:[#allocation209_spill] sm:$0xff] }
 0x538   :  { %v3909_v20 = vadd.f32 %v3908_v61, %v3907_v12  ;;  %v2226_v11 = vsub.f32 %v10253_v52, %v10146_v51  ;;  %v3476_v12 = vmul.f32 0.6931472, %v5092_v19  ;;  %v5314_v19 = vld [vmem:[#allocation2 + $0x140] sm:$0xff] }
 0x539   :  { %v5315_v52 = vld [vmem:[#allocation4 + $0x140] sm:$0xff] }
 0x53a   :  { %v3911_v35 = vadd.f32 %v3910_v50, %v3909_v20  ;;  %v2342_v14 = vmul.f32 1.442695, %v2226_v11  ;;  %v3562_v9 = vadd.f32 %v5313_v28, %v3476_v12 }
 0x53c   :  { %v3039_v23 = vpop.xlane.xlu2 %3038 }
 0x53d   :  { %v3029_v22 = vpop.xlane.xlu0 %3028  ;;  %v3118_v0 = vadd.f32 %v3039_v23, %v2414_v32  ;;  %v3373_v32 = vld [vmem:[#allocation3 + $0x160] sm:$0xff]  ;;  %v3914_v23 = vsel %vm38_vm13, %v3814_v7, 0.0  ;;  %v2159_v7 = vld [vmem:[#allocation3 + $0x188] sm:$0xff] }
 0x53e   :  { %v3369_v27 = vld [vmem:[#allocation3 + $0x140] sm:$0xff]  ;;  %v3113_v58 = vadd.f32 %v3029_v22, %v2409_v13  ;;  %v3912_v13 = vsel %vm38_vm13, %v3813_v36, 0.0  ;;  %v3688_v22 = vsub.f32 %v5312_v8, %v3560_v4  ;;  %v2157_v4 = vld [vmem:[#allocation3 + $0x178] sm:$0xff]  ;;  %v10258_v36 = vld [vmem:[#allocation223_spill] sm:$0xff] }
 0x53f   :  { %5095 = vlog2.f32 %v3369_v27  ;;  %3182 = vst.msk [vmem:[#allocation3 + $0x180] sm:$0xff] %vm38_vm13, %v3118_v0  ;;  %v3913_v0 = vadd.f32 %v3912_v13, %v3911_v35  ;;  %v10259_v35 = vld [vmem:[#allocation212_spill] sm:$0xff] }
 0x540   :  { %5097 = vlog2.f32 %v3371_v42  ;;  %3177 = vst.msk [vmem:[#allocation3 + $0x158] sm:$0xff] %vm38_vm13, %v3113_v58  ;;  %v2412_v42 = vmul.f32 %v5088_v3, %v2156_v25  ;;  %v2228_v3 = vsub.f32 %v10255_v41, %v10147_v44  ;;  %v2229_v44 = vsub.f32 %v10258_v36, %v8264_v29  ;;  %v10261_v29 = vld [vmem:[#allocation227_spill] sm:$0xff]  ;;  %v2162_v36 = vld [vmem:[#allocation3 + $0x1a0] sm:$0xff] }
 0x541   :  { %5099 = vpow2.f32 %v2336_v60  ;;  %v3915_v20 = vadd.f32 %v3914_v23, %v3913_v0  ;;  %vm10260_vm5 = vcmp.ne.s32.totalorder %v10259_v35, 0  ;;  %v2230_v13 = vsub.f32 %v10261_v29, %v8333_v15  ;;  %v5316_v23 = vld [vmem:[#allocation4 + $0x148] sm:$0xff]  ;;  %v5320_v35 = vld [vmem:[#allocation2 + $0x160] sm:$0xff] }
 0x542   :  { %5101 = vlog2.f32 %v3373_v32  ;;  %v3816_v25 = vsel %vm10260_vm5, %v3688_v22, 0.0  ;;  %v2346_v32 = vmul.f32 1.442695, %v2228_v3  ;;  %v2348_v55 = vmul.f32 1.442695, %v2229_v44 }
 0x543   :  { %v3918_v22 = vsel %vm38_vm13, %v3816_v25, 0.0  ;;  %v2350_v62 = vmul.f32 1.442695, %v2230_v13  ;;  %vm10287_vm5 = vcmp.ne.s32.totalorder %v8329_v5, 0  ;;  %v2172_v5 = vld [vmem:[#allocation3 + $0x1f0] sm:$0xff] }
 0x544   :  { %v3045_v38 = vpop.xlane.xlu2 %3044 }
 0x545   :  { %v5096_v24 = vpop.eup %5095  ;;  %v3033_v34 = vpop.xlane.xlu0 %3032  ;;  %v3121_v60 = vadd.f32 %v3045_v38, %v2417_v26  ;;  %v2413_v26 = vmul.f32 %v5094_v39, %v2157_v4  ;;  %v10262_v38 = vld [vmem:[#allocation216_spill] sm:$0xff] }
 0x546   :  { %v3035_v51 = vpop.xlane.xlu1 %3034  ;;  %v5098_v61 = vpop.eup %5097  ;;  %v3474_v50 = vmul.f32 0.6931472, %v5096_v24  ;;  %v3115_v27 = vadd.f32 %v3033_v34, %v2411_v48  ;;  %v3916_v48 = vsel %vm38_vm13, %v3815_v57, 0.0  ;;  %v3377_v45 = vld [vmem:[#allocation3 + $0x180] sm:$0xff]  ;;  %vm10263_vm4 = vcmp.ne.s32.totalorder %v10262_v38, 0  ;;  %v10265_v57 = vld [vmem:[#allocation232_spill] sm:$0xff] }
 0x547   :  { %v3116_v58 = vadd.f32 %v3035_v51, %v2412_v42  ;;  %v3372_v37 = vld [vmem:[#allocation3 + $0x158] sm:$0xff]  ;;  %3185 = vst.msk [vmem:[#allocation3 + $0x198] sm:$0xff] %vm38_vm13, %v3121_v60  ;;  %v5100_v10 = vpop.eup %5099  ;;  %v3478_v33 = vmul.f32 0.6931472, %v5098_v61  ;;  %v3917_v17 = vadd.f32 %v3916_v48, %v3915_v20  ;;  %v3690_v42 = vsub.f32 %v5316_v23, %v3562_v9  ;;  %v2160_v9 = vld [vmem:[#allocation3 + $0x190] sm:$0xff] }
 0x548   :  { %v3561_v46 = vadd.f32 %v5314_v19, %v3474_v50  ;;  %5103 = vlog2.f32 %v3372_v37  ;;  %3179 = vst.msk [vmem:[#allocation3 + $0x168] sm:$0xff] %vm38_vm13, %v3115_v27  ;;  %v5102_v12 = vpop.eup %5101  ;;  %v2415_v24 = vmul.f32 %v5100_v10, %v2159_v7  ;;  %v10264_v61 = vld [vmem:[#allocation228_spill] sm:$0xff]  ;;  %v2232_v20 = vsub.f32 %v10265_v57, %v10118_v47  ;;  %v10266_v37 = vld [vmem:[#allocation217_spill] sm:$0xff] }
 0x549   :  { %3180 = vst.msk [vmem:[#allocation3 + $0x170] sm:$0xff] %vm38_vm13, %v3116_v58  ;;  %5105 = vpow2.f32 %v2338_v43  ;;  %v3563_v8 = vadd.f32 %v5317_v53, %v3478_v33  ;;  %v2231_v50 = vsub.f32 %v10264_v61, %v10113_v6  ;;  %v3482_v27 = vmul.f32 0.6931472, %v5102_v12  ;;  %v5319_v4 = vld [vmem:[#allocation2 + $0x158] sm:$0xff] }
 0x54a   :  { %v3689_v11 = vsub.f32 %v5315_v52, %v3561_v46  ;;  %5107 = vpow2.f32 %v2342_v14  ;;  %v3919_v58 = vadd.f32 %v3918_v22, %v3917_v17  ;;  %vm10267_vm2 = vcmp.ne.s32.totalorder %v10266_v37, 0  ;;  %v5318_v46 = vld [vmem:[#allocation4 + $0x150] sm:$0xff]  ;;  %v10268_v47 = vld [vmem:[#allocation233_spill] sm:$0xff] }
 0x54b   :  { %5109 = vpow2.f32 %v2344_v30  ;;  %v3818_v10 = vsel %vm10267_vm2, %v3690_v42, 0.0  ;;  %v3691_v6 = vsub.f32 %v5318_v46, %v3563_v8  ;;  %v2233_v33 = vsub.f32 %v10268_v47, %v10148_v21  ;;  %v5321_v48 = vld [vmem:[#allocation4 + $0x158] sm:$0xff]  ;;  %v10270_v42 = vld [vmem:[#allocation218_spill] sm:$0xff]  ;;  %v5324_v46 = vld [vmem:[#allocation2 + $0x170] sm:$0xff] }
 0x54c   :  { %v3817_v43 = vsel %vm10263_vm4, %v3689_v11, 0.0  ;;  %5111 = vlog2.f32 %v3377_v45  ;;  %v3565_v25 = vadd.f32 %v5320_v35, %v3482_v27  ;;  %v2352_v45 = vmul.f32 1.442695, %v2231_v50  ;;  %v2163_v50 = vld [vmem:[#allocation3 + $0x1a8] sm:$0xff] }
 0x54d   :  { %v3037_v0 = vpop.xlane.xlu0 %3036  ;;  %v3920_v39 = vsel %vm38_vm13, %v3817_v43, 0.0  ;;  %v2354_v13 = vmul.f32 1.442695, %v2232_v20  ;;  %vm10271_vm3 = vcmp.ne.s32.totalorder %v10270_v42, 0  ;;  %v2356_v53 = vmul.f32 1.442695, %v2233_v33 }
 0x54e   :  { %v3041_v34 = vpop.xlane.xlu1 %3040  ;;  %v5104_v51 = vpop.eup %5103  ;;  %v3117_v60 = vadd.f32 %v3037_v0, %v2413_v26  ;;  %v3921_v44 = vadd.f32 %v3920_v39, %v3919_v58  ;;  %v3922_v26 = vsel %vm38_vm13, %v3818_v10, 0.0  ;;  %v3380_v29 = vld [vmem:[#allocation3 + $0x198] sm:$0xff]  ;;  %v3819_v21 = vsel %vm10271_vm3, %v3691_v6, 0.0  ;;  %v5322_v39 = vld [vmem:[#allocation4 + $0x160] sm:$0xff]  ;;  %v5323_v20 = vld [vmem:[#allocation2 + $0x168] sm:$0xff] }
 0x54f   :  { %v3119_v15 = vadd.f32 %v3041_v34, %v2415_v24  ;;  %v3480_v14 = vmul.f32 0.6931472, %v5104_v51  ;;  %v3374_v41 = vld [vmem:[#allocation3 + $0x168] sm:$0xff]  ;;  %v5106_v3 = vpop.eup %5105  ;;  %v10272_v0 = vld [vmem:[#allocation221_spill] sm:$0xff]  ;;  %v3924_v58 = vsel %vm38_vm13, %v3819_v21, 0.0  ;;  %v2235_v57 = vsub.f32 %v8577_v18, %v8614_v40 }
 0x550   :  { %5113 = vlog2.f32 %v3374_v41  ;;  %v3375_v28 = vld [vmem:[#allocation3 + $0x170] sm:$0xff]  ;;  %3181 = vst.msk [vmem:[#allocation3 + $0x178] sm:$0xff] %vm38_vm13, %v3117_v60  ;;  %v5108_v19 = vpop.eup %5107  ;;  %v2416_v11 = vmul.f32 %v5106_v3, %v2160_v9  ;;  %v3923_v24 = vadd.f32 %v3922_v26, %v3921_v44  ;;  %vm10273_vm11 = vcmp.ne.s32.totalorder %v10272_v0, 0  ;;  %v2165_v10 = vld [vmem:[#allocation3 + $0x1b8] sm:$0xff]  ;;  %v5325_v40 = vld [vmem:[#allocation2 + $0x180] sm:$0xff] }
 0x551   :  { %v3564_v30 = vadd.f32 %v5319_v4, %v3480_v14  ;;  %5115 = vlog2.f32 %v3375_v28  ;;  %3183 = vst.msk [vmem:[#allocation3 + $0x188] sm:$0xff] %vm38_vm13, %v3119_v15  ;;  %v5110_v7 = vpop.eup %5109  ;;  %v2418_v12 = vmul.f32 %v5108_v19, %v2162_v36  ;;  %v3693_v60 = vsub.f32 %v5322_v39, %v3565_v25  ;;  %v2164_v19 = vld [vmem:[#allocation3 + $0x1b0] sm:$0xff]  ;;  %v10274_v4 = vld [vmem:[#allocation222_spill] sm:$0xff] }
 0x552   :  { %5117 = vpow2.f32 %v2346_v32  ;;  %v5112_v17 = vpop.eup %5111  ;;  %v10269_v32 = vld [vmem:[#allocation236_spill] sm:$0xff]  ;;  %v3925_v28 = vadd.f32 %v3924_v58, %v3923_v24  ;;  %vm10275_vm8 = vcmp.ne.s32.totalorder %v10274_v4, 0  ;;  %v2419_v36 = vmul.f32 %v5110_v7, %v2163_v50  ;;  %v5326_v35 = vld [vmem:[#allocation4 + $0x168] sm:$0xff] }
 0x553   :  { %5119 = vpow2.f32 %v2348_v55  ;;  %v3692_v52 = vsub.f32 %v5321_v48, %v3564_v30  ;;  %v2234_v23 = vsub.f32 %v10269_v32, %v8533_v16  ;;  %v3490_v16 = vmul.f32 0.6931472, %v5112_v17  ;;  %v5327_v26 = vld [vmem:[#allocation4 + $0x170] sm:$0xff] }
 0x554   :  { %5121 = vpow2.f32 %v2350_v62  ;;  %v3821_v30 = vsel %vm10275_vm8, %v3693_v60, 0.0  ;;  %vm10288_vm4 = vcmp.ne.s32.totalorder %v8379_v59, 0  ;;  %vm10289_vm2 = vcmp.ne.s32.totalorder %v8404_v2, 0 }
 0x555   :  { %v3043_v38 = vpop.xlane.xlu0 %3042  ;;  %v3820_v34 = vsel %vm10273_vm11, %v3692_v52, 0.0  ;;  %5123 = vlog2.f32 %v3380_v29  ;;  %v2358_v47 = vmul.f32 1.442695, %v2234_v23  ;;  %v3569_v33 = vadd.f32 %v5325_v40, %v3490_v16  ;;  %v10276_v23 = vld [vmem:[#allocation224_spill] sm:$0xff]  ;;  %v10278_v16 = vld [vmem:[#allocation225_spill] sm:$0xff] }
 0x556   :  { %v3047_v43 = vpop.xlane.xlu1 %3046  ;;  %v5114_v55 = vpop.eup %5113  ;;  %v3120_v8 = vadd.f32 %v3043_v38, %v2416_v11  ;;  %v3926_v3 = vsel %vm38_vm13, %v3820_v34, 0.0  ;;  %v2360_v52 = vmul.f32 1.442695, %v2235_v57  ;;  %vm10277_vm15 = vcmp.ne.s32.totalorder %v10276_v23, 0  ;;  %v10280_v40 = vld [vmem:[#allocation229_spill] sm:$0xff] }
 0x557   :  { %v3122_v22 = vadd.f32 %v3047_v43, %v2418_v12  ;;  %v5116_v51 = vpop.eup %5115  ;;  %v3484_v15 = vmul.f32 0.6931472, %v5114_v55  ;;  %v3376_v61 = vld [vmem:[#allocation3 + $0x178] sm:$0xff]  ;;  %v3927_v44 = vadd.f32 %v3926_v3, %v3925_v28  ;;  %vm10279_vm0 = vcmp.ne.s32.totalorder %v10278_v16, 0 }
 0x558   :  { %v5118_v27 = vpop.eup %5117  ;;  %v3486_v14 = vmul.f32 0.6931472, %v5116_v51  ;;  %5125 = vlog2.f32 %v3376_v61  ;;  %v3378_v41 = vld [vmem:[#allocation3 + $0x188] sm:$0xff]  ;;  %3184 = vst.msk [vmem:[#allocation3 + $0x190] sm:$0xff] %vm38_vm13, %v3120_v8  ;;  %v5328_v51 = vld [vmem:[#allocation4 + $0x180] sm:$0xff]  ;;  %v2168_v61 = vld [vmem:[#allocation3 + $0x1d0] sm:$0xff] }
 0x559   :  { %v5120_v62 = vpop.eup %5119  ;;  %v3566_v37 = vadd.f32 %v5323_v20, %v3484_v15  ;;  %3186 = vst.msk [vmem:[#allocation3 + $0x1a0] sm:$0xff] %vm38_vm13, %v3122_v22  ;;  %5127 = vlog2.f32 %v3378_v41  ;;  %v3697_v39 = vsub.f32 %v5328_v51, %v3569_v33  ;;  %v2166_v15 = vld [vmem:[#allocation3 + $0x1c0] sm:$0xff]  ;;  %v5329_v41 = vld [vmem:[#allocation2 + $0x178] sm:$0xff]  ;;  %vm10281_vm14 = vcmp.ne.s32.totalorder %v10280_v40, 0 }
 0x55a   :  { %v5122_v9 = vpop.eup %5121  ;;  %5129 = vpow2.f32 %v2352_v45  ;;  %v3567_v6 = vadd.f32 %v5324_v46, %v3486_v14  ;;  %v2421_v18 = vmul.f32 %v5120_v62, %v2165_v10  ;;  %v2420_v45 = vmul.f32 %v5118_v27, %v2164_v19  ;;  %v2167_v14 = vld [vmem:[#allocation3 + $0x1c8] sm:$0xff]  ;;  %v5331_v46 = vld [vmem:[#allocation4 + $0x178] sm:$0xff] }
 0x55b   :  { %5131 = vpow2.f32 %v2354_v13  ;;  %v3694_v25 = vsub.f32 %v5326_v35, %v3566_v37  ;;  %v5124_v48 = vpop.eup %5123  ;;  %v3928_v13 = vsel %vm38_vm13, %v3821_v30, 0.0  ;;  %v5330_v62 = vld [vmem:[#allocation2 + $0x188] sm:$0xff]  ;;  %v2236_v37 = vsub.f32 %v8616_v54, %v8664_v56 }
 0x55c   :  { %5133 = vpow2.f32 %v2356_v53  ;;  %v3695_v12 = vsub.f32 %v5327_v26, %v3567_v6  ;;  %v3929_v55 = vadd.f32 %v3928_v13, %v3927_v44  ;;  %v3496_v50 = vmul.f32 0.6931472, %v5124_v48  ;;  %v10284_v51 = vld [vmem:[#allocation230_spill] sm:$0xff] }
 0x55d   :  { %v3049_v11 = vpop.xlane.xlu0 %3048  ;;  %v3822_v21 = vsel %vm10277_vm15, %v3694_v25, 0.0  ;;  %5135 = vpow2.f32 %v2358_v47  ;;  %v2237_v10 = vsub.f32 %v8618_v63, %v8667_v1  ;;  %v2422_v28 = vmul.f32 %v5122_v9, %v2166_v15  ;;  %v5332_v47 = vld [vmem:[#allocation2 + $0x198] sm:$0xff]  ;;  %v5333_v63 = vld [vmem:[#allocation4 + $0x188] sm:$0xff]  ;;  %v5336_v15 = vld [vmem:[#allocation2 + $0x1a0] sm:$0xff] }
 0x55e   :  { %v3053_v17 = vpop.xlane.xlu1 %3052  ;;  %v5126_v29 = vpop.eup %5125  ;;  %v3123_v32 = vadd.f32 %v3049_v11, %v2419_v36  ;;  %v3930_v53 = vsel %vm38_vm13, %v3822_v21, 0.0  ;;  %v3823_v27 = vsel %vm10279_vm0, %v3695_v12, 0.0  ;;  %v3825_v33 = vsel %vm10281_vm14, %v3697_v39, 0.0  ;;  %v10282_v9 = vld [vmem:[#allocation226_spill] sm:$0xff] }
 0x55f   :  { %v3125_v7 = vadd.f32 %v3053_v17, %v2421_v18  ;;  %v3051_v42 = vpop.xlane.xlu2 %3050  ;;  %v5128_v38 = vpop.eup %5127  ;;  %v3488_v43 = vmul.f32 0.6931472, %v5126_v29  ;;  %v3379_v22 = vld [vmem:[#allocation3 + $0x190] sm:$0xff]  ;;  %v3931_v58 = vadd.f32 %v3930_v53, %v3929_v55  ;;  %v3932_v4 = vsel %vm38_vm13, %v3823_v27, 0.0  ;;  %v5334_v55 = vld [vmem:[#allocation4 + $0x198] sm:$0xff] }
 0x560   :  { %v3124_v24 = vadd.f32 %v3051_v42, %v2420_v45  ;;  %v5130_v8 = vpop.eup %5129  ;;  %3187 = vst.msk [vmem:[#allocation3 + $0x1a8] sm:$0xff] %vm38_vm13, %v3123_v32  ;;  %v3381_v0 = vld [vmem:[#allocation3 + $0x1a0] sm:$0xff]  ;;  %v3492_v34 = vmul.f32 0.6931472, %v5128_v38  ;;  %5137 = vlog2.f32 %v3379_v22  ;;  %v3572_v18 = vadd.f32 %v5332_v47, %v3496_v50  ;;  %v2169_v32 = vld [vmem:[#allocation3 + $0x1d8] sm:$0xff]  ;;  %v2171_v38 = vld [vmem:[#allocation3 + $0x1e8] sm:$0xff] }
 0x561   :  { %v5132_v60 = vpop.eup %5131  ;;  %3189 = vst.msk [vmem:[#allocation3 + $0x1b8] sm:$0xff] %vm38_vm13, %v3125_v7  ;;  %5139 = vlog2.f32 %v3381_v0  ;;  %v3568_v3 = vadd.f32 %v5329_v41, %v3488_v43  ;;  %v2423_v44 = vmul.f32 %v5130_v8, %v2167_v14  ;;  %v3933_v35 = vadd.f32 %v3932_v4, %v3931_v58  ;;  %v2170_v22 = vld [vmem:[#allocation3 + $0x1e0] sm:$0xff]  ;;  %v5335_v0 = vld [vmem:[#allocation2 + $0x190] sm:$0xff] }
 0x562   :  { %3188 = vst.msk [vmem:[#allocation3 + $0x1b0] sm:$0xff] %vm38_vm13, %v3124_v24  ;;  %v3570_v57 = vadd.f32 %v5330_v62, %v3492_v34  ;;  %v5134_v20 = vpop.eup %5133  ;;  %5141 = vpow2.f32 %v2360_v52  ;;  %v2424_v19 = vmul.f32 %v5132_v60, %v2168_v61  ;;  %vm10283_vm1 = vcmp.ne.s32.totalorder %v10282_v9, 0  ;;  %v5337_v27 = vld [vmem:[#allocation4 + $0x190] sm:$0xff]  ;;  %v5338_v62 = vld [vmem:[#allocation4 + $0x1a0] sm:$0xff] }
 0x563   :  { %v3696_v6 = vsub.f32 %v5331_v46, %v3568_v3  ;;  %v5136_v25 = vpop.eup %5135  ;;  %v2362_v17 = vmul.f32 1.442695, %v2236_v37  ;;  %v2364_v45 = vmul.f32 1.442695, %v2237_v10  ;;  %v3700_v53 = vsub.f32 %v5334_v55, %v3572_v18 }
 0x564   :  { %v3698_v1 = vsub.f32 %v5333_v63, %v3570_v57  ;;  %v3936_v8 = vsel %vm38_vm13, %v3825_v33, 0.0  ;;  %vm10285_vm9 = vcmp.ne.s32.totalorder %v10284_v51, 0  ;;  %v2425_v16 = vmul.f32 %v5134_v20, %v2169_v32  ;;  %v5339_v63 = vld [vmem:[#allocation2 + $0x1a8] sm:$0xff] }
 0x565   :  { %v3055_v30 = vpop.xlane.xlu0 %3054  ;;  %v3824_v52 = vsel %vm10283_vm1, %v3696_v6, 0.0  ;;  %v2426_v3 = vmul.f32 %v5136_v25, %v2170_v22  ;;  %v3828_v37 = vsel %vm10286_vm7, %v3700_v53, 0.0  ;;  %vm10290_vm3 = vcmp.ne.s32.totalorder %v8429_v49, 0 }
 0x566   :  { %v3059_v36 = vpop.xlane.xlu1 %3058  ;;  %v3126_v54 = vadd.f32 %v3055_v30, %v2422_v28  ;;  %v5138_v11 = vpop.eup %5137  ;;  %v3934_v29 = vsel %vm38_vm13, %v3824_v52, 0.0  ;;  %v3826_v39 = vsel %vm10285_vm9, %v3698_v1, 0.0  ;;  %v3942_v25 = vsel %vm38_vm13, %v3828_v37, 0.0 }
 0x567   :  { %v3128_v56 = vadd.f32 %v3059_v36, %v2424_v19  ;;  %v3057_v48 = vpop.xlane.xlu2 %3056  ;;  %v3382_v12 = vld [vmem:[#allocation3 + $0x1a8] sm:$0xff]  ;;  %v5140_v13 = vpop.eup %5139  ;;  %v3494_v42 = vmul.f32 0.6931472, %v5138_v11  ;;  %v3935_v23 = vadd.f32 %v3934_v29, %v3933_v35  ;;  %v3938_v10 = vsel %vm38_vm13, %v3826_v39, 0.0  ;;  %v2173_v11 = vld [vmem:[#allocation3 + $0x1f8] sm:$0xff] }
 0x568   :  { %v3127_v26 = vadd.f32 %v3057_v48, %v2423_v44  ;;  %3190 = vst.msk [vmem:[#allocation3 + $0x1c0] sm:$0xff] %vm38_vm13, %v3126_v54  ;;  %v3384_v7 = vld [vmem:[#allocation3 + $0x1b8] sm:$0xff]  ;;  %5143 = vlog2.f32 %v3382_v12  ;;  %v5142_v21 = vpop.eup %5141  ;;  %v3498_v24 = vmul.f32 0.6931472, %v5140_v13  ;;  %v5341_v12 = vld [vmem:[#allocation2 + $0x1b0] sm:$0xff]  ;;  %v5342_v13 = vld [vmem:[#allocation4 + $0x1a8] sm:$0xff] }
 0x569   :  { %3192 = vst.msk [vmem:[#allocation3 + $0x1d0] sm:$0xff] %vm38_vm13, %v3128_v56  ;;  %v3383_v43 = vld [vmem:[#allocation3 + $0x1b0] sm:$0xff]  ;;  %5145 = vlog2.f32 %v3384_v7  ;;  %v3571_v34 = vadd.f32 %v5335_v0, %v3494_v42  ;;  %v3937_v60 = vadd.f32 %v3936_v8, %v3935_v23  ;;  %v2427_v50 = vmul.f32 %v5142_v21, %v2171_v38  ;;  %v5343_v42 = vld [vmem:[#allocation4 + $0x1b8] sm:$0xff] }
 0x56a   :  { %3191 = vst.msk [vmem:[#allocation3 + $0x1c8] sm:$0xff] %vm38_vm13, %v3127_v26  ;;  %5147 = vlog2.f32 %v3383_v43  ;;  %v3573_v61 = vadd.f32 %v5336_v15, %v3498_v24  ;;  %v5344_v43 = vld [vmem:[#allocation4 + $0x1b0] sm:$0xff] }
 0x56b   :  { %5149 = vpow2.f32 %v2362_v17  ;;  %v3699_v58 = vsub.f32 %v5337_v27, %v3571_v34  ;;  %v3939_v20 = vadd.f32 %v3938_v10, %v3937_v60  ;;  %v5340_v17 = vld [vmem:[#allocation2 + $0x1b8] sm:$0xff]  ;;  %v5346_v10 = vld [vmem:[#allocation2 + $0x1d0] sm:$0xff] }
 0x56c   :  { %5151 = vpow2.f32 %v2364_v45  ;;  %v3701_v57 = vsub.f32 %v5338_v62, %v3573_v61 }
 0x56d   :  { %v3061_v41 = vpop.xlane.xlu0 %3060  ;;  %v3827_v4 = vsel %vm10287_vm5, %v3699_v58, 0.0  ;;  %v10291_v58 = vld [vmem:[#allocation234_spill] sm:$0xff] }
 0x56e   :  { %v3065_v14 = vpop.xlane.xlu1 %3064  ;;  %v5144_v28 = vpop.eup %5143  ;;  %v3129_v46 = vadd.f32 %v3061_v41, %v2425_v16  ;;  %v3940_v18 = vsel %vm38_vm13, %v3827_v4, 0.0  ;;  %v3829_v9 = vsel %vm10288_vm4, %v3701_v57, 0.0  ;;  %vm10292_vm11 = vcmp.ne.s32.totalorder %v10291_v58, 0  ;;  %v5345_v57 = vld [vmem:[#allocation2 + $0x1c0] sm:$0xff] }
 0x56f   :  { %v3131_v19 = vadd.f32 %v3065_v14, %v2427_v50  ;;  %v3063_v6 = vpop.xlane.xlu2 %3062  ;;  %v5146_v30 = vpop.eup %5145  ;;  %v3385_v44 = vld [vmem:[#allocation3 + $0x1c0] sm:$0xff]  ;;  %v3500_v47 = vmul.f32 0.6931472, %v5144_v28  ;;  %v3941_v35 = vadd.f32 %v3940_v18, %v3939_v20  ;;  %v3944_v21 = vsel %vm38_vm13, %v3829_v9, 0.0 }
 0x570   :  { %v3130_v36 = vadd.f32 %v3063_v6, %v2426_v3  ;;  %v5148_v40 = vpop.eup %5147  ;;  %v3387_v31 = vld [vmem:[#allocation3 + $0x1d0] sm:$0xff]  ;;  %v3504_v33 = vmul.f32 0.6931472, %v5146_v30  ;;  %5153 = vlog2.f32 %v3385_v44  ;;  %3193 = vst.msk [vmem:[#allocation3 + $0x1d8] sm:$0xff] %vm38_vm13, %v3129_v46  ;;  %v5348_v6 = vld [vmem:[#allocation4 + $0x1c0] sm:$0xff]  ;;  %v5349_v30 = vld [vmem:[#allocation4 + $0x1c8] sm:$0xff] }
 0x571   :  { %3195 = vst.msk [vmem:[#allocation3 + $0x1e8] sm:$0xff] %vm38_vm13, %v3131_v19  ;;  %v5150_v54 = vpop.eup %5149  ;;  %v3386_v56 = vld [vmem:[#allocation3 + $0x1c8] sm:$0xff]  ;;  %v3502_v48 = vmul.f32 0.6931472, %v5148_v40  ;;  %5155 = vlog2.f32 %v3387_v31  ;;  %v3574_v1 = vadd.f32 %v5339_v63, %v3500_v47  ;;  %v3943_v26 = vadd.f32 %v3942_v25, %v3941_v35  ;;  %v10293_v44 = vld [vmem:[#allocation237_spill] sm:$0xff]  ;;  %v5350_v31 = vld [vmem:[#allocation4 + $0x1d0] sm:$0xff] }
 0x572   :  { %v5152_v52 = vpop.eup %5151  ;;  %3194 = vst.msk [vmem:[#allocation3 + $0x1e0] sm:$0xff] %vm38_vm13, %v3130_v36  ;;  %5157 = vlog2.f32 %v3386_v56  ;;  %v3576_v45 = vadd.f32 %v5340_v17, %v3504_v33  ;;  %v2428_v7 = vmul.f32 %v5150_v54, %v2172_v5  ;;  %v5347_v19 = vld [vmem:[#allocation2 + $0x1c8] sm:$0xff]  ;;  %vm10294_vm8 = vcmp.ne.s32.totalorder %v10293_v44, 0 }
 0x573   :  { %v3575_v29 = vadd.f32 %v5341_v12, %v3502_v48  ;;  %v3702_v32 = vsub.f32 %v5342_v13, %v3574_v1  ;;  %v2429_v59 = vmul.f32 %v5152_v52, %v2173_v11  ;;  %v3945_v53 = vadd.f32 %v3944_v21, %v3943_v26  ;;  %v10295_v56 = vld [vmem:[#allocation238_spill] sm:$0xff]  ;;  %v5352_v12 = vld [vmem:[#allocation2 + $0x1d8] sm:$0xff]  ;;  %v10297_v13 = vld [vmem:[#allocation239_spill] sm:$0xff] }
 0x574   :  { %v3704_v23 = vsub.f32 %v5343_v42, %v3576_v45  ;;  %vm10296_vm15 = vcmp.ne.s32.totalorder %v10295_v56, 0  ;;  %v5351_v17 = vld [vmem:[#allocation2 + $0x1e8] sm:$0xff]  ;;  %vm10298_vm0 = vcmp.ne.s32.totalorder %v10297_v13, 0  ;;  %v5353_v42 = vld [vmem:[#allocation2 + $0x1e0] sm:$0xff]  ;;  %v5354_v21 = vld [vmem:[#allocation4 + $0x1d8] sm:$0xff] }
 0x575   :  { %v3067_v38 = vpop.xlane.xlu0 %3066  ;;  %v3703_v24 = vsub.f32 %v5344_v43, %v3575_v29  ;;  %v3830_v55 = vsel %vm10289_vm2, %v3702_v32, 0.0 }
 0x576   :  { %v5154_v8 = vpop.eup %5153  ;;  %v3132_v22 = vadd.f32 %v3067_v38, %v2428_v7  ;;  %v3946_v34 = vsel %vm38_vm13, %v3830_v55, 0.0  ;;  %v3832_v14 = vsel %vm10292_vm11, %v3704_v23, 0.0 }
 0x577   :  { %v3069_v0 = vpop.xlane.xlu2 %3068  ;;  %v5156_v51 = vpop.eup %5155  ;;  %v3506_v15 = vmul.f32 0.6931472, %v5154_v8  ;;  %v3831_v61 = vsel %vm10290_vm3, %v3703_v24, 0.0  ;;  %v3947_v50 = vadd.f32 %v3946_v34, %v3945_v53  ;;  %v3388_v27 = vld [vmem:[#allocation3 + $0x1d8] sm:$0xff]  ;;  %v3950_v20 = vsel %vm38_vm13, %v3832_v14, 0.0  ;;  %v5356_v24 = vld [vmem:[#allocation4 + $0x1e8] sm:$0xff] }
 0x578   :  { %v3133_v39 = vadd.f32 %v3069_v0, %v2429_v59  ;;  %v3390_v60 = vld [vmem:[#allocation3 + $0x1e8] sm:$0xff]  ;;  %v5158_v16 = vpop.eup %5157  ;;  %3196 = vst.msk [vmem:[#allocation3 + $0x1f0] sm:$0xff] %vm38_vm13, %v3132_v22  ;;  %v3510_v2 = vmul.f32 0.6931472, %v5156_v51  ;;  %v3948_v41 = vsel %vm38_vm13, %v3831_v61, 0.0  ;;  %v5355_v59 = vld [vmem:[#allocation4 + $0x1e0] sm:$0xff] }
 0x579   :  { %5159 = vlog2.f32 %v3390_v60  ;;  %v3389_v3 = vld [vmem:[#allocation3 + $0x1e0] sm:$0xff]  ;;  %v3508_v62 = vmul.f32 0.6931472, %v5158_v16  ;;  %v3577_v49 = vadd.f32 %v5345_v57, %v3506_v15  ;;  %v3949_v37 = vadd.f32 %v3948_v41, %v3947_v50 }
 0x57a   :  { %3197 = vst.msk [vmem:[#allocation3 + $0x1f8] sm:$0xff] %vm38_vm13, %v3133_v39  ;;  %5161 = vlog2.f32 %v3388_v27  ;;  %v3579_v28 = vadd.f32 %v5346_v10, %v3510_v2  ;;  %v10299_v22 = vld [vmem:[#allocation241_spill] sm:$0xff]  ;;  %v10301_v60 = vld [vmem:[#allocation242_spill] sm:$0xff]  ;;  %v5357_v27 = vld [vmem:[#allocation2 + $0x1f0] sm:$0xff] }
 0x57b   :  { %5163 = vlog2.f32 %v3389_v3  ;;  %v3578_v46 = vadd.f32 %v5347_v19, %v3508_v62  ;;  %v3705_v4 = vsub.f32 %v5348_v6, %v3577_v49  ;;  %v3951_v18 = vadd.f32 %v3950_v20, %v3949_v37  ;;  %v5358_v3 = vld [vmem:[#allocation2 + $0x1f8] sm:$0xff]  ;;  %v5359_v49 = vld [vmem:[#allocation4 + $0x1f0] sm:$0xff] }
 0x57c   :  { %v3707_v33 = vsub.f32 %v5350_v31, %v3579_v28  ;;  %vm10300_vm14 = vcmp.ne.s32.totalorder %v10299_v22, 0  ;;  %vm10302_vm1 = vcmp.ne.s32.totalorder %v10301_v60, 0  ;;  %v5360_v10 = vld [vmem:[#allocation4 + $0x1f8] sm:$0xff] }
 0x57d   :  { %v3706_v36 = vsub.f32 %v5349_v30, %v3578_v46  ;;  %v3833_v47 = vsel %vm10294_vm8, %v3705_v4, 0.0  ;;  %v4303_v31 = vpop.xlane.xlu0 %4302 }
 0x57e   :  { %v3952_v35 = vsel %vm38_vm13, %v3833_v47, 0.0  ;;  %v3835_v32 = vsel %vm10298_vm0, %v3707_v33, 0.0 }
 0x57f   :  { %v5160_v40 = vpop.eup %5159  ;;  %v3391_v54 = vld [vmem:[#allocation3 + $0x1f0] sm:$0xff]  ;;  %v3834_v48 = vsel %vm10296_vm15, %v3706_v36, 0.0  ;;  %v3953_v63 = vadd.f32 %v3952_v35, %v3951_v18  ;;  %v3956_v53 = vsel %vm38_vm13, %v3835_v32, 0.0  ;;  %v4306_v35 = vcvt.f32.s32 %v4303_v31 }
 0x580   :  { %v5162_v25 = vpop.eup %5161  ;;  %v3516_v5 = vmul.f32 0.6931472, %v5160_v40  ;;  %5165 = vlog2.f32 %v3391_v54  ;;  %v3954_v26 = vsel %vm38_vm13, %v3834_v48, 0.0  ;;  %v4305_v40 = vpop.xlane.xlu1 %4304 }
 0x581   :  { %v5164_v1 = vpop.eup %5163  ;;  %v3392_v9 = vld [vmem:[#allocation3 + $0x1f8] sm:$0xff]  ;;  %v3512_v52 = vmul.f32 0.6931472, %v5162_v25  ;;  %v3955_v7 = vadd.f32 %v3954_v26, %v3953_v63  ;;  %v4307_v33 = vcvt.f32.s32 %v4305_v40 }
 0x582   :  { %v3514_v11 = vmul.f32 0.6931472, %v5164_v1  ;;  %5167 = vlog2.f32 %v3392_v9  ;;  %v3582_v45 = vadd.f32 %v5351_v17, %v3516_v5 }
 0x583   :  { %v3580_v29 = vadd.f32 %v5352_v12, %v3512_v52  ;;  %v3957_v34 = vadd.f32 %v3956_v53, %v3955_v7  ;;  %v4308_v25 = vshll.u32 %v4307_v33, 16 }
 0x584   :  { %v3581_v23 = vadd.f32 %v5353_v42, %v3514_v11  ;;  %v3710_v55 = vsub.f32 %v5356_v24, %v3582_v45 }
 0x585   :  { %v3708_v38 = vsub.f32 %v5354_v21, %v3580_v29  ;;  %v4309_v54 = vadd.s32 %v4308_v25, %v4306_v35 }
 0x586   :  { %v3709_v43 = vsub.f32 %v5355_v59, %v3581_v23  ;;  %v5166_v8 = vpop.eup %5165  ;;  %v3838_v14 = vsel %vm3774_vm10, %v3710_v55, 0.0 }
 0x587   :  { %v3836_v0 = vsel %vm10300_vm14, %v3708_v38, 0.0  ;;  %v3518_v39 = vmul.f32 0.6931472, %v5166_v8  ;;  %v3962_v19 = vsel %vm38_vm13, %v3838_v14, 0.0  ;;  %v4310_v5 = vrot.slane %v4309_v54, 4 }
 0x588   :  { %v5168_v51 = vpop.eup %5167  ;;  %v3837_v15 = vsel %vm10302_vm1, %v3709_v43, 0.0  ;;  %v3958_v61 = vsel %vm38_vm13, %v3836_v0, 0.0 }
 0x589   :  { %v3520_v50 = vmul.f32 0.6931472, %v5168_v51  ;;  %v3959_v16 = vadd.f32 %v3958_v61, %v3957_v34  ;;  %v3583_v2 = vadd.f32 %v5357_v27, %v3518_v39  ;;  %v3960_v41 = vsel %vm38_vm13, %v3837_v15, 0.0 }
 0x58a   :  { %v4311_v56 = vadd.s32 %v4310_v5, %v4309_v54 }
 0x58b   :  { %v3584_v62 = vadd.f32 %v5358_v3, %v3520_v50  ;;  %v3961_v57 = vadd.f32 %v3960_v41, %v3959_v16  ;;  %v3711_v37 = vsub.f32 %v5359_v49, %v3583_v2 }
 0x58c   :  { %v4312_v63 = vrot.slane %v4311_v56, 2 }
 0x58d   :  { %v3712_v28 = vsub.f32 %v5360_v10, %v3584_v62  ;;  %v3839_v6 = vsel %vm3775_vm6, %v3711_v37, 0.0  ;;  %v3963_v4 = vadd.f32 %v3962_v19, %v3961_v57 }
 0x58e   :  { %v3964_v36 = vsel %vm38_vm13, %v3839_v6, 0.0  ;;  %v4313_v52 = vadd.s32 %v4312_v63, %v4311_v56 }
 0x58f   :  { %v3840_v30 = vsel %vm3776_vm12, %v3712_v28, 0.0  ;;  %v3965_v44 = vadd.f32 %v3964_v36, %v3963_v4 }
 0x590   :  { %v3966_v47 = vsel %vm38_vm13, %v3840_v30, 0.0  ;;  %v4314_v45 = vrot.slane %v4313_v52, 1  ;;  %vm4317_vm13 = vcmask 0  }
 0x591   :  { %v3967_v18 = vadd.f32 %v3966_v47, %v3965_v44 }
 0x592   :  { %v4315_v29 = vadd.s32 %v4314_v45, %v4313_v52 }
 0x593   :  { %3968 = vadd.xlane.f32.xlu2 %v3967_v18 }
 0x606   :  { %v3969_v48 = vpop.xlane.xlu2 %3968 }
 0x607   :  { %v3970_v1 = vrot.slane %v3969_v48, 4 }
 0x609   :  { %v3971_v9 = vadd.f32 %v3970_v1, %v3969_v48 }
 0x60b   :  { %v3972_v11 = vrot.slane %v3971_v9, 2 }
 0x60d   :  { %v3973_v17 = vadd.f32 %v3972_v11, %v3971_v9 }
 0x60f   :  { %v3974_v26 = vrot.slane %v3973_v17, 1 }
 0x611   :  { %v3975_v12 = vadd.f32 %v3974_v26, %v3973_v17 }
 0x613   :  { %4770 = vpush %v3975_v12 }
 0x614   :  { %4772 = vpush %v4315_v29 }
 0x644   :  { %s4771_s24 = spop %4770 }
 0x645   :  { %v3977_v13 = vstv %s4771_s24  ;;  %s4773_s25 = spop %4772 }
 0x646   :  { %v3978_v32 = vsub.f32 0.0, %v3977_v13  ;;  %v4319_v7 = vstv %s4773_s25 }
 0x647   :  { %4320 = vst.msk [vmem:[#allocation9] sm:$0x1] %vm4317_vm13, %v4319_v7 }
 0x648   :  { %4318 = vst.msk [vmem:[#allocation8] sm:$0x1] %vm4317_vm13, %v3978_v32  ;;  %4342 = dma.vmem_to_hbm [thread:$0]  %s4338_s16, 16, %s4340_s19, [#allocation10]  }
 0x649   :  { %4331 = dma.vmem_to_hbm [thread:$0]  %s4327_s21, 16, %s4329_s1, [#allocation7]  }
 0x64a   :  { %5435 = dma.done.wait [#allocation7], 16  }
 0x64b   :  { %5436 = vsyncadd [#allocation7], 4294967280 }
 0x64c   :  { %5437 = dma.done.wait [#allocation10], 16  }
 0x64d   :  { %5438 = vsyncadd [#allocation10], 4294967280 }
 0x64e   :  { %4351 = vsyncpa [#allocation6], 1 }
 0x64f   :  { %4352 = vsyncpa [#allocation7], 1 }
 0x650   :  { %4353 = vsyncpa [#allocation10], 1 }

</bundles_post_ra>
